<compile_context>
chip_gen: v7x
topology: tpu7x:2x2x1
jax: 0.10.0
libtpu: 0.0.40
codegen_flags: <defaults>
</compile_context>

<pallas_src>
import functools

import jax
import jax.numpy as jnp
import numpy as np
from jax.experimental import pallas as pl
from jax.experimental.pallas import tpu as pltpu


# -----------------------------------------------------------------------------
# Model hyper-parameters (small, consistent with the module's constructor)
# -----------------------------------------------------------------------------
INPUT_DIM = 16
D_MODEL = 32
NHEAD = 4
NUM_LAYERS = 2
DIM_FF = 64
MAX_SEQ_LEN = 64
HEAD_DIM = D_MODEL // NHEAD
LN_EPS = 1e-5
DEFAULT_BATCH_TILE = 128       # max sequences per grid step


def _layernorm(x, w, b):
    # PyTorch LayerNorm: normalize over last dim, biased variance, eps=1e-5.
    mu = jnp.mean(x, axis=-1, keepdims=True)
    xc = x - mu
    var = jnp.mean(xc * xc, axis=-1, keepdims=True)
    inv = jax.lax.rsqrt(var + LN_EPS)
    return xc * inv * w + b


def _softmax_last(s):
    # f32 softmax.  approx reciprocal (EUP slot) costs ~2^-12 relative error per
    # row, well below the bf16-matmul noise floor (~1e-2 rel vs f32 reference).
    s = s - jnp.max(s, axis=-1, keepdims=True)
    p = jnp.exp(s)
    return p * pl.reciprocal(jnp.sum(p, axis=-1, keepdims=True), approx=True)


def protein_transformer_kernel(
    # inputs
    x_ref,        # (BT*S, INPUT_DIM)       bf16, flattened batch tile
    pe_ref,       # (S, D_MODEL)            f32 positional encoding slice
    win_ref,      # (INPUT_DIM, D_MODEL)    bf16, pre-transposed (input-major)
    bin_ref,      # (1, D_MODEL)            f32
    wqkv_ref,     # (L, D_MODEL, 3*D_MODEL) bf16
    bqkv_ref,     # (L, 1, 3*D_MODEL)       f32
    wo_ref,       # (L, D_MODEL, D_MODEL)   bf16
    bo_ref,       # (L, 1, D_MODEL)         f32
    ln1w_ref,     # (L, 1, D_MODEL)         f32
    ln1b_ref,     # (L, 1, D_MODEL)         f32
    w1_ref,       # (L, D_MODEL, DIM_FF)    bf16
    b1_ref,       # (L, 1, DIM_FF)          f32
    w2_ref,       # (L, DIM_FF, D_MODEL)    bf16
    b2_ref,       # (L, 1, D_MODEL)         f32
    ln2w_ref,     # (L, 1, D_MODEL)         f32
    ln2b_ref,     # (L, 1, D_MODEL)         f32
    wp1_ref,      # (D_MODEL, D_MODEL//2)   bf16, pre-transposed
    bp1_ref,      # (1, D_MODEL//2)         f32
    wp2_ref,      # (1, D_MODEL//2)         bf16 (original row-vector layout)
    bp2_ref,      # (1, 1)                  f32
    # outputs
    out_ref,      # (1, 1, BT)              f32, lane-dense output row
    *,
    nhead,
):
    seq, d_model = pe_ref.shape
    rows = x_ref.shape[0]
    bt = rows // seq
    num_layers = wqkv_ref.shape[0]
    head_dim = d_model // nhead
    scale = 1.0 / np.sqrt(head_dim)

    # ---- input projection + positional encoding (dropout = identity) -------
    h = jnp.dot(x_ref[...], win_ref[...],
                preferred_element_type=jnp.float32) + bin_ref[...]
    h = (h.reshape(bt, seq, d_model) + pe_ref[...]).reshape(bt * seq, d_model)

    # ---- transformer encoder layers (post-norm, ReLU activation) -----------
    for l in range(num_layers):
        # -- multi-head self attention (batched over the BT sequences) --
        qkv = jnp.dot(h.astype(jnp.bfloat16), wqkv_ref[l],
                      preferred_element_type=jnp.float32) + bqkv_ref[l]
        # Fold 1/sqrt(head_dim) into q once (bt*S*d_model multiplies) instead
        # of scaling each (bt, S, S) score tensor per head.
        q3 = (qkv[:, 0 * d_model:1 * d_model] * scale
              ).reshape(bt, seq, d_model).astype(jnp.bfloat16)
        k3 = qkv[:, 1 * d_model:2 * d_model
                 ].reshape(bt, seq, d_model).astype(jnp.bfloat16)
        v3 = qkv[:, 2 * d_model:3 * d_model
                 ].reshape(bt, seq, d_model).astype(jnp.bfloat16)

        # Static 4-head loop: each einsum is a single-batch-dim 3-D batched
        # matmul over BT sequences (robust Mosaic lowering).  Scores/softmax in
        # f32; MXU operands in bf16.
        head_outs = []
        for hd in range(nhead):
            sl = slice(hd * head_dim, (hd + 1) * head_dim)
            s = jnp.einsum('bqd,bkd->bqk', q3[:, :, sl], k3[:, :, sl],
                           preferred_element_type=jnp.float32)
            p = _softmax_last(s)
            head_outs.append(
                jnp.einsum('bqk,bkd->bqd', p.astype(jnp.bfloat16), v3[:, :, sl],
                           preferred_element_type=jnp.float32))
        attn = jnp.concatenate(head_outs, axis=-1).reshape(bt * seq, d_model)
        attn = jnp.dot(attn.astype(jnp.bfloat16), wo_ref[l],
                       preferred_element_type=jnp.float32) + bo_ref[l]

        h = _layernorm(h + attn, ln1w_ref[l], ln1b_ref[l])

        # -- feed-forward --
        ff = jnp.dot(h.astype(jnp.bfloat16), w1_ref[l],
                     preferred_element_type=jnp.float32) + b1_ref[l]
        ff = jnp.maximum(ff, 0.0)
        ff = jnp.dot(ff.astype(jnp.bfloat16), w2_ref[l],
                     preferred_element_type=jnp.float32) + b2_ref[l]

        h = _layernorm(h + ff, ln2w_ref[l], ln2b_ref[l])

    # ---- mean pooling over seq (no padding mask) ----------------------------
    pooled = jnp.mean(h.reshape(bt, seq, d_model), axis=1)        # (BT, d) f32

    # ---- output head: Linear -> ReLU -> Linear ------------------------------
    o1 = jnp.dot(pooled.astype(jnp.bfloat16), wp1_ref[...],
                 preferred_element_type=jnp.float32) + bp1_ref[...]
    o1 = jnp.maximum(o1, 0.0)                                     # (BT, d/2)
    # Emit the output directly as a lane-dense (1, BT) row (unmasked stores).
    o = jnp.dot(wp2_ref[...], o1.T.astype(jnp.bfloat16),
                preferred_element_type=jnp.float32) + bp2_ref[...]  # (1, BT)

    out_ref[0] = o


# -----------------------------------------------------------------------------
# Parameter construction (deterministic, in-script; weights stored input-major)
# -----------------------------------------------------------------------------
def make_params(key):
    def nrm(k, shape, std=0.05):
        return jax.random.normal(k, shape, dtype=jnp.float32) * std

    keys = jax.random.split(key, 16)
    ki = iter(keys)

    p = {}
    p["win"] = nrm(next(ki), (INPUT_DIM, D_MODEL))
    p["bin"] = nrm(next(ki), (1, D_MODEL))

    # wqkv is nn.MultiheadAttention's in_proj_weight.T with columns ordered
    # [Wq | Wk | Wv] (in_proj_weight rows are packed [Wq; Wk; Wv]).  Any
    # host-side conversion from a real checkpoint must preserve that ordering.
    p["wqkv"] = nrm(next(ki), (NUM_LAYERS, D_MODEL, 3 * D_MODEL))
    p["bqkv"] = nrm(next(ki), (NUM_LAYERS, 1, 3 * D_MODEL))
    p["wo"] = nrm(next(ki), (NUM_LAYERS, D_MODEL, D_MODEL))
    p["bo"] = nrm(next(ki), (NUM_LAYERS, 1, D_MODEL))
    p["ln1w"] = jnp.ones((NUM_LAYERS, 1, D_MODEL), jnp.float32)
    p["ln1b"] = jnp.zeros((NUM_LAYERS, 1, D_MODEL), jnp.float32)
    p["w1"] = nrm(next(ki), (NUM_LAYERS, D_MODEL, DIM_FF))
    p["b1"] = nrm(next(ki), (NUM_LAYERS, 1, DIM_FF))
    p["w2"] = nrm(next(ki), (NUM_LAYERS, DIM_FF, D_MODEL))
    p["b2"] = nrm(next(ki), (NUM_LAYERS, 1, D_MODEL))
    p["ln2w"] = jnp.ones((NUM_LAYERS, 1, D_MODEL), jnp.float32)
    p["ln2b"] = jnp.zeros((NUM_LAYERS, 1, D_MODEL), jnp.float32)

    d_half = D_MODEL // 2
    p["wp1"] = nrm(next(ki), (D_MODEL, d_half))
    p["bp1"] = nrm(next(ki), (1, d_half))
    p["wp2"] = nrm(next(ki), (1, d_half))
    p["bp2"] = nrm(next(ki), (1, 1))
    return p


def make_positional_encoding(max_len, d_model):
    # Matches PositionalEncoding buffer (rows 0..max_len-1).
    position = np.arange(0, max_len, dtype=np.float32)[:, None]
    div_term = np.exp(
        np.arange(0, d_model, 2, dtype=np.float32) * (-np.log(10000.0) / d_model))
    pe = np.zeros((max_len, d_model), dtype=np.float32)
    pe[:, 0::2] = np.sin(position * div_term)
    pe[:, 1::2] = np.cos(position * div_term)
    return jnp.asarray(pe)


# Precompute once for MAX_SEQ_LEN; wrapper just slices (avoids host recompute).
PE_TABLE = make_positional_encoding(MAX_SEQ_LEN, D_MODEL)

_WEIGHT_NAMES = ["win", "bin", "wqkv", "bqkv", "wo", "bo", "ln1w", "ln1b",
                 "w1", "b1", "w2", "b2", "ln2w", "ln2b",
                 "wp1", "bp1", "wp2", "bp2"]
# Matmul weights fed to the MXU are pre-cast to bf16 on the host.
_MXU_WEIGHTS = frozenset({"win", "wqkv", "wo", "w1", "w2", "wp1", "wp2"})


def _round_up(n, m):
    return (n + m - 1) // m * m


def _pick_batch_tile(batch, seq, max_tile):
    """Sequences per grid step.

    * >= 2 grid blocks whenever the batch is big enough to split, so both
      TensorCores of a v7x megacore get work (v5e/v6e unaffected).
    * bt sized to the batch so padding waste stays small (< 16 rows) instead
      of up to bt-1.
    * (bt*seq) kept a multiple of 16 so the bf16 input block respects the
      packed sublane tile.
    """
    min_blocks = 2 if batch > 8 else 1
    target_blocks = max(min_blocks, -(-batch // max_tile))
    bt = min(max_tile, _round_up(-(-batch // target_blocks), 8))
    if (bt * seq) % 16 != 0:
        bt = min(max_tile, _round_up(bt, 16))
    return bt


# -----------------------------------------------------------------------------
# Wrapper
# -----------------------------------------------------------------------------
def protein_transformer_forward(x, params, batch_tile=DEFAULT_BATCH_TILE):
    """x: (B, S, INPUT_DIM) float32 -> (B, 1) float32."""
    B, S, in_dim = x.shape
    assert in_dim == INPUT_DIM
    assert S <= MAX_SEQ_LEN

    bt = _pick_batch_tile(B, S, batch_tile)
    padded_B = _round_up(B, bt)
    if padded_B != B:
        x = jnp.pad(x, ((0, padded_B - B), (0, 0), (0, 0)))
    num_blocks = padded_B // bt

    # bf16 + flattened (B*S, IN) rows at the kernel boundary: halves the x DMA
    # bytes (the MXU consumes bf16 anyway), keeps each block's DMA fully
    # contiguous, and avoids any lane->sublane reshape inside the kernel.
    x_flat = x.reshape(padded_B * S, INPUT_DIM).astype(jnp.bfloat16)

    pe = PE_TABLE[:S]

    def full_spec(a):
        nd = a.ndim
        return pl.BlockSpec(a.shape, lambda b, _nd=nd: (0,) * _nd)

    weights = [params[n].astype(jnp.bfloat16) if n in _MXU_WEIGHTS else params[n]
               for n in _WEIGHT_NAMES]

    in_specs = [
        pl.BlockSpec((bt * S, INPUT_DIM), lambda b: (b, 0)),     # x batch tile
        full_spec(pe),                                           # pe
    ] + [full_spec(w) for w in weights]

    kernel = functools.partial(protein_transformer_kernel, nhead=NHEAD)

    out = pl.pallas_call(
        kernel,
        out_shape=jax.ShapeDtypeStruct((num_blocks, 1, bt), jnp.float32),
        grid=(num_blocks,),
        in_specs=in_specs,
        out_specs=pl.BlockSpec((1, 1, bt), lambda b: (b, 0, 0)),
        compiler_params=pltpu.CompilerParams(
            dimension_semantics=("parallel",),
            # Under v7x's 64 MiB physical VMEM; v5e/v6e (128 MiB) have headroom.
            vmem_limit_bytes=48 * 1024 * 1024),
    )(x_flat, pe, *weights)

    # (num_blocks, 1, bt) -> (padded_B,) -> (B, 1)
    return out.reshape(padded_B)[:B].reshape(B, 1)


# -----------------------------------------------------------------------------
# Demo
# -----------------------------------------------------------------------------
if __name__ == "__main__":
    key = jax.random.PRNGKey(0)
    k_x, k_p = jax.random.split(key)

    B, S = 2, 8
    x = jax.random.normal(k_x, (B, S, INPUT_DIM), dtype=jnp.float32)
    params = make_params(k_p)

    out = protein_transformer_forward(x, params)
    out = jax.block_until_ready(out)

    assert out.shape == (B, 1), out.shape
    assert bool(jnp.all(jnp.isfinite(out)))
    print("KERNEL_OK")
</pallas_src>

<mosaic_0001>
module attributes {stable_mosaic.version = 11 : i64} {
  func.func @protein_transformer_kernel(%arg0: i32, %arg1: memref<64x16xbf16, #tpu.memory_space<vmem>>, %arg2: memref<8x32xf32, #tpu.memory_space<vmem>>, %arg3: memref<16x32xbf16, #tpu.memory_space<vmem>>, %arg4: memref<1x32xf32, #tpu.memory_space<vmem>>, %arg5: memref<2x32x96xbf16, #tpu.memory_space<vmem>>, %arg6: memref<2x1x96xf32, #tpu.memory_space<vmem>>, %arg7: memref<2x32x32xbf16, #tpu.memory_space<vmem>>, %arg8: memref<2x1x32xf32, #tpu.memory_space<vmem>>, %arg9: memref<2x1x32xf32, #tpu.memory_space<vmem>>, %arg10: memref<2x1x32xf32, #tpu.memory_space<vmem>>, %arg11: memref<2x32x64xbf16, #tpu.memory_space<vmem>>, %arg12: memref<2x1x64xf32, #tpu.memory_space<vmem>>, %arg13: memref<2x64x32xbf16, #tpu.memory_space<vmem>>, %arg14: memref<2x1x32xf32, #tpu.memory_space<vmem>>, %arg15: memref<2x1x32xf32, #tpu.memory_space<vmem>>, %arg16: memref<2x1x32xf32, #tpu.memory_space<vmem>>, %arg17: memref<32x16xbf16, #tpu.memory_space<vmem>>, %arg18: memref<1x16xf32, #tpu.memory_space<vmem>>, %arg19: memref<1x16xbf16, #tpu.memory_space<vmem>>, %arg20: memref<1x1xf32, #tpu.memory_space<vmem>>, %arg21: memref<1x1x8xf32, #tpu.memory_space<vmem>>) attributes {dimension_semantics = [#tpu.dimension_semantics<parallel>], iteration_bounds = array<i64: 1>, scalar_prefetch = 0 : i64, scratch_operands = 0 : i64, tpu.core_type = #tpu.core_type<tc>, window_params = [{transform_indices = @transform_0, window_bounds = array<i64: 64, 16>}, {pipeline_mode = #tpu.pipeline_mode<synchronous>, transform_indices = @transform_1, window_bounds = array<i64: 8, 32>}, {pipeline_mode = #tpu.pipeline_mode<synchronous>, transform_indices = @transform_2, window_bounds = array<i64: 16, 32>}, {pipeline_mode = #tpu.pipeline_mode<synchronous>, transform_indices = @transform_3, window_bounds = array<i64: 1, 32>}, {pipeline_mode = #tpu.pipeline_mode<synchronous>, transform_indices = @transform_4, window_bounds = array<i64: 2, 32, 96>}, {pipeline_mode = #tpu.pipeline_mode<synchronous>, transform_indices = @transform_5, window_bounds = array<i64: 2, 1, 96>}, {pipeline_mode = #tpu.pipeline_mode<synchronous>, transform_indices = @transform_6, window_bounds = array<i64: 2, 32, 32>}, {pipeline_mode = #tpu.pipeline_mode<synchronous>, transform_indices = @transform_7, window_bounds = array<i64: 2, 1, 32>}, {pipeline_mode = #tpu.pipeline_mode<synchronous>, transform_indices = @transform_8, window_bounds = array<i64: 2, 1, 32>}, {pipeline_mode = #tpu.pipeline_mode<synchronous>, transform_indices = @transform_9, window_bounds = array<i64: 2, 1, 32>}, {pipeline_mode = #tpu.pipeline_mode<synchronous>, transform_indices = @transform_10, window_bounds = array<i64: 2, 32, 64>}, {pipeline_mode = #tpu.pipeline_mode<synchronous>, transform_indices = @transform_11, window_bounds = array<i64: 2, 1, 64>}, {pipeline_mode = #tpu.pipeline_mode<synchronous>, transform_indices = @transform_12, window_bounds = array<i64: 2, 64, 32>}, {pipeline_mode = #tpu.pipeline_mode<synchronous>, transform_indices = @transform_13, window_bounds = array<i64: 2, 1, 32>}, {pipeline_mode = #tpu.pipeline_mode<synchronous>, transform_indices = @transform_14, window_bounds = array<i64: 2, 1, 32>}, {pipeline_mode = #tpu.pipeline_mode<synchronous>, transform_indices = @transform_15, window_bounds = array<i64: 2, 1, 32>}, {pipeline_mode = #tpu.pipeline_mode<synchronous>, transform_indices = @transform_16, window_bounds = array<i64: 32, 16>}, {pipeline_mode = #tpu.pipeline_mode<synchronous>, transform_indices = @transform_17, window_bounds = array<i64: 1, 16>}, {pipeline_mode = #tpu.pipeline_mode<synchronous>, transform_indices = @transform_18, window_bounds = array<i64: 1, 16>}, {pipeline_mode = #tpu.pipeline_mode<synchronous>, transform_indices = @transform_19, window_bounds = array<i64: 1, 1>}, {transform_indices = @transform_20, window_bounds = array<i64: 1, 1, 8>}]} {
    %c0 = arith.constant 0 : index
    %c0_0 = arith.constant 0 : index
    %0 = vector.load %arg1[%c0, %c0_0] : memref<64x16xbf16, #tpu.memory_space<vmem>>, vector<64x16xbf16>
    %c0_1 = arith.constant 0 : index
    %c0_2 = arith.constant 0 : index
    %1 = vector.load %arg3[%c0_1, %c0_2] : memref<16x32xbf16, #tpu.memory_space<vmem>>, vector<16x32xbf16>
    %cst = arith.constant dense<0.000000e+00> : vector<64x32xf32>
    %2 = tpu.matmul %0, %1, %cst {dimension_numbers = #tpu.dot_dimension_numbers<[1], [0], [0], [1], [0, 0, 1, 1], [], []>} : vector<64x16xbf16>, vector<16x32xbf16>, vector<64x32xf32> -> vector<64x32xf32>
    %c0_3 = arith.constant 0 : index
    %c0_4 = arith.constant 0 : index
    %3 = vector.load %arg4[%c0_3, %c0_4] : memref<1x32xf32, #tpu.memory_space<vmem>>, vector<1x32xf32>
    %4 = vector.broadcast %3 : vector<1x32xf32> to vector<64x32xf32>
    %5 = arith.addf %2, %4 : vector<64x32xf32>
    %6 = vector.shape_cast %5 : vector<64x32xf32> to vector<8x8x32xf32>
    %c0_5 = arith.constant 0 : index
    %c0_6 = arith.constant 0 : index
    %7 = vector.load %arg2[%c0_5, %c0_6] : memref<8x32xf32, #tpu.memory_space<vmem>>, vector<8x32xf32>
    %8 = vector.shape_cast %7 : vector<8x32xf32> to vector<1x8x32xf32>
    %9 = vector.broadcast %8 : vector<1x8x32xf32> to vector<8x8x32xf32>
    %10 = arith.addf %6, %9 : vector<8x8x32xf32>
    %11 = vector.shape_cast %10 : vector<8x8x32xf32> to vector<64x32xf32>
    %12 = arith.truncf %11 : vector<64x32xf32> to vector<64x32xbf16>
    %c0_7 = arith.constant 0 : index
    %c0_8 = arith.constant 0 : index
    %c0_9 = arith.constant 0 : index
    %13 = vector.load %arg5[%c0_7, %c0_8, %c0_9] : memref<2x32x96xbf16, #tpu.memory_space<vmem>>, vector<1x32x96xbf16>
    %14 = vector.shape_cast %13 : vector<1x32x96xbf16> to vector<32x96xbf16>
    %cst_10 = arith.constant dense<0.000000e+00> : vector<64x96xf32>
    %15 = tpu.matmul %12, %14, %cst_10 {dimension_numbers = #tpu.dot_dimension_numbers<[1], [0], [0], [1], [0, 0, 1, 1], [], []>} : vector<64x32xbf16>, vector<32x96xbf16>, vector<64x96xf32> -> vector<64x96xf32>
    %c0_11 = arith.constant 0 : index
    %c0_12 = arith.constant 0 : index
    %c0_13 = arith.constant 0 : index
    %16 = vector.load %arg6[%c0_11, %c0_12, %c0_13] : memref<2x1x96xf32, #tpu.memory_space<vmem>>, vector<1x1x96xf32>
    %17 = vector.shape_cast %16 : vector<1x1x96xf32> to vector<1x96xf32>
    %18 = vector.broadcast %17 : vector<1x96xf32> to vector<64x96xf32>
    %19 = arith.addf %15, %18 : vector<64x96xf32>
    %20 = vector.extract_strided_slice %19 {offsets = [0, 0], sizes = [64, 32], strides = [1, 1]} : vector<64x96xf32> to vector<64x32xf32>
    %cst_14 = arith.constant 0.353553385 : f32
    %21 = vector.broadcast %cst_14 : f32 to vector<64x32xf32>
    %22 = arith.mulf %20, %21 : vector<64x32xf32>
    %23 = vector.shape_cast %22 : vector<64x32xf32> to vector<8x8x32xf32>
    %24 = arith.truncf %23 : vector<8x8x32xf32> to vector<8x8x32xbf16>
    %25 = vector.extract_strided_slice %19 {offsets = [0, 32], sizes = [64, 32], strides = [1, 1]} : vector<64x96xf32> to vector<64x32xf32>
    %26 = vector.shape_cast %25 : vector<64x32xf32> to vector<8x8x32xf32>
    %27 = arith.truncf %26 : vector<8x8x32xf32> to vector<8x8x32xbf16>
    %28 = vector.extract_strided_slice %19 {offsets = [0, 64], sizes = [64, 32], strides = [1, 1]} : vector<64x96xf32> to vector<64x32xf32>
    %29 = vector.shape_cast %28 : vector<64x32xf32> to vector<8x8x32xf32>
    %30 = arith.truncf %29 : vector<8x8x32xf32> to vector<8x8x32xbf16>
    %31 = vector.extract_strided_slice %24 {offsets = [0, 0, 0], sizes = [8, 8, 8], strides = [1, 1, 1]} : vector<8x8x32xbf16> to vector<8x8x8xbf16>
    %32 = vector.extract_strided_slice %27 {offsets = [0, 0, 0], sizes = [8, 8, 8], strides = [1, 1, 1]} : vector<8x8x32xbf16> to vector<8x8x8xbf16>
    "tpu.trace_start"() <{level = 10 : i32, message = "bqd,bkd->bqk"}> : () -> ()
    %cst_15 = arith.constant dense<0.000000e+00> : vector<8x8x8xf32>
    %33 = tpu.matmul %31, %32, %cst_15 {dimension_numbers = #tpu.dot_dimension_numbers<[2], [2], [1], [1], [0, 0, 0, 1, 1, 1], [0], [0]>} : vector<8x8x8xbf16>, vector<8x8x8xbf16>, vector<8x8x8xf32> -> vector<8x8x8xf32>
    "tpu.trace_stop"() : () -> ()
    %cst_16 = arith.constant dense<0xFF800000> : vector<8x8xf32>
    %34 = vector.multi_reduction <maximumf>, %33, %cst_16 [2] : vector<8x8x8xf32> to vector<8x8xf32>
    %35 = vector.shape_cast %34 : vector<8x8xf32> to vector<8x8x1xf32>
    %36 = vector.broadcast %35 : vector<8x8x1xf32> to vector<8x8x8xf32>
    %37 = arith.subf %33, %36 : vector<8x8x8xf32>
    %38 = math.exp %37 : vector<8x8x8xf32>
    %cst_17 = arith.constant dense<0.000000e+00> : vector<8x8xf32>
    %39 = vector.multi_reduction <add>, %38, %cst_17 [2] : vector<8x8x8xf32> to vector<8x8xf32>
    %40 = vector.shape_cast %39 : vector<8x8xf32> to vector<8x8x1xf32>
    %41 = tpu.reciprocal %40 {approx = true} : vector<8x8x1xf32> -> vector<8x8x1xf32>
    %42 = vector.broadcast %41 : vector<8x8x1xf32> to vector<8x8x8xf32>
    %43 = arith.mulf %38, %42 : vector<8x8x8xf32>
    %44 = arith.truncf %43 : vector<8x8x8xf32> to vector<8x8x8xbf16>
    %45 = vector.extract_strided_slice %30 {offsets = [0, 0, 0], sizes = [8, 8, 8], strides = [1, 1, 1]} : vector<8x8x32xbf16> to vector<8x8x8xbf16>
    "tpu.trace_start"() <{level = 10 : i32, message = "bqk,bkd->bqd"}> : () -> ()
    %cst_18 = arith.constant dense<0.000000e+00> : vector<8x8x8xf32>
    %46 = tpu.matmul %44, %45, %cst_18 {dimension_numbers = #tpu.dot_dimension_numbers<[2], [1], [1], [2], [0, 0, 0, 1, 1, 2], [0], [0]>} : vector<8x8x8xbf16>, vector<8x8x8xbf16>, vector<8x8x8xf32> -> vector<8x8x8xf32>
    "tpu.trace_stop"() : () -> ()
    %47 = vector.extract_strided_slice %24 {offsets = [0, 0, 8], sizes = [8, 8, 8], strides = [1, 1, 1]} : vector<8x8x32xbf16> to vector<8x8x8xbf16>
    %48 = vector.extract_strided_slice %27 {offsets = [0, 0, 8], sizes = [8, 8, 8], strides = [1, 1, 1]} : vector<8x8x32xbf16> to vector<8x8x8xbf16>
    "tpu.trace_start"() <{level = 10 : i32, message = "bqd,bkd->bqk"}> : () -> ()
    %cst_19 = arith.constant dense<0.000000e+00> : vector<8x8x8xf32>
    %49 = tpu.matmul %47, %48, %cst_19 {dimension_numbers = #tpu.dot_dimension_numbers<[2], [2], [1], [1], [0, 0, 0, 1, 1, 1], [0], [0]>} : vector<8x8x8xbf16>, vector<8x8x8xbf16>, vector<8x8x8xf32> -> vector<8x8x8xf32>
    "tpu.trace_stop"() : () -> ()
    %cst_20 = arith.constant dense<0xFF800000> : vector<8x8xf32>
    %50 = vector.multi_reduction <maximumf>, %49, %cst_20 [2] : vector<8x8x8xf32> to vector<8x8xf32>
    %51 = vector.shape_cast %50 : vector<8x8xf32> to vector<8x8x1xf32>
    %52 = vector.broadcast %51 : vector<8x8x1xf32> to vector<8x8x8xf32>
    %53 = arith.subf %49, %52 : vector<8x8x8xf32>
    %54 = math.exp %53 : vector<8x8x8xf32>
    %cst_21 = arith.constant dense<0.000000e+00> : vector<8x8xf32>
    %55 = vector.multi_reduction <add>, %54, %cst_21 [2] : vector<8x8x8xf32> to vector<8x8xf32>
    %56 = vector.shape_cast %55 : vector<8x8xf32> to vector<8x8x1xf32>
    %57 = tpu.reciprocal %56 {approx = true} : vector<8x8x1xf32> -> vector<8x8x1xf32>
    %58 = vector.broadcast %57 : vector<8x8x1xf32> to vector<8x8x8xf32>
    %59 = arith.mulf %54, %58 : vector<8x8x8xf32>
    %60 = arith.truncf %59 : vector<8x8x8xf32> to vector<8x8x8xbf16>
    %61 = vector.extract_strided_slice %30 {offsets = [0, 0, 8], sizes = [8, 8, 8], strides = [1, 1, 1]} : vector<8x8x32xbf16> to vector<8x8x8xbf16>
    "tpu.trace_start"() <{level = 10 : i32, message = "bqk,bkd->bqd"}> : () -> ()
    %cst_22 = arith.constant dense<0.000000e+00> : vector<8x8x8xf32>
    %62 = tpu.matmul %60, %61, %cst_22 {dimension_numbers = #tpu.dot_dimension_numbers<[2], [1], [1], [2], [0, 0, 0, 1, 1, 2], [0], [0]>} : vector<8x8x8xbf16>, vector<8x8x8xbf16>, vector<8x8x8xf32> -> vector<8x8x8xf32>
    "tpu.trace_stop"() : () -> ()
    %63 = vector.extract_strided_slice %24 {offsets = [0, 0, 16], sizes = [8, 8, 8], strides = [1, 1, 1]} : vector<8x8x32xbf16> to vector<8x8x8xbf16>
    %64 = vector.extract_strided_slice %27 {offsets = [0, 0, 16], sizes = [8, 8, 8], strides = [1, 1, 1]} : vector<8x8x32xbf16> to vector<8x8x8xbf16>
    "tpu.trace_start"() <{level = 10 : i32, message = "bqd,bkd->bqk"}> : () -> ()
    %cst_23 = arith.constant dense<0.000000e+00> : vector<8x8x8xf32>
    %65 = tpu.matmul %63, %64, %cst_23 {dimension_numbers = #tpu.dot_dimension_numbers<[2], [2], [1], [1], [0, 0, 0, 1, 1, 1], [0], [0]>} : vector<8x8x8xbf16>, vector<8x8x8xbf16>, vector<8x8x8xf32> -> vector<8x8x8xf32>
    "tpu.trace_stop"() : () -> ()
    %cst_24 = arith.constant dense<0xFF800000> : vector<8x8xf32>
    %66 = vector.multi_reduction <maximumf>, %65, %cst_24 [2] : vector<8x8x8xf32> to vector<8x8xf32>
    %67 = vector.shape_cast %66 : vector<8x8xf32> to vector<8x8x1xf32>
    %68 = vector.broadcast %67 : vector<8x8x1xf32> to vector<8x8x8xf32>
    %69 = arith.subf %65, %68 : vector<8x8x8xf32>
    %70 = math.exp %69 : vector<8x8x8xf32>
    %cst_25 = arith.constant dense<0.000000e+00> : vector<8x8xf32>
    %71 = vector.multi_reduction <add>, %70, %cst_25 [2] : vector<8x8x8xf32> to vector<8x8xf32>
    %72 = vector.shape_cast %71 : vector<8x8xf32> to vector<8x8x1xf32>
    %73 = tpu.reciprocal %72 {approx = true} : vector<8x8x1xf32> -> vector<8x8x1xf32>
    %74 = vector.broadcast %73 : vector<8x8x1xf32> to vector<8x8x8xf32>
    %75 = arith.mulf %70, %74 : vector<8x8x8xf32>
    %76 = arith.truncf %75 : vector<8x8x8xf32> to vector<8x8x8xbf16>
    %77 = vector.extract_strided_slice %30 {offsets = [0, 0, 16], sizes = [8, 8, 8], strides = [1, 1, 1]} : vector<8x8x32xbf16> to vector<8x8x8xbf16>
    "tpu.trace_start"() <{level = 10 : i32, message = "bqk,bkd->bqd"}> : () -> ()
    %cst_26 = arith.constant dense<0.000000e+00> : vector<8x8x8xf32>
    %78 = tpu.matmul %76, %77, %cst_26 {dimension_numbers = #tpu.dot_dimension_numbers<[2], [1], [1], [2], [0, 0, 0, 1, 1, 2], [0], [0]>} : vector<8x8x8xbf16>, vector<8x8x8xbf16>, vector<8x8x8xf32> -> vector<8x8x8xf32>
    "tpu.trace_stop"() : () -> ()
    %79 = vector.extract_strided_slice %24 {offsets = [0, 0, 24], sizes = [8, 8, 8], strides = [1, 1, 1]} : vector<8x8x32xbf16> to vector<8x8x8xbf16>
    %80 = vector.extract_strided_slice %27 {offsets = [0, 0, 24], sizes = [8, 8, 8], strides = [1, 1, 1]} : vector<8x8x32xbf16> to vector<8x8x8xbf16>
    "tpu.trace_start"() <{level = 10 : i32, message = "bqd,bkd->bqk"}> : () -> ()
    %cst_27 = arith.constant dense<0.000000e+00> : vector<8x8x8xf32>
    %81 = tpu.matmul %79, %80, %cst_27 {dimension_numbers = #tpu.dot_dimension_numbers<[2], [2], [1], [1], [0, 0, 0, 1, 1, 1], [0], [0]>} : vector<8x8x8xbf16>, vector<8x8x8xbf16>, vector<8x8x8xf32> -> vector<8x8x8xf32>
    "tpu.trace_stop"() : () -> ()
    %cst_28 = arith.constant dense<0xFF800000> : vector<8x8xf32>
    %82 = vector.multi_reduction <maximumf>, %81, %cst_28 [2] : vector<8x8x8xf32> to vector<8x8xf32>
    %83 = vector.shape_cast %82 : vector<8x8xf32> to vector<8x8x1xf32>
    %84 = vector.broadcast %83 : vector<8x8x1xf32> to vector<8x8x8xf32>
    %85 = arith.subf %81, %84 : vector<8x8x8xf32>
    %86 = math.exp %85 : vector<8x8x8xf32>
    %cst_29 = arith.constant dense<0.000000e+00> : vector<8x8xf32>
    %87 = vector.multi_reduction <add>, %86, %cst_29 [2] : vector<8x8x8xf32> to vector<8x8xf32>
    %88 = vector.shape_cast %87 : vector<8x8xf32> to vector<8x8x1xf32>
    %89 = tpu.reciprocal %88 {approx = true} : vector<8x8x1xf32> -> vector<8x8x1xf32>
    %90 = vector.broadcast %89 : vector<8x8x1xf32> to vector<8x8x8xf32>
    %91 = arith.mulf %86, %90 : vector<8x8x8xf32>
    %92 = arith.truncf %91 : vector<8x8x8xf32> to vector<8x8x8xbf16>
    %93 = vector.extract_strided_slice %30 {offsets = [0, 0, 24], sizes = [8, 8, 8], strides = [1, 1, 1]} : vector<8x8x32xbf16> to vector<8x8x8xbf16>
    "tpu.trace_start"() <{level = 10 : i32, message = "bqk,bkd->bqd"}> : () -> ()
    %cst_30 = arith.constant dense<0.000000e+00> : vector<8x8x8xf32>
    %94 = tpu.matmul %92, %93, %cst_30 {dimension_numbers = #tpu.dot_dimension_numbers<[2], [1], [1], [2], [0, 0, 0, 1, 1, 2], [0], [0]>} : vector<8x8x8xbf16>, vector<8x8x8xbf16>, vector<8x8x8xf32> -> vector<8x8x8xf32>
    "tpu.trace_stop"() : () -> ()
    %95 = tpu.concatenate %46, %62, %78, %94 in 2 : vector<8x8x8xf32>, vector<8x8x8xf32>, vector<8x8x8xf32>, vector<8x8x8xf32> -> vector<8x8x32xf32>
    %96 = vector.shape_cast %95 : vector<8x8x32xf32> to vector<64x32xf32>
    %97 = arith.truncf %96 : vector<64x32xf32> to vector<64x32xbf16>
    %c0_31 = arith.constant 0 : index
    %c0_32 = arith.constant 0 : index
    %c0_33 = arith.constant 0 : index
    %98 = vector.load %arg7[%c0_31, %c0_32, %c0_33] : memref<2x32x32xbf16, #tpu.memory_space<vmem>>, vector<1x32x32xbf16>
    %99 = vector.shape_cast %98 : vector<1x32x32xbf16> to vector<32x32xbf16>
    %cst_34 = arith.constant dense<0.000000e+00> : vector<64x32xf32>
    %100 = tpu.matmul %97, %99, %cst_34 {dimension_numbers = #tpu.dot_dimension_numbers<[1], [0], [0], [1], [0, 0, 1, 1], [], []>} : vector<64x32xbf16>, vector<32x32xbf16>, vector<64x32xf32> -> vector<64x32xf32>
    %c0_35 = arith.constant 0 : index
    %c0_36 = arith.constant 0 : index
    %c0_37 = arith.constant 0 : index
    %101 = vector.load %arg8[%c0_35, %c0_36, %c0_37] : memref<2x1x32xf32, #tpu.memory_space<vmem>>, vector<1x1x32xf32>
    %102 = vector.shape_cast %101 : vector<1x1x32xf32> to vector<1x32xf32>
    %103 = vector.broadcast %102 : vector<1x32xf32> to vector<64x32xf32>
    %104 = arith.addf %100, %103 : vector<64x32xf32>
    %105 = arith.addf %11, %104 : vector<64x32xf32>
    %c0_38 = arith.constant 0 : index
    %c0_39 = arith.constant 0 : index
    %c0_40 = arith.constant 0 : index
    %106 = vector.load %arg9[%c0_38, %c0_39, %c0_40] : memref<2x1x32xf32, #tpu.memory_space<vmem>>, vector<1x1x32xf32>
    %107 = vector.shape_cast %106 : vector<1x1x32xf32> to vector<1x32xf32>
    %c0_41 = arith.constant 0 : index
    %c0_42 = arith.constant 0 : index
    %c0_43 = arith.constant 0 : index
    %108 = vector.load %arg10[%c0_41, %c0_42, %c0_43] : memref<2x1x32xf32, #tpu.memory_space<vmem>>, vector<1x1x32xf32>
    %109 = vector.shape_cast %108 : vector<1x1x32xf32> to vector<1x32xf32>
    %cst_44 = arith.constant dense<0.000000e+00> : vector<64xf32>
    %110 = vector.multi_reduction <add>, %105, %cst_44 [1] : vector<64x32xf32> to vector<64xf32>
    %111 = vector.shape_cast %110 : vector<64xf32> to vector<64x1xf32>
    %cst_45 = arith.constant 3.200000e+01 : f32
    %112 = vector.broadcast %cst_45 : f32 to vector<64x1xf32>
    %113 = arith.divf %111, %112 : vector<64x1xf32>
    %114 = vector.broadcast %113 : vector<64x1xf32> to vector<64x32xf32>
    %115 = arith.subf %105, %114 : vector<64x32xf32>
    %116 = arith.mulf %115, %115 : vector<64x32xf32>
    %cst_46 = arith.constant dense<0.000000e+00> : vector<64xf32>
    %117 = vector.multi_reduction <add>, %116, %cst_46 [1] : vector<64x32xf32> to vector<64xf32>
    %118 = vector.shape_cast %117 : vector<64xf32> to vector<64x1xf32>
    %cst_47 = arith.constant 3.200000e+01 : f32
    %119 = vector.broadcast %cst_47 : f32 to vector<64x1xf32>
    %120 = arith.divf %118, %119 : vector<64x1xf32>
    %cst_48 = arith.constant 9.99999974E-6 : f32
    %121 = vector.broadcast %cst_48 : f32 to vector<64x1xf32>
    %122 = arith.addf %120, %121 : vector<64x1xf32>
    %123 = math.rsqrt %122 : vector<64x1xf32>
    %124 = vector.broadcast %123 : vector<64x1xf32> to vector<64x32xf32>
    %125 = arith.mulf %115, %124 : vector<64x32xf32>
    %126 = vector.broadcast %107 : vector<1x32xf32> to vector<64x32xf32>
    %127 = arith.mulf %125, %126 : vector<64x32xf32>
    %128 = vector.broadcast %109 : vector<1x32xf32> to vector<64x32xf32>
    %129 = arith.addf %127, %128 : vector<64x32xf32>
    %130 = arith.truncf %129 : vector<64x32xf32> to vector<64x32xbf16>
    %c0_49 = arith.constant 0 : index
    %c0_50 = arith.constant 0 : index
    %c0_51 = arith.constant 0 : index
    %131 = vector.load %arg11[%c0_49, %c0_50, %c0_51] : memref<2x32x64xbf16, #tpu.memory_space<vmem>>, vector<1x32x64xbf16>
    %132 = vector.shape_cast %131 : vector<1x32x64xbf16> to vector<32x64xbf16>
    %cst_52 = arith.constant dense<0.000000e+00> : vector<64x64xf32>
    %133 = tpu.matmul %130, %132, %cst_52 {dimension_numbers = #tpu.dot_dimension_numbers<[1], [0], [0], [1], [0, 0, 1, 1], [], []>} : vector<64x32xbf16>, vector<32x64xbf16>, vector<64x64xf32> -> vector<64x64xf32>
    %c0_53 = arith.constant 0 : index
    %c0_54 = arith.constant 0 : index
    %c0_55 = arith.constant 0 : index
    %134 = vector.load %arg12[%c0_53, %c0_54, %c0_55] : memref<2x1x64xf32, #tpu.memory_space<vmem>>, vector<1x1x64xf32>
    %135 = vector.shape_cast %134 : vector<1x1x64xf32> to vector<1x64xf32>
    %136 = vector.broadcast %135 : vector<1x64xf32> to vector<64x64xf32>
    %137 = arith.addf %133, %136 : vector<64x64xf32>
    %cst_56 = arith.constant 0.000000e+00 : f32
    %138 = vector.broadcast %cst_56 : f32 to vector<64x64xf32>
    %139 = arith.maximumf %137, %138 : vector<64x64xf32>
    %140 = arith.truncf %139 : vector<64x64xf32> to vector<64x64xbf16>
    %c0_57 = arith.constant 0 : index
    %c0_58 = arith.constant 0 : index
    %c0_59 = arith.constant 0 : index
    %141 = vector.load %arg13[%c0_57, %c0_58, %c0_59] : memref<2x64x32xbf16, #tpu.memory_space<vmem>>, vector<1x64x32xbf16>
    %142 = vector.shape_cast %141 : vector<1x64x32xbf16> to vector<64x32xbf16>
    %cst_60 = arith.constant dense<0.000000e+00> : vector<64x32xf32>
    %143 = tpu.matmul %140, %142, %cst_60 {dimension_numbers = #tpu.dot_dimension_numbers<[1], [0], [0], [1], [0, 0, 1, 1], [], []>} : vector<64x64xbf16>, vector<64x32xbf16>, vector<64x32xf32> -> vector<64x32xf32>
    %c0_61 = arith.constant 0 : index
    %c0_62 = arith.constant 0 : index
    %c0_63 = arith.constant 0 : index
    %144 = vector.load %arg14[%c0_61, %c0_62, %c0_63] : memref<2x1x32xf32, #tpu.memory_space<vmem>>, vector<1x1x32xf32>
    %145 = vector.shape_cast %144 : vector<1x1x32xf32> to vector<1x32xf32>
    %146 = vector.broadcast %145 : vector<1x32xf32> to vector<64x32xf32>
    %147 = arith.addf %143, %146 : vector<64x32xf32>
    %148 = arith.addf %129, %147 : vector<64x32xf32>
    %c0_64 = arith.constant 0 : index
    %c0_65 = arith.constant 0 : index
    %c0_66 = arith.constant 0 : index
    %149 = vector.load %arg15[%c0_64, %c0_65, %c0_66] : memref<2x1x32xf32, #tpu.memory_space<vmem>>, vector<1x1x32xf32>
    %150 = vector.shape_cast %149 : vector<1x1x32xf32> to vector<1x32xf32>
    %c0_67 = arith.constant 0 : index
    %c0_68 = arith.constant 0 : index
    %c0_69 = arith.constant 0 : index
    %151 = vector.load %arg16[%c0_67, %c0_68, %c0_69] : memref<2x1x32xf32, #tpu.memory_space<vmem>>, vector<1x1x32xf32>
    %152 = vector.shape_cast %151 : vector<1x1x32xf32> to vector<1x32xf32>
    %cst_70 = arith.constant dense<0.000000e+00> : vector<64xf32>
    %153 = vector.multi_reduction <add>, %148, %cst_70 [1] : vector<64x32xf32> to vector<64xf32>
    %154 = vector.shape_cast %153 : vector<64xf32> to vector<64x1xf32>
    %cst_71 = arith.constant 3.200000e+01 : f32
    %155 = vector.broadcast %cst_71 : f32 to vector<64x1xf32>
    %156 = arith.divf %154, %155 : vector<64x1xf32>
    %157 = vector.broadcast %156 : vector<64x1xf32> to vector<64x32xf32>
    %158 = arith.subf %148, %157 : vector<64x32xf32>
    %159 = arith.mulf %158, %158 : vector<64x32xf32>
    %cst_72 = arith.constant dense<0.000000e+00> : vector<64xf32>
    %160 = vector.multi_reduction <add>, %159, %cst_72 [1] : vector<64x32xf32> to vector<64xf32>
    %161 = vector.shape_cast %160 : vector<64xf32> to vector<64x1xf32>
    %cst_73 = arith.constant 3.200000e+01 : f32
    %162 = vector.broadcast %cst_73 : f32 to vector<64x1xf32>
    %163 = arith.divf %161, %162 : vector<64x1xf32>
    %cst_74 = arith.constant 9.99999974E-6 : f32
    %164 = vector.broadcast %cst_74 : f32 to vector<64x1xf32>
    %165 = arith.addf %163, %164 : vector<64x1xf32>
    %166 = math.rsqrt %165 : vector<64x1xf32>
    %167 = vector.broadcast %166 : vector<64x1xf32> to vector<64x32xf32>
    %168 = arith.mulf %158, %167 : vector<64x32xf32>
    %169 = vector.broadcast %150 : vector<1x32xf32> to vector<64x32xf32>
    %170 = arith.mulf %168, %169 : vector<64x32xf32>
    %171 = vector.broadcast %152 : vector<1x32xf32> to vector<64x32xf32>
    %172 = arith.addf %170, %171 : vector<64x32xf32>
    %173 = arith.truncf %172 : vector<64x32xf32> to vector<64x32xbf16>
    %c1 = arith.constant 1 : index
    %c0_75 = arith.constant 0 : index
    %c0_76 = arith.constant 0 : index
    %174 = vector.load %arg5[%c1, %c0_75, %c0_76] : memref<2x32x96xbf16, #tpu.memory_space<vmem>>, vector<1x32x96xbf16>
    %175 = vector.shape_cast %174 : vector<1x32x96xbf16> to vector<32x96xbf16>
    %cst_77 = arith.constant dense<0.000000e+00> : vector<64x96xf32>
    %176 = tpu.matmul %173, %175, %cst_77 {dimension_numbers = #tpu.dot_dimension_numbers<[1], [0], [0], [1], [0, 0, 1, 1], [], []>} : vector<64x32xbf16>, vector<32x96xbf16>, vector<64x96xf32> -> vector<64x96xf32>
    %c1_78 = arith.constant 1 : index
    %c0_79 = arith.constant 0 : index
    %c0_80 = arith.constant 0 : index
    %177 = vector.load %arg6[%c1_78, %c0_79, %c0_80] : memref<2x1x96xf32, #tpu.memory_space<vmem>>, vector<1x1x96xf32>
    %178 = vector.shape_cast %177 : vector<1x1x96xf32> to vector<1x96xf32>
    %179 = vector.broadcast %178 : vector<1x96xf32> to vector<64x96xf32>
    %180 = arith.addf %176, %179 : vector<64x96xf32>
    %181 = vector.extract_strided_slice %180 {offsets = [0, 0], sizes = [64, 32], strides = [1, 1]} : vector<64x96xf32> to vector<64x32xf32>
    %cst_81 = arith.constant 0.353553385 : f32
    %182 = vector.broadcast %cst_81 : f32 to vector<64x32xf32>
    %183 = arith.mulf %181, %182 : vector<64x32xf32>
    %184 = vector.shape_cast %183 : vector<64x32xf32> to vector<8x8x32xf32>
    %185 = arith.truncf %184 : vector<8x8x32xf32> to vector<8x8x32xbf16>
    %186 = vector.extract_strided_slice %180 {offsets = [0, 32], sizes = [64, 32], strides = [1, 1]} : vector<64x96xf32> to vector<64x32xf32>
    %187 = vector.shape_cast %186 : vector<64x32xf32> to vector<8x8x32xf32>
    %188 = arith.truncf %187 : vector<8x8x32xf32> to vector<8x8x32xbf16>
    %189 = vector.extract_strided_slice %180 {offsets = [0, 64], sizes = [64, 32], strides = [1, 1]} : vector<64x96xf32> to vector<64x32xf32>
    %190 = vector.shape_cast %189 : vector<64x32xf32> to vector<8x8x32xf32>
    %191 = arith.truncf %190 : vector<8x8x32xf32> to vector<8x8x32xbf16>
    %192 = vector.extract_strided_slice %185 {offsets = [0, 0, 0], sizes = [8, 8, 8], strides = [1, 1, 1]} : vector<8x8x32xbf16> to vector<8x8x8xbf16>
    %193 = vector.extract_strided_slice %188 {offsets = [0, 0, 0], sizes = [8, 8, 8], strides = [1, 1, 1]} : vector<8x8x32xbf16> to vector<8x8x8xbf16>
    "tpu.trace_start"() <{level = 10 : i32, message = "bqd,bkd->bqk"}> : () -> ()
    %cst_82 = arith.constant dense<0.000000e+00> : vector<8x8x8xf32>
    %194 = tpu.matmul %192, %193, %cst_82 {dimension_numbers = #tpu.dot_dimension_numbers<[2], [2], [1], [1], [0, 0, 0, 1, 1, 1], [0], [0]>} : vector<8x8x8xbf16>, vector<8x8x8xbf16>, vector<8x8x8xf32> -> vector<8x8x8xf32>
    "tpu.trace_stop"() : () -> ()
    %cst_83 = arith.constant dense<0xFF800000> : vector<8x8xf32>
    %195 = vector.multi_reduction <maximumf>, %194, %cst_83 [2] : vector<8x8x8xf32> to vector<8x8xf32>
    %196 = vector.shape_cast %195 : vector<8x8xf32> to vector<8x8x1xf32>
    %197 = vector.broadcast %196 : vector<8x8x1xf32> to vector<8x8x8xf32>
    %198 = arith.subf %194, %197 : vector<8x8x8xf32>
    %199 = math.exp %198 : vector<8x8x8xf32>
    %cst_84 = arith.constant dense<0.000000e+00> : vector<8x8xf32>
    %200 = vector.multi_reduction <add>, %199, %cst_84 [2] : vector<8x8x8xf32> to vector<8x8xf32>
    %201 = vector.shape_cast %200 : vector<8x8xf32> to vector<8x8x1xf32>
    %202 = tpu.reciprocal %201 {approx = true} : vector<8x8x1xf32> -> vector<8x8x1xf32>
    %203 = vector.broadcast %202 : vector<8x8x1xf32> to vector<8x8x8xf32>
    %204 = arith.mulf %199, %203 : vector<8x8x8xf32>
    %205 = arith.truncf %204 : vector<8x8x8xf32> to vector<8x8x8xbf16>
    %206 = vector.extract_strided_slice %191 {offsets = [0, 0, 0], sizes = [8, 8, 8], strides = [1, 1, 1]} : vector<8x8x32xbf16> to vector<8x8x8xbf16>
    "tpu.trace_start"() <{level = 10 : i32, message = "bqk,bkd->bqd"}> : () -> ()
    %cst_85 = arith.constant dense<0.000000e+00> : vector<8x8x8xf32>
    %207 = tpu.matmul %205, %206, %cst_85 {dimension_numbers = #tpu.dot_dimension_numbers<[2], [1], [1], [2], [0, 0, 0, 1, 1, 2], [0], [0]>} : vector<8x8x8xbf16>, vector<8x8x8xbf16>, vector<8x8x8xf32> -> vector<8x8x8xf32>
    "tpu.trace_stop"() : () -> ()
    %208 = vector.extract_strided_slice %185 {offsets = [0, 0, 8], sizes = [8, 8, 8], strides = [1, 1, 1]} : vector<8x8x32xbf16> to vector<8x8x8xbf16>
    %209 = vector.extract_strided_slice %188 {offsets = [0, 0, 8], sizes = [8, 8, 8], strides = [1, 1, 1]} : vector<8x8x32xbf16> to vector<8x8x8xbf16>
    "tpu.trace_start"() <{level = 10 : i32, message = "bqd,bkd->bqk"}> : () -> ()
    %cst_86 = arith.constant dense<0.000000e+00> : vector<8x8x8xf32>
    %210 = tpu.matmul %208, %209, %cst_86 {dimension_numbers = #tpu.dot_dimension_numbers<[2], [2], [1], [1], [0, 0, 0, 1, 1, 1], [0], [0]>} : vector<8x8x8xbf16>, vector<8x8x8xbf16>, vector<8x8x8xf32> -> vector<8x8x8xf32>
    "tpu.trace_stop"() : () -> ()
    %cst_87 = arith.constant dense<0xFF800000> : vector<8x8xf32>
    %211 = vector.multi_reduction <maximumf>, %210, %cst_87 [2] : vector<8x8x8xf32> to vector<8x8xf32>
    %212 = vector.shape_cast %211 : vector<8x8xf32> to vector<8x8x1xf32>
    %213 = vector.broadcast %212 : vector<8x8x1xf32> to vector<8x8x8xf32>
    %214 = arith.subf %210, %213 : vector<8x8x8xf32>
    %215 = math.exp %214 : vector<8x8x8xf32>
    %cst_88 = arith.constant dense<0.000000e+00> : vector<8x8xf32>
    %216 = vector.multi_reduction <add>, %215, %cst_88 [2] : vector<8x8x8xf32> to vector<8x8xf32>
    %217 = vector.shape_cast %216 : vector<8x8xf32> to vector<8x8x1xf32>
    %218 = tpu.reciprocal %217 {approx = true} : vector<8x8x1xf32> -> vector<8x8x1xf32>
    %219 = vector.broadcast %218 : vector<8x8x1xf32> to vector<8x8x8xf32>
    %220 = arith.mulf %215, %219 : vector<8x8x8xf32>
    %221 = arith.truncf %220 : vector<8x8x8xf32> to vector<8x8x8xbf16>
    %222 = vector.extract_strided_slice %191 {offsets = [0, 0, 8], sizes = [8, 8, 8], strides = [1, 1, 1]} : vector<8x8x32xbf16> to vector<8x8x8xbf16>
    "tpu.trace_start"() <{level = 10 : i32, message = "bqk,bkd->bqd"}> : () -> ()
    %cst_89 = arith.constant dense<0.000000e+00> : vector<8x8x8xf32>
    %223 = tpu.matmul %221, %222, %cst_89 {dimension_numbers = #tpu.dot_dimension_numbers<[2], [1], [1], [2], [0, 0, 0, 1, 1, 2], [0], [0]>} : vector<8x8x8xbf16>, vector<8x8x8xbf16>, vector<8x8x8xf32> -> vector<8x8x8xf32>
    "tpu.trace_stop"() : () -> ()
    %224 = vector.extract_strided_slice %185 {offsets = [0, 0, 16], sizes = [8, 8, 8], strides = [1, 1, 1]} : vector<8x8x32xbf16> to vector<8x8x8xbf16>
    %225 = vector.extract_strided_slice %188 {offsets = [0, 0, 16], sizes = [8, 8, 8], strides = [1, 1, 1]} : vector<8x8x32xbf16> to vector<8x8x8xbf16>
    "tpu.trace_start"() <{level = 10 : i32, message = "bqd,bkd->bqk"}> : () -> ()
    %cst_90 = arith.constant dense<0.000000e+00> : vector<8x8x8xf32>
    %226 = tpu.matmul %224, %225, %cst_90 {dimension_numbers = #tpu.dot_dimension_numbers<[2], [2], [1], [1], [0, 0, 0, 1, 1, 1], [0], [0]>} : vector<8x8x8xbf16>, vector<8x8x8xbf16>, vector<8x8x8xf32> -> vector<8x8x8xf32>
    "tpu.trace_stop"() : () -> ()
    %cst_91 = arith.constant dense<0xFF800000> : vector<8x8xf32>
    %227 = vector.multi_reduction <maximumf>, %226, %cst_91 [2] : vector<8x8x8xf32> to vector<8x8xf32>
    %228 = vector.shape_cast %227 : vector<8x8xf32> to vector<8x8x1xf32>
    %229 = vector.broadcast %228 : vector<8x8x1xf32> to vector<8x8x8xf32>
    %230 = arith.subf %226, %229 : vector<8x8x8xf32>
    %231 = math.exp %230 : vector<8x8x8xf32>
    %cst_92 = arith.constant dense<0.000000e+00> : vector<8x8xf32>
    %232 = vector.multi_reduction <add>, %231, %cst_92 [2] : vector<8x8x8xf32> to vector<8x8xf32>
    %233 = vector.shape_cast %232 : vector<8x8xf32> to vector<8x8x1xf32>
    %234 = tpu.reciprocal %233 {approx = true} : vector<8x8x1xf32> -> vector<8x8x1xf32>
    %235 = vector.broadcast %234 : vector<8x8x1xf32> to vector<8x8x8xf32>
    %236 = arith.mulf %231, %235 : vector<8x8x8xf32>
    %237 = arith.truncf %236 : vector<8x8x8xf32> to vector<8x8x8xbf16>
    %238 = vector.extract_strided_slice %191 {offsets = [0, 0, 16], sizes = [8, 8, 8], strides = [1, 1, 1]} : vector<8x8x32xbf16> to vector<8x8x8xbf16>
    "tpu.trace_start"() <{level = 10 : i32, message = "bqk,bkd->bqd"}> : () -> ()
    %cst_93 = arith.constant dense<0.000000e+00> : vector<8x8x8xf32>
    %239 = tpu.matmul %237, %238, %cst_93 {dimension_numbers = #tpu.dot_dimension_numbers<[2], [1], [1], [2], [0, 0, 0, 1, 1, 2], [0], [0]>} : vector<8x8x8xbf16>, vector<8x8x8xbf16>, vector<8x8x8xf32> -> vector<8x8x8xf32>
    "tpu.trace_stop"() : () -> ()
    %240 = vector.extract_strided_slice %185 {offsets = [0, 0, 24], sizes = [8, 8, 8], strides = [1, 1, 1]} : vector<8x8x32xbf16> to vector<8x8x8xbf16>
    %241 = vector.extract_strided_slice %188 {offsets = [0, 0, 24], sizes = [8, 8, 8], strides = [1, 1, 1]} : vector<8x8x32xbf16> to vector<8x8x8xbf16>
    "tpu.trace_start"() <{level = 10 : i32, message = "bqd,bkd->bqk"}> : () -> ()
    %cst_94 = arith.constant dense<0.000000e+00> : vector<8x8x8xf32>
    %242 = tpu.matmul %240, %241, %cst_94 {dimension_numbers = #tpu.dot_dimension_numbers<[2], [2], [1], [1], [0, 0, 0, 1, 1, 1], [0], [0]>} : vector<8x8x8xbf16>, vector<8x8x8xbf16>, vector<8x8x8xf32> -> vector<8x8x8xf32>
    "tpu.trace_stop"() : () -> ()
    %cst_95 = arith.constant dense<0xFF800000> : vector<8x8xf32>
    %243 = vector.multi_reduction <maximumf>, %242, %cst_95 [2] : vector<8x8x8xf32> to vector<8x8xf32>
    %244 = vector.shape_cast %243 : vector<8x8xf32> to vector<8x8x1xf32>
    %245 = vector.broadcast %244 : vector<8x8x1xf32> to vector<8x8x8xf32>
    %246 = arith.subf %242, %245 : vector<8x8x8xf32>
    %247 = math.exp %246 : vector<8x8x8xf32>
    %cst_96 = arith.constant dense<0.000000e+00> : vector<8x8xf32>
    %248 = vector.multi_reduction <add>, %247, %cst_96 [2] : vector<8x8x8xf32> to vector<8x8xf32>
    %249 = vector.shape_cast %248 : vector<8x8xf32> to vector<8x8x1xf32>
    %250 = tpu.reciprocal %249 {approx = true} : vector<8x8x1xf32> -> vector<8x8x1xf32>
    %251 = vector.broadcast %250 : vector<8x8x1xf32> to vector<8x8x8xf32>
    %252 = arith.mulf %247, %251 : vector<8x8x8xf32>
    %253 = arith.truncf %252 : vector<8x8x8xf32> to vector<8x8x8xbf16>
    %254 = vector.extract_strided_slice %191 {offsets = [0, 0, 24], sizes = [8, 8, 8], strides = [1, 1, 1]} : vector<8x8x32xbf16> to vector<8x8x8xbf16>
    "tpu.trace_start"() <{level = 10 : i32, message = "bqk,bkd->bqd"}> : () -> ()
    %cst_97 = arith.constant dense<0.000000e+00> : vector<8x8x8xf32>
    %255 = tpu.matmul %253, %254, %cst_97 {dimension_numbers = #tpu.dot_dimension_numbers<[2], [1], [1], [2], [0, 0, 0, 1, 1, 2], [0], [0]>} : vector<8x8x8xbf16>, vector<8x8x8xbf16>, vector<8x8x8xf32> -> vector<8x8x8xf32>
    "tpu.trace_stop"() : () -> ()
    %256 = tpu.concatenate %207, %223, %239, %255 in 2 : vector<8x8x8xf32>, vector<8x8x8xf32>, vector<8x8x8xf32>, vector<8x8x8xf32> -> vector<8x8x32xf32>
    %257 = vector.shape_cast %256 : vector<8x8x32xf32> to vector<64x32xf32>
    %258 = arith.truncf %257 : vector<64x32xf32> to vector<64x32xbf16>
    %c1_98 = arith.constant 1 : index
    %c0_99 = arith.constant 0 : index
    %c0_100 = arith.constant 0 : index
    %259 = vector.load %arg7[%c1_98, %c0_99, %c0_100] : memref<2x32x32xbf16, #tpu.memory_space<vmem>>, vector<1x32x32xbf16>
    %260 = vector.shape_cast %259 : vector<1x32x32xbf16> to vector<32x32xbf16>
    %cst_101 = arith.constant dense<0.000000e+00> : vector<64x32xf32>
    %261 = tpu.matmul %258, %260, %cst_101 {dimension_numbers = #tpu.dot_dimension_numbers<[1], [0], [0], [1], [0, 0, 1, 1], [], []>} : vector<64x32xbf16>, vector<32x32xbf16>, vector<64x32xf32> -> vector<64x32xf32>
    %c1_102 = arith.constant 1 : index
    %c0_103 = arith.constant 0 : index
    %c0_104 = arith.constant 0 : index
    %262 = vector.load %arg8[%c1_102, %c0_103, %c0_104] : memref<2x1x32xf32, #tpu.memory_space<vmem>>, vector<1x1x32xf32>
    %263 = vector.shape_cast %262 : vector<1x1x32xf32> to vector<1x32xf32>
    %264 = vector.broadcast %263 : vector<1x32xf32> to vector<64x32xf32>
    %265 = arith.addf %261, %264 : vector<64x32xf32>
    %266 = arith.addf %172, %265 : vector<64x32xf32>
    %c1_105 = arith.constant 1 : index
    %c0_106 = arith.constant 0 : index
    %c0_107 = arith.constant 0 : index
    %267 = vector.load %arg9[%c1_105, %c0_106, %c0_107] : memref<2x1x32xf32, #tpu.memory_space<vmem>>, vector<1x1x32xf32>
    %268 = vector.shape_cast %267 : vector<1x1x32xf32> to vector<1x32xf32>
    %c1_108 = arith.constant 1 : index
    %c0_109 = arith.constant 0 : index
    %c0_110 = arith.constant 0 : index
    %269 = vector.load %arg10[%c1_108, %c0_109, %c0_110] : memref<2x1x32xf32, #tpu.memory_space<vmem>>, vector<1x1x32xf32>
    %270 = vector.shape_cast %269 : vector<1x1x32xf32> to vector<1x32xf32>
    %cst_111 = arith.constant dense<0.000000e+00> : vector<64xf32>
    %271 = vector.multi_reduction <add>, %266, %cst_111 [1] : vector<64x32xf32> to vector<64xf32>
    %272 = vector.shape_cast %271 : vector<64xf32> to vector<64x1xf32>
    %cst_112 = arith.constant 3.200000e+01 : f32
    %273 = vector.broadcast %cst_112 : f32 to vector<64x1xf32>
    %274 = arith.divf %272, %273 : vector<64x1xf32>
    %275 = vector.broadcast %274 : vector<64x1xf32> to vector<64x32xf32>
    %276 = arith.subf %266, %275 : vector<64x32xf32>
    %277 = arith.mulf %276, %276 : vector<64x32xf32>
    %cst_113 = arith.constant dense<0.000000e+00> : vector<64xf32>
    %278 = vector.multi_reduction <add>, %277, %cst_113 [1] : vector<64x32xf32> to vector<64xf32>
    %279 = vector.shape_cast %278 : vector<64xf32> to vector<64x1xf32>
    %cst_114 = arith.constant 3.200000e+01 : f32
    %280 = vector.broadcast %cst_114 : f32 to vector<64x1xf32>
    %281 = arith.divf %279, %280 : vector<64x1xf32>
    %cst_115 = arith.constant 9.99999974E-6 : f32
    %282 = vector.broadcast %cst_115 : f32 to vector<64x1xf32>
    %283 = arith.addf %281, %282 : vector<64x1xf32>
    %284 = math.rsqrt %283 : vector<64x1xf32>
    %285 = vector.broadcast %284 : vector<64x1xf32> to vector<64x32xf32>
    %286 = arith.mulf %276, %285 : vector<64x32xf32>
    %287 = vector.broadcast %268 : vector<1x32xf32> to vector<64x32xf32>
    %288 = arith.mulf %286, %287 : vector<64x32xf32>
    %289 = vector.broadcast %270 : vector<1x32xf32> to vector<64x32xf32>
    %290 = arith.addf %288, %289 : vector<64x32xf32>
    %291 = arith.truncf %290 : vector<64x32xf32> to vector<64x32xbf16>
    %c1_116 = arith.constant 1 : index
    %c0_117 = arith.constant 0 : index
    %c0_118 = arith.constant 0 : index
    %292 = vector.load %arg11[%c1_116, %c0_117, %c0_118] : memref<2x32x64xbf16, #tpu.memory_space<vmem>>, vector<1x32x64xbf16>
    %293 = vector.shape_cast %292 : vector<1x32x64xbf16> to vector<32x64xbf16>
    %cst_119 = arith.constant dense<0.000000e+00> : vector<64x64xf32>
    %294 = tpu.matmul %291, %293, %cst_119 {dimension_numbers = #tpu.dot_dimension_numbers<[1], [0], [0], [1], [0, 0, 1, 1], [], []>} : vector<64x32xbf16>, vector<32x64xbf16>, vector<64x64xf32> -> vector<64x64xf32>
    %c1_120 = arith.constant 1 : index
    %c0_121 = arith.constant 0 : index
    %c0_122 = arith.constant 0 : index
    %295 = vector.load %arg12[%c1_120, %c0_121, %c0_122] : memref<2x1x64xf32, #tpu.memory_space<vmem>>, vector<1x1x64xf32>
    %296 = vector.shape_cast %295 : vector<1x1x64xf32> to vector<1x64xf32>
    %297 = vector.broadcast %296 : vector<1x64xf32> to vector<64x64xf32>
    %298 = arith.addf %294, %297 : vector<64x64xf32>
    %cst_123 = arith.constant 0.000000e+00 : f32
    %299 = vector.broadcast %cst_123 : f32 to vector<64x64xf32>
    %300 = arith.maximumf %298, %299 : vector<64x64xf32>
    %301 = arith.truncf %300 : vector<64x64xf32> to vector<64x64xbf16>
    %c1_124 = arith.constant 1 : index
    %c0_125 = arith.constant 0 : index
    %c0_126 = arith.constant 0 : index
    %302 = vector.load %arg13[%c1_124, %c0_125, %c0_126] : memref<2x64x32xbf16, #tpu.memory_space<vmem>>, vector<1x64x32xbf16>
    %303 = vector.shape_cast %302 : vector<1x64x32xbf16> to vector<64x32xbf16>
    %cst_127 = arith.constant dense<0.000000e+00> : vector<64x32xf32>
    %304 = tpu.matmul %301, %303, %cst_127 {dimension_numbers = #tpu.dot_dimension_numbers<[1], [0], [0], [1], [0, 0, 1, 1], [], []>} : vector<64x64xbf16>, vector<64x32xbf16>, vector<64x32xf32> -> vector<64x32xf32>
    %c1_128 = arith.constant 1 : index
    %c0_129 = arith.constant 0 : index
    %c0_130 = arith.constant 0 : index
    %305 = vector.load %arg14[%c1_128, %c0_129, %c0_130] : memref<2x1x32xf32, #tpu.memory_space<vmem>>, vector<1x1x32xf32>
    %306 = vector.shape_cast %305 : vector<1x1x32xf32> to vector<1x32xf32>
    %307 = vector.broadcast %306 : vector<1x32xf32> to vector<64x32xf32>
    %308 = arith.addf %304, %307 : vector<64x32xf32>
    %309 = arith.addf %290, %308 : vector<64x32xf32>
    %c1_131 = arith.constant 1 : index
    %c0_132 = arith.constant 0 : index
    %c0_133 = arith.constant 0 : index
    %310 = vector.load %arg15[%c1_131, %c0_132, %c0_133] : memref<2x1x32xf32, #tpu.memory_space<vmem>>, vector<1x1x32xf32>
    %311 = vector.shape_cast %310 : vector<1x1x32xf32> to vector<1x32xf32>
    %c1_134 = arith.constant 1 : index
    %c0_135 = arith.constant 0 : index
    %c0_136 = arith.constant 0 : index
    %312 = vector.load %arg16[%c1_134, %c0_135, %c0_136] : memref<2x1x32xf32, #tpu.memory_space<vmem>>, vector<1x1x32xf32>
    %313 = vector.shape_cast %312 : vector<1x1x32xf32> to vector<1x32xf32>
    %cst_137 = arith.constant dense<0.000000e+00> : vector<64xf32>
    %314 = vector.multi_reduction <add>, %309, %cst_137 [1] : vector<64x32xf32> to vector<64xf32>
    %315 = vector.shape_cast %314 : vector<64xf32> to vector<64x1xf32>
    %cst_138 = arith.constant 3.200000e+01 : f32
    %316 = vector.broadcast %cst_138 : f32 to vector<64x1xf32>
    %317 = arith.divf %315, %316 : vector<64x1xf32>
    %318 = vector.broadcast %317 : vector<64x1xf32> to vector<64x32xf32>
    %319 = arith.subf %309, %318 : vector<64x32xf32>
    %320 = arith.mulf %319, %319 : vector<64x32xf32>
    %cst_139 = arith.constant dense<0.000000e+00> : vector<64xf32>
    %321 = vector.multi_reduction <add>, %320, %cst_139 [1] : vector<64x32xf32> to vector<64xf32>
    %322 = vector.shape_cast %321 : vector<64xf32> to vector<64x1xf32>
    %cst_140 = arith.constant 3.200000e+01 : f32
    %323 = vector.broadcast %cst_140 : f32 to vector<64x1xf32>
    %324 = arith.divf %322, %323 : vector<64x1xf32>
    %cst_141 = arith.constant 9.99999974E-6 : f32
    %325 = vector.broadcast %cst_141 : f32 to vector<64x1xf32>
    %326 = arith.addf %324, %325 : vector<64x1xf32>
    %327 = math.rsqrt %326 : vector<64x1xf32>
    %328 = vector.broadcast %327 : vector<64x1xf32> to vector<64x32xf32>
    %329 = arith.mulf %319, %328 : vector<64x32xf32>
    %330 = vector.broadcast %311 : vector<1x32xf32> to vector<64x32xf32>
    %331 = arith.mulf %329, %330 : vector<64x32xf32>
    %332 = vector.broadcast %313 : vector<1x32xf32> to vector<64x32xf32>
    %333 = arith.addf %331, %332 : vector<64x32xf32>
    %334 = vector.shape_cast %333 : vector<64x32xf32> to vector<8x8x32xf32>
    %cst_142 = arith.constant dense<0.000000e+00> : vector<8x32xf32>
    %335 = vector.multi_reduction <add>, %334, %cst_142 [1] : vector<8x8x32xf32> to vector<8x32xf32>
    %cst_143 = arith.constant 8.000000e+00 : f32
    %336 = vector.broadcast %cst_143 : f32 to vector<8x32xf32>
    %337 = arith.divf %335, %336 : vector<8x32xf32>
    %338 = arith.truncf %337 : vector<8x32xf32> to vector<8x32xbf16>
    %c0_144 = arith.constant 0 : index
    %c0_145 = arith.constant 0 : index
    %339 = vector.load %arg17[%c0_144, %c0_145] : memref<32x16xbf16, #tpu.memory_space<vmem>>, vector<32x16xbf16>
    %cst_146 = arith.constant dense<0.000000e+00> : vector<8x16xf32>
    %340 = tpu.matmul %338, %339, %cst_146 {dimension_numbers = #tpu.dot_dimension_numbers<[1], [0], [0], [1], [0, 0, 1, 1], [], []>} : vector<8x32xbf16>, vector<32x16xbf16>, vector<8x16xf32> -> vector<8x16xf32>
    %c0_147 = arith.constant 0 : index
    %c0_148 = arith.constant 0 : index
    %341 = vector.load %arg18[%c0_147, %c0_148] : memref<1x16xf32, #tpu.memory_space<vmem>>, vector<1x16xf32>
    %342 = vector.broadcast %341 : vector<1x16xf32> to vector<8x16xf32>
    %343 = arith.addf %340, %342 : vector<8x16xf32>
    %cst_149 = arith.constant 0.000000e+00 : f32
    %344 = vector.broadcast %cst_149 : f32 to vector<8x16xf32>
    %345 = arith.maximumf %343, %344 : vector<8x16xf32>
    %c0_150 = arith.constant 0 : index
    %c0_151 = arith.constant 0 : index
    %346 = vector.load %arg19[%c0_150, %c0_151] : memref<1x16xbf16, #tpu.memory_space<vmem>>, vector<1x16xbf16>
    %347 = tpu.transpose %345, [1, 0] : vector<8x16xf32> -> vector<16x8xf32>
    %348 = arith.truncf %347 : vector<16x8xf32> to vector<16x8xbf16>
    %cst_152 = arith.constant dense<0.000000e+00> : vector<1x8xf32>
    %349 = tpu.matmul %346, %348, %cst_152 {dimension_numbers = #tpu.dot_dimension_numbers<[1], [0], [0], [1], [0, 0, 1, 1], [], []>} : vector<1x16xbf16>, vector<16x8xbf16>, vector<1x8xf32> -> vector<1x8xf32>
    %c0_153 = arith.constant 0 : index
    %c0_154 = arith.constant 0 : index
    %350 = vector.load %arg20[%c0_153, %c0_154] : memref<1x1xf32, #tpu.memory_space<vmem>>, vector<1x1xf32>
    %351 = vector.broadcast %350 : vector<1x1xf32> to vector<1x8xf32>
    %352 = arith.addf %349, %351 : vector<1x8xf32>
    %c0_155 = arith.constant 0 : index
    %c0_156 = arith.constant 0 : index
    %c0_157 = arith.constant 0 : index
    %353 = vector.load %arg21[%c0_155, %c0_156, %c0_157] : memref<1x1x8xf32, #tpu.memory_space<vmem>>, vector<1x1x8xf32>
    %354 = vector.shape_cast %353 : vector<1x1x8xf32> to vector<1x8xf32>
    %355 = vector.shape_cast %352 : vector<1x8xf32> to vector<1x1x8xf32>
    tpu.vector_store %arg21[%c0_155, %c0_156, %c0_157], %355 {strides = array<i32>} : memref<1x1x8xf32, #tpu.memory_space<vmem>>, vector<1x1x8xf32>,
    return
  }
  func.func @transform_0(%arg0: i32) -> (i32, i32) {
    %c0_i32 = arith.constant 0 : i32
    %c0_i32_0 = arith.constant 0 : i32
    return %arg0, %c0_i32 : i32, i32
  }
  func.func @transform_1(%arg0: i32) -> (i32, i32) {
    %c0_i32 = arith.constant 0 : i32
    %c0_i32_0 = arith.constant 0 : i32
    %c0_i32_1 = arith.constant 0 : i32
    return %c0_i32, %c0_i32_0 : i32, i32
  }
  func.func @transform_2(%arg0: i32) -> (i32, i32) {
    %c0_i32 = arith.constant 0 : i32
    %c0_i32_0 = arith.constant 0 : i32
    %c0_i32_1 = arith.constant 0 : i32
    return %c0_i32, %c0_i32_0 : i32, i32
  }
  func.func @transform_3(%arg0: i32) -> (i32, i32) {
    %c0_i32 = arith.constant 0 : i32
    %c0_i32_0 = arith.constant 0 : i32
    %c0_i32_1 = arith.constant 0 : i32
    return %c0_i32, %c0_i32_0 : i32, i32
  }
  func.func @transform_4(%arg0: i32) -> (i32, i32, i32) {
    %c0_i32 = arith.constant 0 : i32
    %c0_i32_0 = arith.constant 0 : i32
    %c0_i32_1 = arith.constant 0 : i32
    %c0_i32_2 = arith.constant 0 : i32
    return %c0_i32, %c0_i32_0, %c0_i32_1 : i32, i32, i32
  }
  func.func @transform_5(%arg0: i32) -> (i32, i32, i32) {
    %c0_i32 = arith.constant 0 : i32
    %c0_i32_0 = arith.constant 0 : i32
    %c0_i32_1 = arith.constant 0 : i32
    %c0_i32_2 = arith.constant 0 : i32
    return %c0_i32, %c0_i32_0, %c0_i32_1 : i32, i32, i32
  }
  func.func @transform_6(%arg0: i32) -> (i32, i32, i32) {
    %c0_i32 = arith.constant 0 : i32
    %c0_i32_0 = arith.constant 0 : i32
    %c0_i32_1 = arith.constant 0 : i32
    %c0_i32_2 = arith.constant 0 : i32
    return %c0_i32, %c0_i32_0, %c0_i32_1 : i32, i32, i32
  }
  func.func @transform_7(%arg0: i32) -> (i32, i32, i32) {
    %c0_i32 = arith.constant 0 : i32
    %c0_i32_0 = arith.constant 0 : i32
    %c0_i32_1 = arith.constant 0 : i32
    %c0_i32_2 = arith.constant 0 : i32
    return %c0_i32, %c0_i32_0, %c0_i32_1 : i32, i32, i32
  }
  func.func @transform_8(%arg0: i32) -> (i32, i32, i32) {
    %c0_i32 = arith.constant 0 : i32
    %c0_i32_0 = arith.constant 0 : i32
    %c0_i32_1 = arith.constant 0 : i32
    %c0_i32_2 = arith.constant 0 : i32
    return %c0_i32, %c0_i32_0, %c0_i32_1 : i32, i32, i32
  }
  func.func @transform_9(%arg0: i32) -> (i32, i32, i32) {
    %c0_i32 = arith.constant 0 : i32
    %c0_i32_0 = arith.constant 0 : i32
    %c0_i32_1 = arith.constant 0 : i32
    %c0_i32_2 = arith.constant 0 : i32
    return %c0_i32, %c0_i32_0, %c0_i32_1 : i32, i32, i32
  }
  func.func @transform_10(%arg0: i32) -> (i32, i32, i32) {
    %c0_i32 = arith.constant 0 : i32
    %c0_i32_0 = arith.constant 0 : i32
    %c0_i32_1 = arith.constant 0 : i32
    %c0_i32_2 = arith.constant 0 : i32
    return %c0_i32, %c0_i32_0, %c0_i32_1 : i32, i32, i32
  }
  func.func @transform_11(%arg0: i32) -> (i32, i32, i32) {
    %c0_i32 = arith.constant 0 : i32
    %c0_i32_0 = arith.constant 0 : i32
    %c0_i32_1 = arith.constant 0 : i32
    %c0_i32_2 = arith.constant 0 : i32
    return %c0_i32, %c0_i32_0, %c0_i32_1 : i32, i32, i32
  }
  func.func @transform_12(%arg0: i32) -> (i32, i32, i32) {
    %c0_i32 = arith.constant 0 : i32
    %c0_i32_0 = arith.constant 0 : i32
    %c0_i32_1 = arith.constant 0 : i32
    %c0_i32_2 = arith.constant 0 : i32
    return %c0_i32, %c0_i32_0, %c0_i32_1 : i32, i32, i32
  }
  func.func @transform_13(%arg0: i32) -> (i32, i32, i32) {
    %c0_i32 = arith.constant 0 : i32
    %c0_i32_0 = arith.constant 0 : i32
    %c0_i32_1 = arith.constant 0 : i32
    %c0_i32_2 = arith.constant 0 : i32
    return %c0_i32, %c0_i32_0, %c0_i32_1 : i32, i32, i32
  }
  func.func @transform_14(%arg0: i32) -> (i32, i32, i32) {
    %c0_i32 = arith.constant 0 : i32
    %c0_i32_0 = arith.constant 0 : i32
    %c0_i32_1 = arith.constant 0 : i32
    %c0_i32_2 = arith.constant 0 : i32
    return %c0_i32, %c0_i32_0, %c0_i32_1 : i32, i32, i32
  }
  func.func @transform_15(%arg0: i32) -> (i32, i32, i32) {
    %c0_i32 = arith.constant 0 : i32
    %c0_i32_0 = arith.constant 0 : i32
    %c0_i32_1 = arith.constant 0 : i32
    %c0_i32_2 = arith.constant 0 : i32
    return %c0_i32, %c0_i32_0, %c0_i32_1 : i32, i32, i32
  }
  func.func @transform_16(%arg0: i32) -> (i32, i32) {
    %c0_i32 = arith.constant 0 : i32
    %c0_i32_0 = arith.constant 0 : i32
    %c0_i32_1 = arith.constant 0 : i32
    return %c0_i32, %c0_i32_0 : i32, i32
  }
  func.func @transform_17(%arg0: i32) -> (i32, i32) {
    %c0_i32 = arith.constant 0 : i32
    %c0_i32_0 = arith.constant 0 : i32
    %c0_i32_1 = arith.constant 0 : i32
    return %c0_i32, %c0_i32_0 : i32, i32
  }
  func.func @transform_18(%arg0: i32) -> (i32, i32) {
    %c0_i32 = arith.constant 0 : i32
    %c0_i32_0 = arith.constant 0 : i32
    %c0_i32_1 = arith.constant 0 : i32
    return %c0_i32, %c0_i32_0 : i32, i32
  }
  func.func @transform_19(%arg0: i32) -> (i32, i32) {
    %c0_i32 = arith.constant 0 : i32
    %c0_i32_0 = arith.constant 0 : i32
    %c0_i32_1 = arith.constant 0 : i32
    return %c0_i32, %c0_i32_0 : i32, i32
  }
  func.func @transform_20(%arg0: i32) -> (i32, i32, i32) {
    %c0_i32 = arith.constant 0 : i32
    %c0_i32_0 = arith.constant 0 : i32
    %c0_i32_1 = arith.constant 0 : i32
    return %arg0, %c0_i32, %c0_i32_0 : i32, i32, i32
  }
}

</mosaic_0001>

<bundles_post_ra>
// kernel: tpu_custom_call.1
= control target key start
LH: loop header
LB: loop body
LE: loop exit
PB: predicated region body
PF: predicated region fallthrough
CT: control target
= control target key end

     0   :  { %s13773_s0 = inlined_call_operand.vmem [shape: bf16[64,16], index: 0, kind: input, shape index: {}]   ;;  %s13774_s1 = inlined_call_operand.vmem [shape: f32[8,32], index: 1, kind: input, shape index: {}]   ;;  %s13775_s2 = inlined_call_operand.vmem [shape: bf16[16,32], index: 2, kind: input, shape index: {}]   ;;  %s13776_s3 = inlined_call_operand.vmem [shape: f32[1,32], index: 3, kind: input, shape index: {}]   ;;  %s13777_s4 = inlined_call_operand.vmem [shape: bf16[2,32,96], index: 4, kind: input, shape index: {}]   ;;  %s13778_s5 = inlined_call_operand.vmem [shape: f32[2,1,96], index: 5, kind: input, shape index: {}]   ;;  %s13779_s6 = inlined_call_operand.vmem [shape: bf16[2,32,32], index: 6, kind: input, shape index: {}]   ;;  %s13780_s7 = inlined_call_operand.vmem [shape: f32[2,1,32], index: 7, kind: input, shape index: {}]   ;;  %s13781_s8 = inlined_call_operand.vmem [shape: f32[2,1,32], index: 8, kind: input, shape index: {}]   ;;  %s13782_s9 = inlined_call_operand.vmem [shape: f32[2,1,32], index: 9, kind: input, shape index: {}]   ;;  %s13783_s10 = inlined_call_operand.vmem [shape: bf16[2,32,64], index: 10, kind: input, shape index: {}]   ;;  %s13784_s11 = inlined_call_operand.vmem [shape: f32[2,1,64], index: 11, kind: input, shape index: {}]   ;;  %s13785_s12 = inlined_call_operand.vmem [shape: bf16[2,64,32], index: 12, kind: input, shape index: {}]   ;;  %s13786_s13 = inlined_call_operand.vmem [shape: f32[2,1,32], index: 13, kind: input, shape index: {}]   ;;  %s13787_s14 = inlined_call_operand.vmem [shape: f32[2,1,32], index: 14, kind: input, shape index: {}]   ;;  %s13788_s15 = inlined_call_operand.vmem [shape: f32[2,1,32], index: 15, kind: input, shape index: {}]   ;;  %s13789_s16 = inlined_call_operand.vmem [shape: bf16[32,16], index: 16, kind: input, shape index: {}]   ;;  %s13790_s17 = inlined_call_operand.vmem [shape: f32[1,16], index: 17, kind: input, shape index: {}]   ;;  %s13791_s18 = inlined_call_operand.vmem [shape: bf16[1,16], index: 18, kind: input, shape index: {}]   ;;  %s13792_s19 = inlined_call_operand.<no memory space> [shape: f32[1,1], index: 19, kind: input, shape index: {}]   ;;  %s13793_s20 = inlined_call_operand.hbm [shape: f32[1,1,8], index: 20, kind: output, shape index: {}]  }
   0x1   :  { %13811 = sst [smem:[#allocation8_spill]] %s13773_s0  ;;  %v25_v0 = vstv %s13792_s19 }
   0x2   :  { %13812 = sst [smem:[#allocation9_spill]] %s13774_s1  ;;  %26 = vst [vmem:[#allocation2] sm:$0x1] %v25_v0 }
   0x3   :  { %13813 = sst [smem:[#allocation10_spill]] %s13775_s2 }
   0x4   :  { %13814 = sst [smem:[#allocation11_spill]] %s13776_s3 }
   0x5   :  { %13815 = sst [smem:[#allocation12_spill]] %s13777_s4 }
   0x6   :  { %s13816_s2 = sld [smem:[#allocation10_spill]]  ;;  %vm112_vm0 = vcmask 130048   ;;  %s13817_s26 = sld [smem:[#allocation8_spill]] }
   0xc   :  { %v10859_v1 = vld [vmem:[%s13816_s2] sm:$0xff]   ;;  %v10861_v3 = vld [vmem:[%s13817_s26 + $0x8] sm:$0xff]   ;;  %v10862_v4 = vld [vmem:[%s13817_s26 + $0x10] sm:$0xff]  }
   0xd   :  { %v10860_v2 = vld [vmem:[%s13817_s26] sm:$0xff]   ;;  %9824 = vmatprep.subr.bf16.mxu0 %v10859_v1  ;;  %v10863_v5 = vld [vmem:[%s13817_s26 + $0x18] sm:$0xff]  }
   0xe   :  { %9825 = vmatpush3.bf16.msra.mxu0 %v10859_v1  ;;  %9826 = vmatprep.mubr.msk.bf16.mxu0 %vm112_vm0, %v10860_v2 }
  0x11   :  { %9827 = vmatmul.mubr.msk.bf16.vlgmr.msra.gmra.mrb[0].mxu0 %vm112_vm0, %v10861_v3 }
  0x12   :  { %9830 = vmatprep.mubr.msk.bf16.mxu0 %vm112_vm0, %v10862_v4 }
  0x19   :  { %9831 = vmatmul.mubr.msk.bf16.gmra.mrb[4].mxu0 %vm112_vm0, %v10863_v5 }
  0x1a   :  { %27 = vsyncpa [#allocation4], 0  ;;  %s13818_s1 = sld [smem:[#allocation12_spill]]  ;;  %s13819_s25 = sld [smem:[#allocation11_spill]]  ;;  %vm226_vm1 = vcmask 261120   ;;  %v13796_v38 = vmov 0.0  }
  0x1b   :  { %s13820_s27 = sld [smem:[#allocation9_spill]]  ;;  %9846 = vmatprep.subr.bf16.mxu0 %v13796_v38  ;;  %v9277_v39 = vld [vmem:[%s13778_s5] ss:$0 sm:$0xff]  ;;  %vm11231_vm2 = vmmov 0   ;;  %s11232_s19 = smov 96   ;;  %vm331_vm3 = vcmask 64512  }
  0x1c   :  { %9848 = vmatprep.mubr.msk.bf16.mxu0 %vm11231_vm2, %v13796_v38  ;;  %s11233_s29 = smov 64   ;;  %vm822_vm4 = vcmask 1043456   ;;  %s11234_s30 = smov 88   ;;  %vm3962_vm5 = vcmask 195584   ;;  %vm4373_vm6 = vcmask 523264   ;;  %vm9093_vm7 = vcmask 1041409  }
  0x1d   :  { %s11235_s0 = smov 120   ;;  %s11236_s21 = smov 56   ;;  %vm9095_vm8 = vcmask 1042434   ;;  %vm9097_vm9 = vcmask 1043459   ;;  %vm9099_vm10 = vcmask 1044484   ;;  %vm9101_vm11 = vcmask 1045509  }
  0x1e   :  { %s11237_s22 = smov 80   ;;  %s11238_s23 = smov 112   ;;  %vm9103_vm12 = vcmask 1046534   ;;  %vm9105_vm13 = vcmask 1047559   ;;  %vm9251_vm14 = vcmask 57344  }
  0x1f   :  { %s11239_s24 = smov 48   ;;  %s13803_s2 = smov 72  }
  0x20   :  { %v10864_v6 = vld [vmem:[%s13818_s1] sm:$0xff]   ;;  %v10865_v7 = vld [vmem:[%s13818_s1 + $0x8] sm:$0xff]   ;;  %s13799_s3 = smov 40   ;;  %s11243_s26 = smov 8  }
  0x21   :  { %9834 = vmatprep.subr.bf16.mxu1 %v10864_v6  ;;  %v9267_v8 = vld [vmem:[%s13819_s25] ss:$0 sm:$0xff]  ;;  %s13801_s25 = smov 104  }
  0x22   :  { %9835 = vmatpush3.bf16.msra.mxu1 %v10864_v6  ;;  %v190_v14 = vld [vmem:[%s13820_s27] sm:$0xff]  ;;  %s13807_s27 = smov 16  }
  0x23   :  { %9836 = vmatprep.subr.bf16.mxu1 %v10865_v7 }
  0x26   :  { %9837 = vmatpush3.bf16.msra.mxu1 %v10865_v7 }
  0x27   :  { %9852 = vmatprep.subr.bf16.mxu1 %v13796_v38 }
  0xe4   :  { %v9828_v9 = vpop.f32.mrb[0].mxu0 }
  0xe5   :  { %v159_v10 = vpop.f32.mrb[1].mxu0  ;;  %v168_v13 = vadd.f32 %v9828_v9, %v9267_v8 }
  0xe6   :  { %v160_v11 = vadd.f32 %v9267_v8, %v159_v10  ;;  %v9829_v12 = vpop.f32.mrb[2].mxu0 }
  0xe7   :  { %v171_v15 = vadd.f32 %v9829_v12, %v9267_v8  ;;  %v162_v16 = vpop.f32.mrb[3].mxu0  ;;  %v11393_v21 = vadd.f32 %v190_v14, %v168_v13 }
  0xe8   :  { %v163_v17 = vadd.f32 %v9267_v8, %v162_v16  ;;  %v11389_v19 = vadd.f32 %v190_v14, %v160_v11 }
  0xe9   :  { %v11387_v18 = vadd.f32 %v190_v14, %v171_v15 }
  0xea   :  { %v11391_v20 = vadd.f32 %v190_v14, %v163_v17 }
  0xeb   :  { %v200_v26 = vpack.c.bf16 %v11387_v18, %v11393_v21 }
  0xec   :  { %v9832_v22 = vpop.f32.mrb[4].mxu0  ;;  %v199_v23 = vpack.c.bf16 %v11391_v20, %v11389_v19 }
  0xed   :  { %v184_v24 = vadd.f32 %v9832_v22, %v9267_v8  ;;  %v175_v25 = vpop.f32.mrb[5].mxu0 }
  0xee   :  { %v176_v27 = vadd.f32 %v9267_v8, %v175_v25  ;;  %v9833_v28 = vpop.f32.mrb[6].mxu0  ;;  %9838 = vmatprep.mubr.msk.bf16.mxu1 %vm226_vm1, %v199_v23 }
  0xef   :  { %v11400_v29 = vadd.f32 %v190_v14, %v184_v24  ;;  %v187_v30 = vadd.f32 %v9833_v28, %v9267_v8  ;;  %v178_v31 = vpop.f32.mrb[7].mxu0  ;;  %9839 = vmatmul.mubr.msk.bf16.vlgmr.msra.gmra.mrb[0].mxu1 %vm226_vm1, %v200_v26 }
  0xf0   :  { %v11403_v32 = vadd.f32 %v190_v14, %v176_v27  ;;  %v179_v33 = vadd.f32 %v9267_v8, %v178_v31 }
  0xf1   :  { %v11405_v34 = vadd.f32 %v190_v14, %v187_v30 }
  0xf2   :  { %v11407_v35 = vadd.f32 %v190_v14, %v179_v33 }
  0xf3   :  { %13821 = vst [vmem:[#allocation6_spill] sm:$0xff] %v11405_v34  ;;  %v202_v36 = vpack.c.bf16 %v11405_v34, %v11400_v29 }
  0xf4   :  { %v201_v37 = vpack.c.bf16 %v11407_v35, %v11403_v32 }
  0xf6   :  { %9842 = vmatprep.mubr.msk.bf16.mxu1 %vm226_vm1, %v201_v37 }
  0xf7   :  { %9843 = vmatmul.mubr.msk.bf16.gmra.mrb[4].mxu1 %vm226_vm1, %v202_v36 }
  0xf8   :  { %9854 = vmatprep.mubr.msk.bf16.mxu1 %vm11231_vm2, %v13796_v38 }
 0x1c2   :  { %v9840_v40 = vpop.f32.mrb[0].mxu1 }
 0x1c3   :  { %v282_v41 = vadd.f32 %v9840_v40, %v9277_v39  ;;  %v273_v42 = vpop.f32.mrb[1].mxu1 }
 0x1c4   :  { %v274_v43 = vadd.f32 %v9277_v39, %v273_v42  ;;  %v9841_v44 = vpop.f32.mrb[2].mxu1 }
 0x1c5   :  { %v11424_v45 = vpack.c.bf16 %v282_v41, %v282_v41  ;;  %v285_v46 = vadd.f32 %v9841_v44, %v9277_v39  ;;  %v276_v47 = vpop.f32.mrb[3].mxu1  ;;  %v306_v10 = vmul.f32 0.35355338, %v282_v41 }
 0x1c6   :  { %v11426_v48 = vpack.c.bf16 %v274_v43, %v274_v43  ;;  %v277_v49 = vadd.f32 %v9277_v39, %v276_v47  ;;  %v304_v2 = vmul.f32 0.35355338, %v274_v43 }
 0x1c7   :  { %428 = vrot.lane.b32.xlu1 %v11424_v45, %s11232_s19  ;;  %v11432_v50 = vpack.c.bf16 %v285_v46, %v285_v46  ;;  %v11491_v13 = vpack.c.bf16 %v306_v10, %v306_v10  ;;  %v307_v14 = vmul.f32 0.35355338, %v285_v46 }
 0x1c8   :  { %329 = vrot.lane.b32.xlu0 %v11426_v48, %s11232_s19  ;;  %v11434_v51 = vpack.c.bf16 %v277_v49, %v277_v49  ;;  %v11475_v6 = vpack.c.bf16 %v304_v2, %v304_v2  ;;  %v305_v7 = vmul.f32 0.35355338, %v277_v49 }
 0x1c9   :  { %v11499_v22 = vpack.c.bf16 %v307_v14, %v307_v14 }
 0x1ca   :  { %v9844_v52 = vpop.f32.mrb[4].mxu1  ;;  %v11483_v11 = vpack.c.bf16 %v305_v7, %v305_v7 }
 0x1cb   :  { %477 = vrot.lane.b32.xlu1 %v11432_v50, %s11232_s19  ;;  %v289_v53 = vpop.f32.mrb[5].mxu1  ;;  %v11438_v54 = vadd.f32 %v9844_v52, %v9277_v39 }
 0x1cc   :  { %v290_v55 = vadd.f32 %v9277_v39, %v289_v53  ;;  %v9845_v56 = vpop.f32.mrb[6].mxu1  ;;  %379 = vrot.lane.b32.xlu0 %v11434_v51, %s11232_s19 }
 0x1cd   :  { %v292_v57 = vpop.f32.mrb[7].mxu1  ;;  %v11446_v60 = vpack.c.bf16 %v11438_v54, %v11438_v54  ;;  %v11448_v61 = vadd.f32 %v9845_v56, %v9277_v39  ;;  %v310_v31 = vmul.f32 0.35355338, %v11438_v54 }
 0x1ce   :  { %v11442_v58 = vpack.c.bf16 %v290_v55, %v290_v55  ;;  %v293_v59 = vadd.f32 %v9277_v39, %v292_v57  ;;  %v308_v23 = vmul.f32 0.35355338, %v290_v55 }
 0x1cf   :  { %v11458_v63 = vpack.c.bf16 %v11448_v61, %v11448_v61  ;;  %v11524_v39 = vpack.c.bf16 %v310_v31, %v310_v31  ;;  %v311_v40 = vmul.f32 0.35355338, %v11448_v61 }
 0x1d0   :  { %v11450_v62 = vpack.c.bf16 %v293_v59, %v293_v59  ;;  %526 = vrot.lane.b32.xlu0 %v11442_v58, %s11232_s19  ;;  %v11507_v26 = vpack.c.bf16 %v308_v23, %v308_v23  ;;  %v309_v27 = vmul.f32 0.35355338, %v293_v59 }
 0x1d1   :  { %v11533_v43 = vpack.c.bf16 %v311_v40, %v311_v40 }
 0x1d2   :  { %575 = vrot.lane.b32.xlu1 %v11450_v62, %s11232_s19  ;;  %v11516_v33 = vpack.c.bf16 %v309_v27, %v309_v27 }
 0x1d4   :  { %624 = vrot.lane.b32.xlu0 %v11446_v60, %s11232_s19 }
 0x1d6   :  { %673 = vrot.lane.b32.xlu1 %v11458_v63, %s11232_s19 }
 0x1d8   :  { %866 = vrot.lane.b32.xlu0 %v11434_v51, %s11233_s29 }
 0x1da   :  { %817 = vrot.lane.b32.xlu1 %v11426_v48, %s11233_s29 }
 0x1de   :  { %914 = vrot.lane.b32.xlu1 %v11424_v45, %s11233_s29 }
 0x1e2   :  { %962 = vrot.lane.b32.xlu1 %v11432_v50, %s11233_s29 }
 0x239   :  { %v429_v3 = vpop.permute.xlu1 %428 }
 0x23a   :  { %v330_v0 = vpop.permute.xlu0 %329  ;;  %v434_v8 = vsel %vm331_vm3, %v429_v3, 0 }
 0x23b   :  { %v336_v1 = vsel %vm331_vm3, %v330_v0, 0 }
 0x23c   :  { %9847 = vmatpush3.bf16.xpose.msra.mxu0 %v336_v1 }
 0x23d   :  { %9858 = vmatprep.subr.bf16.mxu0 %v13796_v38  ;;  %v478_v9 = vpop.permute.xlu1 %477 }
 0x23e   :  { %v380_v4 = vpop.permute.xlu0 %379  ;;  %v483_v12 = vsel %vm331_vm3, %v478_v9, 0 }
 0x23f   :  { %v385_v5 = vsel %vm331_vm3, %v380_v4, 0 }
 0x240   :  { %9853 = vmatpush3.bf16.xpose.msra.mxu1 %v385_v5 }
 0x241   :  { %9864 = vmatprep.subr.bf16.mxu1 %v13796_v38 }
 0x242   :  { %v527_v15 = vpop.permute.xlu0 %526 }
 0x243   :  { %9849 = vmatmul.mubr.msk.bf16.vlgmr.msra.gmra.mrb[8].mxu0 %vm331_vm3, %v11475_v6  ;;  %v532_v16 = vsel %vm331_vm3, %v527_v15, 0 }
 0x244   :  { %9859 = vmatpush3.bf16.xpose.msra.mxu0 %v434_v8  ;;  %9860 = vmatprep.mubr.msk.bf16.mxu0 %vm11231_vm2, %v13796_v38  ;;  %v576_v17 = vpop.permute.xlu1 %575 }
 0x245   :  { %9870 = vmatprep.subr.bf16.mxu0 %v13796_v38  ;;  %v581_v24 = vsel %vm331_vm3, %v576_v17, 0 }
 0x246   :  { %v625_v25 = vpop.permute.xlu0 %624 }
 0x247   :  { %9855 = vmatmul.mubr.msk.bf16.vlgmr.msra.gmra.mrb[8].mxu1 %vm331_vm3, %v11483_v11  ;;  %v630_v30 = vsel %vm331_vm3, %v625_v25, 0 }
 0x248   :  { %9865 = vmatpush3.bf16.xpose.msra.mxu1 %v483_v12  ;;  %9866 = vmatprep.mubr.msk.bf16.mxu1 %vm11231_vm2, %v13796_v38  ;;  %v674_v28 = vpop.permute.xlu1 %673 }
 0x249   :  { %9876 = vmatprep.subr.bf16.mxu1 %v13796_v38  ;;  %v679_v36 = vsel %vm331_vm3, %v674_v28, 0 }
 0x24a   :  { %v867_v42 = vpop.permute.xlu0 %866 }
 0x24b   :  { %9861 = vmatmul.mubr.msk.bf16.vlgmr.msra.gmra.mrb[12].mxu0 %vm331_vm3, %v11491_v13  ;;  %v872_v44 = vsel %vm822_vm4, %v867_v42, 0 }
 0x24c   :  { %9871 = vmatpush3.bf16.xpose.msra.mxu0 %v532_v16  ;;  %9872 = vmatprep.mubr.msk.bf16.mxu0 %vm11231_vm2, %v13796_v38  ;;  %v818_v37 = vpop.permute.xlu1 %817 }
 0x24d   :  { %9882 = vmatprep.subr.bf16.mxu0 %v13796_v38  ;;  %v824_v41 = vsel %vm822_vm4, %v818_v37, 0 }
 0x24f   :  { %9867 = vmatmul.mubr.msk.bf16.vlgmr.msra.gmra.mrb[12].mxu1 %vm331_vm3, %v11499_v22 }
 0x250   :  { %9877 = vmatpush3.bf16.xpose.msra.mxu1 %v581_v24  ;;  %9878 = vmatprep.mubr.msk.bf16.mxu1 %vm11231_vm2, %v13796_v38 }
 0x251   :  { %9888 = vmatprep.subr.bf16.mxu1 %v13796_v38 }
 0x253   :  { %9873 = vmatmul.mubr.msk.bf16.vlgmr.msra.gmra.mrb[16].mxu0 %vm331_vm3, %v11507_v26 }
 0x254   :  { %9883 = vmatpush3.bf16.xpose.msra.mxu0 %v630_v30  ;;  %9884 = vmatprep.mubr.msk.bf16.mxu0 %vm11231_vm2, %v13796_v38 }
 0x255   :  { %9894 = vmatprep.subr.bf16.mxu0 %v13796_v38 }
 0x257   :  { %9879 = vmatmul.mubr.msk.bf16.vlgmr.msra.gmra.mrb[16].mxu1 %vm331_vm3, %v11516_v33 }
 0x258   :  { %9889 = vmatpush3.bf16.xpose.msra.mxu1 %v679_v36  ;;  %9890 = vmatprep.mubr.msk.bf16.mxu1 %vm11231_vm2, %v13796_v38 }
 0x259   :  { %9900 = vmatprep.subr.bf16.mxu1 %v13796_v38 }
 0x25b   :  { %9885 = vmatmul.mubr.msk.bf16.vlgmr.msra.gmra.mrb[20].mxu0 %vm331_vm3, %v11524_v39 }
 0x25c   :  { %9895 = vmatpush3.bf16.msra.mxu0 %v824_v41  ;;  %9896 = vmatprep.mubr.msk.bf16.mxu0 %vm11231_vm2, %v13796_v38 }
 0x25d   :  { %9906 = vmatprep.subr.bf16.mxu0 %v13796_v38 }
 0x25f   :  { %9891 = vmatmul.mubr.msk.bf16.vlgmr.msra.gmra.mrb[20].mxu1 %vm331_vm3, %v11533_v43 }
 0x260   :  { %9901 = vmatpush3.bf16.msra.mxu1 %v872_v44  ;;  %9902 = vmatprep.mubr.msk.bf16.mxu1 %vm11231_vm2, %v13796_v38 }
 0x261   :  { %9912 = vmatprep.subr.bf16.mxu1 %v13796_v38 }
 0x316   :  { %v372_v46 = vpop.f32.mrb[8].mxu0 }
 0x317   :  { %v9850_v47 = vpop.f32.mrb[9].mxu0  ;;  %v721_v49 = vsel %vm331_vm3, %v372_v46, -inf }
 0x318   :  { %722 = vmax.xlane.f32.xlu0 %v721_v49  ;;  %v375_v52 = vpop.f32.mrb[10].mxu0  ;;  %v11557_v49 = vpop.permute.xlu1 %914 }
 0x319   :  { %v9851_v53 = vpop.f32.mrb[11].mxu0 }
 0x31a   :  { %v421_v54 = vpop.f32.mrb[8].mxu1 }
 0x31b   :  { %v9856_v55 = vpop.f32.mrb[9].mxu1  ;;  %v724_v56 = vsel %vm331_vm3, %v421_v54, -inf }
 0x31c   :  { %725 = vmax.xlane.f32.xlu1 %v724_v56  ;;  %v424_v57 = vpop.f32.mrb[10].mxu1  ;;  %v11559_v52 = vpop.permute.xlu1 %962 }
 0x31d   :  { %v9857_v59 = vpop.f32.mrb[11].mxu1 }
 0x31e   :  { %v470_v61 = vpop.f32.mrb[12].mxu0 }
 0x31f   :  { %v9862_v0 = vpop.f32.mrb[13].mxu0  ;;  %v727_v1 = vsel %vm331_vm3, %v470_v61, -inf }
 0x320   :  { %728 = vmax.xlane.f32.xlu0 %v727_v1  ;;  %v473_v2 = vpop.f32.mrb[14].mxu0 }
 0x321   :  { %v9863_v3 = vpop.f32.mrb[15].mxu0 }
 0x322   :  { %v519_v4 = vpop.f32.mrb[12].mxu1 }
 0x323   :  { %v9868_v5 = vpop.f32.mrb[13].mxu1  ;;  %v730_v7 = vsel %vm331_vm3, %v519_v4, -inf }
 0x324   :  { %v522_v8 = vpop.f32.mrb[14].mxu1  ;;  %731 = vmax.xlane.f32.xlu0 %v730_v7 }
 0x325   :  { %v9869_v9 = vpop.f32.mrb[15].mxu1 }
 0x326   :  { %v568_v10 = vpop.f32.mrb[16].mxu0 }
 0x327   :  { %v9874_v12 = vpop.f32.mrb[17].mxu0  ;;  %v733_v14 = vsel %vm331_vm3, %v568_v10, -inf }
 0x328   :  { %734 = vmax.xlane.f32.xlu1 %v733_v14  ;;  %v571_v15 = vpop.f32.mrb[18].mxu0 }
 0x329   :  { %v9875_v16 = vpop.f32.mrb[19].mxu0 }
 0x32a   :  { %v617_v17 = vpop.f32.mrb[16].mxu1 }
 0x32b   :  { %v9880_v23 = vpop.f32.mrb[17].mxu1  ;;  %v736_v24 = vsel %vm331_vm3, %v617_v17, -inf }
 0x32c   :  { %v620_v25 = vpop.f32.mrb[18].mxu1  ;;  %737 = vmax.xlane.f32.xlu0 %v736_v24 }
 0x32d   :  { %v9881_v27 = vpop.f32.mrb[19].mxu1 }
 0x32e   :  { %v11548_v28 = vpop.f32.mrb[20].mxu0 }
 0x32f   :  { %v9886_v30 = vpop.f32.mrb[21].mxu0  ;;  %v739_v31 = vsel %vm331_vm3, %v11548_v28, -inf }
 0x330   :  { %740 = vmax.xlane.f32.xlu1 %v739_v31  ;;  %v669_v36 = vpop.f32.mrb[22].mxu0 }
 0x331   :  { %v9887_v37 = vpop.f32.mrb[23].mxu0 }
 0x332   :  { %v715_v40 = vpop.f32.mrb[20].mxu1 }
 0x333   :  { %v9892_v41 = vpop.f32.mrb[21].mxu1  ;;  %v742_v42 = vsel %vm331_vm3, %v715_v40, -inf }
 0x334   :  { %v718_v44 = vpop.f32.mrb[22].mxu1  ;;  %743 = vmax.xlane.f32.xlu0 %v742_v42 }
 0x335   :  { %v9893_v47 = vpop.f32.mrb[23].mxu1 }
 0x341   :  { %1058 = vrot.lane.b32.xlu1 %v11450_v62, %s11233_s29 }
 0x34a   :  { %1010 = vrot.lane.b32.xlu0 %v11442_v58, %s11233_s29 }
 0x3a5   :  { %v723_v53 = vpop.xlane.xlu0 %722 }
 0x3a6   :  { %v745_v55 = vsub.f32 %v372_v46, %v723_v53 }
 0x3a8   :  { %v753_v56 = vmul.f32 1.442695, %v745_v55 }
 0x3a9   :  { %v726_v57 = vpop.xlane.xlu1 %725 }
 0x3aa   :  { %10886 = vpow2.f32 %v753_v56  ;;  %v746_v59 = vsub.f32 %v421_v54, %v726_v57 }
 0x3ac   :  { %v755_v0 = vmul.f32 1.442695, %v746_v59 }
 0x3ad   :  { %v729_v1 = vpop.xlane.xlu0 %728 }
 0x3ae   :  { %10888 = vpow2.f32 %v755_v0  ;;  %v747_v2 = vsub.f32 %v470_v61, %v729_v1 }
 0x3b0   :  { %v757_v3 = vmul.f32 1.442695, %v747_v2 }
 0x3b1   :  { %v732_v5 = vpop.xlane.xlu0 %731 }
 0x3b2   :  { %10890 = vpow2.f32 %v757_v3  ;;  %v748_v7 = vsub.f32 %v519_v4, %v732_v5 }
 0x3b4   :  { %v11561_v8 = vpop.eup %10886  ;;  %v759_v9 = vmul.f32 1.442695, %v748_v7 }
 0x3b5   :  { %v735_v12 = vpop.xlane.xlu1 %734  ;;  %v769_v14 = vsel %vm331_vm3, %v11561_v8, 0.0 }
 0x3b6   :  { %10892 = vpow2.f32 %v759_v9  ;;  %v749_v46 = vsub.f32 %v568_v10, %v735_v12  ;;  %770 = vadd.xlane.f32.xlu1 %v769_v14  ;;  %v920_v14 = vsel %vm822_vm4, %v11557_v49, 0 }
 0x3b8   :  { %v11565_v15 = vpop.eup %10888  ;;  %v761_v54 = vmul.f32 1.442695, %v749_v46 }
 0x3b9   :  { %v738_v16 = vpop.xlane.xlu0 %737  ;;  %v772_v61 = vsel %vm331_vm3, %v11565_v15, 0.0 }
 0x3ba   :  { %10894 = vpow2.f32 %v761_v54  ;;  %v750_v23 = vsub.f32 %v617_v17, %v738_v16  ;;  %773 = vadd.xlane.f32.xlu0 %v772_v61  ;;  %v968_v61 = vsel %vm822_vm4, %v11559_v52, 0 }
 0x3bc   :  { %v11569_v4 = vpop.eup %10890  ;;  %v763_v24 = vmul.f32 1.442695, %v750_v23 }
 0x3bd   :  { %v775_v25 = vsel %vm331_vm3, %v11569_v4, 0.0  ;;  %v741_v37 = vpop.xlane.xlu1 %740 }
 0x3be   :  { %10896 = vpow2.f32 %v763_v24  ;;  %776 = vadd.xlane.f32.xlu1 %v775_v25  ;;  %v751_v41 = vsub.f32 %v11548_v28, %v741_v37 }
 0x3c0   :  { %v11573_v10 = vpop.eup %10892  ;;  %v765_v44 = vmul.f32 1.442695, %v751_v41 }
 0x3c1   :  { %v778_v27 = vsel %vm331_vm3, %v11573_v10, 0.0  ;;  %v744_v42 = vpop.xlane.xlu0 %743  ;;  %v1059_v28 = vpop.permute.xlu1 %1058 }
 0x3c2   :  { %779 = vadd.xlane.f32.xlu0 %v778_v27  ;;  %v752_v47 = vsub.f32 %v715_v40, %v744_v42  ;;  %10898 = vpow2.f32 %v765_v44 }
 0x3c4   :  { %v11577_v30 = vpop.eup %10894  ;;  %v767_v53 = vmul.f32 1.442695, %v752_v47 }
 0x3c5   :  { %v781_v17 = vsel %vm331_vm3, %v11577_v30, 0.0  ;;  %v1011_v40 = vpop.permute.xlu0 %1010 }
 0x3c6   :  { %782 = vadd.xlane.f32.xlu1 %v781_v17  ;;  %10900 = vpow2.f32 %v767_v53  ;;  %v1016_v25 = vsel %vm822_vm4, %v1011_v40, 0  ;;  %v1064_v17 = vsel %vm822_vm4, %v1059_v28, 0 }
 0x3c8   :  { %v11581_v31 = vpop.eup %10896 }
 0x3c9   :  { %v784_v36 = vsel %vm331_vm3, %v11581_v31, 0.0 }
 0x3ca   :  { %785 = vadd.xlane.f32.xlu0 %v784_v36 }
 0x3cc   :  { %v11590_v55 = vpop.eup %10898 }
 0x3cd   :  { %v787_v56 = vsel %vm331_vm3, %v11590_v55, 0.0 }
 0x3d0   :  { %v11594_v57 = vpop.eup %10900 }
 0x3d1   :  { %v790_v59 = vsel %vm331_vm3, %v11594_v57, 0.0 }
 0x3d7   :  { %1154 = vrot.lane.b32.xlu1 %v11458_v63, %s11233_s29 }
 0x3e0   :  { %1106 = vrot.lane.b32.xlu0 %v11446_v60, %s11233_s29 }
 0x3fb   :  { %788 = vadd.xlane.f32.xlu1 %v787_v56 }
 0x3ff   :  { %791 = vadd.xlane.f32.xlu0 %v790_v59 }
 0x40c   :  { %1256 = vrot.lane.b32.xlu1 %v11434_v51, %s11234_s30 }
 0x410   :  { %1254 = vrot.lane.b32.xlu1 %v11483_v11, %s11235_s0 }
 0x414   :  { %1358 = vrot.lane.b32.xlu1 %v11432_v50, %s11234_s30 }
 0x415   :  { %1205 = vrot.lane.b32.xlu0 %v11426_v48, %s11234_s30 }
 0x418   :  { %1356 = vrot.lane.b32.xlu1 %v11499_v22, %s11235_s0 }
 0x419   :  { %1203 = vrot.lane.b32.xlu0 %v11475_v6, %s11235_s0 }
 0x41c   :  { %1460 = vrot.lane.b32.xlu1 %v11450_v62, %s11234_s30 }
 0x41d   :  { %1307 = vrot.lane.b32.xlu0 %v11424_v45, %s11234_s30 }
 0x420   :  { %1458 = vrot.lane.b32.xlu1 %v11516_v33, %s11235_s0 }
 0x421   :  { %1305 = vrot.lane.b32.xlu0 %v11491_v13, %s11235_s0 }
 0x424   :  { %1562 = vrot.lane.b32.xlu1 %v11458_v63, %s11234_s30 }
 0x425   :  { %1409 = vrot.lane.b32.xlu0 %v11442_v58, %s11234_s30 }
 0x428   :  { %1560 = vrot.lane.b32.xlu1 %v11533_v43, %s11235_s0 }
 0x429   :  { %1407 = vrot.lane.b32.xlu0 %v11507_v26, %s11235_s0 }
 0x42c   :  { %1706 = vrot.lane.b32.xlu1 %v11426_v48, %s11236_s21 }
 0x42d   :  { %1511 = vrot.lane.b32.xlu0 %v11446_v60, %s11234_s30 }
 0x430   :  { %1802 = vrot.lane.b32.xlu1 %v11424_v45, %s11236_s21 }
 0x431   :  { %1509 = vrot.lane.b32.xlu0 %v11524_v39, %s11235_s0 }
 0x434   :  { %1850 = vrot.lane.b32.xlu1 %v11432_v50, %s11236_s21 }
 0x435   :  { %1754 = vrot.lane.b32.xlu0 %v11434_v51, %s11236_s21 }
 0x443   :  { %v771_v0 = vpop.xlane.xlu1 %770 }
 0x444   :  { %10902 = vrcp.f32 %v771_v0 }
 0x447   :  { %v774_v1 = vpop.xlane.xlu0 %773 }
 0x448   :  { %10904 = vrcp.f32 %v774_v1 }
 0x44b   :  { %v777_v2 = vpop.xlane.xlu1 %776 }
 0x44c   :  { %10906 = vrcp.f32 %v777_v2 }
 0x44e   :  { %v10903_v3 = vpop.eup %10902 }
 0x44f   :  { %v780_v5 = vpop.xlane.xlu0 %779  ;;  %v801_v7 = vmul.f32 %v10903_v3, %v11561_v8 }
 0x450   :  { %10908 = vrcp.f32 %v780_v5 }
 0x451   :  { %v809_v9 = vpack.c.bf16 %v801_v7, %v801_v7 }
 0x452   :  { %v10905_v12 = vpop.eup %10904 }
 0x453   :  { %9897 = vmatmul.mubr.msk.bf16.vlgmr.msra.gmra.mrb[24].mxu0 %vm331_vm3, %v809_v9  ;;  %v783_v46 = vpop.xlane.xlu1 %782  ;;  %v802_v54 = vmul.f32 %v10905_v12, %v11565_v15 }
 0x454   :  { %9907 = vmatpush3.bf16.msra.mxu0 %v920_v14  ;;  %10910 = vrcp.f32 %v783_v46  ;;  %9908 = vmatprep.mubr.msk.bf16.mxu0 %vm11231_vm2, %v13796_v38 }
 0x455   :  { %v810_v16 = vpack.c.bf16 %v802_v54, %v802_v54  ;;  %9918 = vmatprep.subr.bf16.mxu0 %v13796_v38 }
 0x456   :  { %v10907_v8 = vpop.eup %10906 }
 0x457   :  { %9903 = vmatmul.mubr.msk.bf16.vlgmr.msra.gmra.mrb[24].mxu1 %vm331_vm3, %v810_v16  ;;  %v786_v49 = vpop.xlane.xlu0 %785  ;;  %v803_v23 = vmul.f32 %v10907_v8, %v11569_v4  ;;  %v1155_v47 = vpop.permute.xlu1 %1154 }
 0x458   :  { %9913 = vmatpush3.bf16.msra.mxu1 %v968_v61  ;;  %10912 = vrcp.f32 %v786_v49  ;;  %9914 = vmatprep.mubr.msk.bf16.mxu1 %vm11231_vm2, %v13796_v38  ;;  %v1160_v53 = vsel %vm822_vm4, %v1155_v47, 0 }
 0x459   :  { %v811_v15 = vpack.c.bf16 %v803_v23, %v803_v23  ;;  %9924 = vmatprep.subr.bf16.mxu1 %v13796_v38 }
 0x45a   :  { %v10909_v24 = vpop.eup %10908 }
 0x45b   :  { %9909 = vmatmul.mubr.msk.bf16.vlgmr.msra.gmra.mrb[28].mxu0 %vm331_vm3, %v811_v15  ;;  %v804_v52 = vmul.f32 %v10909_v24, %v11573_v10  ;;  %v1107_v37 = vpop.permute.xlu0 %1106 }
 0x45c   :  { %9919 = vmatpush3.bf16.msra.mxu0 %v1016_v25  ;;  %9920 = vmatprep.mubr.msk.bf16.mxu0 %vm11231_vm2, %v13796_v38  ;;  %v1112_v42 = vsel %vm822_vm4, %v1107_v37, 0 }
 0x45d   :  { %v812_v4 = vpack.c.bf16 %v804_v52, %v804_v52  ;;  %9930 = vmatprep.subr.bf16.mxu0 %v13796_v38 }
 0x45e   :  { %v10911_v27 = vpop.eup %10910 }
 0x45f   :  { %9915 = vmatmul.mubr.msk.bf16.vlgmr.msra.gmra.mrb[28].mxu1 %vm331_vm3, %v812_v4  ;;  %v805_v36 = vmul.f32 %v10911_v27, %v11577_v30 }
 0x460   :  { %9925 = vmatpush3.bf16.msra.mxu1 %v1064_v17  ;;  %9926 = vmatprep.mubr.msk.bf16.mxu1 %vm11231_vm2, %v13796_v38 }
 0x461   :  { %v813_v10 = vpack.c.bf16 %v805_v36, %v805_v36  ;;  %9936 = vmatprep.subr.bf16.mxu1 %v13796_v38 }
 0x462   :  { %v10913_v41 = vpop.eup %10912 }
 0x463   :  { %9921 = vmatmul.mubr.msk.bf16.vlgmr.msra.gmra.mrb[32].mxu0 %vm331_vm3, %v813_v10  ;;  %v806_v44 = vmul.f32 %v10913_v41, %v11581_v31 }
 0x464   :  { %9931 = vmatpush3.bf16.msra.mxu0 %v1112_v42  ;;  %9932 = vmatprep.mubr.msk.bf16.mxu0 %vm11231_vm2, %v13796_v38 }
 0x465   :  { %v814_v30 = vpack.c.bf16 %v806_v44, %v806_v44  ;;  %9942 = vmatprep.subr.bf16.mxu0 %v13796_v38 }
 0x467   :  { %9927 = vmatmul.mubr.msk.bf16.vlgmr.msra.gmra.mrb[32].mxu1 %vm331_vm3, %v814_v30 }
 0x468   :  { %9937 = vmatpush3.bf16.msra.mxu1 %v1160_v53  ;;  %9938 = vmatprep.mubr.msk.bf16.mxu1 %vm11231_vm2, %v13796_v38 }
 0x469   :  { %9948 = vmatprep.subr.bf16.mxu1 %v13796_v38 }
 0x488   :  { %v789_v56 = vpop.xlane.xlu1 %788 }
 0x489   :  { %10914 = vrcp.f32 %v789_v56 }
 0x48c   :  { %v792_v31 = vpop.xlane.xlu0 %791  ;;  %v1257_v59 = vpop.permute.xlu1 %1256 }
 0x48d   :  { %10916 = vrcp.f32 %v792_v31  ;;  %v1262_v16 = vsel %vm331_vm3, %v1257_v59, 0 }
 0x490   :  { %v1206_v28 = vpop.permute.xlu0 %1205  ;;  %v1255_v40 = vpop.permute.xlu1 %1254 }
 0x491   :  { %v1211_v9 = vsel %vm331_vm3, %v1206_v28, 0 }
 0x493   :  { %v10915_v0 = vpop.eup %10914 }
 0x494   :  { %v1204_v1 = vpop.permute.xlu0 %1203  ;;  %v1359_v2 = vpop.permute.xlu1 %1358  ;;  %v807_v3 = vmul.f32 %v10915_v0, %v11590_v55 }
 0x495   :  { %v1364_v23 = vsel %vm331_vm3, %v1359_v2, 0 }
 0x496   :  { %v815_v5 = vpack.c.bf16 %v807_v3, %v807_v3 }
 0x497   :  { %v10917_v7 = vpop.eup %10916 }
 0x498   :  { %v1308_v12 = vpop.permute.xlu0 %1307  ;;  %9933 = vmatmul.mubr.msk.bf16.vlgmr.msra.gmra.mrb[36].mxu0 %vm331_vm3, %v815_v5  ;;  %v1357_v14 = vpop.permute.xlu1 %1356  ;;  %v808_v46 = vmul.f32 %v10917_v7, %v11594_v57 }
 0x499   :  { %9943 = vmatpush3.bf16.xpose.msra.mxu0 %v1211_v9  ;;  %9944 = vmatprep.mubr.msk.bf16.mxu0 %vm11231_vm2, %v13796_v38  ;;  %v1313_v57 = vsel %vm331_vm3, %v1308_v12, 0 }
 0x49a   :  { %v816_v54 = vpack.c.bf16 %v808_v46, %v808_v46  ;;  %9954 = vmatprep.subr.bf16.mxu0 %v13796_v38 }
 0x49c   :  { %v1306_v55 = vpop.permute.xlu0 %1305  ;;  %9939 = vmatmul.mubr.msk.bf16.vlgmr.msra.gmra.mrb[36].mxu1 %vm331_vm3, %v816_v54  ;;  %v1461_v8 = vpop.permute.xlu1 %1460 }
 0x49d   :  { %9949 = vmatpush3.bf16.xpose.msra.mxu1 %v1262_v16  ;;  %9950 = vmatprep.mubr.msk.bf16.mxu1 %vm11231_vm2, %v13796_v38  ;;  %v1466_v52 = vsel %vm331_vm3, %v1461_v8, 0 }
 0x49e   :  { %9960 = vmatprep.subr.bf16.mxu1 %v13796_v38 }
 0x4a0   :  { %9945 = vmatmul.mubr.msk.bf16.vlgmr.msra.gmra.mrb[40].mxu0 %vm331_vm3, %v1204_v1  ;;  %v1410_v61 = vpop.permute.xlu0 %1409  ;;  %v1459_v49 = vpop.permute.xlu1 %1458 }
 0x4a1   :  { %9955 = vmatpush3.bf16.xpose.msra.mxu0 %v1313_v57  ;;  %9956 = vmatprep.mubr.msk.bf16.mxu0 %vm11231_vm2, %v13796_v38  ;;  %v1415_v24 = vsel %vm331_vm3, %v1410_v61, 0 }
 0x4a2   :  { %9966 = vmatprep.subr.bf16.mxu0 %v13796_v38 }
 0x4a4   :  { %9951 = vmatmul.mubr.msk.bf16.vlgmr.msra.gmra.mrb[40].mxu1 %vm331_vm3, %v1255_v40  ;;  %v1408_v15 = vpop.permute.xlu0 %1407  ;;  %v1563_v25 = vpop.permute.xlu1 %1562 }
 0x4a5   :  { %9961 = vmatpush3.bf16.xpose.msra.mxu1 %v1364_v23  ;;  %9962 = vmatprep.mubr.msk.bf16.mxu1 %vm11231_vm2, %v13796_v38  ;;  %v1568_v37 = vsel %vm331_vm3, %v1563_v25, 0 }
 0x4a6   :  { %9972 = vmatprep.subr.bf16.mxu1 %v13796_v38 }
 0x4a8   :  { %9957 = vmatmul.mubr.msk.bf16.vlgmr.msra.gmra.mrb[44].mxu0 %vm331_vm3, %v1306_v55  ;;  %v1512_v4 = vpop.permute.xlu0 %1511  ;;  %v1561_v27 = vpop.permute.xlu1 %1560 }
 0x4a9   :  { %9967 = vmatpush3.bf16.xpose.msra.mxu0 %v1415_v24  ;;  %9968 = vmatprep.mubr.msk.bf16.mxu0 %vm11231_vm2, %v13796_v38  ;;  %v1517_v17 = vsel %vm331_vm3, %v1512_v4, 0 }
 0x4aa   :  { %9978 = vmatprep.subr.bf16.mxu0 %v13796_v38 }
 0x4ac   :  { %9963 = vmatmul.mubr.msk.bf16.vlgmr.msra.gmra.mrb[44].mxu1 %vm331_vm3, %v1357_v14  ;;  %v1510_v36 = vpop.permute.xlu0 %1509  ;;  %v1707_v10 = vpop.permute.xlu1 %1706 }
 0x4ad   :  { %9973 = vmatpush3.bf16.xpose.msra.mxu1 %v1466_v52  ;;  %9974 = vmatprep.mubr.msk.bf16.mxu1 %vm11231_vm2, %v13796_v38  ;;  %v1712_v41 = vsel %vm822_vm4, %v1707_v10, 0 }
 0x4ae   :  { %9984 = vmatprep.subr.bf16.mxu1 %v13796_v38 }
 0x4b0   :  { %9969 = vmatmul.mubr.msk.bf16.vlgmr.msra.gmra.mrb[48].mxu0 %vm331_vm3, %v1408_v15  ;;  %v1755_v42 = vpop.permute.xlu0 %1754 }
 0x4b1   :  { %9979 = vmatpush3.bf16.xpose.msra.mxu0 %v1517_v17  ;;  %9980 = vmatprep.mubr.msk.bf16.mxu0 %vm11231_vm2, %v13796_v38  ;;  %v1760_v44 = vsel %vm822_vm4, %v1755_v42, 0 }
 0x4b2   :  { %9990 = vmatprep.subr.bf16.mxu0 %v13796_v38 }
 0x4b4   :  { %9975 = vmatmul.mubr.msk.bf16.vlgmr.msra.gmra.mrb[48].mxu1 %vm331_vm3, %v1459_v49 }
 0x4b5   :  { %9985 = vmatpush3.bf16.xpose.msra.mxu1 %v1568_v37  ;;  %9986 = vmatprep.mubr.msk.bf16.mxu1 %vm11231_vm2, %v13796_v38 }
 0x4b6   :  { %9996 = vmatprep.subr.bf16.mxu1 %v13796_v38 }
 0x4b8   :  { %9981 = vmatmul.mubr.msk.bf16.vlgmr.msra.gmra.mrb[52].mxu0 %vm331_vm3, %v1510_v36 }
 0x4b9   :  { %9991 = vmatpush3.bf16.msra.mxu0 %v1712_v41  ;;  %9992 = vmatprep.mubr.msk.bf16.mxu0 %vm11231_vm2, %v13796_v38 }
 0x4ba   :  { %10002 = vmatprep.subr.bf16.mxu0 %v13796_v38 }
 0x4bc   :  { %9987 = vmatmul.mubr.msk.bf16.vlgmr.msra.gmra.mrb[52].mxu1 %vm331_vm3, %v1561_v27 }
 0x4bd   :  { %9997 = vmatpush3.bf16.msra.mxu1 %v1760_v44  ;;  %9998 = vmatprep.mubr.msk.bf16.mxu1 %vm11231_vm2, %v13796_v38 }
 0x4be   :  { %10008 = vmatprep.subr.bf16.mxu1 %v13796_v38 }
 0x526   :  { %v11728_v47 = vpop.f32.mrb[24].mxu0 }
 0x527   :  { %v9898_v30 = vpop.f32.mrb[25].mxu0 }
 0x528   :  { %v863_v53 = vpop.f32.mrb[26].mxu0 }
 0x529   :  { %v9899_v56 = vpop.f32.mrb[27].mxu0 }
 0x52a   :  { %v11730_v31 = vpop.f32.mrb[24].mxu1 }
 0x52b   :  { %v9904_v59 = vpop.f32.mrb[25].mxu1 }
 0x52c   :  { %v911_v28 = vpop.f32.mrb[26].mxu1 }
 0x52d   :  { %v9905_v40 = vpop.f32.mrb[27].mxu1 }
 0x52e   :  { %v11732_v0 = vpop.f32.mrb[28].mxu0 }
 0x52f   :  { %v9910_v1 = vpop.f32.mrb[29].mxu0 }
 0x530   :  { %v959_v2 = vpop.f32.mrb[30].mxu0 }
 0x531   :  { %v9911_v3 = vpop.f32.mrb[31].mxu0 }
 0x532   :  { %v11734_v5 = vpop.f32.mrb[28].mxu1 }
 0x533   :  { %v9916_v7 = vpop.f32.mrb[29].mxu1 }
 0x534   :  { %v1007_v9 = vpop.f32.mrb[30].mxu1 }
 0x535   :  { %v9917_v12 = vpop.f32.mrb[31].mxu1 }
 0x536   :  { %v11736_v14 = vpop.f32.mrb[32].mxu0 }
 0x537   :  { %v9922_v46 = vpop.f32.mrb[33].mxu0 }
 0x538   :  { %v1055_v54 = vpop.f32.mrb[34].mxu0 }
 0x539   :  { %v9923_v16 = vpop.f32.mrb[35].mxu0 }
 0x53a   :  { %v11738_v55 = vpop.f32.mrb[32].mxu1 }
 0x53b   :  { %v9928_v8 = vpop.f32.mrb[33].mxu1 }
 0x53c   :  { %v1103_v57 = vpop.f32.mrb[34].mxu1 }
 0x53d   :  { %v9929_v61 = vpop.f32.mrb[35].mxu1 }
 0x56b   :  { %v11740_v49 = vpop.f32.mrb[36].mxu0 }
 0x56c   :  { %v9934_v23 = vpop.f32.mrb[37].mxu0 }
 0x56d   :  { %v1151_v15 = vpop.f32.mrb[38].mxu0 }
 0x56e   :  { %v9935_v24 = vpop.f32.mrb[39].mxu0 }
 0x56f   :  { %v11742_v25 = vpop.f32.mrb[36].mxu1 }
 0x570   :  { %v9940_v52 = vpop.f32.mrb[37].mxu1 }
 0x571   :  { %v1199_v4 = vpop.f32.mrb[38].mxu1 }
 0x572   :  { %v9941_v27 = vpop.f32.mrb[39].mxu1 }
 0x573   :  { %v1247_v17 = vpop.f32.mrb[40].mxu0 }
 0x574   :  { %v9946_v36 = vpop.f32.mrb[41].mxu0  ;;  %v1610_v37 = vsel %vm331_vm3, %v1247_v17, -inf }
 0x575   :  { %1611 = vmax.xlane.f32.xlu0 %v1610_v37  ;;  %v1250_v10 = vpop.f32.mrb[42].mxu0 }
 0x576   :  { %v9947_v41 = vpop.f32.mrb[43].mxu0 }
 0x577   :  { %v1298_v42 = vpop.f32.mrb[40].mxu1 }
 0x578   :  { %v9952_v44 = vpop.f32.mrb[41].mxu1  ;;  %v1613_v30 = vsel %vm331_vm3, %v1298_v42, -inf }
 0x579   :  { %1614 = vmax.xlane.f32.xlu1 %v1613_v30  ;;  %v1301_v53 = vpop.f32.mrb[42].mxu1 }
 0x57a   :  { %v9953_v56 = vpop.f32.mrb[43].mxu1 }
 0x57b   :  { %v1349_v59 = vpop.f32.mrb[44].mxu0 }
 0x57c   :  { %v9958_v28 = vpop.f32.mrb[45].mxu0  ;;  %v1616_v40 = vsel %vm331_vm3, %v1349_v59, -inf }
 0x57d   :  { %1617 = vmax.xlane.f32.xlu0 %v1616_v40  ;;  %v1352_v1 = vpop.f32.mrb[46].mxu0  ;;  %v11759_v40 = vpop.permute.xlu1 %1802 }
 0x57e   :  { %v9959_v2 = vpop.f32.mrb[47].mxu0 }
 0x57f   :  { %v1400_v3 = vpop.f32.mrb[44].mxu1 }
 0x580   :  { %v9964_v7 = vpop.f32.mrb[45].mxu1  ;;  %v1619_v9 = vsel %vm331_vm3, %v1400_v3, -inf }
 0x581   :  { %v1403_v12 = vpop.f32.mrb[46].mxu1  ;;  %1620 = vmax.xlane.f32.xlu0 %v1619_v9  ;;  %v11761_v1 = vpop.permute.xlu1 %1850 }
 0x582   :  { %v9965_v46 = vpop.f32.mrb[47].mxu1 }
 0x583   :  { %v1451_v54 = vpop.f32.mrb[48].mxu0 }
 0x584   :  { %v9970_v16 = vpop.f32.mrb[49].mxu0  ;;  %v1622_v8 = vsel %vm331_vm3, %v1451_v54, -inf }
 0x585   :  { %1623 = vmax.xlane.f32.xlu1 %v1622_v8  ;;  %v1454_v57 = vpop.f32.mrb[50].mxu0 }
 0x586   :  { %v9971_v61 = vpop.f32.mrb[51].mxu0 }
 0x587   :  { %v1502_v23 = vpop.f32.mrb[48].mxu1 }
 0x588   :  { %v9976_v15 = vpop.f32.mrb[49].mxu1  ;;  %v1625_v24 = vsel %vm331_vm3, %v1502_v23, -inf }
 0x589   :  { %v1505_v52 = vpop.f32.mrb[50].mxu1  ;;  %1626 = vmax.xlane.f32.xlu0 %v1625_v24 }
 0x58a   :  { %v9977_v4 = vpop.f32.mrb[51].mxu1 }
 0x58b   :  { %v11750_v27 = vpop.f32.mrb[52].mxu0 }
 0x58c   :  { %v9982_v36 = vpop.f32.mrb[53].mxu0  ;;  %v1628_v37 = vsel %vm331_vm3, %v11750_v27, -inf }
 0x58d   :  { %1629 = vmax.xlane.f32.xlu1 %v1628_v37  ;;  %v1556_v10 = vpop.f32.mrb[54].mxu0 }
 0x58e   :  { %v9983_v41 = vpop.f32.mrb[55].mxu0 }
 0x58f   :  { %v1604_v44 = vpop.f32.mrb[52].mxu1 }
 0x590   :  { %v9988_v30 = vpop.f32.mrb[53].mxu1  ;;  %v1631_v53 = vsel %vm331_vm3, %v1604_v44, -inf }
 0x591   :  { %v1607_v56 = vpop.f32.mrb[54].mxu1  ;;  %1632 = vmax.xlane.f32.xlu0 %v1631_v53 }
 0x592   :  { %v9989_v28 = vpop.f32.mrb[55].mxu1 }
 0x59e   :  { %1946 = vrot.lane.b32.xlu1 %v11450_v62, %s11236_s21 }
 0x5a7   :  { %1898 = vrot.lane.b32.xlu0 %v11442_v58, %s11236_s21 }
 0x602   :  { %v1612_v2 = vpop.xlane.xlu0 %1611 }
 0x603   :  { %v1634_v7 = vsub.f32 %v1247_v17, %v1612_v2 }
 0x605   :  { %v1642_v9 = vmul.f32 1.442695, %v1634_v7 }
 0x606   :  { %v1615_v12 = vpop.xlane.xlu1 %1614 }
 0x607   :  { %10918 = vpow2.f32 %v1642_v9  ;;  %v1635_v46 = vsub.f32 %v1298_v42, %v1615_v12 }
 0x609   :  { %v1644_v16 = vmul.f32 1.442695, %v1635_v46 }
 0x60a   :  { %v1618_v8 = vpop.xlane.xlu0 %1617 }
 0x60b   :  { %10920 = vpow2.f32 %v1644_v16  ;;  %v1636_v57 = vsub.f32 %v1349_v59, %v1618_v8 }
 0x60d   :  { %v1646_v61 = vmul.f32 1.442695, %v1636_v57 }
 0x60e   :  { %v1621_v15 = vpop.xlane.xlu0 %1620 }
 0x60f   :  { %10922 = vpow2.f32 %v1646_v61  ;;  %v1637_v24 = vsub.f32 %v1400_v3, %v1621_v15 }
 0x611   :  { %v11763_v52 = vpop.eup %10918  ;;  %v1648_v4 = vmul.f32 1.442695, %v1637_v24 }
 0x612   :  { %v1624_v36 = vpop.xlane.xlu1 %1623  ;;  %v1658_v37 = vsel %vm331_vm3, %v11763_v52, 0.0 }
 0x613   :  { %10924 = vpow2.f32 %v1648_v4  ;;  %v1638_v17 = vsub.f32 %v1451_v54, %v1624_v36  ;;  %1659 = vadd.xlane.f32.xlu1 %v1658_v37 }
 0x615   :  { %v11767_v10 = vpop.eup %10920  ;;  %v1650_v42 = vmul.f32 1.442695, %v1638_v17 }
 0x616   :  { %v1627_v41 = vpop.xlane.xlu0 %1626  ;;  %v1661_v59 = vsel %vm331_vm3, %v11767_v10, 0.0 }
 0x617   :  { %10926 = vpow2.f32 %v1650_v42  ;;  %v1639_v30 = vsub.f32 %v1502_v23, %v1627_v41  ;;  %1662 = vadd.xlane.f32.xlu0 %v1661_v59 }
 0x619   :  { %v11771_v3 = vpop.eup %10922  ;;  %v1652_v53 = vmul.f32 1.442695, %v1639_v30 }
 0x61a   :  { %v1664_v56 = vsel %vm331_vm3, %v11771_v3, 0.0  ;;  %v1630_v12 = vpop.xlane.xlu1 %1629 }
 0x61b   :  { %10928 = vpow2.f32 %v1652_v53  ;;  %1665 = vadd.xlane.f32.xlu1 %v1664_v56  ;;  %v1640_v46 = vsub.f32 %v11750_v27, %v1630_v12 }
 0x61d   :  { %v11775_v54 = vpop.eup %10924  ;;  %v1654_v8 = vmul.f32 1.442695, %v1640_v46  ;;  %v1856_v46 = vsel %vm822_vm4, %v11761_v1, 0 }
 0x61e   :  { %v1667_v28 = vsel %vm331_vm3, %v11775_v54, 0.0  ;;  %v1633_v16 = vpop.xlane.xlu0 %1632  ;;  %v1947_v27 = vpop.permute.xlu1 %1946 }
 0x61f   :  { %1668 = vadd.xlane.f32.xlu0 %v1667_v28  ;;  %v1641_v57 = vsub.f32 %v1604_v44, %v1633_v16  ;;  %10930 = vpow2.f32 %v1654_v8  ;;  %v1808_v28 = vsel %vm822_vm4, %v11759_v40, 0 }
 0x621   :  { %v11779_v2 = vpop.eup %10926  ;;  %v1656_v61 = vmul.f32 1.442695, %v1641_v57 }
 0x622   :  { %v1670_v23 = vsel %vm331_vm3, %v11779_v2, 0.0  ;;  %v1899_v44 = vpop.permute.xlu0 %1898 }
 0x623   :  { %1671 = vadd.xlane.f32.xlu1 %v1670_v23  ;;  %10932 = vpow2.f32 %v1656_v61  ;;  %v1904_v57 = vsel %vm822_vm4, %v1899_v44, 0 }
 0x625   :  { %v11783_v7 = vpop.eup %10928 }
 0x626   :  { %v1673_v9 = vsel %vm331_vm3, %v11783_v7, 0.0 }
 0x627   :  { %1674 = vadd.xlane.f32.xlu0 %v1673_v9 }
 0x629   :  { %v11792_v15 = vpop.eup %10930 }
 0x62a   :  { %v1676_v24 = vsel %vm331_vm3, %v11792_v15, 0.0 }
 0x62d   :  { %v11796_v4 = vpop.eup %10932 }
 0x62e   :  { %v1679_v36 = vsel %vm331_vm3, %v11796_v4, 0.0 }
 0x634   :  { %2042 = vrot.lane.b32.xlu1 %v11458_v63, %s11236_s21 }
 0x63d   :  { %1994 = vrot.lane.b32.xlu0 %v11446_v60, %s11236_s21 }
 0x658   :  { %1677 = vadd.xlane.f32.xlu1 %v1676_v24  ;;  %v1952_v24 = vsel %vm822_vm4, %v1947_v27, 0 }
 0x65c   :  { %1680 = vadd.xlane.f32.xlu0 %v1679_v36 }
 0x669   :  { %2142 = vrot.lane.b32.xlu1 %v11434_v51, %s11237_s22 }
 0x66d   :  { %2140 = vrot.lane.b32.xlu1 %v11483_v11, %s11238_s23 }
 0x671   :  { %2242 = vrot.lane.b32.xlu1 %v11432_v50, %s11237_s22 }
 0x672   :  { %2092 = vrot.lane.b32.xlu0 %v11426_v48, %s11237_s22 }
 0x675   :  { %2240 = vrot.lane.b32.xlu1 %v11499_v22, %s11238_s23 }
 0x676   :  { %2090 = vrot.lane.b32.xlu0 %v11475_v6, %s11238_s23 }
 0x679   :  { %2342 = vrot.lane.b32.xlu1 %v11450_v62, %s11237_s22 }
 0x67a   :  { %2192 = vrot.lane.b32.xlu0 %v11424_v45, %s11237_s22 }
 0x67d   :  { %2340 = vrot.lane.b32.xlu1 %v11516_v33, %s11238_s23 }
 0x67e   :  { %2190 = vrot.lane.b32.xlu0 %v11491_v13, %s11238_s23 }
 0x681   :  { %2442 = vrot.lane.b32.xlu1 %v11458_v63, %s11237_s22 }
 0x682   :  { %2292 = vrot.lane.b32.xlu0 %v11442_v58, %s11237_s22 }
 0x685   :  { %2440 = vrot.lane.b32.xlu1 %v11533_v43, %s11238_s23 }
 0x686   :  { %2290 = vrot.lane.b32.xlu0 %v11507_v26, %s11238_s23 }
 0x689   :  { %2586 = vrot.lane.b32.xlu1 %v11426_v48, %s11239_s24 }
 0x68a   :  { %2392 = vrot.lane.b32.xlu0 %v11446_v60, %s11237_s22 }
 0x68d   :  { %2682 = vrot.lane.b32.xlu1 %v11424_v45, %s11239_s24 }
 0x68e   :  { %2390 = vrot.lane.b32.xlu0 %v11524_v39, %s11238_s23 }
 0x691   :  { %2730 = vrot.lane.b32.xlu1 %v11432_v50, %s11239_s24 }
 0x692   :  { %2634 = vrot.lane.b32.xlu0 %v11434_v51, %s11239_s24 }
 0x6a0   :  { %v1660_v37 = vpop.xlane.xlu1 %1659 }
 0x6a1   :  { %10934 = vrcp.f32 %v1660_v37 }
 0x6a4   :  { %v1663_v17 = vpop.xlane.xlu0 %1662 }
 0x6a5   :  { %10936 = vrcp.f32 %v1663_v17 }
 0x6a8   :  { %v1666_v42 = vpop.xlane.xlu1 %1665 }
 0x6a9   :  { %10938 = vrcp.f32 %v1666_v42 }
 0x6ab   :  { %v10935_v41 = vpop.eup %10934 }
 0x6ac   :  { %v1669_v59 = vpop.xlane.xlu0 %1668  ;;  %v1690_v30 = vmul.f32 %v10935_v41, %v11763_v52 }
 0x6ad   :  { %10940 = vrcp.f32 %v1669_v59 }
 0x6ae   :  { %v1698_v53 = vpack.c.bf16 %v1690_v30, %v1690_v30 }
 0x6af   :  { %v10937_v56 = vpop.eup %10936 }
 0x6b0   :  { %9993 = vmatmul.mubr.msk.bf16.vlgmr.msra.gmra.mrb[56].mxu0 %vm331_vm3, %v1698_v53  ;;  %v1672_v23 = vpop.xlane.xlu1 %1671  ;;  %v1691_v9 = vmul.f32 %v10937_v56, %v11767_v10 }
 0x6b1   :  { %10003 = vmatpush3.bf16.msra.mxu0 %v1808_v28  ;;  %10942 = vrcp.f32 %v1672_v23  ;;  %10004 = vmatprep.mubr.msk.bf16.mxu0 %vm11231_vm2, %v13796_v38 }
 0x6b2   :  { %v1699_v12 = vpack.c.bf16 %v1691_v9, %v1691_v9  ;;  %10014 = vmatprep.subr.bf16.mxu0 %v13796_v38 }
 0x6b3   :  { %v10939_v52 = vpop.eup %10938 }
 0x6b4   :  { %9999 = vmatmul.mubr.msk.bf16.vlgmr.msra.gmra.mrb[56].mxu1 %vm331_vm3, %v1699_v12  ;;  %v1675_v40 = vpop.xlane.xlu0 %1674  ;;  %v1692_v16 = vmul.f32 %v10939_v52, %v11771_v3  ;;  %v2043_v27 = vpop.permute.xlu1 %2042 }
 0x6b5   :  { %10009 = vmatpush3.bf16.msra.mxu1 %v1856_v46  ;;  %10944 = vrcp.f32 %v1675_v40  ;;  %10010 = vmatprep.mubr.msk.bf16.mxu1 %vm11231_vm2, %v13796_v38  ;;  %v2048_v41 = vsel %vm822_vm4, %v2043_v27, 0 }
 0x6b6   :  { %v1700_v10 = vpack.c.bf16 %v1692_v16, %v1692_v16  ;;  %10020 = vmatprep.subr.bf16.mxu1 %v13796_v38 }
 0x6b7   :  { %v10941_v8 = vpop.eup %10940 }
 0x6b8   :  { %10005 = vmatmul.mubr.msk.bf16.vlgmr.msra.gmra.mrb[60].mxu0 %vm331_vm3, %v1700_v10  ;;  %v1693_v1 = vmul.f32 %v10941_v8, %v11775_v54  ;;  %v1995_v37 = vpop.permute.xlu0 %1994 }
 0x6b9   :  { %10015 = vmatpush3.bf16.msra.mxu0 %v1904_v57  ;;  %10016 = vmatprep.mubr.msk.bf16.mxu0 %vm11231_vm2, %v13796_v38  ;;  %v2000_v17 = vsel %vm822_vm4, %v1995_v37, 0 }
 0x6ba   :  { %v1701_v3 = vpack.c.bf16 %v1693_v1, %v1693_v1  ;;  %10026 = vmatprep.subr.bf16.mxu0 %v13796_v38 }
 0x6bb   :  { %v10943_v61 = vpop.eup %10942 }
 0x6bc   :  { %10011 = vmatmul.mubr.msk.bf16.vlgmr.msra.gmra.mrb[60].mxu1 %vm331_vm3, %v1701_v3  ;;  %v1694_v36 = vmul.f32 %v10943_v61, %v11779_v2 }
 0x6bd   :  { %10021 = vmatpush3.bf16.msra.mxu1 %v1952_v24  ;;  %10022 = vmatprep.mubr.msk.bf16.mxu1 %vm11231_vm2, %v13796_v38 }
 0x6be   :  { %v1702_v54 = vpack.c.bf16 %v1694_v36, %v1694_v36  ;;  %10032 = vmatprep.subr.bf16.mxu1 %v13796_v38 }
 0x6bf   :  { %v10945_v44 = vpop.eup %10944 }
 0x6c0   :  { %10017 = vmatmul.mubr.msk.bf16.vlgmr.msra.gmra.mrb[64].mxu0 %vm331_vm3, %v1702_v54  ;;  %v1695_v42 = vmul.f32 %v10945_v44, %v11783_v7 }
 0x6c1   :  { %10027 = vmatpush3.bf16.msra.mxu0 %v2000_v17  ;;  %10028 = vmatprep.mubr.msk.bf16.mxu0 %vm11231_vm2, %v13796_v38 }
 0x6c2   :  { %v1703_v2 = vpack.c.bf16 %v1695_v42, %v1695_v42  ;;  %10038 = vmatprep.subr.bf16.mxu0 %v13796_v38 }
 0x6c4   :  { %10023 = vmatmul.mubr.msk.bf16.vlgmr.msra.gmra.mrb[64].mxu1 %vm331_vm3, %v1703_v2 }
 0x6c5   :  { %10033 = vmatpush3.bf16.msra.mxu1 %v2048_v41  ;;  %10034 = vmatprep.mubr.msk.bf16.mxu1 %vm11231_vm2, %v13796_v38 }
 0x6c6   :  { %10044 = vmatprep.subr.bf16.mxu1 %v13796_v38 }
 0x6e5   :  { %v1678_v59 = vpop.xlane.xlu1 %1677 }
 0x6e6   :  { %10946 = vrcp.f32 %v1678_v59 }
 0x6e9   :  { %v1681_v7 = vpop.xlane.xlu0 %1680  ;;  %v2143_v30 = vpop.permute.xlu1 %2142 }
 0x6ea   :  { %10948 = vrcp.f32 %v1681_v7  ;;  %v2148_v1 = vsel %vm331_vm3, %v2143_v30, 0 }
 0x6ed   :  { %v2093_v53 = vpop.permute.xlu0 %2092  ;;  %v2141_v56 = vpop.permute.xlu1 %2140 }
 0x6ee   :  { %v2098_v40 = vsel %vm331_vm3, %v2093_v53, 0 }
 0x6f0   :  { %v10947_v28 = vpop.eup %10946 }
 0x6f1   :  { %v2091_v23 = vpop.permute.xlu0 %2090  ;;  %v2243_v9 = vpop.permute.xlu1 %2242  ;;  %v1696_v12 = vmul.f32 %v10947_v28, %v11792_v15 }
 0x6f2   :  { %v2248_v36 = vsel %vm331_vm3, %v2243_v9, 0 }
 0x6f3   :  { %v1704_v52 = vpack.c.bf16 %v1696_v12, %v1696_v12 }
 0x6f4   :  { %v10949_v46 = vpop.eup %10948 }
 0x6f5   :  { %v2193_v16 = vpop.permute.xlu0 %2192  ;;  %10029 = vmatmul.mubr.msk.bf16.vlgmr.msra.gmra.mrb[68].mxu0 %vm331_vm3, %v1704_v52  ;;  %v2241_v10 = vpop.permute.xlu1 %2240  ;;  %v1697_v8 = vmul.f32 %v10949_v46, %v11796_v4 }
 0x6f6   :  { %10039 = vmatpush3.bf16.xpose.msra.mxu0 %v2098_v40  ;;  %10040 = vmatprep.mubr.msk.bf16.mxu0 %vm11231_vm2, %v13796_v38  ;;  %v2198_v4 = vsel %vm331_vm3, %v2193_v16, 0 }
 0x6f7   :  { %v1705_v57 = vpack.c.bf16 %v1697_v8, %v1697_v8  ;;  %10050 = vmatprep.subr.bf16.mxu0 %v13796_v38 }
 0x6f9   :  { %v2191_v15 = vpop.permute.xlu0 %2190  ;;  %10035 = vmatmul.mubr.msk.bf16.vlgmr.msra.gmra.mrb[68].mxu1 %vm331_vm3, %v1705_v57  ;;  %v2343_v3 = vpop.permute.xlu1 %2342 }
 0x6fa   :  { %10045 = vmatpush3.bf16.xpose.msra.mxu1 %v2148_v1  ;;  %10046 = vmatprep.mubr.msk.bf16.mxu1 %vm11231_vm2, %v13796_v38  ;;  %v2348_v17 = vsel %vm331_vm3, %v2343_v3, 0 }
 0x6fb   :  { %10056 = vmatprep.subr.bf16.mxu1 %v13796_v38 }
 0x6fd   :  { %10041 = vmatmul.mubr.msk.bf16.vlgmr.msra.gmra.mrb[72].mxu0 %vm331_vm3, %v2091_v23  ;;  %v2293_v61 = vpop.permute.xlu0 %2292  ;;  %v2341_v24 = vpop.permute.xlu1 %2340 }
 0x6fe   :  { %10051 = vmatpush3.bf16.xpose.msra.mxu0 %v2198_v4  ;;  %10052 = vmatprep.mubr.msk.bf16.mxu0 %vm11231_vm2, %v13796_v38  ;;  %v2298_v54 = vsel %vm331_vm3, %v2293_v61, 0 }
 0x6ff   :  { %10062 = vmatprep.subr.bf16.mxu0 %v13796_v38 }
 0x701   :  { %10047 = vmatmul.mubr.msk.bf16.vlgmr.msra.gmra.mrb[72].mxu1 %vm331_vm3, %v2141_v56  ;;  %v2291_v37 = vpop.permute.xlu0 %2290  ;;  %v2443_v44 = vpop.permute.xlu1 %2442 }
 0x702   :  { %10057 = vmatpush3.bf16.xpose.msra.mxu1 %v2248_v36  ;;  %10058 = vmatprep.mubr.msk.bf16.mxu1 %vm11231_vm2, %v13796_v38  ;;  %v2448_v59 = vsel %vm331_vm3, %v2443_v44, 0 }
 0x703   :  { %10068 = vmatprep.subr.bf16.mxu1 %v13796_v38 }
 0x705   :  { %10053 = vmatmul.mubr.msk.bf16.vlgmr.msra.gmra.mrb[76].mxu0 %vm331_vm3, %v2191_v15  ;;  %v2393_v42 = vpop.permute.xlu0 %2392  ;;  %v2441_v27 = vpop.permute.xlu1 %2440 }
 0x706   :  { %10063 = vmatpush3.bf16.xpose.msra.mxu0 %v2298_v54  ;;  %10064 = vmatprep.mubr.msk.bf16.mxu0 %vm11231_vm2, %v13796_v38  ;;  %v2398_v2 = vsel %vm331_vm3, %v2393_v42, 0 }
 0x707   :  { %10074 = vmatprep.subr.bf16.mxu0 %v13796_v38 }
 0x709   :  { %10059 = vmatmul.mubr.msk.bf16.vlgmr.msra.gmra.mrb[76].mxu1 %vm331_vm3, %v2241_v10  ;;  %v2391_v41 = vpop.permute.xlu0 %2390  ;;  %v2587_v7 = vpop.permute.xlu1 %2586 }
 0x70a   :  { %10069 = vmatpush3.bf16.xpose.msra.mxu1 %v2348_v17  ;;  %10070 = vmatprep.mubr.msk.bf16.mxu1 %vm11231_vm2, %v13796_v38  ;;  %v2592_v30 = vsel %vm822_vm4, %v2587_v7, 0 }
 0x70b   :  { %10080 = vmatprep.subr.bf16.mxu1 %v13796_v38 }
 0x70d   :  { %10065 = vmatmul.mubr.msk.bf16.vlgmr.msra.gmra.mrb[80].mxu0 %vm331_vm3, %v2291_v37  ;;  %v2635_v53 = vpop.permute.xlu0 %2634 }
 0x70e   :  { %10075 = vmatpush3.bf16.xpose.msra.mxu0 %v2398_v2  ;;  %10076 = vmatprep.mubr.msk.bf16.mxu0 %vm11231_vm2, %v13796_v38  ;;  %v2640_v56 = vsel %vm822_vm4, %v2635_v53, 0 }
 0x70f   :  { %10086 = vmatprep.subr.bf16.mxu0 %v13796_v38 }
 0x711   :  { %10071 = vmatmul.mubr.msk.bf16.vlgmr.msra.gmra.mrb[80].mxu1 %vm331_vm3, %v2341_v24 }
 0x712   :  { %10081 = vmatpush3.bf16.xpose.msra.mxu1 %v2448_v59  ;;  %10082 = vmatprep.mubr.msk.bf16.mxu1 %vm11231_vm2, %v13796_v38 }
 0x713   :  { %10092 = vmatprep.subr.bf16.mxu1 %v13796_v38 }
 0x715   :  { %10077 = vmatmul.mubr.msk.bf16.vlgmr.msra.gmra.mrb[84].mxu0 %vm331_vm3, %v2391_v41 }
 0x716   :  { %10087 = vmatpush3.bf16.msra.mxu0 %v2592_v30  ;;  %10088 = vmatprep.mubr.msk.bf16.mxu0 %vm11231_vm2, %v13796_v38 }
 0x717   :  { %10098 = vmatprep.subr.bf16.mxu0 %v13796_v38 }
 0x719   :  { %10083 = vmatmul.mubr.msk.bf16.vlgmr.msra.gmra.mrb[84].mxu1 %vm331_vm3, %v2441_v27 }
 0x71a   :  { %10093 = vmatpush3.bf16.msra.mxu1 %v2640_v56  ;;  %10094 = vmatprep.mubr.msk.bf16.mxu1 %vm11231_vm2, %v13796_v38 }
 0x71b   :  { %10104 = vmatprep.subr.bf16.mxu1 %v13796_v38 }
 0x783   :  { %v11930_v28 = vpop.f32.mrb[56].mxu0 }
 0x784   :  { %v9994_v23 = vpop.f32.mrb[57].mxu0 }
 0x785   :  { %v1751_v9 = vpop.f32.mrb[58].mxu0 }
 0x786   :  { %v9995_v12 = vpop.f32.mrb[59].mxu0 }
 0x787   :  { %v11932_v52 = vpop.f32.mrb[56].mxu1 }
 0x788   :  { %v10000_v40 = vpop.f32.mrb[57].mxu1 }
 0x789   :  { %v1799_v16 = vpop.f32.mrb[58].mxu1 }
 0x78a   :  { %v10001_v10 = vpop.f32.mrb[59].mxu1 }
 0x78b   :  { %v11936_v8 = vpop.f32.mrb[60].mxu0 }
 0x78c   :  { %v10006_v57 = vpop.f32.mrb[61].mxu0 }
 0x78d   :  { %v1847_v1 = vpop.f32.mrb[62].mxu0 }
 0x78e   :  { %v10007_v15 = vpop.f32.mrb[63].mxu0 }
 0x78f   :  { %v11938_v3 = vpop.f32.mrb[60].mxu1 }
 0x790   :  { %v10012_v61 = vpop.f32.mrb[61].mxu1 }
 0x791   :  { %v1895_v24 = vpop.f32.mrb[62].mxu1 }
 0x792   :  { %v10013_v36 = vpop.f32.mrb[63].mxu1 }
 0x793   :  { %v11942_v37 = vpop.f32.mrb[64].mxu0 }
 0x794   :  { %v10018_v54 = vpop.f32.mrb[65].mxu0 }
 0x795   :  { %v1943_v44 = vpop.f32.mrb[66].mxu0 }
 0x796   :  { %v10019_v17 = vpop.f32.mrb[67].mxu0 }
 0x797   :  { %v11944_v42 = vpop.f32.mrb[64].mxu1 }
 0x798   :  { %v10024_v2 = vpop.f32.mrb[65].mxu1 }
 0x799   :  { %v1991_v41 = vpop.f32.mrb[66].mxu1 }
 0x79a   :  { %v10025_v59 = vpop.f32.mrb[67].mxu1 }
 0x7c8   :  { %v11948_v7 = vpop.f32.mrb[68].mxu0 }
 0x7c9   :  { %v10030_v30 = vpop.f32.mrb[69].mxu0 }
 0x7ca   :  { %v2039_v53 = vpop.f32.mrb[70].mxu0 }
 0x7cb   :  { %v10031_v56 = vpop.f32.mrb[71].mxu0 }
 0x7cc   :  { %v11950_v23 = vpop.f32.mrb[68].mxu1 }
 0x7cd   :  { %v10036_v12 = vpop.f32.mrb[69].mxu1 }
 0x7ce   :  { %v2087_v40 = vpop.f32.mrb[70].mxu1 }
 0x7cf   :  { %v10037_v16 = vpop.f32.mrb[71].mxu1 }
 0x7d0   :  { %v2134_v10 = vpop.f32.mrb[72].mxu0 }
 0x7d1   :  { %v10042_v57 = vpop.f32.mrb[73].mxu0  ;;  %v2490_v1 = vsel %vm331_vm3, %v2134_v10, -inf }
 0x7d2   :  { %2491 = vmax.xlane.f32.xlu0 %v2490_v1  ;;  %v2137_v15 = vpop.f32.mrb[74].mxu0 }
 0x7d3   :  { %v10043_v61 = vpop.f32.mrb[75].mxu0 }
 0x7d4   :  { %v2184_v24 = vpop.f32.mrb[72].mxu1 }
 0x7d5   :  { %v10048_v36 = vpop.f32.mrb[73].mxu1  ;;  %v2493_v54 = vsel %vm331_vm3, %v2184_v24, -inf }
 0x7d6   :  { %2494 = vmax.xlane.f32.xlu1 %v2493_v54  ;;  %v2187_v44 = vpop.f32.mrb[74].mxu1 }
 0x7d7   :  { %v10049_v17 = vpop.f32.mrb[75].mxu1 }
 0x7d8   :  { %v2234_v2 = vpop.f32.mrb[76].mxu0 }
 0x7d9   :  { %v10054_v41 = vpop.f32.mrb[77].mxu0  ;;  %v2496_v59 = vsel %vm331_vm3, %v2234_v2, -inf }
 0x7da   :  { %2497 = vmax.xlane.f32.xlu0 %v2496_v59  ;;  %v2237_v30 = vpop.f32.mrb[78].mxu0 }
 0x7db   :  { %v10055_v53 = vpop.f32.mrb[79].mxu0 }
 0x7dc   :  { %v2284_v56 = vpop.f32.mrb[76].mxu1 }
 0x7dd   :  { %v10060_v12 = vpop.f32.mrb[77].mxu1  ;;  %v2499_v40 = vsel %vm331_vm3, %v2284_v56, -inf }
 0x7de   :  { %v2287_v16 = vpop.f32.mrb[78].mxu1  ;;  %2500 = vmax.xlane.f32.xlu0 %v2499_v40 }
 0x7df   :  { %v10061_v57 = vpop.f32.mrb[79].mxu1 }
 0x7e0   :  { %v2334_v1 = vpop.f32.mrb[80].mxu0 }
 0x7e1   :  { %v10066_v15 = vpop.f32.mrb[81].mxu0  ;;  %v2502_v61 = vsel %vm331_vm3, %v2334_v1, -inf }
 0x7e2   :  { %2503 = vmax.xlane.f32.xlu1 %v2502_v61  ;;  %v2337_v36 = vpop.f32.mrb[82].mxu0 }
 0x7e3   :  { %v10067_v54 = vpop.f32.mrb[83].mxu0 }
 0x7e4   :  { %v2384_v44 = vpop.f32.mrb[80].mxu1 }
 0x7e5   :  { %v10072_v17 = vpop.f32.mrb[81].mxu1  ;;  %v2505_v41 = vsel %vm331_vm3, %v2384_v44, -inf }
 0x7e6   :  { %v2387_v59 = vpop.f32.mrb[82].mxu1  ;;  %2506 = vmax.xlane.f32.xlu0 %v2505_v41  ;;  %v11969_v41 = vpop.permute.xlu1 %2682 }
 0x7e7   :  { %v10073_v30 = vpop.f32.mrb[83].mxu1 }
 0x7e8   :  { %v11960_v53 = vpop.f32.mrb[84].mxu0 }
 0x7e9   :  { %v10078_v12 = vpop.f32.mrb[85].mxu0  ;;  %v2508_v40 = vsel %vm331_vm3, %v11960_v53, -inf }
 0x7ea   :  { %2509 = vmax.xlane.f32.xlu1 %v2508_v40  ;;  %v2437_v16 = vpop.f32.mrb[86].mxu0  ;;  %v11971_v59 = vpop.permute.xlu1 %2730 }
 0x7eb   :  { %v10079_v57 = vpop.f32.mrb[87].mxu0 }
 0x7ec   :  { %v2484_v15 = vpop.f32.mrb[84].mxu1 }
 0x7ed   :  { %v10084_v61 = vpop.f32.mrb[85].mxu1  ;;  %v2511_v36 = vsel %vm331_vm3, %v2484_v15, -inf }
 0x7ee   :  { %v2487_v54 = vpop.f32.mrb[86].mxu1  ;;  %2512 = vmax.xlane.f32.xlu0 %v2511_v36 }
 0x7ef   :  { %v10085_v17 = vpop.f32.mrb[87].mxu1 }
 0x7fb   :  { %2826 = vrot.lane.b32.xlu1 %v11450_v62, %s11239_s24 }
 0x804   :  { %2778 = vrot.lane.b32.xlu0 %v11442_v58, %s11239_s24 }
 0x85f   :  { %v2492_v30 = vpop.xlane.xlu0 %2491 }
 0x860   :  { %v2514_v12 = vsub.f32 %v2134_v10, %v2492_v30 }
 0x862   :  { %v2522_v40 = vmul.f32 1.442695, %v2514_v12 }
 0x863   :  { %v2495_v16 = vpop.xlane.xlu1 %2494 }
 0x864   :  { %10950 = vpow2.f32 %v2522_v40  ;;  %v2515_v57 = vsub.f32 %v2184_v24, %v2495_v16 }
 0x866   :  { %v2524_v61 = vmul.f32 1.442695, %v2515_v57 }
 0x867   :  { %v2498_v54 = vpop.xlane.xlu0 %2497 }
 0x868   :  { %10952 = vpow2.f32 %v2524_v61  ;;  %v2516_v36 = vsub.f32 %v2234_v2, %v2498_v54 }
 0x86a   :  { %v2526_v17 = vmul.f32 1.442695, %v2516_v36 }
 0x86b   :  { %v2501_v9 = vpop.xlane.xlu0 %2500 }
 0x86c   :  { %10954 = vpow2.f32 %v2526_v17  ;;  %v2517_v27 = vsub.f32 %v2284_v56, %v2501_v9 }
 0x86e   :  { %v11973_v46 = vpop.eup %10950  ;;  %v2528_v4 = vmul.f32 1.442695, %v2517_v27 }
 0x86f   :  { %v2504_v38 = vpop.xlane.xlu1 %2503  ;;  %v2538_v34 = vsel %vm331_vm3, %v11973_v46, 0.0 }
 0x870   :  { %10956 = vpow2.f32 %v2528_v4  ;;  %v2518_v10 = vsub.f32 %v2334_v1, %v2504_v38  ;;  %2539 = vadd.xlane.f32.xlu1 %v2538_v34 }
 0x872   :  { %v11977_v30 = vpop.eup %10952  ;;  %v2530_v24 = vmul.f32 1.442695, %v2518_v10 }
 0x873   :  { %v2507_v12 = vpop.xlane.xlu0 %2506  ;;  %v2541_v2 = vsel %vm331_vm3, %v11977_v30, 0.0 }
 0x874   :  { %10958 = vpow2.f32 %v2530_v24  ;;  %v2519_v40 = vsub.f32 %v2384_v44, %v2507_v12  ;;  %2542 = vadd.xlane.f32.xlu0 %v2541_v2 }
 0x876   :  { %v11981_v9 = vpop.eup %10954  ;;  %v2532_v27 = vmul.f32 1.442695, %v2519_v40 }
 0x877   :  { %v2544_v56 = vsel %vm331_vm3, %v11981_v9, 0.0  ;;  %v2510_v57 = vpop.xlane.xlu1 %2509 }
 0x878   :  { %10960 = vpow2.f32 %v2532_v27  ;;  %2545 = vadd.xlane.f32.xlu1 %v2544_v56  ;;  %v2520_v61 = vsub.f32 %v11960_v53, %v2510_v57  ;;  %v2688_v27 = vsel %vm822_vm4, %v11969_v41, 0 }
 0x87a   :  { %v11985_v38 = vpop.eup %10956  ;;  %v2534_v36 = vmul.f32 1.442695, %v2520_v61 }
 0x87b   :  { %v2547_v34 = vsel %vm331_vm3, %v11985_v38, 0.0  ;;  %v2513_v54 = vpop.xlane.xlu0 %2512 }
 0x87c   :  { %2548 = vadd.xlane.f32.xlu0 %v2547_v34  ;;  %v2521_v17 = vsub.f32 %v2484_v15, %v2513_v54  ;;  %10962 = vpow2.f32 %v2534_v36  ;;  %v13822_v34 = vmov 0.0  }
 0x87e   :  { %v11989_v4 = vpop.eup %10958  ;;  %v2536_v10 = vmul.f32 1.442695, %v2521_v17 }
 0x87f   :  { %v2550_v1 = vsel %vm331_vm3, %v11989_v4, 0.0 }
 0x880   :  { %2551 = vadd.xlane.f32.xlu1 %v2550_v1  ;;  %10964 = vpow2.f32 %v2536_v10 }
 0x882   :  { %v11993_v44 = vpop.eup %10960 }
 0x883   :  { %v2553_v16 = vsel %vm331_vm3, %v11993_v44, 0.0 }
 0x884   :  { %2554 = vadd.xlane.f32.xlu0 %v2553_v16  ;;  %v2736_v16 = vsel %vm822_vm4, %v11971_v59, 0 }
 0x886   :  { %v12002_v24 = vpop.eup %10962 }
 0x887   :  { %v2556_v12 = vsel %vm331_vm3, %v12002_v24, 0.0 }
 0x88a   :  { %v12006_v2 = vpop.eup %10964 }
 0x88b   :  { %v2559_v40 = vsel %vm331_vm3, %v12006_v2, 0.0 }
 0x891   :  { %2922 = vrot.lane.b32.xlu1 %v11458_v63, %s11239_s24 }
 0x89a   :  { %2874 = vrot.lane.b32.xlu0 %v11446_v60, %s11239_s24 }
 0x8b5   :  { %2557 = vadd.xlane.f32.xlu1 %v2556_v12 }
 0x8b9   :  { %2560 = vadd.xlane.f32.xlu0 %v2559_v40 }
 0x8c6   :  { %3022 = vrot.lane.b32.xlu1 %v11434_v51, %s13803_s2 }
 0x8ca   :  { %3020 = vrot.lane.b32.xlu1 %v11483_v11, %s13801_s25  ;;  %v2779_v11 = vpop.permute.xlu0 %2778 }
 0x8cb   :  { %v2784_v54 = vsel %vm822_vm4, %v2779_v11, 0 }
 0x8ce   :  { %3122 = vrot.lane.b32.xlu1 %v11432_v50, %s13803_s2 }
 0x8cf   :  { %2972 = vrot.lane.b32.xlu0 %v11426_v48, %s13803_s2 }
 0x8d2   :  { %3120 = vrot.lane.b32.xlu1 %v11499_v22, %s13801_s25 }
 0x8d3   :  { %2970 = vrot.lane.b32.xlu0 %v11475_v6, %s13801_s25  ;;  %v2827_v6 = vpop.permute.xlu1 %2826 }
 0x8d4   :  { %v2832_v17 = vsel %vm822_vm4, %v2827_v6, 0 }
 0x8d6   :  { %3222 = vrot.lane.b32.xlu1 %v11450_v62, %s13803_s2 }
 0x8d7   :  { %3072 = vrot.lane.b32.xlu0 %v11424_v45, %s13803_s2 }
 0x8da   :  { %3220 = vrot.lane.b32.xlu1 %v11516_v33, %s13801_s25 }
 0x8db   :  { %3070 = vrot.lane.b32.xlu0 %v11491_v13, %s13801_s25 }
 0x8de   :  { %3322 = vrot.lane.b32.xlu1 %v11458_v63, %s13803_s2 }
 0x8df   :  { %3172 = vrot.lane.b32.xlu0 %v11442_v58, %s13803_s2 }
 0x8e2   :  { %3320 = vrot.lane.b32.xlu1 %v11533_v43, %s13801_s25 }
 0x8e3   :  { %3170 = vrot.lane.b32.xlu0 %v11507_v26, %s13801_s25 }
 0x8e6   :  { %3466 = vrot.lane.b32.xlu1 %v11426_v48, %s13799_s3 }
 0x8e7   :  { %3272 = vrot.lane.b32.xlu0 %v11446_v60, %s13803_s2  ;;  %s13805_s2 = smov 24  }
 0x8eb   :  { %3270 = vrot.lane.b32.xlu0 %v11524_v39, %s13801_s25 }
 0x8fd   :  { %v2540_v13 = vpop.xlane.xlu1 %2539 }
 0x8fe   :  { %10966 = vrcp.f32 %v2540_v13 }
 0x901   :  { %v2543_v22 = vpop.xlane.xlu0 %2542 }
 0x902   :  { %10968 = vrcp.f32 %v2543_v22 }
 0x905   :  { %v2546_v33 = vpop.xlane.xlu1 %2545 }
 0x906   :  { %10970 = vrcp.f32 %v2546_v33 }
 0x908   :  { %v10967_v43 = vpop.eup %10966 }
 0x909   :  { %v2549_v26 = vpop.xlane.xlu0 %2548  ;;  %v2570_v53 = vmul.f32 %v10967_v43, %v11973_v46 }
 0x90a   :  { %10972 = vrcp.f32 %v2549_v26 }
 0x90b   :  { %v2578_v48 = vpack.c.bf16 %v2570_v53, %v2570_v53 }
 0x90c   :  { %v10969_v15 = vpop.eup %10968 }
 0x90d   :  { %10089 = vmatmul.mubr.msk.bf16.vlgmr.msra.gmra.mrb[88].mxu0 %vm331_vm3, %v2578_v48  ;;  %v2552_v39 = vpop.xlane.xlu1 %2551  ;;  %v2571_v56 = vmul.f32 %v10969_v15, %v11977_v30 }
 0x90e   :  { %10099 = vmatpush3.bf16.msra.mxu0 %v2688_v27  ;;  %10974 = vrcp.f32 %v2552_v39  ;;  %10100 = vmatprep.mubr.msk.bf16.mxu0 %vm11231_vm2, %v13822_v34 }
 0x90f   :  { %v2579_v1 = vpack.c.bf16 %v2571_v56, %v2571_v56  ;;  %10110 = vmatprep.subr.bf16.mxu0 %v13822_v34 }
 0x910   :  { %v10971_v46 = vpop.eup %10970 }
 0x911   :  { %10095 = vmatmul.mubr.msk.bf16.vlgmr.msra.gmra.mrb[88].mxu1 %vm331_vm3, %v2579_v1  ;;  %v2555_v41 = vpop.xlane.xlu0 %2554  ;;  %v2572_v57 = vmul.f32 %v10971_v46, %v11981_v9  ;;  %v2923_v6 = vpop.permute.xlu1 %2922 }
 0x912   :  { %10105 = vmatpush3.bf16.msra.mxu1 %v2736_v16  ;;  %10976 = vrcp.f32 %v2555_v41  ;;  %10106 = vmatprep.mubr.msk.bf16.mxu1 %vm11231_vm2, %v13822_v34  ;;  %v2928_v22 = vsel %vm822_vm4, %v2923_v6, 0 }
 0x913   :  { %v2580_v30 = vpack.c.bf16 %v2572_v57, %v2572_v57  ;;  %10116 = vmatprep.subr.bf16.mxu1 %v13822_v34 }
 0x914   :  { %v10973_v61 = vpop.eup %10972 }
 0x915   :  { %10101 = vmatmul.mubr.msk.bf16.vlgmr.msra.gmra.mrb[92].mxu0 %vm331_vm3, %v2580_v30  ;;  %v2573_v59 = vmul.f32 %v10973_v61, %v11985_v38  ;;  %v2875_v12 = vpop.permute.xlu0 %2874 }
 0x916   :  { %10111 = vmatpush3.bf16.msra.mxu0 %v2784_v54  ;;  %10112 = vmatprep.mubr.msk.bf16.mxu0 %vm11231_vm2, %v13822_v34  ;;  %v2880_v11 = vsel %vm822_vm4, %v2875_v12, 0 }
 0x917   :  { %v2581_v9 = vpack.c.bf16 %v2573_v59, %v2573_v59  ;;  %10122 = vmatprep.subr.bf16.mxu0 %v13822_v34 }
 0x918   :  { %v10975_v36 = vpop.eup %10974 }
 0x919   :  { %10107 = vmatmul.mubr.msk.bf16.vlgmr.msra.gmra.mrb[92].mxu1 %vm331_vm3, %v2581_v9  ;;  %v2574_v10 = vmul.f32 %v10975_v36, %v11989_v4 }
 0x91a   :  { %10117 = vmatpush3.bf16.msra.mxu1 %v2832_v17  ;;  %10118 = vmatprep.mubr.msk.bf16.mxu1 %vm11231_vm2, %v13822_v34 }
 0x91b   :  { %v2582_v38 = vpack.c.bf16 %v2574_v10, %v2574_v10  ;;  %10128 = vmatprep.subr.bf16.mxu1 %v13822_v34 }
 0x91c   :  { %v10977_v40 = vpop.eup %10976 }
 0x91d   :  { %10113 = vmatmul.mubr.msk.bf16.vlgmr.msra.gmra.mrb[96].mxu0 %vm331_vm3, %v2582_v38  ;;  %v2575_v13 = vmul.f32 %v10977_v40, %v11993_v44 }
 0x91e   :  { %10123 = vmatpush3.bf16.msra.mxu0 %v2880_v11  ;;  %10124 = vmatprep.mubr.msk.bf16.mxu0 %vm11231_vm2, %v13822_v34 }
 0x91f   :  { %v2583_v4 = vpack.c.bf16 %v2575_v13, %v2575_v13  ;;  %10134 = vmatprep.subr.bf16.mxu0 %v13822_v34 }
 0x921   :  { %10119 = vmatmul.mubr.msk.bf16.vlgmr.msra.gmra.mrb[96].mxu1 %vm331_vm3, %v2583_v4 }
 0x922   :  { %10129 = vmatpush3.bf16.msra.mxu1 %v2928_v22  ;;  %10130 = vmatprep.mubr.msk.bf16.mxu1 %vm11231_vm2, %v13822_v34 }
 0x923   :  { %10140 = vmatprep.subr.bf16.mxu1 %v13822_v34 }
 0x942   :  { %v2558_v33 = vpop.xlane.xlu1 %2557 }
 0x943   :  { %10978 = vrcp.f32 %v2558_v33 }
 0x946   :  { %v2561_v44 = vpop.xlane.xlu0 %2560  ;;  %v3023_v43 = vpop.permute.xlu1 %3022 }
 0x947   :  { %10980 = vrcp.f32 %v2561_v44  ;;  %v3028_v61 = vsel %vm331_vm3, %v3023_v43, 0 }
 0x94a   :  { %v2973_v26 = vpop.permute.xlu0 %2972  ;;  %v3021_v53 = vpop.permute.xlu1 %3020 }
 0x94b   :  { %v2978_v46 = vsel %vm331_vm3, %v2973_v26, 0 }
 0x94d   :  { %v10979_v48 = vpop.eup %10978 }
 0x94e   :  { %v2971_v15 = vpop.permute.xlu0 %2970  ;;  %v3123_v27 = vpop.permute.xlu1 %3122  ;;  %v2576_v39 = vmul.f32 %v10979_v48, %v12002_v24 }
 0x94f   :  { %v3128_v36 = vsel %vm331_vm3, %v3123_v27, 0 }
 0x950   :  { %v2584_v56 = vpack.c.bf16 %v2576_v39, %v2576_v39 }
 0x951   :  { %v10981_v1 = vpop.eup %10980 }
 0x952   :  { %v3073_v16 = vpop.permute.xlu0 %3072  ;;  %10125 = vmatmul.mubr.msk.bf16.vlgmr.msra.gmra.mrb[100].mxu0 %vm331_vm3, %v2584_v56  ;;  %v3121_v41 = vpop.permute.xlu1 %3120  ;;  %v2577_v57 = vmul.f32 %v10981_v1, %v12006_v2 }
 0x953   :  { %10135 = vmatpush3.bf16.xpose.msra.mxu0 %v2978_v46  ;;  %10136 = vmatprep.mubr.msk.bf16.mxu0 %vm11231_vm2, %v13822_v34  ;;  %v3078_v2 = vsel %vm331_vm3, %v3073_v16, 0 }
 0x954   :  { %v2585_v30 = vpack.c.bf16 %v2577_v57, %v2577_v57  ;;  %10146 = vmatprep.subr.bf16.mxu0 %v13822_v34 }
 0x956   :  { %v3071_v24 = vpop.permute.xlu0 %3070  ;;  %10131 = vmatmul.mubr.msk.bf16.vlgmr.msra.gmra.mrb[100].mxu1 %vm331_vm3, %v2585_v30  ;;  %v3223_v54 = vpop.permute.xlu1 %3222 }
 0x957   :  { %10141 = vmatpush3.bf16.xpose.msra.mxu1 %v3028_v61  ;;  %10142 = vmatprep.mubr.msk.bf16.mxu1 %vm11231_vm2, %v13822_v34  ;;  %v3228_v38 = vsel %vm331_vm3, %v3223_v54, 0 }
 0x958   :  { %10152 = vmatprep.subr.bf16.mxu1 %v13822_v34 }
 0x95a   :  { %10137 = vmatmul.mubr.msk.bf16.vlgmr.msra.gmra.mrb[104].mxu0 %vm331_vm3, %v2971_v15  ;;  %v3173_v59 = vpop.permute.xlu0 %3172  ;;  %v3221_v9 = vpop.permute.xlu1 %3220 }
 0x95b   :  { %10147 = vmatpush3.bf16.xpose.msra.mxu0 %v3078_v2  ;;  %10148 = vmatprep.mubr.msk.bf16.mxu0 %vm11231_vm2, %v13822_v34  ;;  %v3178_v10 = vsel %vm331_vm3, %v3173_v59, 0 }
 0x95c   :  { %10158 = vmatprep.subr.bf16.mxu0 %v13822_v34 }
 0x95e   :  { %10143 = vmatmul.mubr.msk.bf16.vlgmr.msra.gmra.mrb[104].mxu1 %vm331_vm3, %v3021_v53  ;;  %v3171_v17 = vpop.permute.xlu0 %3170  ;;  %v3323_v12 = vpop.permute.xlu1 %3322 }
 0x95f   :  { %10153 = vmatpush3.bf16.xpose.msra.mxu1 %v3128_v36  ;;  %10154 = vmatprep.mubr.msk.bf16.mxu1 %vm11231_vm2, %v13822_v34  ;;  %v3328_v6 = vsel %vm331_vm3, %v3323_v12, 0 }
 0x960   :  { %10164 = vmatprep.subr.bf16.mxu1 %v13822_v34 }
 0x962   :  { %10149 = vmatmul.mubr.msk.bf16.vlgmr.msra.gmra.mrb[108].mxu0 %vm331_vm3, %v3071_v24  ;;  %v3273_v40 = vpop.permute.xlu0 %3272  ;;  %v3321_v11 = vpop.permute.xlu1 %3320 }
 0x963   :  { %10159 = vmatpush3.bf16.xpose.msra.mxu0 %v3178_v10  ;;  %10160 = vmatprep.mubr.msk.bf16.mxu0 %vm11231_vm2, %v13822_v34  ;;  %v3278_v13 = vsel %vm331_vm3, %v3273_v40, 0 }
 0x964   :  { %10170 = vmatprep.subr.bf16.mxu0 %v13822_v34 }
 0x966   :  { %10155 = vmatmul.mubr.msk.bf16.vlgmr.msra.gmra.mrb[108].mxu1 %vm331_vm3, %v3121_v41  ;;  %v3467_v4 = vpop.permute.xlu1 %3466  ;;  %v3271_v22 = vpop.permute.xlu0 %3270 }
 0x967   :  { %10165 = vmatpush3.bf16.xpose.msra.mxu1 %v3228_v38  ;;  %10166 = vmatprep.mubr.msk.bf16.mxu1 %vm11231_vm2, %v13822_v34  ;;  %v3472_v33 = vsel %vm822_vm4, %v3467_v4, 0 }
 0x968   :  { %10176 = vmatprep.subr.bf16.mxu1 %v13822_v34 }
 0x96a   :  { %10161 = vmatmul.mubr.msk.bf16.vlgmr.msra.gmra.mrb[112].mxu0 %vm331_vm3, %v3171_v17 }
 0x96b   :  { %10171 = vmatpush3.bf16.xpose.msra.mxu0 %v3278_v13  ;;  %10172 = vmatprep.mubr.msk.bf16.mxu0 %vm11231_vm2, %v13822_v34 }
 0x96c   :  { %10182 = vmatprep.subr.bf16.mxu0 %v13822_v34 }
 0x96e   :  { %10167 = vmatmul.mubr.msk.bf16.vlgmr.msra.gmra.mrb[112].mxu1 %vm331_vm3, %v3221_v9 }
 0x96f   :  { %10177 = vmatpush3.bf16.xpose.msra.mxu1 %v3328_v6  ;;  %10178 = vmatprep.mubr.msk.bf16.mxu1 %vm11231_vm2, %v13822_v34 }
 0x970   :  { %10188 = vmatprep.subr.bf16.mxu1 %v13822_v34 }
 0x972   :  { %10173 = vmatmul.mubr.msk.bf16.vlgmr.msra.gmra.mrb[116].mxu0 %vm331_vm3, %v3271_v22 }
 0x973   :  { %10183 = vmatpush3.bf16.msra.mxu0 %v3472_v33  ;;  %10184 = vmatprep.mubr.msk.bf16.mxu0 %vm11231_vm2, %v13822_v34 }
 0x974   :  { %10194 = vmatprep.subr.bf16.mxu0 %v13822_v34 }
 0x976   :  { %10179 = vmatmul.mubr.msk.bf16.vlgmr.msra.gmra.mrb[116].mxu1 %vm331_vm3, %v3321_v11 }
 0x977   :  { %10190 = vmatprep.mubr.msk.bf16.mxu1 %vm11231_vm2, %v13822_v34 }
 0x9e0   :  { %v12132_v44 = vpop.f32.mrb[88].mxu0 }
 0x9e1   :  { %v10090_v43 = vpop.f32.mrb[89].mxu0 }
 0x9e2   :  { %v2631_v26 = vpop.f32.mrb[90].mxu0 }
 0x9e3   :  { %v10091_v53 = vpop.f32.mrb[91].mxu0 }
 0x9e4   :  { %v12134_v48 = vpop.f32.mrb[88].mxu1 }
 0x9e5   :  { %v10748_v15 = vpack.i.bf16 %v12134_v48, %v12132_v44  ;;  %v10096_v27 = vpop.f32.mrb[89].mxu1 }
 0x9e6   :  { %v2679_v39 = vpop.f32.mrb[90].mxu1 }
 0x9e7   :  { %v10097_v56 = vpop.f32.mrb[91].mxu1 }
 0x9e8   :  { %v12138_v1 = vpop.f32.mrb[92].mxu0 }
 0x9e9   :  { %v10102_v46 = vpop.f32.mrb[93].mxu0 }
 0x9ea   :  { %v2727_v16 = vpop.f32.mrb[94].mxu0 }
 0x9eb   :  { %v10103_v41 = vpop.f32.mrb[95].mxu0 }
 0x9ec   :  { %v12140_v57 = vpop.f32.mrb[92].mxu1 }
 0x9ed   :  { %v10753_v30 = vpack.i.bf16 %v12140_v57, %v12138_v1  ;;  %v10108_v61 = vpop.f32.mrb[93].mxu1 }
 0x9ee   :  { %v2775_v24 = vpop.f32.mrb[94].mxu1 }
 0x9ef   :  { %v10109_v54 = vpop.f32.mrb[95].mxu1 }
 0x9f0   :  { %v12144_v2 = vpop.f32.mrb[96].mxu0 }
 0x9f1   :  { %v10114_v59 = vpop.f32.mrb[97].mxu0 }
 0x9f2   :  { %v2823_v9 = vpop.f32.mrb[98].mxu0 }
 0x9f3   :  { %v10115_v36 = vpop.f32.mrb[99].mxu0 }
 0x9f4   :  { %v12146_v17 = vpop.f32.mrb[96].mxu1 }
 0x9f5   :  { %v10778_v10 = vpack.i.bf16 %v12146_v17, %v12144_v2  ;;  %v10120_v12 = vpop.f32.mrb[97].mxu1 }
 0x9f6   :  { %v2871_v38 = vpop.f32.mrb[98].mxu1 }
 0x9f7   :  { %v10121_v40 = vpop.f32.mrb[99].mxu1 }
 0xa25   :  { %v12150_v11 = vpop.f32.mrb[100].mxu0 }
 0xa26   :  { %v10126_v13 = vpop.f32.mrb[101].mxu0 }
 0xa27   :  { %v2919_v6 = vpop.f32.mrb[102].mxu0 }
 0xa28   :  { %v10127_v4 = vpop.f32.mrb[103].mxu0 }
 0xa29   :  { %v12152_v22 = vpop.f32.mrb[100].mxu1 }
 0xa2a   :  { %v10783_v33 = vpack.i.bf16 %v12152_v22, %v12150_v11  ;;  %v10132_v43 = vpop.f32.mrb[101].mxu1 }
 0xa2b   :  { %v2967_v26 = vpop.f32.mrb[102].mxu1 }
 0xa2c   :  { %v10133_v53 = vpop.f32.mrb[103].mxu1 }
 0xa2d   :  { %v3014_v27 = vpop.f32.mrb[104].mxu0 }
 0xa2e   :  { %v10138_v39 = vpop.f32.mrb[105].mxu0  ;;  %v3370_v56 = vsel %vm331_vm3, %v3014_v27, -inf }
 0xa2f   :  { %3371 = vmax.xlane.f32.xlu0 %v3370_v56  ;;  %v3017_v46 = vpop.f32.mrb[106].mxu0 }
 0xa30   :  { %v10139_v16 = vpop.f32.mrb[107].mxu0 }
 0xa31   :  { %v3064_v41 = vpop.f32.mrb[104].mxu1 }
 0xa32   :  { %v10144_v61 = vpop.f32.mrb[105].mxu1  ;;  %v3373_v24 = vsel %vm331_vm3, %v3064_v41, -inf }
 0xa33   :  { %3374 = vmax.xlane.f32.xlu1 %v3373_v24  ;;  %v3067_v54 = vpop.f32.mrb[106].mxu1 }
 0xa34   :  { %v10145_v59 = vpop.f32.mrb[107].mxu1 }
 0xa35   :  { %v3114_v9 = vpop.f32.mrb[108].mxu0 }
 0xa36   :  { %v10150_v36 = vpop.f32.mrb[109].mxu0  ;;  %v3376_v12 = vsel %vm331_vm3, %v3114_v9, -inf }
 0xa37   :  { %3377 = vmax.xlane.f32.xlu0 %v3376_v12  ;;  %v3117_v38 = vpop.f32.mrb[110].mxu0 }
 0xa38   :  { %v10151_v40 = vpop.f32.mrb[111].mxu0 }
 0xa39   :  { %v3164_v13 = vpop.f32.mrb[108].mxu1 }
 0xa3a   :  { %v10156_v6 = vpop.f32.mrb[109].mxu1  ;;  %v3379_v4 = vsel %vm331_vm3, %v3164_v13, -inf }
 0xa3b   :  { %v3167_v43 = vpop.f32.mrb[110].mxu1  ;;  %3380 = vmax.xlane.f32.xlu0 %v3379_v4 }
 0xa3c   :  { %v10157_v26 = vpop.f32.mrb[111].mxu1 }
 0xa3d   :  { %v12160_v53 = vpop.f32.mrb[112].mxu0 }
 0xa3e   :  { %v10162_v39 = vpop.f32.mrb[113].mxu0  ;;  %v3382_v56 = vsel %vm331_vm3, %v12160_v53, -inf }
 0xa3f   :  { %3383 = vmax.xlane.f32.xlu1 %v3382_v56  ;;  %v3217_v46 = vpop.f32.mrb[114].mxu0 }
 0xa40   :  { %v10163_v16 = vpop.f32.mrb[115].mxu0 }
 0xa41   :  { %v12164_v61 = vpop.f32.mrb[112].mxu1 }
 0xa42   :  { %v10168_v24 = vpop.f32.mrb[113].mxu1  ;;  %v3385_v54 = vsel %vm331_vm3, %v12164_v61, -inf }
 0xa43   :  { %v3267_v59 = vpop.f32.mrb[114].mxu1  ;;  %3386 = vmax.xlane.f32.xlu0 %v3385_v54 }
 0xa44   :  { %v10169_v36 = vpop.f32.mrb[115].mxu1 }
 0xa45   :  { %v3314_v12 = vpop.f32.mrb[116].mxu0 }
 0xa46   :  { %v10174_v38 = vpop.f32.mrb[117].mxu0  ;;  %v3388_v40 = vsel %vm331_vm3, %v3314_v12, -inf }
 0xa47   :  { %3389 = vmax.xlane.f32.xlu1 %v3388_v40  ;;  %v3317_v6 = vpop.f32.mrb[118].mxu0 }
 0xa48   :  { %v10175_v4 = vpop.f32.mrb[119].mxu0 }
 0xa49   :  { %v3364_v43 = vpop.f32.mrb[116].mxu1 }
 0xa4a   :  { %v10180_v26 = vpop.f32.mrb[117].mxu1  ;;  %v3391_v39 = vsel %vm331_vm3, %v3364_v43, -inf }
 0xa4b   :  { %v3367_v56 = vpop.f32.mrb[118].mxu1  ;;  %3392 = vmax.xlane.f32.xlu0 %v3391_v39 }
 0xa4c   :  { %v10181_v46 = vpop.f32.mrb[119].mxu1 }
 0xa58   :  { %3562 = vrot.lane.b32.xlu1 %v11424_v45, %s13799_s3 }
 0xa5c   :  { %3610 = vrot.lane.b32.xlu1 %v11432_v50, %s13799_s3 }
 0xa61   :  { %3514 = vrot.lane.b32.xlu0 %v11434_v51, %s13799_s3 }
 0xabc   :  { %v3372_v16 = vpop.xlane.xlu0 %3371 }
 0xabd   :  { %v3394_v24 = vsub.f32 %v3014_v27, %v3372_v16 }
 0xabf   :  { %v3402_v54 = vmul.f32 1.442695, %v3394_v24 }
 0xac0   :  { %v3375_v59 = vpop.xlane.xlu1 %3374 }
 0xac1   :  { %10982 = vpow2.f32 %v3402_v54  ;;  %v3395_v36 = vsub.f32 %v3064_v41, %v3375_v59 }
 0xac3   :  { %v3404_v38 = vmul.f32 1.442695, %v3395_v36 }
 0xac4   :  { %v3378_v40 = vpop.xlane.xlu0 %3377 }
 0xac5   :  { %10984 = vpow2.f32 %v3404_v38  ;;  %v3396_v6 = vsub.f32 %v3114_v9, %v3378_v40 }
 0xac7   :  { %v3406_v4 = vmul.f32 1.442695, %v3396_v6 }
 0xac8   :  { %v3381_v26 = vpop.xlane.xlu0 %3380 }
 0xac9   :  { %10986 = vpow2.f32 %v3406_v4  ;;  %v3397_v45 = vsub.f32 %v3164_v13, %v3381_v26 }
 0xacb   :  { %v12176_v39 = vpop.eup %10982  ;;  %v3408_v50 = vmul.f32 1.442695, %v3397_v45 }
 0xacc   :  { %v3418_v51 = vsel %vm331_vm3, %v12176_v39, 0.0  ;;  %v3384_v36 = vpop.xlane.xlu1 %3383 }
 0xacd   :  { %10988 = vpow2.f32 %v3408_v50  ;;  %3419 = vadd.xlane.f32.xlu1 %v3418_v51  ;;  %v3398_v38 = vsub.f32 %v12160_v53, %v3384_v36 }
 0xacf   :  { %v12180_v27 = vpop.eup %10984  ;;  %v3410_v4 = vmul.f32 1.442695, %v3398_v38 }
 0xad0   :  { %v3421_v41 = vsel %vm331_vm3, %v12180_v27, 0.0  ;;  %v3387_v9 = vpop.xlane.xlu0 %3386 }
 0xad1   :  { %3422 = vadd.xlane.f32.xlu0 %v3421_v41  ;;  %v3399_v6 = vsub.f32 %v12164_v61, %v3387_v9  ;;  %10990 = vpow2.f32 %v3410_v4 }
 0xad3   :  { %v12184_v56 = vpop.eup %10986  ;;  %v3412_v45 = vmul.f32 1.442695, %v3399_v6 }
 0xad4   :  { %v3424_v13 = vsel %vm331_vm3, %v12184_v56, 0.0  ;;  %v3390_v40 = vpop.xlane.xlu1 %3389 }
 0xad5   :  { %3425 = vadd.xlane.f32.xlu1 %v3424_v13  ;;  %v3400_v26 = vsub.f32 %v3314_v12, %v3390_v40  ;;  %10992 = vpow2.f32 %v3412_v45 }
 0xad7   :  { %v12188_v46 = vpop.eup %10988  ;;  %v3414_v50 = vmul.f32 1.442695, %v3400_v26 }
 0xad8   :  { %v3393_v16 = vpop.xlane.xlu0 %3392  ;;  %v3427_v24 = vsel %vm331_vm3, %v12188_v46, 0.0 }
 0xad9   :  { %3428 = vadd.xlane.f32.xlu0 %v3427_v24  ;;  %v3401_v51 = vsub.f32 %v3364_v43, %v3393_v16  ;;  %10994 = vpow2.f32 %v3414_v50  ;;  %v13823_v16 = vpack.i.bf16 %v11938_v3, %v11936_v8  ;;  %v13824_v24 = vpack.i.bf16 %v11932_v52, %v11930_v28 }
 0xadb   :  { %v3416_v41 = vmul.f32 1.442695, %v3401_v51 }
 0xadc   :  { %v3515_v54 = vpop.permute.xlu0 %3514 }
 0xadd   :  { %v3520_v59 = vsel %vm822_vm4, %v3515_v54, 0  ;;  %10996 = vpow2.f32 %v3416_v41 }
 0xade   :  { %10189 = vmatpush3.bf16.msra.mxu1 %v3520_v59 }
 0xadf   :  { %10200 = vmatprep.subr.bf16.mxu1 %v13822_v34 }
 0xae6   :  { %3706 = vrot.lane.b32.xlu1 %v11450_v62, %s13799_s3  ;;  %v12200_v62 = vpop.eup %10990 }
 0xae7   :  { %v12202_v13 = vpop.eup %10992 }
 0xae8   :  { %v12206_v53 = vpop.eup %10994  ;;  %v3433_v61 = vsel %vm331_vm3, %v12202_v13, 0.0 }
 0xae9   :  { %v3436_v12 = vsel %vm331_vm3, %v12206_v53, 0.0  ;;  %v12212_v43 = vpop.eup %10996 }
 0xaea   :  { %v3439_v9 = vsel %vm331_vm3, %v12212_v43, 0.0 }
 0xaef   :  { %3658 = vrot.lane.b32.xlu0 %v11442_v58, %s13799_s3  ;;  %v3430_v58 = vsel %vm331_vm3, %v12200_v62, 0.0 }
 0xb0a   :  { %3431 = vadd.xlane.f32.xlu1 %v3430_v58 }
 0xb0e   :  { %3434 = vadd.xlane.f32.xlu0 %v3433_v61  ;;  %3437 = vadd.xlane.f32.xlu1 %v3436_v12 }
 0xb12   :  { %3440 = vadd.xlane.f32.xlu0 %v3439_v9 }
 0xb1f   :  { %3802 = vrot.lane.b32.xlu1 %v11458_v63, %s13799_s3  ;;  %v3563_v63 = vpop.permute.xlu1 %3562 }
 0xb20   :  { %v3568_v59 = vsel %vm822_vm4, %v3563_v63, 0 }
 0xb23   :  { %10744 = vrot.lane.b32.xlu1 %v13823_v16, %s11243_s26  ;;  %v3611_v8 = vpop.permute.xlu1 %3610 }
 0xb24   :  { %v3616_v36 = vsel %vm822_vm4, %v3611_v8, 0 }
 0xb27   :  { %10754 = vrot.lane.b32.xlu1 %v10753_v30, %s13807_s27 }
 0xb28   :  { %3754 = vrot.lane.b32.xlu0 %v11446_v60, %s13799_s3 }
 0xb2c   :  { %10739 = vrot.lane.b32.xlu0 %v13824_v24, %s11243_s26 }
 0xb30   :  { %10749 = vrot.lane.b32.xlu0 %v10748_v15, %s13807_s27 }
 0xb5a   :  { %v3420_v3 = vpop.xlane.xlu1 %3419 }
 0xb5b   :  { %10998 = vrcp.f32 %v3420_v3 }
 0xb5e   :  { %v3423_v54 = vpop.xlane.xlu0 %3422 }
 0xb5f   :  { %11000 = vrcp.f32 %v3423_v54 }
 0xb62   :  { %v3426_v1 = vpop.xlane.xlu1 %3425 }
 0xb63   :  { %11002 = vrcp.f32 %v3426_v1 }
 0xb65   :  { %v10999_v57 = vpop.eup %10998 }
 0xb66   :  { %v3429_v60 = vpop.xlane.xlu0 %3428  ;;  %v3450_v30 = vmul.f32 %v10999_v57, %v12176_v39  ;;  %v3707_v26 = vpop.permute.xlu1 %3706 }
 0xb67   :  { %11004 = vrcp.f32 %v3429_v60  ;;  %v3712_v45 = vsel %vm822_vm4, %v3707_v26, 0 }
 0xb68   :  { %v3458_v28 = vpack.c.bf16 %v3450_v30, %v3450_v30 }
 0xb69   :  { %v11001_v52 = vpop.eup %11000 }
 0xb6a   :  { %10185 = vmatmul.mubr.msk.bf16.vlgmr.msra.gmra.mrb[120].mxu0 %vm331_vm3, %v3458_v28  ;;  %v3451_v44 = vmul.f32 %v11001_v52, %v12180_v27  ;;  %v3659_v38 = vpop.permute.xlu0 %3658 }
 0xb6b   :  { %10195 = vmatpush3.bf16.msra.mxu0 %v3568_v59  ;;  %10196 = vmatprep.mubr.msk.bf16.mxu0 %vm11231_vm2, %v13822_v34  ;;  %v3664_v6 = vsel %vm822_vm4, %v3659_v38, 0 }
 0xb6c   :  { %v3459_v48 = vpack.c.bf16 %v3451_v44, %v3451_v44  ;;  %10206 = vmatprep.subr.bf16.mxu0 %v13822_v34 }
 0xb6d   :  { %v11003_v15 = vpop.eup %11002 }
 0xb6e   :  { %10191 = vmatmul.mubr.msk.bf16.vlgmr.msra.gmra.mrb[120].mxu1 %vm331_vm3, %v3459_v48  ;;  %v3452_v39 = vmul.f32 %v11003_v15, %v12184_v56  ;;  %v10867_v48 = vld [vmem:[%s13779_s6 + $0x8] sm:$0xff]  }
 0xb6f   :  { %10201 = vmatpush3.bf16.msra.mxu1 %v3616_v36  ;;  %10202 = vmatprep.mubr.msk.bf16.mxu1 %vm11231_vm2, %v13822_v34 }
 0xb70   :  { %v3460_v27 = vpack.c.bf16 %v3452_v39, %v3452_v39  ;;  %10212 = vmatprep.subr.bf16.mxu1 %v13822_v34 }
 0xb71   :  { %v11005_v40 = vpop.eup %11004 }
 0xb72   :  { %10197 = vmatmul.mubr.msk.bf16.vlgmr.msra.gmra.mrb[124].mxu0 %vm331_vm3, %v3460_v27  ;;  %v3453_v4 = vmul.f32 %v11005_v40, %v12188_v46 }
 0xb73   :  { %10207 = vmatpush3.bf16.msra.mxu0 %v3664_v6  ;;  %10208 = vmatprep.mubr.msk.bf16.mxu0 %vm11231_vm2, %v13822_v34 }
 0xb74   :  { %v3461_v56 = vpack.c.bf16 %v3453_v4, %v3453_v4  ;;  %10218 = vmatprep.subr.bf16.mxu0 %v13822_v34  ;;  %v13825_v4 = vpack.i.bf16 %v11944_v42, %v11942_v37 }
 0xb76   :  { %10203 = vmatmul.mubr.msk.bf16.vlgmr.msra.gmra.mrb[124].mxu1 %vm331_vm3, %v3461_v56 }
 0xb77   :  { %10213 = vmatpush3.bf16.msra.mxu1 %v3712_v45  ;;  %10214 = vmatprep.mubr.msk.bf16.mxu1 %vm11231_vm2, %v13822_v34 }
 0xb78   :  { %10224 = vmatprep.subr.bf16.mxu1 %v13822_v34 }
 0xb97   :  { %v3432_v50 = vpop.xlane.xlu1 %3431 }
 0xb98   :  { %11006 = vrcp.f32 %v3432_v50 }
 0xb9b   :  { %v3435_v46 = vpop.xlane.xlu0 %3434  ;;  %v3438_v51 = vpop.xlane.xlu1 %3437 }
 0xb9c   :  { %11008 = vrcp.f32 %v3435_v46 }
 0xb9d   :  { %11010 = vrcp.f32 %v3438_v51 }
 0xb9f   :  { %v3441_v41 = vpop.xlane.xlu0 %3440  ;;  %v3803_v3 = vpop.permute.xlu1 %3802 }
 0xba0   :  { %11012 = vrcp.f32 %v3441_v41  ;;  %v13826_v41 = vpack.i.bf16 %v11950_v23, %v11948_v7 }
 0xba2   :  { %v11007_v58 = vpop.eup %11006 }
 0xba3   :  { %v3454_v61 = vmul.f32 %v11007_v58, %v12200_v62  ;;  %v3755_v12 = vpop.permute.xlu0 %3754  ;;  %v3808_v62 = vsel %vm822_vm4, %v3803_v3, 0 }
 0xba4   :  { %v3760_v63 = vsel %vm822_vm4, %v3755_v12, 0 }
 0xba5   :  { %v3462_v9 = vpack.c.bf16 %v3454_v61, %v3454_v61 }
 0xba6   :  { %v11009_v16 = vpop.eup %11008 }
 0xba7   :  { %v11011_v24 = vpop.eup %11010  ;;  %10209 = vmatmul.mubr.msk.bf16.vlgmr.msra.gmra.mrb[128].mxu0 %vm331_vm3, %v3462_v9  ;;  %v3455_v8 = vmul.f32 %v11009_v16, %v12202_v13 }
 0xba8   :  { %10219 = vmatpush3.bf16.msra.mxu0 %v3760_v63  ;;  %10220 = vmatprep.mubr.msk.bf16.mxu0 %vm11231_vm2, %v13822_v34  ;;  %v3456_v1 = vmul.f32 %v11011_v24, %v12206_v53  ;;  %v10866_v53 = vld [vmem:[%s13779_s6] sm:$0xff]  }
 0xba9   :  { %v3463_v54 = vpack.c.bf16 %v3455_v8, %v3455_v8  ;;  %10230 = vmatprep.subr.bf16.mxu0 %v10866_v53 }
 0xbaa   :  { %v11013_v57 = vpop.eup %11012  ;;  %v3464_v60 = vpack.c.bf16 %v3456_v1, %v3456_v1  ;;  %v10745_v1 = vpop.permute.xlu1 %10744 }
 0xbab   :  { %10215 = vmatmul.mubr.msk.bf16.vlgmr.msra.gmra.mrb[128].mxu1 %vm331_vm3, %v3463_v54  ;;  %v3457_v13 = vmul.f32 %v11013_v57, %v12212_v43 }
 0xbac   :  { %10225 = vmatpush3.bf16.msra.mxu1 %v3808_v62  ;;  %10226 = vmatprep.mubr.msk.bf16.mxu1 %vm11231_vm2, %v13822_v34 }
 0xbad   :  { %v3465_v30 = vpack.c.bf16 %v3457_v13, %v3457_v13 }
 0xbaf   :  { %10221 = vmatmul.mubr.msk.bf16.vlgmr.msra.gmra.mrb[132].mxu0 %vm331_vm3, %v3464_v60 }
 0xbb0   :  { %10231 = vmatpush3.bf16.msra.mxu0 %v10866_v53 }
 0xbb1   :  { %10232 = vmatprep.subr.bf16.mxu0 %v10867_v48 }
 0xbb3   :  { %10227 = vmatmul.mubr.msk.bf16.vlgmr.msra.gmra.mrb[132].mxu1 %vm331_vm3, %v3465_v30 }
 0xbb4   :  { %10233 = vmatpush3.bf16.msra.mxu0 %v10867_v48 }
 0xc3d   :  { %v3508_v28 = vpop.f32.mrb[120].mxu0 }
 0xc3e   :  { %v10186_v52 = vpop.f32.mrb[121].mxu0 }
 0xc3f   :  { %v3511_v59 = vpop.f32.mrb[122].mxu0 }
 0xc40   :  { %v10187_v44 = vpop.f32.mrb[123].mxu0 }
 0xc41   :  { %v3556_v43 = vpop.f32.mrb[120].mxu1 }
 0xc42   :  { %v10758_v15 = vpack.i.bf16 %v3556_v43, %v3508_v28  ;;  %v10192_v36 = vpop.f32.mrb[121].mxu1  ;;  %v10755_v43 = vpop.permute.xlu1 %10754 }
 0xc43   :  { %v3559_v39 = vpop.f32.mrb[122].mxu1 }
 0xc44   :  { %v10193_v38 = vpop.f32.mrb[123].mxu1  ;;  %10759 = vrot.lane.b32.xlu0 %v10758_v15, %s13805_s2 }
 0xc45   :  { %v3604_v27 = vpop.f32.mrb[124].mxu0  ;;  %v10747_v38 = vunpack.i.h.bf16 %v10745_v1 }
 0xc46   :  { %v10198_v40 = vpop.f32.mrb[125].mxu0 }
 0xc47   :  { %v3607_v6 = vpop.f32.mrb[126].mxu0  ;;  %v10757_v40 = vunpack.i.h.bf16 %v10755_v43 }
 0xc48   :  { %10769 = vrot.lane.b32.xlu0 %v13825_v4, %s11243_s26  ;;  %v10199_v26 = vpop.f32.mrb[127].mxu0  ;;  %v10756_v6 = vunpack.i.l.bf16 %v10755_v43 }
 0xc49   :  { %v3652_v56 = vpop.f32.mrb[124].mxu1 }
 0xc4a   :  { %v10763_v45 = vpack.i.bf16 %v3652_v56, %v3604_v27  ;;  %v10204_v50 = vpop.f32.mrb[125].mxu1  ;;  %v10746_v27 = vunpack.i.l.bf16 %v10745_v1 }
 0xc4b   :  { %v3655_v46 = vpop.f32.mrb[126].mxu1 }
 0xc4c   :  { %v10205_v51 = vpop.f32.mrb[127].mxu1  ;;  %10779 = vrot.lane.b32.xlu0 %v10778_v10, %s13807_s27  ;;  %10764 = vrot.lane.b32.xlu1 %v10763_v45, %s13805_s2  ;;  %v3948_v4 = vsel %vm331_vm3, %v11732_v0, %v10746_v27 }
 0xc4d   :  { %v3956_v45 = vsel %vm112_vm0, %v3948_v4, %v10756_v6 }
 0xc50   :  { %10774 = vrot.lane.b32.xlu1 %v13826_v41, %s11243_s26 }
 0xc54   :  { %10784 = vrot.lane.b32.xlu1 %v10783_v33, %s13807_s27  ;;  %v10740_v33 = vpop.permute.xlu0 %10739 }
 0xc55   :  { %v10742_v57 = vunpack.i.h.bf16 %v10740_v33  ;;  %v10741_v62 = vunpack.i.l.bf16 %v10740_v33 }
 0xc57   :  { %v3947_v53 = vsel %vm331_vm3, %v11730_v31, %v10742_v57  ;;  %v3946_v28 = vsel %vm331_vm3, %v11728_v47, %v10741_v62  ;;  %v3949_v47 = vsel %vm331_vm3, %v11734_v5, %v10747_v38 }
 0xc58   :  { %v10750_v54 = vpop.permute.xlu0 %10749  ;;  %v3957_v50 = vsel %vm112_vm0, %v3949_v47, %v10757_v40 }
 0xc59   :  { %v10752_v60 = vunpack.i.h.bf16 %v10750_v54  ;;  %v10751_v13 = vunpack.i.l.bf16 %v10750_v54 }
 0xc5b   :  { %v3954_v44 = vsel %vm112_vm0, %v3946_v28, %v10751_v13  ;;  %v3955_v48 = vsel %vm112_vm0, %v3947_v53, %v10752_v60 }
 0xc7a   :  { %v3700_v37 = vpop.f32.mrb[128].mxu0 }
 0xc7b   :  { %v10210_v42 = vpop.f32.mrb[129].mxu0 }
 0xc7c   :  { %v3703_v58 = vpop.f32.mrb[130].mxu0 }
 0xc7d   :  { %v10211_v61 = vpop.f32.mrb[131].mxu0 }
 0xc7e   :  { %v3748_v12 = vpop.f32.mrb[128].mxu1 }
 0xc7f   :  { %v10788_v9 = vpack.i.bf16 %v3748_v12, %v3700_v37  ;;  %v10216_v2 = vpop.f32.mrb[129].mxu1 }
 0xc80   :  { %v3751_v17 = vpop.f32.mrb[130].mxu1 }
 0xc81   :  { %v10217_v10 = vpop.f32.mrb[131].mxu1  ;;  %10789 = vrot.lane.b32.xlu0 %v10788_v9, %s13805_s2 }
 0xc82   :  { %v3796_v16 = vpop.f32.mrb[132].mxu0 }
 0xc83   :  { %v10222_v24 = vpop.f32.mrb[133].mxu0 }
 0xc84   :  { %v3799_v7 = vpop.f32.mrb[134].mxu0 }
 0xc85   :  { %v10223_v23 = vpop.f32.mrb[135].mxu0 }
 0xc86   :  { %v3844_v63 = vpop.f32.mrb[132].mxu1 }
 0xc87   :  { %v10793_v8 = vpack.i.bf16 %v3844_v63, %v3796_v16  ;;  %v10228_v3 = vpop.f32.mrb[133].mxu1 }
 0xc88   :  { %v3847_v11 = vpop.f32.mrb[134].mxu1 }
 0xc89   :  { %v10229_v22 = vpop.f32.mrb[135].mxu1  ;;  %10794 = vrot.lane.b32.xlu1 %v10793_v8, %s13805_s2 }
 0xcb6   :  { %v10760_v30 = vpop.permute.xlu0 %10759 }
 0xcb7   :  { %v10762_v52 = vunpack.i.h.bf16 %v10760_v30  ;;  %v10761_v59 = vunpack.i.l.bf16 %v10760_v30 }
 0xcb9   :  { %v3964_v15 = vsel %vm3962_vm5, %v3955_v48, %v10762_v52  ;;  %v3963_v36 = vsel %vm3962_vm5, %v3954_v44, %v10761_v59 }
 0xcba   :  { %v3971_v39 = vpack.c.bf16 %v3964_v15, %v3963_v36  ;;  %v10770_v37 = vpop.permute.xlu0 %10769 }
 0xcbb   :  { %v10772_v58 = vunpack.i.h.bf16 %v10770_v37  ;;  %v10771_v5 = vunpack.i.l.bf16 %v10770_v37 }
 0xcbc   :  { %10234 = vmatprep.mubr.msk.bf16.mxu0 %vm226_vm1, %v3971_v39 }
 0xcbd   :  { %v3951_v2 = vsel %vm331_vm3, %v11738_v55, %v10772_v58  ;;  %v3950_v17 = vsel %vm331_vm3, %v11736_v14, %v10771_v5 }
 0xcbe   :  { %v10765_v31 = vpop.permute.xlu1 %10764  ;;  %v10780_v42 = vpop.permute.xlu0 %10779 }
 0xcbf   :  { %v10767_v26 = vunpack.i.h.bf16 %v10765_v31  ;;  %v10766_v56 = vunpack.i.l.bf16 %v10765_v31  ;;  %v10782_v12 = vunpack.i.h.bf16 %v10780_v42  ;;  %v10781_v0 = vunpack.i.l.bf16 %v10780_v42  ;;  %v13827_v42 = vld [vmem:[#allocation6_spill] sm:$0xff] }
 0xcc1   :  { %v3966_v46 = vsel %vm3962_vm5, %v3957_v50, %v10767_v26  ;;  %v3965_v51 = vsel %vm3962_vm5, %v3956_v45, %v10766_v56  ;;  %v3958_v24 = vsel %vm112_vm0, %v3950_v17, %v10781_v0  ;;  %v3959_v7 = vsel %vm112_vm0, %v3951_v2, %v10782_v12 }
 0xcc2   :  { %v3972_v41 = vpack.c.bf16 %v3966_v46, %v3965_v51  ;;  %v10775_v61 = vpop.permute.xlu1 %10774 }
 0xcc3   :  { %v10777_v11 = vunpack.i.h.bf16 %v10775_v61  ;;  %v10776_v22 = vunpack.i.l.bf16 %v10775_v61 }
 0xcc4   :  { %10235 = vmatmul.mubr.msk.bf16.vlgmr.msra.gmra.mrb[136].mxu0 %vm226_vm1, %v3972_v41 }
 0xcc5   :  { %v3953_v14 = vsel %vm331_vm3, %v11742_v25, %v10777_v11  ;;  %v3952_v1 = vsel %vm331_vm3, %v11740_v49, %v10776_v22  ;;  %v9348_v25 = vld [vmem:[%s13780_s7] ss:$0 sm:$0xff] }
 0xcc6   :  { %v10785_v23 = vpop.permute.xlu1 %10784 }
 0xcc7   :  { %v10787_v33 = vunpack.i.h.bf16 %v10785_v23  ;;  %v10786_v54 = vunpack.i.l.bf16 %v10785_v23 }
 0xcc9   :  { %v3960_v60 = vsel %vm112_vm0, %v3952_v1, %v10786_v54  ;;  %v3961_v13 = vsel %vm112_vm0, %v3953_v14, %v10787_v33  ;;  %v10868_v14 = vld [vmem:[%s13783_s10] sm:$0xff]   ;;  %v10869_v1 = vld [vmem:[%s13783_s10 + $0x8] sm:$0xff]  }
 0xcca   :  { %10242 = vmatprep.subr.bf16.mxu1 %v10868_v14 }
 0xccb   :  { %10243 = vmatpush3.bf16.msra.mxu1 %v10868_v14 }
 0xccc   :  { %10244 = vmatprep.subr.bf16.mxu1 %v10869_v1 }
 0xccf   :  { %10245 = vmatpush3.bf16.msra.mxu1 %v10869_v1 }
 0xcf3   :  { %v10790_v9 = vpop.permute.xlu0 %10789 }
 0xcf4   :  { %v10792_v10 = vunpack.i.h.bf16 %v10790_v9  ;;  %v10791_v16 = vunpack.i.l.bf16 %v10790_v9 }
 0xcf6   :  { %v3968_v63 = vsel %vm3962_vm5, %v3959_v7, %v10792_v10  ;;  %v3967_v8 = vsel %vm3962_vm5, %v3958_v24, %v10791_v16 }
 0xcf7   :  { %v3973_v3 = vpack.c.bf16 %v3968_v63, %v3967_v8 }
 0xcf9   :  { %10238 = vmatprep.mubr.msk.bf16.mxu0 %vm226_vm1, %v3973_v3 }
 0xcfb   :  { %v10795_v55 = vpop.permute.xlu1 %10794 }
 0xcfc   :  { %v10797_v57 = vunpack.i.h.bf16 %v10795_v55  ;;  %v10796_v62 = vunpack.i.l.bf16 %v10795_v55 }
 0xcfe   :  { %v3970_v30 = vsel %vm3962_vm5, %v3961_v13, %v10797_v57  ;;  %v3969_v53 = vsel %vm3962_vm5, %v3960_v60, %v10796_v62 }
 0xcff   :  { %v3974_v28 = vpack.c.bf16 %v3970_v30, %v3969_v53 }
 0xd01   :  { %10239 = vmatmul.mubr.msk.bf16.gmra.mrb[140].mxu0 %vm226_vm1, %v3974_v28 }
 0xd97   :  { %v10236_v52 = vpop.f32.mrb[136].mxu0 }
 0xd98   :  { %v4044_v59 = vpop.f32.mrb[137].mxu0  ;;  %v4053_v49 = vadd.f32 %v10236_v52, %v9348_v25 }
 0xd99   :  { %v4045_v44 = vadd.f32 %v9348_v25, %v4044_v59  ;;  %v10237_v48 = vpop.f32.mrb[138].mxu0 }
 0xd9a   :  { %v4047_v43 = vpop.f32.mrb[139].mxu0  ;;  %v4077_v39 = vadd.f32 %v4053_v49, %v11393_v21  ;;  %v4056_v38 = vadd.f32 %v10237_v48, %v9348_v25 }
 0xd9b   :  { %v4075_v15 = vadd.f32 %v4045_v44, %v11389_v19  ;;  %v4048_v36 = vadd.f32 %v9348_v25, %v4047_v43 }
 0xd9c   :  { %v4078_v31 = vadd.f32 %v4056_v38, %v11387_v18  ;;  %v4091_v47 = vsel %vm226_vm1, %v4077_v39, 0.0 }
 0xd9d   :  { %v4076_v27 = vadd.f32 %v4048_v36, %v11391_v20  ;;  %v4085_v40 = vsel %vm226_vm1, %v4075_v15, 0.0 }
 0xd9e   :  { %4086 = vadd.xlane.f32.xlu0 %v4085_v40  ;;  %v4094_v4 = vsel %vm226_vm1, %v4078_v31, 0.0 }
 0xd9f   :  { %v4088_v6 = vsel %vm226_vm1, %v4076_v27, 0.0 }
 0xda0   :  { %4089 = vadd.xlane.f32.xlu1 %v4088_v6  ;;  %v10870_v6 = vld [vmem:[%s13785_s12] sm:$0xff]  }
 0xda1   :  { %10254 = vmatprep.subr.bf16.mxu0 %v10870_v6 }
 0xda2   :  { %4092 = vadd.xlane.f32.xlu0 %v4091_v47  ;;  %10255 = vmatpush3.bf16.msra.mxu0 %v10870_v6 }
 0xda6   :  { %4095 = vadd.xlane.f32.xlu0 %v4094_v4 }
 0xdd4   :  { %v10240_v19 = vpop.f32.mrb[140].mxu0 }
 0xdd5   :  { %v4069_v26 = vadd.f32 %v10240_v19, %v9348_v25  ;;  %v4060_v21 = vpop.f32.mrb[141].mxu0 }
 0xdd6   :  { %v4061_v56 = vadd.f32 %v9348_v25, %v4060_v21  ;;  %v10241_v45 = vpop.f32.mrb[142].mxu0 }
 0xdd7   :  { %v4072_v20 = vadd.f32 %v10241_v45, %v9348_v25  ;;  %v4063_v50 = vpop.f32.mrb[143].mxu0  ;;  %v4081_v41 = vadd.f32 %v4069_v26, %v11400_v29 }
 0xdd8   :  { %v4079_v46 = vadd.f32 %v4061_v56, %v11403_v32  ;;  %v4064_v51 = vadd.f32 %v9348_v25, %v4063_v50 }
 0xdd9   :  { %v4082_v58 = vadd.f32 %v4072_v20, %v13827_v42  ;;  %v4103_v61 = vsel %vm226_vm1, %v4081_v41, 0.0 }
 0xdda   :  { %v4080_v18 = vadd.f32 %v4064_v51, %v11407_v35  ;;  %v4097_v37 = vsel %vm226_vm1, %v4079_v46, 0.0 }
 0xddb   :  { %4098 = vadd.xlane.f32.xlu1 %v4097_v37  ;;  %v4106_v12 = vsel %vm226_vm1, %v4082_v58, 0.0  ;;  %v9355_v37 = vld [vmem:[%s13781_s8] ss:$0 sm:$0xff] }
 0xddc   :  { %v4100_v5 = vsel %vm226_vm1, %v4080_v18, 0.0 }
 0xddd   :  { %4101 = vadd.xlane.f32.xlu0 %v4100_v5 }
 0xddf   :  { %4104 = vadd.xlane.f32.xlu1 %v4103_v61 }
 0xde1   :  { %4107 = vadd.xlane.f32.xlu0 %v4106_v12 }
 0xe2b   :  { %v4087_v32 = vpop.xlane.xlu0 %4086 }
 0xe2c   :  { %v4110_v0 = vmul.f32 0.03125, %v4087_v32  ;;  %v9356_v32 = vld [vmem:[%s13782_s9] ss:$0 sm:$0xff] }
 0xe2d   :  { %v4090_v9 = vpop.xlane.xlu1 %4089 }
 0xe2e   :  { %v12355_v29 = vsub.f32 %v4075_v15, %v4110_v0  ;;  %v4111_v35 = vmul.f32 0.03125, %v4090_v9 }
 0xe2f   :  { %v4093_v2 = vpop.xlane.xlu0 %4092 }
 0xe30   :  { %v12357_v17 = vsub.f32 %v4076_v27, %v4111_v35  ;;  %v4112_v10 = vmul.f32 0.03125, %v4093_v2  ;;  %v4126_v16 = vmul.f32 %v12355_v29, %v12355_v29 }
 0xe32   :  { %v12361_v24 = vsub.f32 %v4077_v39, %v4112_v10  ;;  %v4134_v7 = vsel %vm226_vm1, %v4126_v16, 0.0  ;;  %v4127_v23 = vmul.f32 %v12357_v17, %v12357_v17 }
 0xe33   :  { %4135 = vadd.xlane.f32.xlu1 %v4134_v7  ;;  %v4096_v63 = vpop.xlane.xlu0 %4095 }
 0xe34   :  { %v4113_v8 = vmul.f32 0.03125, %v4096_v63  ;;  %v4137_v3 = vsel %vm226_vm1, %v4127_v23, 0.0  ;;  %v4128_v11 = vmul.f32 %v12361_v24, %v12361_v24 }
 0xe35   :  { %4138 = vadd.xlane.f32.xlu0 %v4137_v3 }
 0xe36   :  { %v12369_v22 = vsub.f32 %v4078_v31, %v4113_v8  ;;  %v4140_v33 = vsel %vm226_vm1, %v4128_v11, 0.0  ;;  %v10871_v31 = vld [vmem:[%s13785_s12 + $0x8] sm:$0xff]  }
 0xe37   :  { %4141 = vadd.xlane.f32.xlu1 %v4140_v33  ;;  %10256 = vmatprep.subr.bf16.mxu0 %v10871_v31 }
 0xe38   :  { %v4129_v54 = vmul.f32 %v12369_v22, %v12369_v22  ;;  %10257 = vmatpush3.bf16.msra.mxu0 %v10871_v31 }
 0xe3a   :  { %v4143_v55 = vsel %vm226_vm1, %v4129_v54, 0.0 }
 0xe3b   :  { %4144 = vadd.xlane.f32.xlu0 %v4143_v55 }
 0xe68   :  { %v4099_v57 = vpop.xlane.xlu1 %4098 }
 0xe69   :  { %v4114_v62 = vmul.f32 0.03125, %v4099_v57 }
 0xe6a   :  { %v4102_v60 = vpop.xlane.xlu0 %4101 }
 0xe6b   :  { %v12381_v13 = vsub.f32 %v4079_v46, %v4114_v62  ;;  %v4115_v30 = vmul.f32 0.03125, %v4102_v60 }
 0xe6c   :  { %v4105_v53 = vpop.xlane.xlu1 %4104 }
 0xe6d   :  { %v12383_v28 = vsub.f32 %v4080_v18, %v4115_v30  ;;  %v4116_v25 = vmul.f32 0.03125, %v4105_v53  ;;  %v4130_v52 = vmul.f32 %v12381_v13, %v12381_v13 }
 0xe6e   :  { %v4108_v59 = vpop.xlane.xlu0 %4107 }
 0xe6f   :  { %v12387_v49 = vsub.f32 %v4081_v41, %v4116_v25  ;;  %v4117_v44 = vmul.f32 0.03125, %v4108_v59  ;;  %v4146_v48 = vsel %vm226_vm1, %v4130_v52, 0.0  ;;  %v4131_v43 = vmul.f32 %v12383_v28, %v12383_v28 }
 0xe70   :  { %4147 = vadd.xlane.f32.xlu1 %v4146_v48 }
 0xe71   :  { %v12392_v15 = vsub.f32 %v4082_v58, %v4117_v44  ;;  %v4149_v36 = vsel %vm226_vm1, %v4131_v43, 0.0  ;;  %v4132_v39 = vmul.f32 %v12387_v49, %v12387_v49 }
 0xe72   :  { %4150 = vadd.xlane.f32.xlu0 %v4149_v36 }
 0xe73   :  { %v4152_v38 = vsel %vm226_vm1, %v4132_v39, 0.0  ;;  %v4133_v27 = vmul.f32 %v12392_v15, %v12392_v15 }
 0xe74   :  { %4153 = vadd.xlane.f32.xlu1 %v4152_v38 }
 0xe75   :  { %v4155_v40 = vsel %vm226_vm1, %v4133_v27, 0.0 }
 0xe76   :  { %4156 = vadd.xlane.f32.xlu0 %v4155_v40 }
 0xec0   :  { %v4136_v47 = vpop.xlane.xlu1 %4135 }
 0xec1   :  { %v4158_v4 = vmul.f32 0.03125, %v4136_v47  ;;  %v10873_v47 = vld [vmem:[%s13785_s12 + $0x18] sm:$0xff]  }
 0xec2   :  { %v4139_v19 = vpop.xlane.xlu0 %4138 }
 0xec3   :  { %v4166_v26 = vadd.f32 1e-05, %v4158_v4  ;;  %v4159_v21 = vmul.f32 0.03125, %v4139_v19  ;;  %v9357_v4 = vld [vmem:[%s13784_s11] ss:$0 sm:$0xff] }
 0xec4   :  { %v4142_v56 = vpop.xlane.xlu1 %4141 }
 0xec5   :  { %11014 = vrsqrt.f32 %v4166_v26  ;;  %v4167_v45 = vadd.f32 1e-05, %v4159_v21  ;;  %v4160_v20 = vmul.f32 0.03125, %v4142_v56 }
 0xec7   :  { %11016 = vrsqrt.f32 %v4167_v45  ;;  %v4168_v50 = vadd.f32 1e-05, %v4160_v20 }
 0xec8   :  { %v4145_v46 = vpop.xlane.xlu0 %4144 }
 0xec9   :  { %11018 = vrsqrt.f32 %v4168_v50  ;;  %v4161_v51 = vmul.f32 0.03125, %v4145_v46 }
 0xecb   :  { %v4169_v41 = vadd.f32 1e-05, %v4161_v51 }
 0xecd   :  { %11020 = vrsqrt.f32 %v4169_v41 }
 0xecf   :  { %v11015_v18 = vpop.eup %11014 }
 0xed0   :  { %v4182_v42 = vmul.f32 %v11015_v18, %v12355_v29 }
 0xed1   :  { %v11017_v58 = vpop.eup %11016 }
 0xed2   :  { %v4183_v5 = vmul.f32 %v11017_v58, %v12357_v17  ;;  %v4196_v61 = vmul.f32 %v9355_v37, %v4182_v42 }
 0xed3   :  { %v11019_v12 = vpop.eup %11018 }
 0xed4   :  { %v4184_v0 = vmul.f32 %v11019_v12, %v12361_v24  ;;  %v4197_v9 = vmul.f32 %v9355_v37, %v4183_v5  ;;  %v12416_v35 = vadd.f32 %v9356_v32, %v4196_v61 }
 0xed6   :  { %v12418_v2 = vadd.f32 %v9356_v32, %v4197_v9  ;;  %v4198_v16 = vmul.f32 %v9355_v37, %v4184_v0 }
 0xed7   :  { %v11021_v10 = vpop.eup %11020 }
 0xed8   :  { %v4185_v29 = vmul.f32 %v11021_v10, %v12369_v22  ;;  %v4218_v17 = vpack.c.bf16 %v12418_v2, %v12416_v35  ;;  %v12424_v23 = vadd.f32 %v9356_v32, %v4198_v16 }
 0xeda   :  { %v4199_v7 = vmul.f32 %v9355_v37, %v4185_v29  ;;  %10246 = vmatprep.mubr.msk.bf16.mxu1 %vm226_vm1, %v4218_v17 }
 0xedc   :  { %v12426_v63 = vadd.f32 %v9356_v32, %v4199_v7 }
 0xede   :  { %v4219_v24 = vpack.c.bf16 %v12426_v63, %v12424_v23 }
 0xee0   :  { %10247 = vmatmul.mubr.msk.bf16.vlgmr.msra.gmra.mrb[136].mxu1 %vm226_vm1, %v4219_v24 }
 0xefd   :  { %v4148_v8 = vpop.xlane.xlu1 %4147 }
 0xefe   :  { %v4162_v3 = vmul.f32 0.03125, %v4148_v8 }
 0xeff   :  { %v4151_v11 = vpop.xlane.xlu0 %4150 }
 0xf00   :  { %v4170_v33 = vadd.f32 1e-05, %v4162_v3  ;;  %v4163_v22 = vmul.f32 0.03125, %v4151_v11  ;;  %v9364_v11 = vld [vmem:[%s13786_s13] ss:$0 sm:$0xff] }
 0xf01   :  { %v4154_v54 = vpop.xlane.xlu1 %4153 }
 0xf02   :  { %11022 = vrsqrt.f32 %v4170_v33  ;;  %v4171_v55 = vadd.f32 1e-05, %v4163_v22  ;;  %v4164_v14 = vmul.f32 0.03125, %v4154_v54 }
 0xf03   :  { %v4157_v1 = vpop.xlane.xlu0 %4156 }
 0xf04   :  { %11024 = vrsqrt.f32 %v4171_v55  ;;  %v4172_v57 = vadd.f32 1e-05, %v4164_v14  ;;  %v4165_v62 = vmul.f32 0.03125, %v4157_v1 }
 0xf06   :  { %11026 = vrsqrt.f32 %v4172_v57  ;;  %v4173_v60 = vadd.f32 1e-05, %v4165_v62 }
 0xf08   :  { %11028 = vrsqrt.f32 %v4173_v60 }
 0xf0c   :  { %v11023_v30 = vpop.eup %11022 }
 0xf0d   :  { %v4186_v53 = vmul.f32 %v11023_v30, %v12381_v13 }
 0xf0e   :  { %v11025_v25 = vpop.eup %11024 }
 0xf0f   :  { %v4187_v52 = vmul.f32 %v11025_v25, %v12383_v28  ;;  %v4200_v59 = vmul.f32 %v9355_v37, %v4186_v53 }
 0xf10   :  { %v11027_v44 = vpop.eup %11026 }
 0xf11   :  { %v4201_v48 = vmul.f32 %v9355_v37, %v4187_v52  ;;  %v4188_v43 = vmul.f32 %v11027_v44, %v12387_v49  ;;  %v12434_v39 = vadd.f32 %v9356_v32, %v4200_v59 }
 0xf12   :  { %v11029_v36 = vpop.eup %11028 }
 0xf13   :  { %v12436_v38 = vadd.f32 %v9356_v32, %v4201_v48  ;;  %v4189_v27 = vmul.f32 %v11029_v36, %v12392_v15  ;;  %v4202_v40 = vmul.f32 %v9355_v37, %v4188_v43  ;;  %v10872_v15 = vld [vmem:[%s13785_s12 + $0x10] sm:$0xff]  }
 0xf14   :  { %10258 = vmatprep.subr.bf16.mxu0 %v10872_v15 }
 0xf15   :  { %v4220_v6 = vpack.c.bf16 %v12436_v38, %v12434_v39  ;;  %v4203_v13 = vmul.f32 %v9355_v37, %v4189_v27  ;;  %v12442_v28 = vadd.f32 %v9356_v32, %v4202_v40  ;;  %10259 = vmatpush3.bf16.msra.mxu0 %v10872_v15 }
 0xf16   :  { %10260 = vmatprep.subr.bf16.mxu0 %v10873_v47 }
 0xf17   :  { %10250 = vmatprep.mubr.msk.bf16.mxu1 %vm226_vm1, %v4220_v6  ;;  %v12444_v31 = vadd.f32 %v9356_v32, %v4203_v13 }
 0xf19   :  { %v4221_v49 = vpack.c.bf16 %v12444_v31, %v12442_v28  ;;  %10261 = vmatpush3.bf16.msra.mxu0 %v10873_v47 }
 0xf1a   :  { %10282 = vmatprep.subr.bf16.mxu0 %v13822_v34 }
 0xf1b   :  { %10251 = vmatmul.mubr.msk.bf16.gmra.mrb[140].mxu1 %vm226_vm1, %v4221_v49 }
 0xfb3   :  { %v10248_v19 = vpop.f32.mrb[136].mxu1 }
 0xfb4   :  { %v4300_v26 = vadd.f32 %v10248_v19, %v9357_v4  ;;  %v4291_v21 = vpop.f32.mrb[137].mxu1 }
 0xfb5   :  { %v4292_v56 = vadd.f32 %v9357_v4, %v4291_v21  ;;  %v10249_v45 = vpop.f32.mrb[138].mxu1 }
 0xfb6   :  { %v4303_v20 = vadd.f32 %v10249_v45, %v9357_v4  ;;  %v4294_v50 = vpop.f32.mrb[139].mxu1  ;;  %v4324_v51 = vmax.f32 %v4300_v26, 0.0 }
 0xfb7   :  { %v4295_v46 = vadd.f32 %v9357_v4, %v4294_v50  ;;  %v4322_v18 = vmax.f32 %v4292_v56, 0.0 }
 0xfb8   :  { %v4325_v41 = vmax.f32 %v4303_v20, 0.0 }
 0xfb9   :  { %v4323_v37 = vmax.f32 %v4295_v46, 0.0 }
 0xfba   :  { %v4331_v42 = vpack.c.bf16 %v4325_v41, %v4324_v51 }
 0xfbb   :  { %v4330_v58 = vpack.c.bf16 %v4323_v37, %v4322_v18 }
 0xfbd   :  { %10262 = vmatprep.mubr.msk.bf16.mxu0 %vm4373_vm6, %v4330_v58 }
 0xfbe   :  { %10263 = vmatmul.mubr.msk.bf16.vlgmr.msra.gmra.mrb[144].mxu0 %vm4373_vm6, %v4331_v42 }
 0xfee   :  { %v10252_v5 = vpop.f32.mrb[140].mxu1 }
 0xfef   :  { %v4316_v61 = vadd.f32 %v10252_v5, %v9357_v4  ;;  %v4307_v12 = vpop.f32.mrb[141].mxu1 }
 0xff0   :  { %v4308_v32 = vadd.f32 %v9357_v4, %v4307_v12  ;;  %v10253_v0 = vpop.f32.mrb[142].mxu1 }
 0xff1   :  { %v4319_v9 = vadd.f32 %v10253_v0, %v9357_v4  ;;  %v4310_v10 = vpop.f32.mrb[143].mxu1  ;;  %v4328_v29 = vmax.f32 %v4316_v61, 0.0  ;;  %v10874_v0 = vld [vmem:[%s13818_s1 + $0x10] sm:$0xff]  }
 0xff2   :  { %v4311_v16 = vadd.f32 %v9357_v4, %v4310_v10  ;;  %v4326_v7 = vmax.f32 %v4308_v32, 0.0  ;;  %10270 = vmatprep.subr.bf16.mxu1 %v10874_v0 }
 0xff3   :  { %v4329_v17 = vmax.f32 %v4319_v9, 0.0  ;;  %10271 = vmatpush3.bf16.msra.mxu1 %v10874_v0  ;;  %v10875_v9 = vld [vmem:[%s13818_s1 + $0x18] sm:$0xff]  }
 0xff4   :  { %v4327_v24 = vmax.f32 %v4311_v16, 0.0  ;;  %10272 = vmatprep.subr.bf16.mxu1 %v10875_v9 }
 0xff5   :  { %v4333_v8 = vpack.c.bf16 %v4329_v17, %v4328_v29 }
 0xff6   :  { %v4332_v3 = vpack.c.bf16 %v4327_v24, %v4326_v7 }
 0xff7   :  { %10273 = vmatpush3.bf16.msra.mxu1 %v10875_v9 }
 0xff8   :  { %10266 = vmatprep.mubr.msk.bf16.mxu0 %vm4373_vm6, %v4332_v3  ;;  %10288 = vmatprep.subr.bf16.mxu1 %v13822_v34 }
 0xff9   :  { %10267 = vmatmul.mubr.msk.bf16.gmra.mrb[148].mxu0 %vm4373_vm6, %v4333_v8 }
 0xffa   :  { %10284 = vmatprep.mubr.msk.bf16.mxu0 %vm11231_vm2, %v13822_v34 }
0x1091   :  { %v10264_v33 = vpop.f32.mrb[144].mxu0 }
0x1092   :  { %v4420_v22 = vpop.f32.mrb[145].mxu0  ;;  %v4429_v54 = vadd.f32 %v10264_v33, %v9364_v11 }
0x1093   :  { %v4421_v55 = vadd.f32 %v9364_v11, %v4420_v22  ;;  %v10265_v14 = vpop.f32.mrb[146].mxu0 }
0x1094   :  { %v4423_v1 = vpop.f32.mrb[147].mxu0  ;;  %v4432_v62 = vadd.f32 %v10265_v14, %v9364_v11  ;;  %v4453_v30 = vadd.f32 %v4429_v54, %v12424_v23 }
0x1095   :  { %v4451_v57 = vadd.f32 %v4421_v55, %v12416_v35  ;;  %v4424_v60 = vadd.f32 %v9364_v11, %v4423_v1 }
0x1096   :  { %v4454_v52 = vadd.f32 %v4432_v62, %v12426_v63  ;;  %v4467_v44 = vsel %vm226_vm1, %v4453_v30, 0.0 }
0x1097   :  { %v4452_v53 = vadd.f32 %v4424_v60, %v12418_v2  ;;  %v4461_v25 = vsel %vm226_vm1, %v4451_v57, 0.0 }
0x1098   :  { %4462 = vadd.xlane.f32.xlu1 %v4461_v25  ;;  %v4470_v48 = vsel %vm226_vm1, %v4454_v52, 0.0 }
0x1099   :  { %v4464_v59 = vsel %vm226_vm1, %v4452_v53, 0.0 }
0x109a   :  { %4465 = vadd.xlane.f32.xlu0 %v4464_v59 }
0x109c   :  { %4468 = vadd.xlane.f32.xlu1 %v4467_v44 }
0x109e   :  { %4471 = vadd.xlane.f32.xlu0 %v4470_v48 }
0x10cc   :  { %v10268_v35 = vpop.f32.mrb[148].mxu0 }
0x10cd   :  { %v4436_v43 = vpop.f32.mrb[149].mxu0  ;;  %v4445_v36 = vadd.f32 %v10268_v35, %v9364_v11 }
0x10ce   :  { %v4437_v23 = vadd.f32 %v9364_v11, %v4436_v43  ;;  %v10269_v27 = vpop.f32.mrb[150].mxu0 }
0x10cf   :  { %v4448_v2 = vadd.f32 %v10269_v27, %v9364_v11  ;;  %v4439_v40 = vpop.f32.mrb[151].mxu0  ;;  %v4457_v63 = vadd.f32 %v4445_v36, %v12442_v28 }
0x10d0   :  { %v4455_v6 = vadd.f32 %v4437_v23, %v12434_v39  ;;  %v4440_v13 = vadd.f32 %v9364_v11, %v4439_v40 }
0x10d1   :  { %v4458_v47 = vadd.f32 %v4448_v2, %v12444_v31  ;;  %v4479_v19 = vsel %vm226_vm1, %v4457_v63, 0.0 }
0x10d2   :  { %v4456_v49 = vadd.f32 %v4440_v13, %v12436_v38  ;;  %v4473_v15 = vsel %vm226_vm1, %v4455_v6, 0.0  ;;  %v9373_v13 = vld [vmem:[%s13787_s14] ss:$0 sm:$0xff] }
0x10d3   :  { %4474 = vadd.xlane.f32.xlu1 %v4473_v15  ;;  %v4482_v26 = vsel %vm226_vm1, %v4458_v47, 0.0 }
0x10d4   :  { %v4476_v4 = vsel %vm226_vm1, %v4456_v49, 0.0 }
0x10d5   :  { %4477 = vadd.xlane.f32.xlu0 %v4476_v4 }
0x10d7   :  { %4480 = vadd.xlane.f32.xlu1 %v4479_v19  ;;  %v9374_v19 = vld [vmem:[%s13788_s15] ss:$0 sm:$0xff] }
0x10d9   :  { %4483 = vadd.xlane.f32.xlu0 %v4482_v26 }
0x1125   :  { %v4463_v39 = vpop.xlane.xlu1 %4462 }
0x1126   :  { %v4485_v21 = vmul.f32 0.03125, %v4463_v39 }
0x1127   :  { %v4466_v56 = vpop.xlane.xlu0 %4465 }
0x1128   :  { %v12484_v28 = vsub.f32 %v4451_v57, %v4485_v21  ;;  %v4486_v38 = vmul.f32 0.03125, %v4466_v56 }
0x1129   :  { %v4469_v45 = vpop.xlane.xlu1 %4468 }
0x112a   :  { %v12486_v20 = vsub.f32 %v4452_v53, %v4486_v38  ;;  %v4487_v50 = vmul.f32 0.03125, %v4469_v45  ;;  %v4501_v31 = vmul.f32 %v12484_v28, %v12484_v28 }
0x112b   :  { %v4472_v46 = vpop.xlane.xlu0 %4471 }
0x112c   :  { %v12490_v51 = vsub.f32 %v4453_v30, %v4487_v50  ;;  %v4488_v41 = vmul.f32 0.03125, %v4472_v46  ;;  %v4509_v18 = vsel %vm226_vm1, %v4501_v31, 0.0  ;;  %v4502_v37 = vmul.f32 %v12486_v20, %v12486_v20 }
0x112d   :  { %4510 = vadd.xlane.f32.xlu1 %v4509_v18 }
0x112e   :  { %v12495_v42 = vsub.f32 %v4454_v52, %v4488_v41  ;;  %v4512_v58 = vsel %vm226_vm1, %v4502_v37, 0.0  ;;  %v4503_v5 = vmul.f32 %v12490_v51, %v12490_v51 }
0x112f   :  { %4513 = vadd.xlane.f32.xlu0 %v4512_v58 }
0x1130   :  { %v4515_v61 = vsel %vm226_vm1, %v4503_v5, 0.0  ;;  %v4504_v12 = vmul.f32 %v12495_v42, %v12495_v42 }
0x1131   :  { %4516 = vadd.xlane.f32.xlu1 %v4515_v61 }
0x1132   :  { %v4518_v32 = vsel %vm226_vm1, %v4504_v12, 0.0 }
0x1133   :  { %4519 = vadd.xlane.f32.xlu0 %v4518_v32 }
0x1160   :  { %v4475_v10 = vpop.xlane.xlu1 %4474 }
0x1161   :  { %v4489_v16 = vmul.f32 0.03125, %v4475_v10 }
0x1162   :  { %v4478_v29 = vpop.xlane.xlu0 %4477 }
0x1163   :  { %v12511_v17 = vsub.f32 %v4455_v6, %v4489_v16  ;;  %v4490_v7 = vmul.f32 0.03125, %v4478_v29 }
0x1164   :  { %v4481_v24 = vpop.xlane.xlu1 %4480 }
0x1165   :  { %v12513_v8 = vsub.f32 %v4456_v49, %v4490_v7  ;;  %v4491_v3 = vmul.f32 0.03125, %v4481_v24  ;;  %v4505_v11 = vmul.f32 %v12511_v17, %v12511_v17 }
0x1166   :  { %v4484_v33 = vpop.xlane.xlu0 %4483 }
0x1167   :  { %v12517_v22 = vsub.f32 %v4457_v63, %v4491_v3  ;;  %v4492_v54 = vmul.f32 0.03125, %v4484_v33  ;;  %v4521_v55 = vsel %vm226_vm1, %v4505_v11, 0.0  ;;  %v4506_v14 = vmul.f32 %v12513_v8, %v12513_v8 }
0x1168   :  { %4522 = vadd.xlane.f32.xlu1 %v4521_v55 }
0x1169   :  { %v12522_v1 = vsub.f32 %v4458_v47, %v4492_v54  ;;  %v4524_v57 = vsel %vm226_vm1, %v4506_v14, 0.0  ;;  %v4507_v62 = vmul.f32 %v12517_v22, %v12517_v22 }
0x116a   :  { %4525 = vadd.xlane.f32.xlu0 %v4524_v57 }
0x116b   :  { %v4527_v60 = vsel %vm226_vm1, %v4507_v62, 0.0  ;;  %v4508_v30 = vmul.f32 %v12522_v1, %v12522_v1 }
0x116c   :  { %4528 = vadd.xlane.f32.xlu1 %v4527_v60 }
0x116d   :  { %v4530_v53 = vsel %vm226_vm1, %v4508_v30, 0.0 }
0x116e   :  { %4531 = vadd.xlane.f32.xlu0 %v4530_v53 }
0x11ba   :  { %v4511_v25 = vpop.xlane.xlu1 %4510 }
0x11bb   :  { %v4533_v52 = vmul.f32 0.03125, %v4511_v25 }
0x11bc   :  { %v4514_v59 = vpop.xlane.xlu0 %4513 }
0x11bd   :  { %v4541_v44 = vadd.f32 1e-05, %v4533_v52  ;;  %v4534_v48 = vmul.f32 0.03125, %v4514_v59 }
0x11be   :  { %v4517_v35 = vpop.xlane.xlu1 %4516 }
0x11bf   :  { %11030 = vrsqrt.f32 %v4541_v44  ;;  %v4542_v43 = vadd.f32 1e-05, %v4534_v48  ;;  %v4535_v36 = vmul.f32 0.03125, %v4517_v35 }
0x11c0   :  { %v4520_v23 = vpop.xlane.xlu0 %4519 }
0x11c1   :  { %11032 = vrsqrt.f32 %v4542_v43  ;;  %v4543_v27 = vadd.f32 1e-05, %v4535_v36  ;;  %v4536_v2 = vmul.f32 0.03125, %v4520_v23 }
0x11c3   :  { %11034 = vrsqrt.f32 %v4543_v27  ;;  %v4544_v40 = vadd.f32 1e-05, %v4536_v2 }
0x11c5   :  { %11036 = vrsqrt.f32 %v4544_v40 }
0x11c9   :  { %v11031_v6 = vpop.eup %11030 }
0x11ca   :  { %v4557_v63 = vmul.f32 %v11031_v6, %v12484_v28 }
0x11cb   :  { %v11033_v49 = vpop.eup %11032 }
0x11cc   :  { %v4558_v15 = vmul.f32 %v11033_v49, %v12486_v20  ;;  %v4571_v47 = vmul.f32 %v9373_v13, %v4557_v63 }
0x11cd   :  { %v11035_v4 = vpop.eup %11034 }
0x11ce   :  { %v4559_v26 = vmul.f32 %v11035_v4, %v12490_v51  ;;  %v4572_v39 = vmul.f32 %v9373_v13, %v4558_v15  ;;  %v12541_v45 = vadd.f32 %v9374_v19, %v4571_v47 }
0x11cf   :  { %v11037_v21 = vpop.eup %11036 }
0x11d0   :  { %v4573_v56 = vmul.f32 %v9373_v13, %v4559_v26  ;;  %v4560_v38 = vmul.f32 %v11037_v21, %v12495_v42  ;;  %v12543_v50 = vadd.f32 %v9374_v19, %v4572_v39 }
0x11d2   :  { %v4574_v28 = vmul.f32 %v9373_v13, %v4560_v38  ;;  %v4593_v20 = vpack.c.bf16 %v12543_v50, %v12541_v45  ;;  %v12547_v31 = vadd.f32 %v9374_v19, %v4573_v56 }
0x11d4   :  { %v12549_v46 = vadd.f32 %v9374_v19, %v4574_v28  ;;  %10274 = vmatprep.mubr.msk.bf16.mxu1 %vm226_vm1, %v4593_v20 }
0x11d6   :  { %v4594_v51 = vpack.c.bf16 %v12549_v46, %v12547_v31 }
0x11d8   :  { %10275 = vmatmul.mubr.msk.bf16.vlgmr.msra.gmra.mrb[144].mxu1 %vm226_vm1, %v4594_v51 }
0x11f5   :  { %v4523_v41 = vpop.xlane.xlu1 %4522 }
0x11f6   :  { %v4537_v18 = vmul.f32 0.03125, %v4523_v41 }
0x11f7   :  { %v4526_v37 = vpop.xlane.xlu0 %4525 }
0x11f8   :  { %v4545_v42 = vadd.f32 1e-05, %v4537_v18  ;;  %v4538_v58 = vmul.f32 0.03125, %v4526_v37 }
0x11f9   :  { %v4529_v5 = vpop.xlane.xlu1 %4528 }
0x11fa   :  { %11038 = vrsqrt.f32 %v4545_v42  ;;  %v4546_v61 = vadd.f32 1e-05, %v4538_v58  ;;  %v4539_v12 = vmul.f32 0.03125, %v4529_v5 }
0x11fb   :  { %v4532_v32 = vpop.xlane.xlu0 %4531 }
0x11fc   :  { %11040 = vrsqrt.f32 %v4546_v61  ;;  %v4547_v0 = vadd.f32 1e-05, %v4539_v12  ;;  %v4540_v9 = vmul.f32 0.03125, %v4532_v32 }
0x11fe   :  { %11042 = vrsqrt.f32 %v4547_v0  ;;  %v4548_v10 = vadd.f32 1e-05, %v4540_v9 }
0x1200   :  { %11044 = vrsqrt.f32 %v4548_v10 }
0x1204   :  { %v11039_v16 = vpop.eup %11038 }
0x1205   :  { %v4561_v29 = vmul.f32 %v11039_v16, %v12511_v17 }
0x1206   :  { %v11041_v7 = vpop.eup %11040 }
0x1207   :  { %v4562_v24 = vmul.f32 %v11041_v7, %v12513_v8  ;;  %v4575_v3 = vmul.f32 %v9373_v13, %v4561_v29 }
0x1208   :  { %v11043_v11 = vpop.eup %11042 }
0x1209   :  { %v4576_v33 = vmul.f32 %v9373_v13, %v4562_v24  ;;  %v4563_v54 = vmul.f32 %v11043_v11, %v12517_v22  ;;  %v12558_v14 = vadd.f32 %v9374_v19, %v4575_v3 }
0x120a   :  { %v11045_v55 = vpop.eup %11044 }
0x120b   :  { %v12560_v57 = vadd.f32 %v9374_v19, %v4576_v33  ;;  %v4564_v62 = vmul.f32 %v11045_v55, %v12522_v1  ;;  %v4577_v60 = vmul.f32 %v9373_v13, %v4563_v54  ;;  %v9380_v1 = vld [vmem:[%s13778_s5 + $0x1] ss:$0 sm:$0xff]  ;;  %s13830_s5 = smov 72  }
0x120d   :  { %13828 = vst [vmem:[#allocation6_spill] sm:$0xff] %v12560_v57  ;;  %v4595_v30 = vpack.c.bf16 %v12560_v57, %v12558_v14  ;;  %v4578_v17 = vmul.f32 %v9373_v13, %v4564_v62  ;;  %v12566_v8 = vadd.f32 %v9374_v19, %v4577_v60 }
0x120f   :  { %10278 = vmatprep.mubr.msk.bf16.mxu1 %vm226_vm1, %v4595_v30  ;;  %v12568_v53 = vadd.f32 %v9374_v19, %v4578_v17 }
0x1211   :  { %13829 = vst [vmem:[#allocation7_spill] sm:$0xff] %v12568_v53  ;;  %v4596_v22 = vpack.c.bf16 %v12568_v53, %v12566_v8 }
0x1213   :  { %10279 = vmatmul.mubr.msk.bf16.gmra.mrb[148].mxu1 %vm226_vm1, %v4596_v22 }
0x1214   :  { %10290 = vmatprep.mubr.msk.bf16.mxu1 %vm11231_vm2, %v13822_v34 }
0x12ab   :  { %v10276_v25 = vpop.f32.mrb[144].mxu1 }
0x12ac   :  { %v4668_v52 = vpop.f32.mrb[145].mxu1  ;;  %v4677_v35 = vadd.f32 %v10276_v25, %v9380_v1 }
0x12ad   :  { %v4669_v59 = vadd.f32 %v9380_v1, %v4668_v52  ;;  %v10277_v44 = vpop.f32.mrb[146].mxu1 }
0x12ae   :  { %v4671_v48 = vpop.f32.mrb[147].mxu1  ;;  %v12584_v27 = vpack.c.bf16 %v4677_v35, %v4677_v35  ;;  %v4680_v2 = vadd.f32 %v10277_v44, %v9380_v1  ;;  %v4701_v12 = vmul.f32 0.35355338, %v4677_v35 }
0x12af   :  { %v12578_v43 = vpack.c.bf16 %v4669_v59, %v4669_v59  ;;  %v4672_v36 = vadd.f32 %v9380_v1, %v4671_v48  ;;  %v4699_v51 = vmul.f32 0.35355338, %v4669_v59 }
0x12b0   :  { %v12590_v40 = vpack.c.bf16 %v4680_v2, %v4680_v2  ;;  %v4702_v0 = vmul.f32 0.35355338, %v4680_v2  ;;  %v12646_v9 = vpack.c.bf16 %v4701_v12, %v4701_v12 }
0x12b1   :  { %v12580_v23 = vpack.c.bf16 %v4672_v36, %v4672_v36  ;;  %4724 = vrot.lane.b32.xlu1 %v12578_v43, %s11232_s19  ;;  %v4700_v37 = vmul.f32 0.35355338, %v4672_v36  ;;  %v12630_v42 = vpack.c.bf16 %v4699_v51, %v4699_v51 }
0x12b2   :  { %v12648_v10 = vpack.c.bf16 %v4702_v0, %v4702_v0 }
0x12b3   :  { %4773 = vrot.lane.b32.xlu0 %v12580_v23, %s11232_s19  ;;  %v12632_v5 = vpack.c.bf16 %v4700_v37, %v4700_v37 }
0x12b5   :  { %4822 = vrot.lane.b32.xlu1 %v12584_v27, %s11232_s19 }
0x12b9   :  { %4871 = vrot.lane.b32.xlu1 %v12590_v40, %s11232_s19 }
0x12e6   :  { %v10280_v6 = vpop.f32.mrb[148].mxu1 }
0x12e7   :  { %v4684_v13 = vpop.f32.mrb[149].mxu1  ;;  %v12596_v4 = vadd.f32 %v10280_v6, %v9380_v1 }
0x12e8   :  { %v4685_v63 = vadd.f32 %v9380_v1, %v4684_v13  ;;  %v10281_v49 = vpop.f32.mrb[150].mxu1 }
0x12e9   :  { %v12594_v15 = vadd.f32 %v10281_v49, %v9380_v1  ;;  %v4687_v47 = vpop.f32.mrb[151].mxu1  ;;  %v12606_v21 = vpack.c.bf16 %v12596_v4, %v12596_v4  ;;  %v4705_v30 = vmul.f32 0.35355338, %v12596_v4 }
0x12ea   :  { %v12598_v19 = vpack.c.bf16 %v4685_v63, %v4685_v63  ;;  %v4688_v26 = vadd.f32 %v9380_v1, %v4687_v47  ;;  %v4703_v24 = vmul.f32 0.35355338, %v4685_v63 }
0x12eb   :  { %v12612_v56 = vpack.c.bf16 %v12594_v15, %v12594_v15  ;;  %v4706_v22 = vmul.f32 0.35355338, %v12594_v15  ;;  %v12680_v25 = vpack.c.bf16 %v4705_v30, %v4705_v30 }
0x12ec   :  { %v12600_v39 = vpack.c.bf16 %v4688_v26, %v4688_v26  ;;  %4920 = vrot.lane.b32.xlu0 %v12598_v19, %s11232_s19  ;;  %v4704_v11 = vmul.f32 0.35355338, %v4688_v26  ;;  %v12662_v54 = vpack.c.bf16 %v4703_v24, %v4703_v24 }
0x12ed   :  { %v12682_v59 = vpack.c.bf16 %v4706_v22, %v4706_v22 }
0x12ee   :  { %4969 = vrot.lane.b32.xlu1 %v12600_v39, %s11232_s19  ;;  %v12664_v62 = vpack.c.bf16 %v4704_v11, %v4704_v11 }
0x12f0   :  { %5018 = vrot.lane.b32.xlu0 %v12606_v21, %s11232_s19 }
0x12f2   :  { %5067 = vrot.lane.b32.xlu1 %v12612_v56, %s11232_s19  ;;  %s13831_s19 = smov 104  }
0x12f4   :  { %5259 = vrot.lane.b32.xlu0 %v12580_v23, %s11233_s29 }
0x12f6   :  { %5211 = vrot.lane.b32.xlu1 %v12578_v43, %s11233_s29 }
0x12fa   :  { %5307 = vrot.lane.b32.xlu1 %v12584_v27, %s11233_s29 }
0x12fe   :  { %5355 = vrot.lane.b32.xlu1 %v12590_v40, %s11233_s29 }
0x1323   :  { %v4725_v38 = vpop.permute.xlu1 %4724 }
0x1324   :  { %v4730_v28 = vsel %vm331_vm3, %v4725_v38, 0 }
0x1325   :  { %10283 = vmatpush3.bf16.xpose.msra.mxu0 %v4730_v28  ;;  %v4774_v20 = vpop.permute.xlu0 %4773 }
0x1326   :  { %v4779_v41 = vsel %vm331_vm3, %v4774_v20, 0  ;;  %10294 = vmatprep.subr.bf16.mxu0 %v13822_v34 }
0x1327   :  { %v4823_v18 = vpop.permute.xlu1 %4822  ;;  %10289 = vmatpush3.bf16.xpose.msra.mxu1 %v4779_v41 }
0x1328   :  { %10300 = vmatprep.subr.bf16.mxu1 %v13822_v34  ;;  %v4828_v61 = vsel %vm331_vm3, %v4823_v18, 0 }
0x132b   :  { %v4872_v58 = vpop.permute.xlu1 %4871 }
0x132c   :  { %10285 = vmatmul.mubr.msk.bf16.vlgmr.msra.gmra.mrb[152].mxu0 %vm331_vm3, %v12630_v42  ;;  %v4877_v32 = vsel %vm331_vm3, %v4872_v58, 0 }
0x132d   :  { %10295 = vmatpush3.bf16.xpose.msra.mxu0 %v4828_v61  ;;  %10296 = vmatprep.mubr.msk.bf16.mxu0 %vm11231_vm2, %v13822_v34 }
0x132e   :  { %10291 = vmatmul.mubr.msk.bf16.vlgmr.msra.gmra.mrb[152].mxu1 %vm331_vm3, %v12632_v5  ;;  %10306 = vmatprep.subr.bf16.mxu0 %v13822_v34 }
0x132f   :  { %10301 = vmatpush3.bf16.xpose.msra.mxu1 %v4877_v32  ;;  %10302 = vmatprep.mubr.msk.bf16.mxu1 %vm11231_vm2, %v13822_v34 }
0x1330   :  { %10312 = vmatprep.subr.bf16.mxu1 %v13822_v34 }
0x1334   :  { %10297 = vmatmul.mubr.msk.bf16.vlgmr.msra.gmra.mrb[156].mxu0 %vm331_vm3, %v12646_v9 }
0x1335   :  { %10308 = vmatprep.mubr.msk.bf16.mxu0 %vm11231_vm2, %v13822_v34 }
0x1336   :  { %10303 = vmatmul.mubr.msk.bf16.vlgmr.msra.gmra.mrb[156].mxu1 %vm331_vm3, %v12648_v10 }
0x1337   :  { %10314 = vmatprep.mubr.msk.bf16.mxu1 %vm11231_vm2, %v13822_v34 }
0x135e   :  { %v4921_v16 = vpop.permute.xlu0 %4920 }
0x135f   :  { %v4926_v29 = vsel %vm331_vm3, %v4921_v16, 0 }
0x1360   :  { %v4970_v7 = vpop.permute.xlu1 %4969  ;;  %10307 = vmatpush3.bf16.xpose.msra.mxu0 %v4926_v29 }
0x1361   :  { %v4975_v3 = vsel %vm331_vm3, %v4970_v7, 0  ;;  %10318 = vmatprep.subr.bf16.mxu0 %v13822_v34 }
0x1362   :  { %10313 = vmatpush3.bf16.xpose.msra.mxu1 %v4975_v3  ;;  %v5019_v33 = vpop.permute.xlu0 %5018 }
0x1363   :  { %10324 = vmatprep.subr.bf16.mxu1 %v13822_v34  ;;  %v5024_v60 = vsel %vm331_vm3, %v5019_v33, 0 }
0x1364   :  { %v5068_v55 = vpop.permute.xlu1 %5067 }
0x1365   :  { %v5073_v17 = vsel %vm331_vm3, %v5068_v55, 0 }
0x1366   :  { %v5260_v52 = vpop.permute.xlu0 %5259 }
0x1367   :  { %10309 = vmatmul.mubr.msk.bf16.vlgmr.msra.gmra.mrb[160].mxu0 %vm331_vm3, %v12662_v54  ;;  %v5265_v48 = vsel %vm822_vm4, %v5260_v52, 0 }
0x1368   :  { %10319 = vmatpush3.bf16.xpose.msra.mxu0 %v5024_v60  ;;  %10320 = vmatprep.mubr.msk.bf16.mxu0 %vm11231_vm2, %v13822_v34  ;;  %v5212_v1 = vpop.permute.xlu1 %5211 }
0x1369   :  { %10315 = vmatmul.mubr.msk.bf16.vlgmr.msra.gmra.mrb[160].mxu1 %vm331_vm3, %v12664_v62  ;;  %10330 = vmatprep.subr.bf16.mxu0 %v13822_v34  ;;  %v5217_v44 = vsel %vm822_vm4, %v5212_v1, 0 }
0x136a   :  { %10325 = vmatpush3.bf16.xpose.msra.mxu1 %v5073_v17  ;;  %10326 = vmatprep.mubr.msk.bf16.mxu1 %vm11231_vm2, %v13822_v34 }
0x136b   :  { %10336 = vmatprep.subr.bf16.mxu1 %v13822_v34 }
0x136f   :  { %10321 = vmatmul.mubr.msk.bf16.vlgmr.msra.gmra.mrb[164].mxu0 %vm331_vm3, %v12680_v25 }
0x1370   :  { %10331 = vmatpush3.bf16.msra.mxu0 %v5217_v44  ;;  %10332 = vmatprep.mubr.msk.bf16.mxu0 %vm11231_vm2, %v13822_v34 }
0x1371   :  { %10327 = vmatmul.mubr.msk.bf16.vlgmr.msra.gmra.mrb[164].mxu1 %vm331_vm3, %v12682_v59  ;;  %10342 = vmatprep.subr.bf16.mxu0 %v13822_v34 }
0x1372   :  { %10337 = vmatpush3.bf16.msra.mxu1 %v5265_v48  ;;  %10338 = vmatprep.mubr.msk.bf16.mxu1 %vm11231_vm2, %v13822_v34 }
0x1373   :  { %10348 = vmatprep.subr.bf16.mxu1 %v13822_v34 }
0x13ff   :  { %v4766_v35 = vpop.f32.mrb[152].mxu0 }
0x1400   :  { %v10286_v36 = vpop.f32.mrb[153].mxu0  ;;  %v5115_v2 = vsel %vm331_vm3, %v4766_v35, -inf }
0x1401   :  { %v4769_v6 = vpop.f32.mrb[154].mxu0  ;;  %5116 = vmax.xlane.f32.xlu0 %v5115_v2  ;;  %v4815_v13 = vpop.f32.mrb[152].mxu1 }
0x1402   :  { %v10287_v63 = vpop.f32.mrb[155].mxu0  ;;  %v10292_v49 = vpop.f32.mrb[153].mxu1  ;;  %v5118_v15 = vsel %vm331_vm3, %v4815_v13, -inf }
0x1403   :  { %5119 = vmax.xlane.f32.xlu1 %v5118_v15  ;;  %v4818_v47 = vpop.f32.mrb[154].mxu1  ;;  %v12711_v2 = vpop.permute.xlu1 %5307 }
0x1404   :  { %v10293_v4 = vpop.f32.mrb[155].mxu1 }
0x1407   :  { %v4864_v26 = vpop.f32.mrb[156].mxu0  ;;  %v12713_v6 = vpop.permute.xlu1 %5355 }
0x1408   :  { %v10298_v38 = vpop.f32.mrb[157].mxu0  ;;  %v5121_v28 = vsel %vm331_vm3, %v4864_v26, -inf }
0x1409   :  { %v4867_v20 = vpop.f32.mrb[158].mxu0  ;;  %5122 = vmax.xlane.f32.xlu0 %v5121_v28  ;;  %v4913_v51 = vpop.f32.mrb[156].mxu1 }
0x140a   :  { %v10299_v41 = vpop.f32.mrb[159].mxu0  ;;  %v10304_v18 = vpop.f32.mrb[157].mxu1  ;;  %v5124_v61 = vsel %vm331_vm3, %v4913_v51, -inf }
0x140b   :  { %v4916_v37 = vpop.f32.mrb[158].mxu1 }
0x140c   :  { %v10305_v58 = vpop.f32.mrb[159].mxu1 }
0x140d   :  { %5125 = vmax.xlane.f32.xlu0 %v5124_v61 }
0x143a   :  { %v4962_v12 = vpop.f32.mrb[160].mxu0 }
0x143b   :  { %v10310_v32 = vpop.f32.mrb[161].mxu0  ;;  %v5127_v0 = vsel %vm331_vm3, %v4962_v12, -inf }
0x143c   :  { %v5011_v16 = vpop.f32.mrb[160].mxu1  ;;  %5128 = vmax.xlane.f32.xlu1 %v5127_v0  ;;  %v4965_v29 = vpop.f32.mrb[162].mxu0 }
0x143d   :  { %v10311_v7 = vpop.f32.mrb[163].mxu0  ;;  %v10316_v24 = vpop.f32.mrb[161].mxu1  ;;  %v5130_v3 = vsel %vm331_vm3, %v5011_v16, -inf }
0x143e   :  { %5131 = vmax.xlane.f32.xlu0 %v5130_v3  ;;  %v5014_v11 = vpop.f32.mrb[162].mxu1 }
0x143f   :  { %v10317_v33 = vpop.f32.mrb[163].mxu1 }
0x1442   :  { %v12702_v55 = vpop.f32.mrb[164].mxu0 }
0x1443   :  { %v10322_v60 = vpop.f32.mrb[165].mxu0  ;;  %v5133_v30 = vsel %vm331_vm3, %v12702_v55, -inf }
0x1444   :  { %v5109_v17 = vpop.f32.mrb[164].mxu1  ;;  %5134 = vmax.xlane.f32.xlu1 %v5133_v30  ;;  %v5063_v22 = vpop.f32.mrb[166].mxu0 }
0x1445   :  { %v10323_v1 = vpop.f32.mrb[167].mxu0  ;;  %v10328_v52 = vpop.f32.mrb[165].mxu1  ;;  %v5136_v44 = vsel %vm331_vm3, %v5109_v17, -inf }
0x1446   :  { %5137 = vmax.xlane.f32.xlu0 %v5136_v44  ;;  %v5112_v48 = vpop.f32.mrb[166].mxu1 }
0x1447   :  { %v10329_v36 = vpop.f32.mrb[167].mxu1 }
0x1455   :  { %5451 = vrot.lane.b32.xlu1 %v12600_v39, %s11233_s29 }
0x145c   :  { %5403 = vrot.lane.b32.xlu0 %v12598_v19, %s11233_s29 }
0x148e   :  { %v5117_v63 = vpop.xlane.xlu0 %5116 }
0x148f   :  { %v5139_v49 = vsub.f32 %v4766_v35, %v5117_v63 }
0x1490   :  { %v5120_v15 = vpop.xlane.xlu1 %5119 }
0x1491   :  { %v5147_v47 = vmul.f32 1.442695, %v5139_v49  ;;  %v5140_v4 = vsub.f32 %v4815_v13, %v5120_v15 }
0x1493   :  { %11046 = vpow2.f32 %v5147_v47  ;;  %v5149_v38 = vmul.f32 1.442695, %v5140_v4 }
0x1495   :  { %11048 = vpow2.f32 %v5149_v38 }
0x1496   :  { %v5123_v28 = vpop.xlane.xlu0 %5122 }
0x1497   :  { %v5141_v20 = vsub.f32 %v4864_v26, %v5123_v28 }
0x1499   :  { %v5151_v41 = vmul.f32 1.442695, %v5141_v20 }
0x149a   :  { %v5126_v18 = vpop.xlane.xlu0 %5125 }
0x149b   :  { %11050 = vpow2.f32 %v5151_v41  ;;  %v5142_v37 = vsub.f32 %v4913_v51, %v5126_v18 }
0x149d   :  { %v12715_v58 = vpop.eup %11046  ;;  %v5153_v61 = vmul.f32 1.442695, %v5142_v37 }
0x149e   :  { %v5163_v32 = vsel %vm331_vm3, %v12715_v58, 0.0 }
0x149f   :  { %v12719_v0 = vpop.eup %11048  ;;  %11052 = vpow2.f32 %v5153_v61  ;;  %5164 = vadd.xlane.f32.xlu1 %v5163_v32 }
0x14a0   :  { %v5166_v35 = vsel %vm331_vm3, %v12719_v0, 0.0 }
0x14a1   :  { %5167 = vadd.xlane.f32.xlu0 %v5166_v35 }
0x14a5   :  { %v12723_v13 = vpop.eup %11050 }
0x14a6   :  { %v5169_v26 = vsel %vm331_vm3, %v12723_v13, 0.0 }
0x14a7   :  { %5170 = vadd.xlane.f32.xlu1 %v5169_v26  ;;  %v5313_v26 = vsel %vm822_vm4, %v12711_v2, 0 }
0x14a9   :  { %v12727_v51 = vpop.eup %11052 }
0x14aa   :  { %v5172_v29 = vsel %vm331_vm3, %v12727_v51, 0.0 }
0x14ab   :  { %5173 = vadd.xlane.f32.xlu0 %v5172_v29 }
0x14c9   :  { %v5129_v7 = vpop.xlane.xlu1 %5128 }
0x14ca   :  { %v5143_v24 = vsub.f32 %v4962_v12, %v5129_v7 }
0x14cb   :  { %v5132_v3 = vpop.xlane.xlu0 %5131 }
0x14cc   :  { %v5155_v11 = vmul.f32 1.442695, %v5143_v24  ;;  %v5144_v33 = vsub.f32 %v5011_v16, %v5132_v3 }
0x14ce   :  { %11054 = vpow2.f32 %v5155_v11  ;;  %v5157_v60 = vmul.f32 1.442695, %v5144_v33 }
0x14d0   :  { %11056 = vpow2.f32 %v5157_v60 }
0x14d1   :  { %v5135_v12 = vpop.xlane.xlu1 %5134 }
0x14d2   :  { %v5145_v44 = vsub.f32 %v12702_v55, %v5135_v12 }
0x14d3   :  { %v5138_v16 = vpop.xlane.xlu0 %5137 }
0x14d4   :  { %v5146_v48 = vsub.f32 %v5109_v17, %v5138_v16  ;;  %v5159_v36 = vmul.f32 1.442695, %v5145_v44 }
0x14d5   :  { %v5452_v55 = vpop.permute.xlu1 %5451 }
0x14d6   :  { %v5161_v63 = vmul.f32 1.442695, %v5146_v48  ;;  %11058 = vpow2.f32 %v5159_v36  ;;  %v5457_v11 = vsel %vm822_vm4, %v5452_v55, 0 }
0x14d7   :  { %v5404_v17 = vpop.permute.xlu0 %5403 }
0x14d8   :  { %v12731_v30 = vpop.eup %11054  ;;  %11060 = vpow2.f32 %v5161_v63  ;;  %v5409_v24 = vsel %vm822_vm4, %v5404_v17, 0 }
0x14d9   :  { %v5175_v22 = vsel %vm331_vm3, %v12731_v30, 0.0 }
0x14da   :  { %v12735_v1 = vpop.eup %11056  ;;  %5176 = vadd.xlane.f32.xlu1 %v5175_v22 }
0x14db   :  { %v5178_v52 = vsel %vm331_vm3, %v12735_v1, 0.0 }
0x14dc   :  { %5179 = vadd.xlane.f32.xlu0 %v5178_v52 }
0x14e0   :  { %v12744_v49 = vpop.eup %11058 }
0x14e1   :  { %v5181_v47 = vsel %vm331_vm3, %v12744_v49, 0.0 }
0x14e2   :  { %v12746_v15 = vpop.eup %11060 }
0x14e3   :  { %v5184_v4 = vsel %vm331_vm3, %v12746_v15, 0.0 }
0x14eb   :  { %5547 = vrot.lane.b32.xlu1 %v12612_v56, %s11233_s29 }
0x14f2   :  { %5499 = vrot.lane.b32.xlu0 %v12606_v21, %s11233_s29  ;;  %s13832_s29 = smov 40  }
0x150f   :  { %5182 = vadd.xlane.f32.xlu1 %v5181_v47 }
0x1511   :  { %5185 = vadd.xlane.f32.xlu0 %v5184_v4 }
0x1520   :  { %5649 = vrot.lane.b32.xlu1 %v12580_v23, %s11234_s30 }
0x1524   :  { %5647 = vrot.lane.b32.xlu1 %v12632_v5, %s11235_s0 }
0x1527   :  { %5598 = vrot.lane.b32.xlu0 %v12578_v43, %s11234_s30 }
0x1528   :  { %5751 = vrot.lane.b32.xlu1 %v12590_v40, %s11234_s30 }
0x152b   :  { %5596 = vrot.lane.b32.xlu0 %v12630_v42, %s11235_s0 }
0x152c   :  { %v5165_v38 = vpop.xlane.xlu1 %5164  ;;  %5749 = vrot.lane.b32.xlu1 %v12648_v10, %s11235_s0 }
0x152d   :  { %11062 = vrcp.f32 %v5165_v38 }
0x152e   :  { %v5168_v28 = vpop.xlane.xlu0 %5167 }
0x152f   :  { %11064 = vrcp.f32 %v5168_v28  ;;  %5700 = vrot.lane.b32.xlu0 %v12584_v27, %s11234_s30 }
0x1530   :  { %5853 = vrot.lane.b32.xlu1 %v12600_v39, %s11234_s30 }
0x1533   :  { %5698 = vrot.lane.b32.xlu0 %v12646_v9, %s11235_s0 }
0x1534   :  { %5851 = vrot.lane.b32.xlu1 %v12664_v62, %s11235_s0  ;;  %v5171_v20 = vpop.xlane.xlu1 %5170 }
0x1535   :  { %11066 = vrcp.f32 %v5171_v20 }
0x1537   :  { %v11063_v41 = vpop.eup %11062  ;;  %5802 = vrot.lane.b32.xlu0 %v12598_v19, %s11234_s30 }
0x1538   :  { %5955 = vrot.lane.b32.xlu1 %v12612_v56, %s11234_s30  ;;  %v5174_v18 = vpop.xlane.xlu0 %5173  ;;  %v5195_v37 = vmul.f32 %v11063_v41, %v12715_v58  ;;  %v5361_v58 = vsel %vm822_vm4, %v12713_v6, 0 }
0x1539   :  { %v11065_v61 = vpop.eup %11064  ;;  %11068 = vrcp.f32 %v5174_v18 }
0x153a   :  { %v5203_v32 = vpack.c.bf16 %v5195_v37, %v5195_v37  ;;  %v5196_v35 = vmul.f32 %v11065_v61, %v12719_v0 }
0x153b   :  { %5800 = vrot.lane.b32.xlu0 %v12662_v54, %s11235_s0 }
0x153c   :  { %10333 = vmatmul.mubr.msk.bf16.vlgmr.msra.gmra.mrb[168].mxu0 %vm331_vm3, %v5203_v32  ;;  %5953 = vrot.lane.b32.xlu1 %v12682_v59, %s11235_s0  ;;  %v5204_v29 = vpack.c.bf16 %v5196_v35, %v5196_v35 }
0x153d   :  { %10343 = vmatpush3.bf16.msra.mxu0 %v5313_v26  ;;  %10344 = vmatprep.mubr.msk.bf16.mxu0 %vm11231_vm2, %v13822_v34 }
0x153e   :  { %10339 = vmatmul.mubr.msk.bf16.vlgmr.msra.gmra.mrb[168].mxu1 %vm331_vm3, %v5204_v29  ;;  %10354 = vmatprep.subr.bf16.mxu0 %v13822_v34 }
0x153f   :  { %v11067_v0 = vpop.eup %11066  ;;  %10349 = vmatpush3.bf16.msra.mxu1 %v5361_v58  ;;  %5904 = vrot.lane.b32.xlu0 %v12606_v21, %s11234_s30  ;;  %s13834_s30 = smov 16  }
0x1540   :  { %6099 = vrot.lane.b32.xlu1 %v12578_v43, %s11236_s21  ;;  %v5197_v2 = vmul.f32 %v11067_v0, %v12723_v13  ;;  %10350 = vmatprep.mubr.msk.bf16.mxu1 %vm11231_vm2, %v13822_v34 }
0x1541   :  { %10360 = vmatprep.subr.bf16.mxu1 %v13822_v34 }
0x1542   :  { %v5205_v6 = vpack.c.bf16 %v5197_v2, %v5197_v2 }
0x1543   :  { %v11069_v7 = vpop.eup %11068  ;;  %5902 = vrot.lane.b32.xlu0 %v12680_v25, %s11235_s0 }
0x1544   :  { %6195 = vrot.lane.b32.xlu1 %v12584_v27, %s11236_s21  ;;  %10345 = vmatmul.mubr.msk.bf16.vlgmr.msra.gmra.mrb[172].mxu0 %vm331_vm3, %v5205_v6  ;;  %v5198_v3 = vmul.f32 %v11069_v7, %v12727_v51 }
0x1545   :  { %10355 = vmatpush3.bf16.msra.mxu0 %v5409_v24  ;;  %10356 = vmatprep.mubr.msk.bf16.mxu0 %vm11231_vm2, %v13822_v34 }
0x1546   :  { %v5206_v13 = vpack.c.bf16 %v5198_v3, %v5198_v3  ;;  %10366 = vmatprep.subr.bf16.mxu0 %v13822_v34 }
0x1547   :  { %6147 = vrot.lane.b32.xlu0 %v12580_v23, %s11236_s21 }
0x1548   :  { %6243 = vrot.lane.b32.xlu1 %v12590_v40, %s11236_s21  ;;  %10351 = vmatmul.mubr.msk.bf16.vlgmr.msra.gmra.mrb[172].mxu1 %vm331_vm3, %v5206_v13 }
0x1549   :  { %10361 = vmatpush3.bf16.msra.mxu1 %v5457_v11  ;;  %10362 = vmatprep.mubr.msk.bf16.mxu1 %vm11231_vm2, %v13822_v34 }
0x154a   :  { %10372 = vmatprep.subr.bf16.mxu1 %v13822_v34 }
0x1567   :  { %v5177_v51 = vpop.xlane.xlu1 %5176 }
0x1568   :  { %11070 = vrcp.f32 %v5177_v51 }
0x1569   :  { %v5180_v33 = vpop.xlane.xlu0 %5179 }
0x156a   :  { %11072 = vrcp.f32 %v5180_v33 }
0x156b   :  { %v5548_v48 = vpop.permute.xlu1 %5547 }
0x156c   :  { %v5553_v47 = vsel %vm822_vm4, %v5548_v48, 0 }
0x156d   :  { %v5500_v12 = vpop.permute.xlu0 %5499 }
0x156e   :  { %v5505_v36 = vsel %vm822_vm4, %v5500_v12, 0 }
0x1572   :  { %v11071_v60 = vpop.eup %11070 }
0x1573   :  { %v5199_v22 = vmul.f32 %v11071_v60, %v12731_v30 }
0x1574   :  { %v11073_v52 = vpop.eup %11072 }
0x1575   :  { %v5207_v16 = vpack.c.bf16 %v5199_v22, %v5199_v22  ;;  %v5200_v44 = vmul.f32 %v11073_v52, %v12735_v1 }
0x1577   :  { %10357 = vmatmul.mubr.msk.bf16.vlgmr.msra.gmra.mrb[176].mxu0 %vm331_vm3, %v5207_v16  ;;  %v5208_v63 = vpack.c.bf16 %v5200_v44, %v5200_v44 }
0x1578   :  { %10367 = vmatpush3.bf16.msra.mxu0 %v5505_v36  ;;  %10368 = vmatprep.mubr.msk.bf16.mxu0 %vm11231_vm2, %v13822_v34 }
0x1579   :  { %10363 = vmatmul.mubr.msk.bf16.vlgmr.msra.gmra.mrb[176].mxu1 %vm331_vm3, %v5208_v63  ;;  %10378 = vmatprep.subr.bf16.mxu0 %v13822_v34 }
0x157a   :  { %10373 = vmatpush3.bf16.msra.mxu1 %v5553_v47  ;;  %10374 = vmatprep.mubr.msk.bf16.mxu1 %vm11231_vm2, %v13822_v34 }
0x157b   :  { %10384 = vmatprep.subr.bf16.mxu1 %v13822_v34 }
0x159c   :  { %v5183_v30 = vpop.xlane.xlu1 %5182 }
0x159d   :  { %11074 = vrcp.f32 %v5183_v30 }
0x159e   :  { %v5186_v1 = vpop.xlane.xlu0 %5185 }
0x159f   :  { %11076 = vrcp.f32 %v5186_v1 }
0x15a0   :  { %v5650_v4 = vpop.permute.xlu1 %5649 }
0x15a1   :  { %v5655_v58 = vsel %vm331_vm3, %v5650_v4, 0 }
0x15a2   :  { %v5599_v55 = vpop.permute.xlu0 %5598 }
0x15a3   :  { %v5604_v35 = vsel %vm331_vm3, %v5599_v55, 0 }
0x15a4   :  { %v5648_v17 = vpop.permute.xlu1 %5647 }
0x15a6   :  { %v5597_v38 = vpop.permute.xlu0 %5596 }
0x15a7   :  { %v11075_v28 = vpop.eup %11074 }
0x15a8   :  { %v5752_v20 = vpop.permute.xlu1 %5751  ;;  %v5201_v41 = vmul.f32 %v11075_v28, %v12744_v49 }
0x15a9   :  { %v11077_v18 = vpop.eup %11076  ;;  %v5757_v6 = vsel %vm331_vm3, %v5752_v20, 0 }
0x15aa   :  { %v5701_v37 = vpop.permute.xlu0 %5700  ;;  %v5209_v61 = vpack.c.bf16 %v5201_v41, %v5201_v41  ;;  %v5202_v32 = vmul.f32 %v11077_v18, %v12746_v15 }
0x15ab   :  { %v5706_v2 = vsel %vm331_vm3, %v5701_v37, 0 }
0x15ac   :  { %v5750_v26 = vpop.permute.xlu1 %5749  ;;  %10369 = vmatmul.mubr.msk.bf16.vlgmr.msra.gmra.mrb[180].mxu0 %vm331_vm3, %v5209_v61  ;;  %v5210_v29 = vpack.c.bf16 %v5202_v32, %v5202_v32 }
0x15ad   :  { %10379 = vmatpush3.bf16.xpose.msra.mxu0 %v5604_v35  ;;  %10380 = vmatprep.mubr.msk.bf16.mxu0 %vm11231_vm2, %v13822_v34 }
0x15ae   :  { %10375 = vmatmul.mubr.msk.bf16.vlgmr.msra.gmra.mrb[180].mxu1 %vm331_vm3, %v5210_v29  ;;  %v5699_v49 = vpop.permute.xlu0 %5698  ;;  %10390 = vmatprep.subr.bf16.mxu0 %v13822_v34 }
0x15af   :  { %10385 = vmatpush3.bf16.xpose.msra.mxu1 %v5655_v58  ;;  %10386 = vmatprep.mubr.msk.bf16.mxu1 %vm11231_vm2, %v13822_v34 }
0x15b0   :  { %10396 = vmatprep.subr.bf16.mxu1 %v13822_v34  ;;  %v5854_v15 = vpop.permute.xlu1 %5853 }
0x15b1   :  { %v5859_v11 = vsel %vm331_vm3, %v5854_v15, 0 }
0x15b2   :  { %v5803_v0 = vpop.permute.xlu0 %5802 }
0x15b3   :  { %v5808_v3 = vsel %vm331_vm3, %v5803_v0, 0 }
0x15b4   :  { %10381 = vmatmul.mubr.msk.bf16.vlgmr.msra.gmra.mrb[184].mxu0 %vm331_vm3, %v5597_v38  ;;  %v5852_v7 = vpop.permute.xlu1 %5851 }
0x15b5   :  { %10391 = vmatpush3.bf16.xpose.msra.mxu0 %v5706_v2  ;;  %10392 = vmatprep.mubr.msk.bf16.mxu0 %vm11231_vm2, %v13822_v34 }
0x15b6   :  { %10387 = vmatmul.mubr.msk.bf16.vlgmr.msra.gmra.mrb[184].mxu1 %vm331_vm3, %v5648_v17  ;;  %10402 = vmatprep.subr.bf16.mxu0 %v13822_v34  ;;  %v5801_v24 = vpop.permute.xlu0 %5800 }
0x15b7   :  { %10397 = vmatpush3.bf16.xpose.msra.mxu1 %v5757_v6  ;;  %10398 = vmatprep.mubr.msk.bf16.mxu1 %vm11231_vm2, %v13822_v34 }
0x15b8   :  { %10408 = vmatprep.subr.bf16.mxu1 %v13822_v34  ;;  %v5956_v13 = vpop.permute.xlu1 %5955 }
0x15b9   :  { %v5961_v52 = vsel %vm331_vm3, %v5956_v13, 0 }
0x15ba   :  { %v5905_v51 = vpop.permute.xlu0 %5904 }
0x15bb   :  { %v5910_v60 = vsel %vm331_vm3, %v5905_v51, 0 }
0x15bc   :  { %10393 = vmatmul.mubr.msk.bf16.vlgmr.msra.gmra.mrb[188].mxu0 %vm331_vm3, %v5699_v49  ;;  %v5954_v33 = vpop.permute.xlu1 %5953 }
0x15bd   :  { %10403 = vmatpush3.bf16.xpose.msra.mxu0 %v5808_v3  ;;  %10404 = vmatprep.mubr.msk.bf16.mxu0 %vm11231_vm2, %v13822_v34 }
0x15be   :  { %10399 = vmatmul.mubr.msk.bf16.vlgmr.msra.gmra.mrb[188].mxu1 %vm331_vm3, %v5750_v26  ;;  %10414 = vmatprep.subr.bf16.mxu0 %v13822_v34  ;;  %v5903_v22 = vpop.permute.xlu0 %5902 }
0x15bf   :  { %10409 = vmatpush3.bf16.xpose.msra.mxu1 %v5859_v11  ;;  %10410 = vmatprep.mubr.msk.bf16.mxu1 %vm11231_vm2, %v13822_v34 }
0x15c0   :  { %10420 = vmatprep.subr.bf16.mxu1 %v13822_v34  ;;  %v6100_v12 = vpop.permute.xlu1 %6099 }
0x15c1   :  { %v6105_v44 = vsel %vm822_vm4, %v6100_v12, 0 }
0x15c2   :  { %v6148_v16 = vpop.permute.xlu0 %6147 }
0x15c3   :  { %v6153_v48 = vsel %vm822_vm4, %v6148_v16, 0 }
0x15c4   :  { %10405 = vmatmul.mubr.msk.bf16.vlgmr.msra.gmra.mrb[192].mxu0 %vm331_vm3, %v5801_v24 }
0x15c5   :  { %10415 = vmatpush3.bf16.xpose.msra.mxu0 %v5910_v60  ;;  %10416 = vmatprep.mubr.msk.bf16.mxu0 %vm11231_vm2, %v13822_v34 }
0x15c6   :  { %10411 = vmatmul.mubr.msk.bf16.vlgmr.msra.gmra.mrb[192].mxu1 %vm331_vm3, %v5852_v7  ;;  %10426 = vmatprep.subr.bf16.mxu0 %v13822_v34 }
0x15c7   :  { %10421 = vmatpush3.bf16.xpose.msra.mxu1 %v5961_v52  ;;  %10422 = vmatprep.mubr.msk.bf16.mxu1 %vm11231_vm2, %v13822_v34 }
0x15c8   :  { %10432 = vmatprep.subr.bf16.mxu1 %v13822_v34 }
0x15cc   :  { %10417 = vmatmul.mubr.msk.bf16.vlgmr.msra.gmra.mrb[196].mxu0 %vm331_vm3, %v5903_v22 }
0x15cd   :  { %10427 = vmatpush3.bf16.msra.mxu0 %v6105_v44  ;;  %10428 = vmatprep.mubr.msk.bf16.mxu0 %vm11231_vm2, %v13822_v34 }
0x15ce   :  { %10423 = vmatmul.mubr.msk.bf16.vlgmr.msra.gmra.mrb[196].mxu1 %vm331_vm3, %v5954_v33  ;;  %10438 = vmatprep.subr.bf16.mxu0 %v13822_v34 }
0x15cf   :  { %10433 = vmatpush3.bf16.msra.mxu1 %v6153_v48  ;;  %10434 = vmatprep.mubr.msk.bf16.mxu1 %vm11231_vm2, %v13822_v34 }
0x15d0   :  { %10444 = vmatprep.subr.bf16.mxu1 %v13822_v34 }
0x160f   :  { %v12882_v36 = vpop.f32.mrb[168].mxu0 }
0x1610   :  { %v10334_v63 = vpop.f32.mrb[169].mxu0 }
0x1611   :  { %v5256_v47 = vpop.f32.mrb[170].mxu0  ;;  %v12884_v30 = vpop.f32.mrb[168].mxu1 }
0x1612   :  { %v10335_v1 = vpop.f32.mrb[171].mxu0  ;;  %v10340_v4 = vpop.f32.mrb[169].mxu1 }
0x1613   :  { %v5304_v55 = vpop.f32.mrb[170].mxu1 }
0x1614   :  { %v10341_v17 = vpop.f32.mrb[171].mxu1 }
0x1617   :  { %v12886_v38 = vpop.f32.mrb[172].mxu0 }
0x1618   :  { %v10346_v28 = vpop.f32.mrb[173].mxu0 }
0x1619   :  { %v5352_v20 = vpop.f32.mrb[174].mxu0 }
0x161a   :  { %v10347_v41 = vpop.f32.mrb[175].mxu0 }
0x161b   :  { %v12888_v18 = vpop.f32.mrb[172].mxu1 }
0x161c   :  { %v10352_v37 = vpop.f32.mrb[173].mxu1 }
0x161d   :  { %v5400_v61 = vpop.f32.mrb[174].mxu1 }
0x161e   :  { %v10353_v32 = vpop.f32.mrb[175].mxu1 }
0x164a   :  { %v12890_v35 = vpop.f32.mrb[176].mxu0 }
0x164b   :  { %v10358_v26 = vpop.f32.mrb[177].mxu0 }
0x164c   :  { %v5448_v29 = vpop.f32.mrb[178].mxu0  ;;  %v12892_v58 = vpop.f32.mrb[176].mxu1 }
0x164d   :  { %v10359_v49 = vpop.f32.mrb[179].mxu0  ;;  %v10364_v15 = vpop.f32.mrb[177].mxu1 }
0x164e   :  { %v5496_v0 = vpop.f32.mrb[178].mxu1 }
0x164f   :  { %v10365_v2 = vpop.f32.mrb[179].mxu1 }
0x167f   :  { %v12894_v6 = vpop.f32.mrb[180].mxu0 }
0x1680   :  { %v10370_v7 = vpop.f32.mrb[181].mxu0 }
0x1681   :  { %v5544_v24 = vpop.f32.mrb[182].mxu0  ;;  %v12896_v3 = vpop.f32.mrb[180].mxu1 }
0x1682   :  { %v10371_v13 = vpop.f32.mrb[183].mxu0  ;;  %v10376_v11 = vpop.f32.mrb[181].mxu1 }
0x1683   :  { %v5592_v51 = vpop.f32.mrb[182].mxu1 }
0x1684   :  { %v10377_v33 = vpop.f32.mrb[183].mxu1 }
0x1687   :  { %v5640_v60 = vpop.f32.mrb[184].mxu0 }
0x1688   :  { %v10382_v22 = vpop.f32.mrb[185].mxu0  ;;  %v6003_v52 = vsel %vm331_vm3, %v5640_v60, -inf }
0x1689   :  { %v5691_v12 = vpop.f32.mrb[184].mxu1  ;;  %6004 = vmax.xlane.f32.xlu0 %v6003_v52  ;;  %v5643_v16 = vpop.f32.mrb[186].mxu0 }
0x168a   :  { %v10383_v44 = vpop.f32.mrb[187].mxu0  ;;  %v10388_v48 = vpop.f32.mrb[185].mxu1  ;;  %v6006_v63 = vsel %vm331_vm3, %v5691_v12, -inf }
0x168b   :  { %6007 = vmax.xlane.f32.xlu1 %v6006_v63  ;;  %v5694_v47 = vpop.f32.mrb[186].mxu1 }
0x168c   :  { %v10389_v1 = vpop.f32.mrb[187].mxu1 }
0x168f   :  { %v5742_v4 = vpop.f32.mrb[188].mxu0 }
0x1690   :  { %v10394_v55 = vpop.f32.mrb[189].mxu0  ;;  %v6009_v17 = vsel %vm331_vm3, %v5742_v4, -inf }
0x1691   :  { %v5793_v28 = vpop.f32.mrb[188].mxu1  ;;  %6010 = vmax.xlane.f32.xlu0 %v6009_v17  ;;  %v5745_v20 = vpop.f32.mrb[190].mxu0 }
0x1692   :  { %v10395_v41 = vpop.f32.mrb[191].mxu0  ;;  %v10400_v37 = vpop.f32.mrb[189].mxu1  ;;  %v6012_v26 = vsel %vm331_vm3, %v5793_v28, -inf }
0x1693   :  { %v5796_v61 = vpop.f32.mrb[190].mxu1  ;;  %v12913_v17 = vpop.permute.xlu1 %6195 }
0x1694   :  { %v10401_v32 = vpop.f32.mrb[191].mxu1 }
0x1695   :  { %6013 = vmax.xlane.f32.xlu0 %v6012_v26 }
0x1697   :  { %v5844_v29 = vpop.f32.mrb[192].mxu0  ;;  %v12915_v20 = vpop.permute.xlu1 %6243 }
0x1698   :  { %v10406_v49 = vpop.f32.mrb[193].mxu0  ;;  %v6015_v15 = vsel %vm331_vm3, %v5844_v29, -inf }
0x1699   :  { %v5895_v0 = vpop.f32.mrb[192].mxu1  ;;  %6016 = vmax.xlane.f32.xlu1 %v6015_v15  ;;  %v5847_v2 = vpop.f32.mrb[194].mxu0 }
0x169a   :  { %v10407_v7 = vpop.f32.mrb[195].mxu0  ;;  %v10412_v24 = vpop.f32.mrb[193].mxu1  ;;  %v6018_v13 = vsel %vm331_vm3, %v5895_v0, -inf }
0x169b   :  { %v5898_v11 = vpop.f32.mrb[194].mxu1  ;;  %6019 = vmax.xlane.f32.xlu0 %v6018_v13 }
0x169c   :  { %v10413_v51 = vpop.f32.mrb[195].mxu1 }
0x169f   :  { %v12904_v33 = vpop.f32.mrb[196].mxu0 }
0x16a0   :  { %v10418_v22 = vpop.f32.mrb[197].mxu0  ;;  %v6021_v52 = vsel %vm331_vm3, %v12904_v33, -inf }
0x16a1   :  { %v5997_v16 = vpop.f32.mrb[196].mxu1  ;;  %6022 = vmax.xlane.f32.xlu1 %v6021_v52  ;;  %v5949_v44 = vpop.f32.mrb[198].mxu0 }
0x16a2   :  { %v10419_v48 = vpop.f32.mrb[199].mxu0  ;;  %v10424_v63 = vpop.f32.mrb[197].mxu1  ;;  %v6024_v47 = vsel %vm331_vm3, %v5997_v16, -inf }
0x16a3   :  { %v6000_v1 = vpop.f32.mrb[198].mxu1  ;;  %6025 = vmax.xlane.f32.xlu0 %v6024_v47 }
0x16a4   :  { %v10425_v55 = vpop.f32.mrb[199].mxu1 }
0x16b2   :  { %6339 = vrot.lane.b32.xlu1 %v12600_v39, %s11236_s21 }
0x16b9   :  { %6291 = vrot.lane.b32.xlu0 %v12598_v19, %s11236_s21 }
0x1716   :  { %v6005_v41 = vpop.xlane.xlu0 %6004 }
0x1717   :  { %v6027_v37 = vsub.f32 %v5640_v60, %v6005_v41 }
0x1718   :  { %v6008_v61 = vpop.xlane.xlu1 %6007 }
0x1719   :  { %v6035_v32 = vmul.f32 1.442695, %v6027_v37  ;;  %v6028_v26 = vsub.f32 %v5691_v12, %v6008_v61 }
0x171b   :  { %11078 = vpow2.f32 %v6035_v32  ;;  %v6037_v49 = vmul.f32 1.442695, %v6028_v26 }
0x171d   :  { %11080 = vpow2.f32 %v6037_v49 }
0x171e   :  { %v6011_v15 = vpop.xlane.xlu0 %6010 }
0x171f   :  { %v6029_v2 = vsub.f32 %v5742_v4, %v6011_v15 }
0x1721   :  { %v6039_v7 = vmul.f32 1.442695, %v6029_v2 }
0x1722   :  { %v6014_v24 = vpop.xlane.xlu0 %6013 }
0x1723   :  { %11082 = vpow2.f32 %v6039_v7  ;;  %v6030_v13 = vsub.f32 %v5793_v28, %v6014_v24 }
0x1725   :  { %v12917_v11 = vpop.eup %11078  ;;  %v6041_v51 = vmul.f32 1.442695, %v6030_v13 }
0x1726   :  { %v6017_v22 = vpop.xlane.xlu1 %6016  ;;  %v6051_v52 = vsel %vm331_vm3, %v12917_v11, 0.0 }
0x1727   :  { %v12921_v60 = vpop.eup %11080  ;;  %11084 = vpow2.f32 %v6041_v51  ;;  %v6031_v12 = vsub.f32 %v5844_v29, %v6017_v22  ;;  %6052 = vadd.xlane.f32.xlu1 %v6051_v52 }
0x1728   :  { %v6020_v44 = vpop.xlane.xlu0 %6019  ;;  %v6054_v4 = vsel %vm331_vm3, %v12921_v60, 0.0 }
0x1729   :  { %v6043_v48 = vmul.f32 1.442695, %v6031_v12  ;;  %v6032_v63 = vsub.f32 %v5895_v0, %v6020_v44  ;;  %6055 = vadd.xlane.f32.xlu0 %v6054_v4 }
0x172b   :  { %11086 = vpow2.f32 %v6043_v48  ;;  %v6045_v28 = vmul.f32 1.442695, %v6032_v63 }
0x172d   :  { %v12925_v47 = vpop.eup %11082  ;;  %11088 = vpow2.f32 %v6045_v28 }
0x172e   :  { %v6057_v1 = vsel %vm331_vm3, %v12925_v47, 0.0  ;;  %v6023_v32 = vpop.xlane.xlu1 %6022 }
0x172f   :  { %6058 = vadd.xlane.f32.xlu1 %v6057_v1  ;;  %v6033_v49 = vsub.f32 %v12904_v33, %v6023_v32 }
0x1730   :  { %v6026_v26 = vpop.xlane.xlu0 %6025 }
0x1731   :  { %v12929_v55 = vpop.eup %11084  ;;  %v6034_v15 = vsub.f32 %v5997_v16, %v6026_v26  ;;  %v6047_v2 = vmul.f32 1.442695, %v6033_v49 }
0x1732   :  { %v6060_v29 = vsel %vm331_vm3, %v12929_v55, 0.0  ;;  %v6340_v33 = vpop.permute.xlu1 %6339 }
0x1733   :  { %6061 = vadd.xlane.f32.xlu0 %v6060_v29  ;;  %v6049_v7 = vmul.f32 1.442695, %v6034_v15  ;;  %11090 = vpow2.f32 %v6047_v2 }
0x1734   :  { %v6292_v16 = vpop.permute.xlu0 %6291 }
0x1735   :  { %v12933_v41 = vpop.eup %11086  ;;  %11092 = vpow2.f32 %v6049_v7  ;;  %v6297_v2 = vsel %vm822_vm4, %v6292_v16, 0 }
0x1736   :  { %v6063_v0 = vsel %vm331_vm3, %v12933_v41, 0.0 }
0x1737   :  { %v12937_v37 = vpop.eup %11088  ;;  %6064 = vadd.xlane.f32.xlu1 %v6063_v0  ;;  %v6201_v0 = vsel %vm822_vm4, %v12913_v17, 0 }
0x1738   :  { %v6066_v61 = vsel %vm331_vm3, %v12937_v37, 0.0 }
0x1739   :  { %6067 = vadd.xlane.f32.xlu0 %v6066_v61 }
0x173d   :  { %v12946_v24 = vpop.eup %11090 }
0x173e   :  { %v6069_v51 = vsel %vm331_vm3, %v12946_v24, 0.0 }
0x173f   :  { %v12948_v13 = vpop.eup %11092 }
0x1740   :  { %v6072_v22 = vsel %vm331_vm3, %v12948_v13, 0.0 }
0x1748   :  { %6435 = vrot.lane.b32.xlu1 %v12612_v56, %s11236_s21 }
0x174f   :  { %6387 = vrot.lane.b32.xlu0 %v12606_v21, %s11236_s21 }
0x176c   :  { %6070 = vadd.xlane.f32.xlu1 %v6069_v51 }
0x176e   :  { %6073 = vadd.xlane.f32.xlu0 %v6072_v22 }
0x177d   :  { %6535 = vrot.lane.b32.xlu1 %v12580_v23, %s11237_s22 }
0x1781   :  { %6533 = vrot.lane.b32.xlu1 %v12632_v5, %s11238_s23 }
0x1784   :  { %6485 = vrot.lane.b32.xlu0 %v12578_v43, %s11237_s22 }
0x1785   :  { %6635 = vrot.lane.b32.xlu1 %v12590_v40, %s11237_s22 }
0x1788   :  { %6483 = vrot.lane.b32.xlu0 %v12630_v42, %s11238_s23 }
0x1789   :  { %6633 = vrot.lane.b32.xlu1 %v12648_v10, %s11238_s23 }
0x178c   :  { %6585 = vrot.lane.b32.xlu0 %v12584_v27, %s11237_s22 }
0x178d   :  { %6735 = vrot.lane.b32.xlu1 %v12600_v39, %s11237_s22 }
0x1790   :  { %6583 = vrot.lane.b32.xlu0 %v12646_v9, %s11238_s23 }
0x1791   :  { %6733 = vrot.lane.b32.xlu1 %v12664_v62, %s11238_s23 }
0x1794   :  { %6685 = vrot.lane.b32.xlu0 %v12598_v19, %s11237_s22 }
0x1795   :  { %6835 = vrot.lane.b32.xlu1 %v12612_v56, %s11237_s22 }
0x1798   :  { %6683 = vrot.lane.b32.xlu0 %v12662_v54, %s11238_s23 }
0x1799   :  { %6833 = vrot.lane.b32.xlu1 %v12682_v59, %s11238_s23 }
0x179c   :  { %6785 = vrot.lane.b32.xlu0 %v12606_v21, %s11237_s22 }
0x179d   :  { %6979 = vrot.lane.b32.xlu1 %v12578_v43, %s11239_s24 }
0x17a0   :  { %6783 = vrot.lane.b32.xlu0 %v12680_v25, %s11238_s23 }
0x17a1   :  { %7075 = vrot.lane.b32.xlu1 %v12584_v27, %s11239_s24 }
0x17a4   :  { %7027 = vrot.lane.b32.xlu0 %v12580_v23, %s11239_s24 }
0x17a5   :  { %7123 = vrot.lane.b32.xlu1 %v12590_v40, %s11239_s24 }
0x17b4   :  { %v6053_v52 = vpop.xlane.xlu1 %6052 }
0x17b5   :  { %11094 = vrcp.f32 %v6053_v52 }
0x17b6   :  { %v6056_v12 = vpop.xlane.xlu0 %6055 }
0x17b7   :  { %11096 = vrcp.f32 %v6056_v12 }
0x17bc   :  { %v6059_v44 = vpop.xlane.xlu1 %6058 }
0x17bd   :  { %11098 = vrcp.f32 %v6059_v44 }
0x17bf   :  { %v11095_v4 = vpop.eup %11094 }
0x17c0   :  { %v6062_v48 = vpop.xlane.xlu0 %6061  ;;  %v6083_v63 = vmul.f32 %v11095_v4, %v12917_v11  ;;  %v6249_v11 = vsel %vm822_vm4, %v12915_v20, 0 }
0x17c1   :  { %v11097_v28 = vpop.eup %11096  ;;  %11100 = vrcp.f32 %v6062_v48 }
0x17c2   :  { %v6091_v1 = vpack.c.bf16 %v6083_v63, %v6083_v63  ;;  %v6084_v29 = vmul.f32 %v11097_v28, %v12921_v60 }
0x17c4   :  { %10429 = vmatmul.mubr.msk.bf16.vlgmr.msra.gmra.mrb[200].mxu0 %vm331_vm3, %v6091_v1  ;;  %v6065_v61 = vpop.xlane.xlu1 %6064  ;;  %v6092_v32 = vpack.c.bf16 %v6084_v29, %v6084_v29 }
0x17c5   :  { %10439 = vmatpush3.bf16.msra.mxu0 %v6201_v0  ;;  %11102 = vrcp.f32 %v6065_v61  ;;  %10440 = vmatprep.mubr.msk.bf16.mxu0 %vm11231_vm2, %v13822_v34 }
0x17c6   :  { %10435 = vmatmul.mubr.msk.bf16.vlgmr.msra.gmra.mrb[200].mxu1 %vm331_vm3, %v6092_v32  ;;  %v6068_v26 = vpop.xlane.xlu0 %6067  ;;  %10450 = vmatprep.subr.bf16.mxu0 %v13822_v34 }
0x17c7   :  { %v11099_v60 = vpop.eup %11098  ;;  %10445 = vmatpush3.bf16.msra.mxu1 %v6249_v11  ;;  %11104 = vrcp.f32 %v6068_v26  ;;  %10446 = vmatprep.mubr.msk.bf16.mxu1 %vm11231_vm2, %v13822_v34 }
0x17c8   :  { %v6085_v17 = vmul.f32 %v11099_v60, %v12925_v47  ;;  %10456 = vmatprep.subr.bf16.mxu1 %v13822_v34  ;;  %v6345_v47 = vsel %vm822_vm4, %v6340_v33, 0  ;;  %v6436_v33 = vpop.permute.xlu1 %6435 }
0x17c9   :  { %v6441_v4 = vsel %vm822_vm4, %v6436_v33, 0 }
0x17ca   :  { %v6093_v49 = vpack.c.bf16 %v6085_v17, %v6085_v17  ;;  %v6388_v16 = vpop.permute.xlu0 %6387 }
0x17cb   :  { %v11101_v15 = vpop.eup %11100  ;;  %v6393_v44 = vsel %vm822_vm4, %v6388_v16, 0 }
0x17cc   :  { %10441 = vmatmul.mubr.msk.bf16.vlgmr.msra.gmra.mrb[204].mxu0 %vm331_vm3, %v6093_v49  ;;  %v6086_v20 = vmul.f32 %v11101_v15, %v12929_v55 }
0x17cd   :  { %10451 = vmatpush3.bf16.msra.mxu0 %v6297_v2  ;;  %10452 = vmatprep.mubr.msk.bf16.mxu0 %vm11231_vm2, %v13822_v34 }
0x17ce   :  { %v6094_v7 = vpack.c.bf16 %v6086_v20, %v6086_v20  ;;  %10462 = vmatprep.subr.bf16.mxu0 %v13822_v34 }
0x17cf   :  { %v11103_v51 = vpop.eup %11102 }
0x17d0   :  { %10447 = vmatmul.mubr.msk.bf16.vlgmr.msra.gmra.mrb[204].mxu1 %vm331_vm3, %v6094_v7  ;;  %v6087_v22 = vmul.f32 %v11103_v51, %v12933_v41 }
0x17d1   :  { %v11105_v52 = vpop.eup %11104  ;;  %10457 = vmatpush3.bf16.msra.mxu1 %v6345_v47  ;;  %10458 = vmatprep.mubr.msk.bf16.mxu1 %vm11231_vm2, %v13822_v34 }
0x17d2   :  { %v6095_v55 = vpack.c.bf16 %v6087_v22, %v6087_v22  ;;  %10468 = vmatprep.subr.bf16.mxu1 %v13822_v34  ;;  %v6088_v12 = vmul.f32 %v11105_v52, %v12937_v37 }
0x17d4   :  { %10453 = vmatmul.mubr.msk.bf16.vlgmr.msra.gmra.mrb[208].mxu0 %vm331_vm3, %v6095_v55  ;;  %v6096_v41 = vpack.c.bf16 %v6088_v12, %v6088_v12 }
0x17d5   :  { %10463 = vmatpush3.bf16.msra.mxu0 %v6393_v44  ;;  %10464 = vmatprep.mubr.msk.bf16.mxu0 %vm11231_vm2, %v13822_v34 }
0x17d6   :  { %10474 = vmatprep.subr.bf16.mxu0 %v13822_v34 }
0x17d8   :  { %10459 = vmatmul.mubr.msk.bf16.vlgmr.msra.gmra.mrb[208].mxu1 %vm331_vm3, %v6096_v41 }
0x17d9   :  { %10469 = vmatpush3.bf16.msra.mxu1 %v6441_v4  ;;  %10470 = vmatprep.mubr.msk.bf16.mxu1 %vm11231_vm2, %v13822_v34 }
0x17da   :  { %10480 = vmatprep.subr.bf16.mxu1 %v13822_v34 }
0x17f9   :  { %v6071_v37 = vpop.xlane.xlu1 %6070 }
0x17fa   :  { %11106 = vrcp.f32 %v6071_v37 }
0x17fb   :  { %v6074_v48 = vpop.xlane.xlu0 %6073 }
0x17fc   :  { %11108 = vrcp.f32 %v6074_v48 }
0x17fd   :  { %v6536_v63 = vpop.permute.xlu1 %6535 }
0x17fe   :  { %v6541_v20 = vsel %vm331_vm3, %v6536_v63, 0 }
0x17ff   :  { %v6486_v28 = vpop.permute.xlu0 %6485 }
0x1800   :  { %v6491_v49 = vsel %vm331_vm3, %v6486_v28, 0 }
0x1801   :  { %v6534_v1 = vpop.permute.xlu1 %6533 }
0x1803   :  { %v6484_v29 = vpop.permute.xlu0 %6483 }
0x1804   :  { %v11107_v0 = vpop.eup %11106 }
0x1805   :  { %v6636_v61 = vpop.permute.xlu1 %6635  ;;  %v6089_v32 = vmul.f32 %v11107_v0, %v12946_v24 }
0x1806   :  { %v11109_v11 = vpop.eup %11108  ;;  %v6641_v47 = vsel %vm331_vm3, %v6636_v61, 0 }
0x1807   :  { %v6586_v26 = vpop.permute.xlu0 %6585  ;;  %v6097_v60 = vpack.c.bf16 %v6089_v32, %v6089_v32  ;;  %v6090_v17 = vmul.f32 %v11109_v11, %v12948_v13 }
0x1808   :  { %v6591_v51 = vsel %vm331_vm3, %v6586_v26, 0 }
0x1809   :  { %v6634_v15 = vpop.permute.xlu1 %6633  ;;  %10465 = vmatmul.mubr.msk.bf16.vlgmr.msra.gmra.mrb[212].mxu0 %vm331_vm3, %v6097_v60  ;;  %v6098_v2 = vpack.c.bf16 %v6090_v17, %v6090_v17 }
0x180a   :  { %10475 = vmatpush3.bf16.xpose.msra.mxu0 %v6491_v49  ;;  %10476 = vmatprep.mubr.msk.bf16.mxu0 %vm11231_vm2, %v13822_v34 }
0x180b   :  { %10471 = vmatmul.mubr.msk.bf16.vlgmr.msra.gmra.mrb[212].mxu1 %vm331_vm3, %v6098_v2  ;;  %v6584_v24 = vpop.permute.xlu0 %6583  ;;  %10486 = vmatprep.subr.bf16.mxu0 %v13822_v34 }
0x180c   :  { %10481 = vmatpush3.bf16.xpose.msra.mxu1 %v6541_v20  ;;  %10482 = vmatprep.mubr.msk.bf16.mxu1 %vm11231_vm2, %v13822_v34 }
0x180d   :  { %10492 = vmatprep.subr.bf16.mxu1 %v13822_v34  ;;  %v6736_v13 = vpop.permute.xlu1 %6735 }
0x180e   :  { %v6741_v12 = vsel %vm331_vm3, %v6736_v13, 0 }
0x180f   :  { %v6686_v7 = vpop.permute.xlu0 %6685 }
0x1810   :  { %v6691_v16 = vsel %vm331_vm3, %v6686_v7, 0 }
0x1811   :  { %10477 = vmatmul.mubr.msk.bf16.vlgmr.msra.gmra.mrb[216].mxu0 %vm331_vm3, %v6484_v29  ;;  %v6734_v22 = vpop.permute.xlu1 %6733 }
0x1812   :  { %10487 = vmatpush3.bf16.xpose.msra.mxu0 %v6591_v51  ;;  %10488 = vmatprep.mubr.msk.bf16.mxu0 %vm11231_vm2, %v13822_v34 }
0x1813   :  { %10483 = vmatmul.mubr.msk.bf16.vlgmr.msra.gmra.mrb[216].mxu1 %vm331_vm3, %v6534_v1  ;;  %10498 = vmatprep.subr.bf16.mxu0 %v13822_v34  ;;  %v6684_v52 = vpop.permute.xlu0 %6683 }
0x1814   :  { %10493 = vmatpush3.bf16.xpose.msra.mxu1 %v6641_v47  ;;  %10494 = vmatprep.mubr.msk.bf16.mxu1 %vm11231_vm2, %v13822_v34 }
0x1815   :  { %10504 = vmatprep.subr.bf16.mxu1 %v13822_v34  ;;  %v6836_v55 = vpop.permute.xlu1 %6835 }
0x1816   :  { %v6841_v37 = vsel %vm331_vm3, %v6836_v55, 0 }
0x1817   :  { %v6786_v44 = vpop.permute.xlu0 %6785 }
0x1818   :  { %v6791_v41 = vsel %vm331_vm3, %v6786_v44, 0 }
0x1819   :  { %10489 = vmatmul.mubr.msk.bf16.vlgmr.msra.gmra.mrb[220].mxu0 %vm331_vm3, %v6584_v24  ;;  %v6834_v33 = vpop.permute.xlu1 %6833 }
0x181a   :  { %10499 = vmatpush3.bf16.xpose.msra.mxu0 %v6691_v16  ;;  %10500 = vmatprep.mubr.msk.bf16.mxu0 %vm11231_vm2, %v13822_v34 }
0x181b   :  { %10495 = vmatmul.mubr.msk.bf16.vlgmr.msra.gmra.mrb[220].mxu1 %vm331_vm3, %v6634_v15  ;;  %10510 = vmatprep.subr.bf16.mxu0 %v13822_v34  ;;  %v6784_v4 = vpop.permute.xlu0 %6783 }
0x181c   :  { %10505 = vmatpush3.bf16.xpose.msra.mxu1 %v6741_v12  ;;  %10506 = vmatprep.mubr.msk.bf16.mxu1 %vm11231_vm2, %v13822_v34 }
0x181d   :  { %10516 = vmatprep.subr.bf16.mxu1 %v13822_v34  ;;  %v6980_v48 = vpop.permute.xlu1 %6979 }
0x181e   :  { %v6985_v28 = vsel %vm822_vm4, %v6980_v48, 0 }
0x181f   :  { %v7028_v63 = vpop.permute.xlu0 %7027 }
0x1820   :  { %v7033_v1 = vsel %vm822_vm4, %v7028_v63, 0 }
0x1821   :  { %10501 = vmatmul.mubr.msk.bf16.vlgmr.msra.gmra.mrb[224].mxu0 %vm331_vm3, %v6684_v52 }
0x1822   :  { %10511 = vmatpush3.bf16.xpose.msra.mxu0 %v6791_v41  ;;  %10512 = vmatprep.mubr.msk.bf16.mxu0 %vm11231_vm2, %v13822_v34 }
0x1823   :  { %10507 = vmatmul.mubr.msk.bf16.vlgmr.msra.gmra.mrb[224].mxu1 %vm331_vm3, %v6734_v22  ;;  %10522 = vmatprep.subr.bf16.mxu0 %v13822_v34 }
0x1824   :  { %10517 = vmatpush3.bf16.xpose.msra.mxu1 %v6841_v37  ;;  %10518 = vmatprep.mubr.msk.bf16.mxu1 %vm11231_vm2, %v13822_v34 }
0x1825   :  { %10528 = vmatprep.subr.bf16.mxu1 %v13822_v34 }
0x1829   :  { %10513 = vmatmul.mubr.msk.bf16.vlgmr.msra.gmra.mrb[228].mxu0 %vm331_vm3, %v6784_v4 }
0x182a   :  { %10523 = vmatpush3.bf16.msra.mxu0 %v6985_v28  ;;  %10524 = vmatprep.mubr.msk.bf16.mxu0 %vm11231_vm2, %v13822_v34 }
0x182b   :  { %10519 = vmatmul.mubr.msk.bf16.vlgmr.msra.gmra.mrb[228].mxu1 %vm331_vm3, %v6834_v33  ;;  %10534 = vmatprep.subr.bf16.mxu0 %v13822_v34 }
0x182c   :  { %10529 = vmatpush3.bf16.msra.mxu1 %v7033_v1  ;;  %10530 = vmatprep.mubr.msk.bf16.mxu1 %vm11231_vm2, %v13822_v34 }
0x182d   :  { %10540 = vmatprep.subr.bf16.mxu1 %v13822_v34 }
0x1897   :  { %v13084_v29 = vpop.f32.mrb[200].mxu0 }
0x1898   :  { %v10430_v0 = vpop.f32.mrb[201].mxu0 }
0x1899   :  { %v6144_v61 = vpop.f32.mrb[202].mxu0  ;;  %v13086_v32 = vpop.f32.mrb[200].mxu1 }
0x189a   :  { %v10431_v26 = vpop.f32.mrb[203].mxu0  ;;  %v10436_v60 = vpop.f32.mrb[201].mxu1 }
0x189b   :  { %v6192_v17 = vpop.f32.mrb[202].mxu1 }
0x189c   :  { %v10437_v49 = vpop.f32.mrb[203].mxu1 }
0x189f   :  { %v13090_v15 = vpop.f32.mrb[204].mxu0 }
0x18a0   :  { %v10442_v2 = vpop.f32.mrb[205].mxu0 }
0x18a1   :  { %v6240_v20 = vpop.f32.mrb[206].mxu0 }
0x18a2   :  { %v10443_v24 = vpop.f32.mrb[207].mxu0 }
0x18a3   :  { %v13092_v13 = vpop.f32.mrb[204].mxu1 }
0x18a4   :  { %v10448_v51 = vpop.f32.mrb[205].mxu1 }
0x18a5   :  { %v6288_v47 = vpop.f32.mrb[206].mxu1 }
0x18a6   :  { %v10449_v22 = vpop.f32.mrb[207].mxu1 }
0x18a7   :  { %v13096_v52 = vpop.f32.mrb[208].mxu0 }
0x18a8   :  { %v10454_v16 = vpop.f32.mrb[209].mxu0 }
0x18a9   :  { %v6336_v55 = vpop.f32.mrb[210].mxu0 }
0x18aa   :  { %v10455_v12 = vpop.f32.mrb[211].mxu0 }
0x18ab   :  { %v13098_v44 = vpop.f32.mrb[208].mxu1 }
0x18ac   :  { %v10460_v41 = vpop.f32.mrb[209].mxu1 }
0x18ad   :  { %v6384_v4 = vpop.f32.mrb[210].mxu1 }
0x18ae   :  { %v10461_v37 = vpop.f32.mrb[211].mxu1 }
0x18dc   :  { %v13102_v48 = vpop.f32.mrb[212].mxu0 }
0x18dd   :  { %v10466_v63 = vpop.f32.mrb[213].mxu0 }
0x18de   :  { %v6432_v28 = vpop.f32.mrb[214].mxu0  ;;  %v13104_v1 = vpop.f32.mrb[212].mxu1 }
0x18df   :  { %v10467_v61 = vpop.f32.mrb[215].mxu0  ;;  %v10472_v26 = vpop.f32.mrb[213].mxu1 }
0x18e0   :  { %v6480_v60 = vpop.f32.mrb[214].mxu1 }
0x18e1   :  { %v10473_v17 = vpop.f32.mrb[215].mxu1 }
0x18e4   :  { %v6527_v49 = vpop.f32.mrb[216].mxu0 }
0x18e5   :  { %v10478_v2 = vpop.f32.mrb[217].mxu0  ;;  %v6883_v20 = vsel %vm331_vm3, %v6527_v49, -inf }
0x18e6   :  { %v6577_v24 = vpop.f32.mrb[216].mxu1  ;;  %6884 = vmax.xlane.f32.xlu0 %v6883_v20  ;;  %v6530_v51 = vpop.f32.mrb[218].mxu0 }
0x18e7   :  { %v10479_v47 = vpop.f32.mrb[219].mxu0  ;;  %v10484_v22 = vpop.f32.mrb[217].mxu1  ;;  %v6886_v16 = vsel %vm331_vm3, %v6577_v24, -inf }
0x18e8   :  { %6887 = vmax.xlane.f32.xlu1 %v6886_v16  ;;  %v6580_v55 = vpop.f32.mrb[218].mxu1 }
0x18e9   :  { %v10485_v12 = vpop.f32.mrb[219].mxu1 }
0x18ec   :  { %v6627_v41 = vpop.f32.mrb[220].mxu0 }
0x18ed   :  { %v10490_v4 = vpop.f32.mrb[221].mxu0  ;;  %v6889_v37 = vsel %vm331_vm3, %v6627_v41, -inf }
0x18ee   :  { %v6677_v63 = vpop.f32.mrb[220].mxu1  ;;  %6890 = vmax.xlane.f32.xlu0 %v6889_v37  ;;  %v6630_v28 = vpop.f32.mrb[222].mxu0 }
0x18ef   :  { %v10491_v61 = vpop.f32.mrb[223].mxu0  ;;  %v10496_v26 = vpop.f32.mrb[221].mxu1  ;;  %v6892_v2 = vsel %vm331_vm3, %v6677_v63, -inf }
0x18f0   :  { %v6680_v60 = vpop.f32.mrb[222].mxu1 }
0x18f1   :  { %v10497_v17 = vpop.f32.mrb[223].mxu1 }
0x18f2   :  { %6893 = vmax.xlane.f32.xlu0 %v6892_v2 }
0x18f4   :  { %v6727_v20 = vpop.f32.mrb[224].mxu0 }
0x18f5   :  { %v10502_v51 = vpop.f32.mrb[225].mxu0  ;;  %v6895_v47 = vsel %vm331_vm3, %v6727_v20, -inf }
0x18f6   :  { %v6777_v22 = vpop.f32.mrb[224].mxu1  ;;  %6896 = vmax.xlane.f32.xlu1 %v6895_v47  ;;  %v6730_v16 = vpop.f32.mrb[226].mxu0 }
0x18f7   :  { %v10503_v55 = vpop.f32.mrb[227].mxu0  ;;  %v10508_v12 = vpop.f32.mrb[225].mxu1  ;;  %v6898_v4 = vsel %vm331_vm3, %v6777_v22, -inf }
0x18f8   :  { %v6780_v37 = vpop.f32.mrb[226].mxu1  ;;  %6899 = vmax.xlane.f32.xlu0 %v6898_v4  ;;  %v13123_v12 = vpop.permute.xlu1 %7075 }
0x18f9   :  { %v10509_v28 = vpop.f32.mrb[227].mxu1 }
0x18fc   :  { %v13114_v61 = vpop.f32.mrb[228].mxu0  ;;  %v13125_v4 = vpop.permute.xlu1 %7123 }
0x18fd   :  { %v10514_v26 = vpop.f32.mrb[229].mxu0  ;;  %v6901_v60 = vsel %vm331_vm3, %v13114_v61, -inf }
0x18fe   :  { %v6877_v17 = vpop.f32.mrb[228].mxu1  ;;  %6902 = vmax.xlane.f32.xlu1 %v6901_v60  ;;  %v6830_v2 = vpop.f32.mrb[230].mxu0 }
0x18ff   :  { %v10515_v51 = vpop.f32.mrb[231].mxu0  ;;  %v10520_v33 = vpop.f32.mrb[229].mxu1  ;;  %v6904_v47 = vsel %vm331_vm3, %v6877_v17, -inf }
0x1900   :  { %v6880_v16 = vpop.f32.mrb[230].mxu1  ;;  %6905 = vmax.xlane.f32.xlu0 %v6904_v47 }
0x1901   :  { %v10521_v55 = vpop.f32.mrb[231].mxu1 }
0x190f   :  { %7219 = vrot.lane.b32.xlu1 %v12600_v39, %s11239_s24 }
0x1916   :  { %7171 = vrot.lane.b32.xlu0 %v12598_v19, %s11239_s24 }
0x1973   :  { %v6885_v37 = vpop.xlane.xlu0 %6884 }
0x1974   :  { %v6907_v28 = vsub.f32 %v6527_v49, %v6885_v37 }
0x1975   :  { %v6888_v26 = vpop.xlane.xlu1 %6887 }
0x1976   :  { %v6915_v60 = vmul.f32 1.442695, %v6907_v28  ;;  %v6908_v33 = vsub.f32 %v6577_v24, %v6888_v26 }
0x1978   :  { %11110 = vpow2.f32 %v6915_v60  ;;  %v6917_v2 = vmul.f32 1.442695, %v6908_v33 }
0x197a   :  { %11112 = vpow2.f32 %v6917_v2 }
0x197b   :  { %v6891_v51 = vpop.xlane.xlu0 %6890 }
0x197c   :  { %v6909_v47 = vsub.f32 %v6627_v41, %v6891_v51 }
0x197e   :  { %v6919_v16 = vmul.f32 1.442695, %v6909_v47 }
0x197f   :  { %v6894_v55 = vpop.xlane.xlu0 %6893 }
0x1980   :  { %11114 = vpow2.f32 %v6919_v16  ;;  %v6910_v11 = vsub.f32 %v6677_v63, %v6894_v55 }
0x1982   :  { %v13127_v0 = vpop.eup %11110  ;;  %v6921_v7 = vmul.f32 1.442695, %v6910_v11 }
0x1983   :  { %v6897_v53 = vpop.xlane.xlu1 %6896  ;;  %v6931_v57 = vsel %vm331_vm3, %v13127_v0, 0.0 }
0x1984   :  { %v13131_v49 = vpop.eup %11112  ;;  %11116 = vpow2.f32 %v6921_v7  ;;  %v6911_v24 = vsub.f32 %v6727_v20, %v6897_v53  ;;  %6932 = vadd.xlane.f32.xlu1 %v6931_v57 }
0x1985   :  { %v6900_v37 = vpop.xlane.xlu0 %6899  ;;  %v6934_v41 = vsel %vm331_vm3, %v13131_v49, 0.0 }
0x1986   :  { %v6923_v28 = vmul.f32 1.442695, %v6911_v24  ;;  %v6912_v26 = vsub.f32 %v6777_v22, %v6900_v37  ;;  %6935 = vadd.xlane.f32.xlu0 %v6934_v41 }
0x1988   :  { %11118 = vpow2.f32 %v6923_v28  ;;  %v6925_v63 = vmul.f32 1.442695, %v6912_v26 }
0x198a   :  { %v13135_v60 = vpop.eup %11114  ;;  %11120 = vpow2.f32 %v6925_v63 }
0x198b   :  { %v6937_v11 = vsel %vm331_vm3, %v13135_v60, 0.0  ;;  %v6903_v2 = vpop.xlane.xlu1 %6902 }
0x198c   :  { %6938 = vadd.xlane.f32.xlu1 %v6937_v11  ;;  %v6913_v47 = vsub.f32 %v13114_v61, %v6903_v2 }
0x198d   :  { %v6906_v51 = vpop.xlane.xlu0 %6905 }
0x198e   :  { %v13139_v33 = vpop.eup %11116  ;;  %v6914_v16 = vsub.f32 %v6877_v17, %v6906_v51  ;;  %v6927_v55 = vmul.f32 1.442695, %v6913_v47 }
0x198f   :  { %v6940_v57 = vsel %vm331_vm3, %v13139_v33, 0.0 }
0x1990   :  { %6941 = vadd.xlane.f32.xlu0 %v6940_v57  ;;  %v6929_v24 = vmul.f32 1.442695, %v6914_v16  ;;  %11122 = vpow2.f32 %v6927_v55 }
0x1992   :  { %v13143_v53 = vpop.eup %11118  ;;  %11124 = vpow2.f32 %v6929_v24 }
0x1993   :  { %v6943_v7 = vsel %vm331_vm3, %v13143_v53, 0.0 }
0x1994   :  { %v13147_v20 = vpop.eup %11120  ;;  %6944 = vadd.xlane.f32.xlu1 %v6943_v7 }
0x1995   :  { %v6946_v22 = vsel %vm331_vm3, %v13147_v20, 0.0 }
0x1996   :  { %6947 = vadd.xlane.f32.xlu0 %v6946_v22 }
0x199a   :  { %v13156_v37 = vpop.eup %11122 }
0x199b   :  { %v6949_v28 = vsel %vm331_vm3, %v13156_v37, 0.0 }
0x199c   :  { %v13158_v41 = vpop.eup %11124 }
0x199d   :  { %v6952_v26 = vsel %vm331_vm3, %v13158_v41, 0.0 }
0x19a5   :  { %7315 = vrot.lane.b32.xlu1 %v12612_v56, %s11239_s24 }
0x19ac   :  { %7267 = vrot.lane.b32.xlu0 %v12606_v21, %s11239_s24  ;;  %s13838_s24 = smov 24  }
0x19c9   :  { %6950 = vadd.xlane.f32.xlu1 %v6949_v28 }
0x19cb   :  { %6953 = vadd.xlane.f32.xlu0 %v6952_v26 }
0x19da   :  { %7415 = vrot.lane.b32.xlu1 %v12580_v23, %s13830_s5 }
0x19de   :  { %7413 = vrot.lane.b32.xlu1 %v12632_v5, %s13831_s19  ;;  %v7172_v5 = vpop.permute.xlu0 %7171 }
0x19df   :  { %v7177_v51 = vsel %vm822_vm4, %v7172_v5, 0 }
0x19e1   :  { %7365 = vrot.lane.b32.xlu0 %v12578_v43, %s13830_s5 }
0x19e2   :  { %7515 = vrot.lane.b32.xlu1 %v12590_v40, %s13830_s5 }
0x19e5   :  { %7363 = vrot.lane.b32.xlu0 %v12630_v42, %s13831_s19  ;;  %v7220_v42 = vpop.permute.xlu1 %7219 }
0x19e6   :  { %7513 = vrot.lane.b32.xlu1 %v12648_v10, %s13831_s19 }
0x19e9   :  { %7465 = vrot.lane.b32.xlu0 %v12584_v27, %s13830_s5 }
0x19ea   :  { %7615 = vrot.lane.b32.xlu1 %v12600_v39, %s13830_s5 }
0x19ed   :  { %7463 = vrot.lane.b32.xlu0 %v12646_v9, %s13831_s19 }
0x19ee   :  { %7613 = vrot.lane.b32.xlu1 %v12664_v62, %s13831_s19 }
0x19f1   :  { %7565 = vrot.lane.b32.xlu0 %v12598_v19, %s13830_s5 }
0x19f2   :  { %7715 = vrot.lane.b32.xlu1 %v12612_v56, %s13830_s5 }
0x19f5   :  { %7563 = vrot.lane.b32.xlu0 %v12662_v54, %s13831_s19 }
0x19f6   :  { %7713 = vrot.lane.b32.xlu1 %v12682_v59, %s13831_s19 }
0x19f9   :  { %7665 = vrot.lane.b32.xlu0 %v12606_v21, %s13830_s5 }
0x19fa   :  { %7859 = vrot.lane.b32.xlu1 %v12578_v43, %s13832_s29 }
0x19fd   :  { %7663 = vrot.lane.b32.xlu0 %v12680_v25, %s13831_s19  ;;  %v7081_v25 = vsel %vm822_vm4, %v13123_v12, 0 }
0x1a11   :  { %v6933_v9 = vpop.xlane.xlu1 %6932 }
0x1a12   :  { %11126 = vrcp.f32 %v6933_v9 }
0x1a13   :  { %v6936_v10 = vpop.xlane.xlu0 %6935 }
0x1a14   :  { %11128 = vrcp.f32 %v6936_v10 }
0x1a19   :  { %v6939_v62 = vpop.xlane.xlu1 %6938 }
0x1a1a   :  { %11130 = vrcp.f32 %v6939_v62 }
0x1a1c   :  { %v11127_v54 = vpop.eup %11126 }
0x1a1d   :  { %v6963_v59 = vmul.f32 %v11127_v54, %v13127_v0  ;;  %v6942_v61 = vpop.xlane.xlu0 %6941  ;;  %v7129_v0 = vsel %vm822_vm4, %v13125_v4, 0 }
0x1a1e   :  { %v11129_v17 = vpop.eup %11128  ;;  %11132 = vrcp.f32 %v6942_v61 }
0x1a1f   :  { %v6964_v63 = vmul.f32 %v11129_v17, %v13131_v49  ;;  %v6971_v43 = vpack.c.bf16 %v6963_v59, %v6963_v59 }
0x1a21   :  { %10525 = vmatmul.mubr.msk.bf16.vlgmr.msra.gmra.mrb[232].mxu0 %vm331_vm3, %v6971_v43  ;;  %v6945_v11 = vpop.xlane.xlu1 %6944  ;;  %v6972_v57 = vpack.c.bf16 %v6964_v63, %v6964_v63 }
0x1a22   :  { %10535 = vmatpush3.bf16.msra.mxu0 %v7081_v25  ;;  %11134 = vrcp.f32 %v6945_v11  ;;  %10536 = vmatprep.mubr.msk.bf16.mxu0 %vm11231_vm2, %v13822_v34 }
0x1a23   :  { %10531 = vmatmul.mubr.msk.bf16.vlgmr.msra.gmra.mrb[232].mxu1 %vm331_vm3, %v6972_v57  ;;  %v6948_v7 = vpop.xlane.xlu0 %6947  ;;  %10546 = vmatprep.subr.bf16.mxu0 %v13822_v34 }
0x1a24   :  { %v11131_v49 = vpop.eup %11130  ;;  %10541 = vmatpush3.bf16.msra.mxu1 %v7129_v0  ;;  %11136 = vrcp.f32 %v6948_v7  ;;  %10542 = vmatprep.mubr.msk.bf16.mxu1 %vm11231_vm2, %v13822_v34 }
0x1a25   :  { %v6965_v12 = vmul.f32 %v11131_v49, %v13135_v60  ;;  %10552 = vmatprep.subr.bf16.mxu1 %v13822_v34  ;;  %v7225_v60 = vsel %vm822_vm4, %v7220_v42, 0  ;;  %v7316_v42 = vpop.permute.xlu1 %7315 }
0x1a26   :  { %v7321_v9 = vsel %vm822_vm4, %v7316_v42, 0 }
0x1a27   :  { %v6973_v22 = vpack.c.bf16 %v6965_v12, %v6965_v12  ;;  %v7268_v28 = vpop.permute.xlu0 %7267 }
0x1a28   :  { %v11133_v2 = vpop.eup %11132  ;;  %v7273_v5 = vsel %vm822_vm4, %v7268_v28, 0 }
0x1a29   :  { %v6966_v4 = vmul.f32 %v11133_v2, %v13139_v33  ;;  %10537 = vmatmul.mubr.msk.bf16.vlgmr.msra.gmra.mrb[236].mxu0 %vm331_vm3, %v6973_v22 }
0x1a2a   :  { %10547 = vmatpush3.bf16.msra.mxu0 %v7177_v51  ;;  %10548 = vmatprep.mubr.msk.bf16.mxu0 %vm11231_vm2, %v13822_v34 }
0x1a2b   :  { %v6974_v47 = vpack.c.bf16 %v6966_v4, %v6966_v4  ;;  %10558 = vmatprep.subr.bf16.mxu0 %v13822_v34 }
0x1a2c   :  { %v11135_v16 = vpop.eup %11134 }
0x1a2d   :  { %v6967_v55 = vmul.f32 %v11135_v16, %v13143_v53  ;;  %10543 = vmatmul.mubr.msk.bf16.vlgmr.msra.gmra.mrb[236].mxu1 %vm331_vm3, %v6974_v47 }
0x1a2e   :  { %v11137_v24 = vpop.eup %11136  ;;  %10553 = vmatpush3.bf16.msra.mxu1 %v7225_v60  ;;  %10554 = vmatprep.mubr.msk.bf16.mxu1 %vm11231_vm2, %v13822_v34 }
0x1a2f   :  { %v6968_v33 = vmul.f32 %v11137_v24, %v13147_v20  ;;  %v6975_v26 = vpack.c.bf16 %v6967_v55, %v6967_v55  ;;  %10564 = vmatprep.subr.bf16.mxu1 %v13822_v34 }
0x1a31   :  { %10549 = vmatmul.mubr.msk.bf16.vlgmr.msra.gmra.mrb[240].mxu0 %vm331_vm3, %v6975_v26  ;;  %v6976_v53 = vpack.c.bf16 %v6968_v33, %v6968_v33 }
0x1a32   :  { %10559 = vmatpush3.bf16.msra.mxu0 %v7273_v5  ;;  %10560 = vmatprep.mubr.msk.bf16.mxu0 %vm11231_vm2, %v13822_v34 }
0x1a33   :  { %10570 = vmatprep.subr.bf16.mxu0 %v13822_v34 }
0x1a35   :  { %10555 = vmatmul.mubr.msk.bf16.vlgmr.msra.gmra.mrb[240].mxu1 %vm331_vm3, %v6976_v53 }
0x1a36   :  { %10565 = vmatpush3.bf16.msra.mxu1 %v7321_v9  ;;  %10566 = vmatprep.mubr.msk.bf16.mxu1 %vm11231_vm2, %v13822_v34 }
0x1a37   :  { %10576 = vmatprep.subr.bf16.mxu1 %v13822_v34 }
0x1a56   :  { %v6951_v20 = vpop.xlane.xlu1 %6950 }
0x1a57   :  { %11138 = vrcp.f32 %v6951_v20 }
0x1a58   :  { %v6954_v10 = vpop.xlane.xlu0 %6953 }
0x1a59   :  { %11140 = vrcp.f32 %v6954_v10 }
0x1a5a   :  { %v7416_v62 = vpop.permute.xlu1 %7415 }
0x1a5b   :  { %v7421_v22 = vsel %vm331_vm3, %v7416_v62, 0 }
0x1a5c   :  { %v7366_v54 = vpop.permute.xlu0 %7365 }
0x1a5d   :  { %v7371_v7 = vsel %vm331_vm3, %v7366_v54, 0 }
0x1a5e   :  { %v7414_v59 = vpop.permute.xlu1 %7413 }
0x1a60   :  { %v7364_v61 = vpop.permute.xlu0 %7363 }
0x1a61   :  { %v11139_v17 = vpop.eup %11138 }
0x1a62   :  { %v6969_v63 = vmul.f32 %v11139_v17, %v13156_v37  ;;  %v7516_v43 = vpop.permute.xlu1 %7515 }
0x1a63   :  { %v11141_v25 = vpop.eup %11140  ;;  %v7521_v4 = vsel %vm331_vm3, %v7516_v43, 0 }
0x1a64   :  { %v6970_v11 = vmul.f32 %v11141_v25, %v13158_v41  ;;  %v7466_v57 = vpop.permute.xlu0 %7465  ;;  %v6977_v0 = vpack.c.bf16 %v6969_v63, %v6969_v63 }
0x1a65   :  { %v7471_v2 = vsel %vm331_vm3, %v7466_v57, 0 }
0x1a66   :  { %v7514_v49 = vpop.permute.xlu1 %7513  ;;  %10561 = vmatmul.mubr.msk.bf16.vlgmr.msra.gmra.mrb[244].mxu0 %vm331_vm3, %v6977_v0  ;;  %v6978_v12 = vpack.c.bf16 %v6970_v11, %v6970_v11 }
0x1a67   :  { %10571 = vmatpush3.bf16.xpose.msra.mxu0 %v7371_v7  ;;  %10572 = vmatprep.mubr.msk.bf16.mxu0 %vm11231_vm2, %v13822_v34 }
0x1a68   :  { %10567 = vmatmul.mubr.msk.bf16.vlgmr.msra.gmra.mrb[244].mxu1 %vm331_vm3, %v6978_v12  ;;  %10582 = vmatprep.subr.bf16.mxu0 %v13822_v34  ;;  %v7464_v37 = vpop.permute.xlu0 %7463 }
0x1a69   :  { %10577 = vmatpush3.bf16.xpose.msra.mxu1 %v7421_v22  ;;  %10578 = vmatprep.mubr.msk.bf16.mxu1 %vm11231_vm2, %v13822_v34 }
0x1a6a   :  { %10588 = vmatprep.subr.bf16.mxu1 %v13822_v34  ;;  %v7616_v41 = vpop.permute.xlu1 %7615 }
0x1a6b   :  { %v7621_v24 = vsel %vm331_vm3, %v7616_v41, 0 }
0x1a6c   :  { %v7566_v51 = vpop.permute.xlu0 %7565 }
0x1a6d   :  { %v7571_v60 = vsel %vm331_vm3, %v7566_v51, 0 }
0x1a6e   :  { %10573 = vmatmul.mubr.msk.bf16.vlgmr.msra.gmra.mrb[248].mxu0 %vm331_vm3, %v7364_v61  ;;  %v7614_v47 = vpop.permute.xlu1 %7613 }
0x1a6f   :  { %10583 = vmatpush3.bf16.xpose.msra.mxu0 %v7471_v2  ;;  %10584 = vmatprep.mubr.msk.bf16.mxu0 %vm11231_vm2, %v13822_v34 }
0x1a70   :  { %10579 = vmatmul.mubr.msk.bf16.vlgmr.msra.gmra.mrb[248].mxu1 %vm331_vm3, %v7414_v59  ;;  %10594 = vmatprep.subr.bf16.mxu0 %v13822_v34  ;;  %v7564_v16 = vpop.permute.xlu0 %7563 }
0x1a71   :  { %10589 = vmatpush3.bf16.xpose.msra.mxu1 %v7521_v4  ;;  %10590 = vmatprep.mubr.msk.bf16.mxu1 %vm11231_vm2, %v13822_v34 }
0x1a72   :  { %10600 = vmatprep.subr.bf16.mxu1 %v13822_v34  ;;  %v7716_v55 = vpop.permute.xlu1 %7715 }
0x1a73   :  { %v7721_v5 = vsel %vm331_vm3, %v7716_v55, 0 }
0x1a74   :  { %v7666_v28 = vpop.permute.xlu0 %7665 }
0x1a75   :  { %v7671_v26 = vsel %vm331_vm3, %v7666_v28, 0 }
0x1a76   :  { %10585 = vmatmul.mubr.msk.bf16.vlgmr.msra.gmra.mrb[252].mxu0 %vm331_vm3, %v7464_v37  ;;  %v7714_v33 = vpop.permute.xlu1 %7713 }
0x1a77   :  { %10595 = vmatpush3.bf16.xpose.msra.mxu0 %v7571_v60  ;;  %10596 = vmatprep.mubr.msk.bf16.mxu0 %vm11231_vm2, %v13822_v34 }
0x1a78   :  { %10591 = vmatmul.mubr.msk.bf16.vlgmr.msra.gmra.mrb[252].mxu1 %vm331_vm3, %v7514_v49  ;;  %10606 = vmatprep.subr.bf16.mxu0 %v13822_v34  ;;  %v7664_v53 = vpop.permute.xlu0 %7663 }
0x1a79   :  { %10601 = vmatpush3.bf16.xpose.msra.mxu1 %v7621_v24  ;;  %10602 = vmatprep.mubr.msk.bf16.mxu1 %vm11231_vm2, %v13822_v34 }
0x1a7a   :  { %10612 = vmatprep.subr.bf16.mxu1 %v13822_v34  ;;  %v7860_v42 = vpop.permute.xlu1 %7859 }
0x1a7b   :  { %v7865_v9 = vsel %vm822_vm4, %v7860_v42, 0 }
0x1a7e   :  { %10597 = vmatmul.mubr.msk.bf16.vlgmr.msra.gmra.mrb[0].mxu0 %vm331_vm3, %v7564_v16 }
0x1a7f   :  { %10607 = vmatpush3.bf16.xpose.msra.mxu0 %v7671_v26  ;;  %10608 = vmatprep.mubr.msk.bf16.mxu0 %vm11231_vm2, %v13822_v34 }
0x1a80   :  { %10603 = vmatmul.mubr.msk.bf16.vlgmr.msra.gmra.mrb[0].mxu1 %vm331_vm3, %v7614_v47  ;;  %10618 = vmatprep.subr.bf16.mxu0 %v13822_v34 }
0x1a81   :  { %10613 = vmatpush3.bf16.xpose.msra.mxu1 %v7721_v5  ;;  %10614 = vmatprep.mubr.msk.bf16.mxu1 %vm11231_vm2, %v13822_v34 }
0x1a82   :  { %10624 = vmatprep.subr.bf16.mxu1 %v13822_v34 }
0x1a86   :  { %10609 = vmatmul.mubr.msk.bf16.vlgmr.msra.gmra.mrb[4].mxu0 %vm331_vm3, %v7664_v53 }
0x1a87   :  { %10619 = vmatpush3.bf16.msra.mxu0 %v7865_v9  ;;  %10620 = vmatprep.mubr.msk.bf16.mxu0 %vm11231_vm2, %v13822_v34 }
0x1a88   :  { %10615 = vmatmul.mubr.msk.bf16.vlgmr.msra.gmra.mrb[4].mxu1 %vm331_vm3, %v7714_v33  ;;  %10630 = vmatprep.subr.bf16.mxu0 %v13822_v34 }
0x1a89   :  { %10626 = vmatprep.mubr.msk.bf16.mxu1 %vm11231_vm2, %v13822_v34 }
0x1af4   :  { %v13286_v20 = vpop.f32.mrb[232].mxu0 }
0x1af5   :  { %v10526_v10 = vpop.f32.mrb[233].mxu0 }
0x1af6   :  { %v7024_v62 = vpop.f32.mrb[234].mxu0  ;;  %v13288_v54 = vpop.f32.mrb[232].mxu1 }
0x1af7   :  { %v10808_v59 = vpack.i.bf16 %v13288_v54, %v13286_v20  ;;  %v10527_v61 = vpop.f32.mrb[235].mxu0  ;;  %v10532_v17 = vpop.f32.mrb[233].mxu1 }
0x1af8   :  { %v7072_v63 = vpop.f32.mrb[234].mxu1 }
0x1af9   :  { %v10533_v43 = vpop.f32.mrb[235].mxu1 }
0x1afc   :  { %v13292_v25 = vpop.f32.mrb[236].mxu0 }
0x1afd   :  { %v10538_v11 = vpop.f32.mrb[237].mxu0 }
0x1afe   :  { %v7120_v57 = vpop.f32.mrb[238].mxu0 }
0x1aff   :  { %v10539_v0 = vpop.f32.mrb[239].mxu0 }
0x1b00   :  { %v13294_v7 = vpop.f32.mrb[236].mxu1 }
0x1b01   :  { %v10813_v49 = vpack.i.bf16 %v13294_v7, %v13292_v25  ;;  %v10544_v12 = vpop.f32.mrb[237].mxu1 }
0x1b02   :  { %v7168_v22 = vpop.f32.mrb[238].mxu1 }
0x1b03   :  { %v10545_v37 = vpop.f32.mrb[239].mxu1 }
0x1b04   :  { %v13298_v41 = vpop.f32.mrb[240].mxu0 }
0x1b05   :  { %v10550_v2 = vpop.f32.mrb[241].mxu0 }
0x1b06   :  { %v7216_v51 = vpop.f32.mrb[242].mxu0 }
0x1b07   :  { %v10551_v4 = vpop.f32.mrb[243].mxu0 }
0x1b08   :  { %v13300_v47 = vpop.f32.mrb[240].mxu1 }
0x1b09   :  { %v10833_v16 = vpack.i.bf16 %v13300_v47, %v13298_v41  ;;  %v10556_v60 = vpop.f32.mrb[241].mxu1 }
0x1b0a   :  { %v7264_v55 = vpop.f32.mrb[242].mxu1 }
0x1b0b   :  { %v10557_v24 = vpop.f32.mrb[243].mxu1 }
0x1b39   :  { %v13304_v28 = vpop.f32.mrb[244].mxu0 }
0x1b3a   :  { %v10562_v33 = vpop.f32.mrb[245].mxu0 }
0x1b3b   :  { %v7312_v26 = vpop.f32.mrb[246].mxu0  ;;  %v13306_v5 = vpop.f32.mrb[244].mxu1 }
0x1b3c   :  { %v10843_v42 = vpack.i.bf16 %v13306_v5, %v13304_v28  ;;  %v10563_v53 = vpop.f32.mrb[247].mxu0  ;;  %v10568_v9 = vpop.f32.mrb[245].mxu1 }
0x1b3d   :  { %v7360_v10 = vpop.f32.mrb[246].mxu1 }
0x1b3e   :  { %v10569_v62 = vpop.f32.mrb[247].mxu1 }
0x1b41   :  { %v7407_v61 = vpop.f32.mrb[248].mxu0 }
0x1b42   :  { %v10574_v17 = vpop.f32.mrb[249].mxu0  ;;  %v7763_v63 = vsel %vm331_vm3, %v7407_v61, -inf }
0x1b43   :  { %v7457_v43 = vpop.f32.mrb[248].mxu1  ;;  %7764 = vmax.xlane.f32.xlu0 %v7763_v63  ;;  %v7410_v11 = vpop.f32.mrb[250].mxu0 }
0x1b44   :  { %v10575_v57 = vpop.f32.mrb[251].mxu0  ;;  %v10580_v0 = vpop.f32.mrb[249].mxu1  ;;  %v7766_v12 = vsel %vm331_vm3, %v7457_v43, -inf }
0x1b45   :  { %7767 = vmax.xlane.f32.xlu1 %v7766_v12  ;;  %v7460_v22 = vpop.f32.mrb[250].mxu1 }
0x1b46   :  { %v10581_v37 = vpop.f32.mrb[251].mxu1 }
0x1b49   :  { %v7507_v2 = vpop.f32.mrb[252].mxu0 }
0x1b4a   :  { %v10586_v51 = vpop.f32.mrb[253].mxu0  ;;  %v7769_v4 = vsel %vm331_vm3, %v7507_v2, -inf }
0x1b4b   :  { %v7557_v60 = vpop.f32.mrb[252].mxu1  ;;  %7770 = vmax.xlane.f32.xlu0 %v7769_v4  ;;  %v7510_v55 = vpop.f32.mrb[254].mxu0 }
0x1b4c   :  { %v10587_v24 = vpop.f32.mrb[255].mxu0  ;;  %v10592_v33 = vpop.f32.mrb[253].mxu1  ;;  %v7772_v9 = vsel %vm331_vm3, %v7557_v60, -inf }
0x1b4d   :  { %v7560_v26 = vpop.f32.mrb[254].mxu1 }
0x1b4e   :  { %v10593_v53 = vpop.f32.mrb[255].mxu1 }
0x1b4f   :  { %7773 = vmax.xlane.f32.xlu0 %v7772_v9 }
0x1b51   :  { %v13314_v10 = vpop.f32.mrb[0].mxu0 }
0x1b52   :  { %v10598_v62 = vpop.f32.mrb[1].mxu0  ;;  %v7775_v17 = vsel %vm331_vm3, %v13314_v10, -inf }
0x1b53   :  { %v13318_v63 = vpop.f32.mrb[0].mxu1  ;;  %7776 = vmax.xlane.f32.xlu1 %v7775_v17  ;;  %v7610_v11 = vpop.f32.mrb[2].mxu0 }
0x1b54   :  { %v10599_v57 = vpop.f32.mrb[3].mxu0  ;;  %v10604_v0 = vpop.f32.mrb[1].mxu1  ;;  %v7778_v12 = vsel %vm331_vm3, %v13318_v63, -inf }
0x1b55   :  { %v7660_v22 = vpop.f32.mrb[2].mxu1  ;;  %7779 = vmax.xlane.f32.xlu0 %v7778_v12 }
0x1b56   :  { %v10605_v37 = vpop.f32.mrb[3].mxu1 }
0x1b59   :  { %v7707_v51 = vpop.f32.mrb[4].mxu0 }
0x1b5a   :  { %v10610_v4 = vpop.f32.mrb[5].mxu0  ;;  %v7781_v55 = vsel %vm331_vm3, %v7707_v51, -inf }
0x1b5b   :  { %v7757_v24 = vpop.f32.mrb[4].mxu1  ;;  %7782 = vmax.xlane.f32.xlu1 %v7781_v55  ;;  %v7710_v33 = vpop.f32.mrb[6].mxu0 }
0x1b5c   :  { %v10611_v26 = vpop.f32.mrb[7].mxu0  ;;  %v10616_v53 = vpop.f32.mrb[5].mxu1  ;;  %v7784_v9 = vsel %vm331_vm3, %v7757_v24, -inf }
0x1b5d   :  { %v7760_v62 = vpop.f32.mrb[6].mxu1  ;;  %7785 = vmax.xlane.f32.xlu0 %v7784_v9 }
0x1b5e   :  { %v10617_v17 = vpop.f32.mrb[7].mxu1 }
0x1b6c   :  { %7955 = vrot.lane.b32.xlu1 %v12584_v27, %s13832_s29 }
0x1b70   :  { %8003 = vrot.lane.b32.xlu1 %v12590_v40, %s13832_s29 }
0x1b73   :  { %7907 = vrot.lane.b32.xlu0 %v12580_v23, %s13832_s29 }
0x1bd0   :  { %v7765_v11 = vpop.xlane.xlu0 %7764 }
0x1bd1   :  { %v7787_v57 = vsub.f32 %v7407_v61, %v7765_v11 }
0x1bd2   :  { %v7768_v0 = vpop.xlane.xlu1 %7767 }
0x1bd3   :  { %v7795_v12 = vmul.f32 1.442695, %v7787_v57  ;;  %v7788_v22 = vsub.f32 %v7457_v43, %v7768_v0 }
0x1bd5   :  { %11142 = vpow2.f32 %v7795_v12  ;;  %v7797_v37 = vmul.f32 1.442695, %v7788_v22 }
0x1bd7   :  { %11144 = vpow2.f32 %v7797_v37 }
0x1bd8   :  { %v7771_v4 = vpop.xlane.xlu0 %7770 }
0x1bd9   :  { %v7789_v55 = vsub.f32 %v7507_v2, %v7771_v4 }
0x1bdb   :  { %v7799_v33 = vmul.f32 1.442695, %v7789_v55 }
0x1bdc   :  { %v7774_v26 = vpop.xlane.xlu0 %7773 }
0x1bdd   :  { %11146 = vpow2.f32 %v7799_v33  ;;  %v7790_v27 = vsub.f32 %v7557_v60, %v7774_v26 }
0x1bdf   :  { %v13330_v53 = vpop.eup %11142  ;;  %v7801_v40 = vmul.f32 1.442695, %v7790_v27 }
0x1be0   :  { %v7811_v23 = vsel %vm331_vm3, %v13330_v53, 0.0  ;;  %v7777_v12 = vpop.xlane.xlu1 %7776 }
0x1be1   :  { %v13334_v9 = vpop.eup %11144  ;;  %11148 = vpow2.f32 %v7801_v40  ;;  %7812 = vadd.xlane.f32.xlu1 %v7811_v23  ;;  %v7791_v22 = vsub.f32 %v13314_v10, %v7777_v12 }
0x1be2   :  { %v7814_v61 = vsel %vm331_vm3, %v13334_v9, 0.0  ;;  %v7780_v43 = vpop.xlane.xlu0 %7779 }
0x1be3   :  { %7815 = vadd.xlane.f32.xlu0 %v7814_v61  ;;  %v7792_v4 = vsub.f32 %v13318_v63, %v7780_v43  ;;  %v7803_v55 = vmul.f32 1.442695, %v7791_v22 }
0x1be5   :  { %v7805_v26 = vmul.f32 1.442695, %v7792_v4  ;;  %11150 = vpow2.f32 %v7803_v55 }
0x1be7   :  { %v13338_v2 = vpop.eup %11146  ;;  %11152 = vpow2.f32 %v7805_v26 }
0x1be8   :  { %v7817_v60 = vsel %vm331_vm3, %v13338_v2, 0.0  ;;  %v7783_v37 = vpop.xlane.xlu1 %7782 }
0x1be9   :  { %7818 = vadd.xlane.f32.xlu1 %v7817_v60  ;;  %v7793_v33 = vsub.f32 %v7707_v51, %v7783_v37  ;;  %v13833_v60 = vpack.i.bf16 %v13092_v13, %v13090_v15  ;;  %v13837_v15 = vpack.i.bf16 %v13098_v44, %v13096_v52 }
0x1bea   :  { %v7786_v62 = vpop.xlane.xlu0 %7785 }
0x1beb   :  { %v13342_v17 = vpop.eup %11148  ;;  %v7807_v27 = vmul.f32 1.442695, %v7793_v33  ;;  %v7794_v40 = vsub.f32 %v7757_v24, %v7786_v62  ;;  %v13835_v62 = vpack.i.bf16 %v13104_v1, %v13102_v48 }
0x1bec   :  { %v7820_v11 = vsel %vm331_vm3, %v13342_v17, 0.0 }
0x1bed   :  { %7821 = vadd.xlane.f32.xlu0 %v7820_v11  ;;  %11154 = vpow2.f32 %v7807_v27  ;;  %v7809_v23 = vmul.f32 1.442695, %v7794_v40 }
0x1bee   :  { %v7908_v57 = vpop.permute.xlu0 %7907 }
0x1bef   :  { %v7913_v0 = vsel %vm822_vm4, %v7908_v57, 0  ;;  %11156 = vpow2.f32 %v7809_v23 }
0x1bf0   :  { %10625 = vmatpush3.bf16.msra.mxu1 %v7913_v0 }
0x1bf1   :  { %10636 = vmatprep.subr.bf16.mxu1 %v13822_v34 }
0x1bfa   :  { %8099 = vrot.lane.b32.xlu1 %v12600_v39, %s13832_s29  ;;  %v13354_v39 = vpop.eup %11150 }
0x1bfb   :  { %v13356_v61 = vpop.eup %11152 }
0x1bfc   :  { %v13360_v10 = vpop.eup %11154  ;;  %v7826_v51 = vsel %vm331_vm3, %v13356_v61, 0.0 }
0x1bfd   :  { %v7829_v63 = vsel %vm331_vm3, %v13360_v10, 0.0  ;;  %v13366_v24 = vpop.eup %11156 }
0x1bfe   :  { %v7832_v43 = vsel %vm331_vm3, %v13366_v24, 0.0 }
0x1c03   :  { %8051 = vrot.lane.b32.xlu0 %v12598_v19, %s13832_s29  ;;  %v7823_v19 = vsel %vm331_vm3, %v13354_v39, 0.0 }
0x1c1e   :  { %7824 = vadd.xlane.f32.xlu1 %v7823_v19 }
0x1c22   :  { %7830 = vadd.xlane.f32.xlu1 %v7829_v63  ;;  %7827 = vadd.xlane.f32.xlu0 %v7826_v51 }
0x1c26   :  { %7833 = vadd.xlane.f32.xlu0 %v7832_v43 }
0x1c33   :  { %8195 = vrot.lane.b32.xlu1 %v12612_v56, %s13832_s29  ;;  %v13836_v56 = vpack.i.bf16 %v13086_v32, %v13084_v29 }
0x1c37   :  { %10804 = vrot.lane.b32.xlu1 %v13833_v60, %s11243_s26 }
0x1c3b   :  { %10814 = vrot.lane.b32.xlu1 %v10813_v49, %s13834_s30 }
0x1c3c   :  { %8147 = vrot.lane.b32.xlu0 %v12606_v21, %s13832_s29  ;;  %v7956_v21 = vpop.permute.xlu1 %7955 }
0x1c3d   :  { %v7961_v52 = vsel %vm822_vm4, %v7956_v21, 0 }
0x1c3f   :  { %10824 = vrot.lane.b32.xlu1 %v13835_v62, %s11243_s26 }
0x1c40   :  { %10799 = vrot.lane.b32.xlu0 %v13836_v56, %s11243_s26  ;;  %v8004_v13 = vpop.permute.xlu1 %8003 }
0x1c44   :  { %10809 = vrot.lane.b32.xlu0 %v10808_v59, %s13834_s30  ;;  %v8009_v59 = vsel %vm822_vm4, %v8004_v13, 0 }
0x1c48   :  { %10819 = vrot.lane.b32.xlu0 %v13837_v15, %s11243_s26 }
0x1c6e   :  { %v7813_v25 = vpop.xlane.xlu1 %7812 }
0x1c6f   :  { %11158 = vrcp.f32 %v7813_v25 }
0x1c70   :  { %v7816_v48 = vpop.xlane.xlu0 %7815 }
0x1c71   :  { %11160 = vrcp.f32 %v7816_v48 }
0x1c76   :  { %v7819_v1 = vpop.xlane.xlu1 %7818 }
0x1c77   :  { %11162 = vrcp.f32 %v7819_v1 }
0x1c79   :  { %v11159_v29 = vpop.eup %11158 }
0x1c7a   :  { %v7843_v32 = vmul.f32 %v11159_v29, %v13330_v53  ;;  %v7822_v7 = vpop.xlane.xlu0 %7821  ;;  %v8100_v37 = vpop.permute.xlu1 %8099 }
0x1c7b   :  { %v11161_v49 = vpop.eup %11160  ;;  %11164 = vrcp.f32 %v7822_v7 }
0x1c7c   :  { %v7851_v20 = vpack.c.bf16 %v7843_v32, %v7843_v32  ;;  %v7844_v54 = vmul.f32 %v11161_v49, %v13334_v9 }
0x1c7e   :  { %v7852_v44 = vpack.c.bf16 %v7844_v54, %v7844_v54  ;;  %10621 = vmatmul.mubr.msk.bf16.vlgmr.msra.gmra.mrb[8].mxu0 %vm331_vm3, %v7851_v20  ;;  %v8052_v11 = vpop.permute.xlu0 %8051 }
0x1c7f   :  { %10631 = vmatpush3.bf16.msra.mxu0 %v7961_v52  ;;  %10632 = vmatprep.mubr.msk.bf16.mxu0 %vm11231_vm2, %v13822_v34  ;;  %v8057_v22 = vsel %vm822_vm4, %v8052_v11, 0 }
0x1c80   :  { %10627 = vmatmul.mubr.msk.bf16.vlgmr.msra.gmra.mrb[8].mxu1 %vm331_vm3, %v7852_v44  ;;  %10642 = vmatprep.subr.bf16.mxu0 %v13822_v34 }
0x1c81   :  { %v11163_v53 = vpop.eup %11162  ;;  %10637 = vmatpush3.bf16.msra.mxu1 %v8009_v59  ;;  %10638 = vmatprep.mubr.msk.bf16.mxu1 %vm11231_vm2, %v13822_v34 }
0x1c82   :  { %v7845_v9 = vmul.f32 %v11163_v53, %v13338_v2  ;;  %10648 = vmatprep.subr.bf16.mxu1 %v13822_v34  ;;  %v8105_v2 = vsel %vm822_vm4, %v8100_v37, 0 }
0x1c84   :  { %v7853_v57 = vpack.c.bf16 %v7845_v9, %v7845_v9 }
0x1c85   :  { %v11165_v0 = vpop.eup %11164 }
0x1c86   :  { %v7846_v12 = vmul.f32 %v11165_v0, %v13342_v17  ;;  %10633 = vmatmul.mubr.msk.bf16.vlgmr.msra.gmra.mrb[12].mxu0 %vm331_vm3, %v7853_v57 }
0x1c87   :  { %10643 = vmatpush3.bf16.msra.mxu0 %v8057_v22  ;;  %10644 = vmatprep.mubr.msk.bf16.mxu0 %vm11231_vm2, %v13822_v34 }
0x1c88   :  { %v7854_v4 = vpack.c.bf16 %v7846_v12, %v7846_v12  ;;  %10654 = vmatprep.subr.bf16.mxu0 %v13822_v34 }
0x1c8a   :  { %10639 = vmatmul.mubr.msk.bf16.vlgmr.msra.gmra.mrb[12].mxu1 %vm331_vm3, %v7854_v4 }
0x1c8b   :  { %10649 = vmatpush3.bf16.msra.mxu1 %v8105_v2  ;;  %10650 = vmatprep.mubr.msk.bf16.mxu1 %vm11231_vm2, %v13822_v34 }
0x1c8c   :  { %10660 = vmatprep.subr.bf16.mxu1 %v13822_v34 }
0x1cab   :  { %v7825_v17 = vpop.xlane.xlu1 %7824 }
0x1cac   :  { %11166 = vrcp.f32 %v7825_v17 }
0x1caf   :  { %v7831_v55 = vpop.xlane.xlu1 %7830  ;;  %v7828_v33 = vpop.xlane.xlu0 %7827 }
0x1cb0   :  { %11168 = vrcp.f32 %v7831_v55 }
0x1cb1   :  { %11170 = vrcp.f32 %v7828_v33 }
0x1cb3   :  { %v8196_v26 = vpop.permute.xlu1 %8195  ;;  %v7834_v27 = vpop.xlane.xlu0 %7833 }
0x1cb4   :  { %11172 = vrcp.f32 %v7834_v27  ;;  %v8201_v29 = vsel %vm822_vm4, %v8196_v26, 0 }
0x1cb6   :  { %v11167_v40 = vpop.eup %11166 }
0x1cb7   :  { %v7847_v23 = vmul.f32 %v11167_v40, %v13354_v39  ;;  %v13423_v19 = vpop.permute.xlu1 %10804  ;;  %v8148_v63 = vpop.permute.xlu0 %8147 }
0x1cb8   :  { %v8153_v62 = vsel %vm822_vm4, %v8148_v63, 0 }
0x1cb9   :  { %v7855_v51 = vpack.c.bf16 %v7847_v23, %v7847_v23 }
0x1cba   :  { %v11169_v43 = vpop.eup %11168 }
0x1cbb   :  { %v11171_v60 = vpop.eup %11170  ;;  %v13426_v56 = vpop.permute.xlu1 %10814  ;;  %10645 = vmatmul.mubr.msk.bf16.vlgmr.msra.gmra.mrb[16].mxu0 %vm331_vm3, %v7855_v51  ;;  %v7849_v39 = vmul.f32 %v11169_v43, %v13360_v10 }
0x1cbc   :  { %v13429_v15 = vpop.permute.xlu0 %10799  ;;  %v7848_v21 = vmul.f32 %v11171_v60, %v13356_v61  ;;  %10655 = vmatpush3.bf16.msra.mxu0 %v8153_v62  ;;  %10656 = vmatprep.mubr.msk.bf16.mxu0 %vm11231_vm2, %v13822_v34 }
0x1cbd   :  { %v7857_v49 = vpack.c.bf16 %v7849_v39, %v7849_v39 }
0x1cbe   :  { %v7856_v13 = vpack.c.bf16 %v7848_v21, %v7848_v21  ;;  %v11173_v25 = vpop.eup %11172 }
0x1cbf   :  { %v10825_v48 = vpop.permute.xlu1 %10824  ;;  %v7850_v61 = vmul.f32 %v11173_v25, %v13366_v24 }
0x1cc0   :  { %v13435_v1 = vpop.permute.xlu0 %10809  ;;  %v10827_v32 = vunpack.i.h.bf16 %v10825_v48  ;;  %v10826_v7 = vunpack.i.l.bf16 %v10825_v48  ;;  %10651 = vmatmul.mubr.msk.bf16.vlgmr.msra.gmra.mrb[16].mxu1 %vm331_vm3, %v7856_v13 }
0x1cc1   :  { %10661 = vmatpush3.bf16.msra.mxu1 %v8201_v29  ;;  %10662 = vmatprep.mubr.msk.bf16.mxu1 %vm11231_vm2, %v13822_v34  ;;  %v7858_v59 = vpack.c.bf16 %v7850_v61, %v7850_v61  ;;  %v10812_v61 = vunpack.i.h.bf16 %v13435_v1 }
0x1cc2   :  { %v13444_v10 = vsel %vm331_vm3, %v12896_v3, %v10827_v32  ;;  %v13448_v20 = vsel %vm331_vm3, %v12894_v6, %v10826_v7  ;;  %v10876_v6 = vld [vmem:[%s13779_s6 + $0x10] sm:$0xff]  }
0x1cc3   :  { %10657 = vmatmul.mubr.msk.bf16.vlgmr.msra.gmra.mrb[20].mxu0 %vm331_vm3, %v7857_v49  ;;  %10666 = vmatprep.subr.bf16.mxu0 %v10876_v6  ;;  %v10801_v49 = vunpack.i.l.bf16 %v13429_v15 }
0x1cc4   :  { %v10820_v54 = vpop.permute.xlu0 %10819  ;;  %10667 = vmatpush3.bf16.msra.mxu0 %v10876_v6 }
0x1cc5   :  { %v10822_v52 = vunpack.i.h.bf16 %v10820_v54  ;;  %v10821_v44 = vunpack.i.l.bf16 %v10820_v54  ;;  %v10811_v54 = vunpack.i.l.bf16 %v13435_v1  ;;  %v10807_v1 = vunpack.i.h.bf16 %v13423_v19 }
0x1cc7   :  { %v13453_v53 = vsel %vm331_vm3, %v12892_v58, %v10822_v52  ;;  %v13457_v24 = vsel %vm331_vm3, %v12890_v35, %v10821_v44  ;;  %v10877_v35 = vld [vmem:[%s13779_s6 + $0x18] sm:$0xff]  }
0x1cc8   :  { %10663 = vmatmul.mubr.msk.bf16.vlgmr.msra.gmra.mrb[20].mxu1 %vm331_vm3, %v7858_v59  ;;  %10668 = vmatprep.subr.bf16.mxu0 %v10877_v35  ;;  %v8339_v59 = vsel %vm331_vm3, %v12882_v36, %v10801_v49  ;;  %v10816_v36 = vunpack.i.l.bf16 %v13426_v56 }
0x1cc9   :  { %10669 = vmatpush3.bf16.msra.mxu0 %v10877_v35  ;;  %v8342_v35 = vsel %vm331_vm3, %v12888_v18, %v10807_v1 }
0x1d51   :  { %v7901_v3 = vpop.f32.mrb[8].mxu0 }
0x1d52   :  { %v10622_v9 = vpop.f32.mrb[9].mxu0 }
0x1d53   :  { %v7904_v11 = vpop.f32.mrb[10].mxu0  ;;  %v7949_v57 = vpop.f32.mrb[8].mxu1  ;;  %v8347_v9 = vsel %vm112_vm0, %v8339_v59, %v10811_v54 }
0x1d54   :  { %v10828_v0 = vpack.i.bf16 %v7949_v57, %v7901_v3  ;;  %v10623_v12 = vpop.f32.mrb[11].mxu0  ;;  %v10628_v58 = vpop.f32.mrb[9].mxu1 }
0x1d55   :  { %v7952_v22 = vpop.f32.mrb[10].mxu1  ;;  %v10817_v12 = vunpack.i.h.bf16 %v13426_v56 }
0x1d56   :  { %10829 = vrot.lane.b32.xlu0 %v10828_v0, %s13838_s24  ;;  %v10629_v37 = vpop.f32.mrb[11].mxu1 }
0x1d59   :  { %v7997_v4 = vpop.f32.mrb[12].mxu0 }
0x1d5a   :  { %v10634_v2 = vpop.f32.mrb[13].mxu0  ;;  %10834 = vrot.lane.b32.xlu0 %v10833_v16, %s13834_s30 }
0x1d5b   :  { %v8000_v17 = vpop.f32.mrb[14].mxu0 }
0x1d5c   :  { %v10635_v55 = vpop.f32.mrb[15].mxu0  ;;  %v8350_v17 = vsel %vm112_vm0, %v8342_v35, %v10817_v12  ;;  %v13840_v35 = vld [vmem:[#allocation7_spill] sm:$0xff] }
0x1d5d   :  { %v8045_v33 = vpop.f32.mrb[12].mxu1 }
0x1d5e   :  { %v10838_v26 = vpack.i.bf16 %v8045_v33, %v7997_v4  ;;  %v10640_v27 = vpop.f32.mrb[13].mxu1 }
0x1d5f   :  { %v8048_v40 = vpop.f32.mrb[14].mxu1 }
0x1d60   :  { %10839 = vrot.lane.b32.xlu1 %v10838_v26, %s13838_s24  ;;  %v10641_v23 = vpop.f32.mrb[15].mxu1 }
0x1d64   :  { %10844 = vrot.lane.b32.xlu1 %v10843_v42, %s13834_s30  ;;  %v10802_v42 = vunpack.i.h.bf16 %v13429_v15 }
0x1d66   :  { %v8340_v44 = vsel %vm331_vm3, %v12884_v30, %v10802_v42  ;;  %v10806_v30 = vunpack.i.l.bf16 %v13423_v19 }
0x1d67   :  { %v8348_v11 = vsel %vm112_vm0, %v8340_v44, %v10812_v61 }
0x1d68   :  { %v8341_v22 = vsel %vm331_vm3, %v12886_v38, %v10806_v30 }
0x1d69   :  { %v8349_v2 = vsel %vm112_vm0, %v8341_v22, %v10816_v36  ;;  %v13839_v36 = vld [vmem:[#allocation6_spill] sm:$0xff] }
0x1d8e   :  { %v8093_v63 = vpop.f32.mrb[16].mxu0 }
0x1d8f   :  { %v10646_v51 = vpop.f32.mrb[17].mxu0 }
0x1d90   :  { %v8096_v43 = vpop.f32.mrb[18].mxu0 }
0x1d91   :  { %v10647_v60 = vpop.f32.mrb[19].mxu0 }
0x1d93   :  { %v8141_v41 = vpop.f32.mrb[16].mxu1 }
0x1d94   :  { %v10848_v47 = vpack.i.bf16 %v8141_v41, %v8093_v63  ;;  %v10652_v16 = vpop.f32.mrb[17].mxu1 }
0x1d95   :  { %v8144_v62 = vpop.f32.mrb[18].mxu1 }
0x1d96   :  { %10849 = vrot.lane.b32.xlu0 %v10848_v47, %s13838_s24  ;;  %v10653_v21 = vpop.f32.mrb[19].mxu1  ;;  %v8189_v39 = vpop.f32.mrb[20].mxu0 }
0x1d97   :  { %v10658_v13 = vpop.f32.mrb[21].mxu0 }
0x1d98   :  { %v8192_v25 = vpop.f32.mrb[22].mxu0 }
0x1d99   :  { %v10659_v48 = vpop.f32.mrb[23].mxu0 }
0x1d9b   :  { %v8237_v29 = vpop.f32.mrb[20].mxu1 }
0x1d9c   :  { %v10853_v32 = vpack.i.bf16 %v8237_v29, %v8189_v39  ;;  %v10664_v7 = vpop.f32.mrb[21].mxu1  ;;  %v9456_v29 = vld [vmem:[%s13780_s7 + $0x1] ss:$0 sm:$0xff] }
0x1d9d   :  { %v8240_v28 = vpop.f32.mrb[22].mxu1 }
0x1d9e   :  { %v10665_v5 = vpop.f32.mrb[23].mxu1  ;;  %10854 = vrot.lane.b32.xlu1 %v10853_v32, %s13838_s24 }
0x1dc8   :  { %v10830_v52 = vpop.permute.xlu0 %10829 }
0x1dc9   :  { %v10832_v6 = vunpack.i.h.bf16 %v10830_v52  ;;  %v10831_v3 = vunpack.i.l.bf16 %v10830_v52 }
0x1dcb   :  { %v8355_v57 = vsel %vm3962_vm5, %v8347_v9, %v10831_v3  ;;  %v8356_v15 = vsel %vm3962_vm5, %v8348_v11, %v10832_v6 }
0x1dcc   :  { %v8363_v0 = vpack.c.bf16 %v8356_v15, %v8355_v57  ;;  %v10835_v56 = vpop.permute.xlu0 %10834 }
0x1dcd   :  { %v10837_v26 = vunpack.i.h.bf16 %v10835_v56  ;;  %v10836_v27 = vunpack.i.l.bf16 %v10835_v56 }
0x1dce   :  { %10670 = vmatprep.mubr.msk.bf16.mxu0 %vm226_vm1, %v8363_v0 }
0x1dcf   :  { %v8351_v38 = vsel %vm112_vm0, %v13457_v24, %v10836_v27  ;;  %v8352_v63 = vsel %vm112_vm0, %v13453_v53, %v10837_v26 }
0x1dd2   :  { %v10840_v58 = vpop.permute.xlu1 %10839 }
0x1dd3   :  { %v10842_v37 = vunpack.i.h.bf16 %v10840_v58  ;;  %v10841_v4 = vunpack.i.l.bf16 %v10840_v58 }
0x1dd5   :  { %v8358_v55 = vsel %vm3962_vm5, %v8350_v17, %v10842_v37  ;;  %v8357_v19 = vsel %vm3962_vm5, %v8349_v2, %v10841_v4 }
0x1dd6   :  { %v8364_v33 = vpack.c.bf16 %v8358_v55, %v8357_v19  ;;  %v10845_v51 = vpop.permute.xlu1 %10844 }
0x1dd7   :  { %v10847_v47 = vunpack.i.h.bf16 %v10845_v51  ;;  %v10846_v16 = vunpack.i.l.bf16 %v10845_v51 }
0x1dd8   :  { %10671 = vmatmul.mubr.msk.bf16.vlgmr.msra.gmra.mrb[24].mxu0 %vm226_vm1, %v8364_v33 }
0x1dd9   :  { %v8354_v13 = vsel %vm112_vm0, %v13444_v10, %v10847_v47  ;;  %v8353_v24 = vsel %vm112_vm0, %v13448_v20, %v10846_v16 }
0x1e08   :  { %v10850_v18 = vpop.permute.xlu0 %10849 }
0x1e09   :  { %v10852_v40 = vunpack.i.h.bf16 %v10850_v18  ;;  %v10851_v23 = vunpack.i.l.bf16 %v10850_v18 }
0x1e0b   :  { %v8359_v43 = vsel %vm3962_vm5, %v8351_v38, %v10851_v23  ;;  %v8360_v60 = vsel %vm3962_vm5, %v8352_v63, %v10852_v40 }
0x1e0c   :  { %v8365_v41 = vpack.c.bf16 %v8360_v60, %v8359_v43 }
0x1e0e   :  { %10674 = vmatprep.mubr.msk.bf16.mxu0 %vm226_vm1, %v8365_v41 }
0x1e10   :  { %v10855_v62 = vpop.permute.xlu1 %10854 }
0x1e11   :  { %v10857_v21 = vunpack.i.h.bf16 %v10855_v62  ;;  %v10856_v39 = vunpack.i.l.bf16 %v10855_v62  ;;  %v10878_v62 = vld [vmem:[%s13783_s10 + $0x10] sm:$0xff]  }
0x1e12   :  { %10678 = vmatprep.subr.bf16.mxu1 %v10878_v62 }
0x1e13   :  { %v8362_v53 = vsel %vm3962_vm5, %v8354_v13, %v10857_v21  ;;  %v8361_v25 = vsel %vm3962_vm5, %v8353_v24, %v10856_v39  ;;  %10679 = vmatpush3.bf16.msra.mxu1 %v10878_v62  ;;  %v10879_v21 = vld [vmem:[%s13783_s10 + $0x18] sm:$0xff]  }
0x1e14   :  { %v8366_v48 = vpack.c.bf16 %v8362_v53, %v8361_v25  ;;  %10680 = vmatprep.subr.bf16.mxu1 %v10879_v21 }
0x1e16   :  { %10675 = vmatmul.mubr.msk.bf16.gmra.mrb[28].mxu0 %vm226_vm1, %v8366_v48 }
0x1e17   :  { %10681 = vmatpush3.bf16.msra.mxu1 %v10879_v21 }
0x1e18   :  { %10706 = vmatprep.subr.bf16.mxu1 %v13822_v34 }
0x1eab   :  { %v10672_v32 = vpop.f32.mrb[24].mxu0 }
0x1eac   :  { %v8438_v7 = vpop.f32.mrb[25].mxu0  ;;  %v8447_v28 = vadd.f32 %v10672_v32, %v9456_v29 }
0x1ead   :  { %v8439_v5 = vadd.f32 %v9456_v29, %v8438_v7  ;;  %v10673_v42 = vpop.f32.mrb[26].mxu0 }
0x1eae   :  { %v8441_v10 = vpop.f32.mrb[27].mxu0  ;;  %v8471_v61 = vadd.f32 %v8447_v28, %v12547_v31  ;;  %v8450_v54 = vadd.f32 %v10673_v42, %v9456_v29 }
0x1eaf   :  { %v8469_v49 = vadd.f32 %v8439_v5, %v12541_v45  ;;  %v8442_v20 = vadd.f32 %v9456_v29, %v8441_v10 }
0x1eb0   :  { %v8472_v6 = vadd.f32 %v8450_v54, %v12549_v46  ;;  %v8487_v3 = vsel %vm226_vm1, %v8471_v61, 0.0 }
0x1eb1   :  { %v8470_v52 = vadd.f32 %v8442_v20, %v12543_v50  ;;  %v8481_v44 = vsel %vm226_vm1, %v8469_v49, 0.0 }
0x1eb2   :  { %8482 = vadd.xlane.f32.xlu0 %v8481_v44  ;;  %v8490_v9 = vsel %vm226_vm1, %v8472_v6, 0.0 }
0x1eb3   :  { %v8484_v59 = vsel %vm226_vm1, %v8470_v52, 0.0 }
0x1eb4   :  { %8485 = vadd.xlane.f32.xlu1 %v8484_v59 }
0x1eb6   :  { %8488 = vadd.xlane.f32.xlu0 %v8487_v3  ;;  %v10881_v3 = vld [vmem:[%s13785_s12 + $0x28] sm:$0xff]  }
0x1eba   :  { %8491 = vadd.xlane.f32.xlu0 %v8490_v9 }
0x1ee9   :  { %v10676_v45 = vpop.f32.mrb[28].mxu0 }
0x1eea   :  { %v8454_v11 = vpop.f32.mrb[29].mxu0  ;;  %v8463_v31 = vadd.f32 %v10676_v45, %v9456_v29 }
0x1eeb   :  { %v8455_v57 = vadd.f32 %v9456_v29, %v8454_v11  ;;  %v10677_v15 = vpop.f32.mrb[30].mxu0 }
0x1eec   :  { %v8457_v50 = vpop.f32.mrb[31].mxu0  ;;  %v8466_v1 = vadd.f32 %v10677_v15, %v9456_v29  ;;  %v8475_v12 = vadd.f32 %v8463_v31, %v12566_v8 }
0x1eed   :  { %v8473_v0 = vadd.f32 %v8455_v57, %v12558_v14  ;;  %v8458_v30 = vadd.f32 %v9456_v29, %v8457_v50 }
0x1eee   :  { %v8476_v22 = vadd.f32 %v8466_v1, %v13840_v35  ;;  %v8499_v4 = vsel %vm226_vm1, %v8475_v12, 0.0 }
0x1eef   :  { %v8474_v46 = vadd.f32 %v8458_v30, %v13839_v36  ;;  %v8493_v58 = vsel %vm226_vm1, %v8473_v0, 0.0 }
0x1ef0   :  { %8494 = vadd.xlane.f32.xlu1 %v8493_v58  ;;  %v8502_v2 = vsel %vm226_vm1, %v8476_v22, 0.0  ;;  %v9465_v58 = vld [vmem:[%s13781_s8 + $0x1] ss:$0 sm:$0xff] }
0x1ef1   :  { %v8496_v37 = vsel %vm226_vm1, %v8474_v46, 0.0 }
0x1ef2   :  { %8497 = vadd.xlane.f32.xlu0 %v8496_v37 }
0x1ef4   :  { %8500 = vadd.xlane.f32.xlu1 %v8499_v4 }
0x1ef6   :  { %8503 = vadd.xlane.f32.xlu0 %v8502_v2 }
0x1f3f   :  { %v8483_v14 = vpop.xlane.xlu0 %8482 }
0x1f40   :  { %v8505_v17 = vmul.f32 0.03125, %v8483_v14  ;;  %v9466_v14 = vld [vmem:[%s13782_s9 + $0x1] ss:$0 sm:$0xff] }
0x1f41   :  { %v8486_v55 = vpop.xlane.xlu1 %8485 }
0x1f42   :  { %v13537_v8 = vsub.f32 %v8469_v49, %v8505_v17  ;;  %v8506_v19 = vmul.f32 0.03125, %v8486_v55 }
0x1f43   :  { %v8489_v33 = vpop.xlane.xlu0 %8488 }
0x1f44   :  { %v13539_v56 = vsub.f32 %v8470_v52, %v8506_v19  ;;  %v8507_v26 = vmul.f32 0.03125, %v8489_v33  ;;  %v8521_v27 = vmul.f32 %v13537_v8, %v13537_v8 }
0x1f46   :  { %v13543_v18 = vsub.f32 %v8471_v61, %v8507_v26  ;;  %v8529_v40 = vsel %vm226_vm1, %v8521_v27, 0.0  ;;  %v8522_v23 = vmul.f32 %v13539_v56, %v13539_v56 }
0x1f47   :  { %8530 = vadd.xlane.f32.xlu1 %v8529_v40  ;;  %v8492_v38 = vpop.xlane.xlu0 %8491 }
0x1f48   :  { %v8508_v63 = vmul.f32 0.03125, %v8492_v38  ;;  %v8532_v51 = vsel %vm226_vm1, %v8522_v23, 0.0  ;;  %v8523_v43 = vmul.f32 %v13543_v18, %v13543_v18 }
0x1f49   :  { %8533 = vadd.xlane.f32.xlu0 %v8532_v51 }
0x1f4a   :  { %v13551_v60 = vsub.f32 %v8472_v6, %v8508_v63  ;;  %v8535_v41 = vsel %vm226_vm1, %v8523_v43, 0.0  ;;  %v10880_v6 = vld [vmem:[%s13785_s12 + $0x20] sm:$0xff]  }
0x1f4b   :  { %8536 = vadd.xlane.f32.xlu1 %v8535_v41  ;;  %10690 = vmatprep.subr.bf16.mxu0 %v10880_v6 }
0x1f4c   :  { %v8524_v47 = vmul.f32 %v13551_v60, %v13551_v60  ;;  %10691 = vmatpush3.bf16.msra.mxu0 %v10880_v6 }
0x1f4d   :  { %10692 = vmatprep.subr.bf16.mxu0 %v10881_v3 }
0x1f4e   :  { %v8538_v16 = vsel %vm226_vm1, %v8524_v47, 0.0 }
0x1f4f   :  { %8539 = vadd.xlane.f32.xlu0 %v8538_v16 }
0x1f50   :  { %10693 = vmatpush3.bf16.msra.mxu0 %v10881_v3 }
0x1f7d   :  { %v8495_v39 = vpop.xlane.xlu1 %8494 }
0x1f7e   :  { %v8509_v13 = vmul.f32 0.03125, %v8495_v39 }
0x1f7f   :  { %v8498_v24 = vpop.xlane.xlu0 %8497 }
0x1f80   :  { %v13564_v53 = vsub.f32 %v8473_v0, %v8509_v13  ;;  %v8510_v25 = vmul.f32 0.03125, %v8498_v24 }
0x1f81   :  { %v8501_v48 = vpop.xlane.xlu1 %8500 }
0x1f82   :  { %v13566_v29 = vsub.f32 %v8474_v46, %v8510_v25  ;;  %v8511_v32 = vmul.f32 0.03125, %v8501_v48  ;;  %v8525_v7 = vmul.f32 %v13564_v53, %v13564_v53 }
0x1f83   :  { %v8504_v28 = vpop.xlane.xlu0 %8503 }
0x1f84   :  { %v13570_v5 = vsub.f32 %v8475_v12, %v8511_v32  ;;  %v8512_v42 = vmul.f32 0.03125, %v8504_v28  ;;  %v8541_v10 = vsel %vm226_vm1, %v8525_v7, 0.0  ;;  %v8526_v49 = vmul.f32 %v13566_v29, %v13566_v29 }
0x1f85   :  { %8542 = vadd.xlane.f32.xlu1 %v8541_v10 }
0x1f86   :  { %v13575_v20 = vsub.f32 %v8476_v22, %v8512_v42  ;;  %v8544_v61 = vsel %vm226_vm1, %v8526_v49, 0.0  ;;  %v8527_v54 = vmul.f32 %v13570_v5, %v13570_v5 }
0x1f87   :  { %8545 = vadd.xlane.f32.xlu0 %v8544_v61 }
0x1f88   :  { %v8547_v52 = vsel %vm226_vm1, %v8527_v54, 0.0  ;;  %v8528_v44 = vmul.f32 %v13575_v20, %v13575_v20 }
0x1f89   :  { %8548 = vadd.xlane.f32.xlu1 %v8547_v52 }
0x1f8a   :  { %v8550_v59 = vsel %vm226_vm1, %v8528_v44, 0.0 }
0x1f8b   :  { %8551 = vadd.xlane.f32.xlu0 %v8550_v59 }
0x1fd4   :  { %v8531_v9 = vpop.xlane.xlu1 %8530 }
0x1fd5   :  { %v8553_v45 = vmul.f32 0.03125, %v8531_v9  ;;  %v10883_v9 = vld [vmem:[%s13785_s12 + $0x38] sm:$0xff]  }
0x1fd6   :  { %v8534_v11 = vpop.xlane.xlu0 %8533 }
0x1fd7   :  { %v8561_v31 = vadd.f32 1e-05, %v8553_v45  ;;  %v8554_v57 = vmul.f32 0.03125, %v8534_v11  ;;  %v9472_v45 = vld [vmem:[%s13784_s11 + $0x1] ss:$0 sm:$0xff] }
0x1fd8   :  { %v8537_v15 = vpop.xlane.xlu1 %8536 }
0x1fd9   :  { %11174 = vrsqrt.f32 %v8561_v31  ;;  %v8562_v50 = vadd.f32 1e-05, %v8554_v57  ;;  %v8555_v0 = vmul.f32 0.03125, %v8537_v15 }
0x1fdb   :  { %11176 = vrsqrt.f32 %v8562_v50  ;;  %v8563_v1 = vadd.f32 1e-05, %v8555_v0 }
0x1fdc   :  { %v8540_v30 = vpop.xlane.xlu0 %8539 }
0x1fdd   :  { %11178 = vrsqrt.f32 %v8563_v1  ;;  %v8556_v12 = vmul.f32 0.03125, %v8540_v30 }
0x1fdf   :  { %v8564_v36 = vadd.f32 1e-05, %v8556_v12 }
0x1fe1   :  { %11180 = vrsqrt.f32 %v8564_v36 }
0x1fe3   :  { %v11175_v46 = vpop.eup %11174 }
0x1fe4   :  { %v8577_v35 = vmul.f32 %v11175_v46, %v13537_v8 }
0x1fe5   :  { %v11177_v22 = vpop.eup %11176 }
0x1fe6   :  { %v8578_v37 = vmul.f32 %v11177_v22, %v13539_v56  ;;  %v8591_v4 = vmul.f32 %v9465_v58, %v8577_v35 }
0x1fe7   :  { %v11179_v2 = vpop.eup %11178 }
0x1fe8   :  { %v8579_v17 = vmul.f32 %v11179_v2, %v13543_v18  ;;  %v8592_v55 = vmul.f32 %v9465_v58, %v8578_v37  ;;  %v13599_v19 = vadd.f32 %v9466_v14, %v8591_v4 }
0x1fea   :  { %v13601_v33 = vadd.f32 %v9466_v14, %v8592_v55  ;;  %v8593_v27 = vmul.f32 %v9465_v58, %v8579_v17 }
0x1feb   :  { %v11181_v26 = vpop.eup %11180 }
0x1fec   :  { %v8580_v8 = vmul.f32 %v11181_v26, %v13551_v60  ;;  %v8613_v56 = vpack.c.bf16 %v13601_v33, %v13599_v19  ;;  %v13607_v23 = vadd.f32 %v9466_v14, %v8593_v27 }
0x1fee   :  { %v8594_v40 = vmul.f32 %v9465_v58, %v8580_v8  ;;  %10682 = vmatprep.mubr.msk.bf16.mxu1 %vm226_vm1, %v8613_v56 }
0x1ff0   :  { %v13609_v38 = vadd.f32 %v9466_v14, %v8594_v40 }
0x1ff2   :  { %v8614_v18 = vpack.c.bf16 %v13609_v38, %v13607_v23 }
0x1ff4   :  { %10683 = vmatmul.mubr.msk.bf16.vlgmr.msra.gmra.mrb[24].mxu1 %vm226_vm1, %v8614_v18 }
0x2012   :  { %v8543_v63 = vpop.xlane.xlu1 %8542 }
0x2013   :  { %v8557_v51 = vmul.f32 0.03125, %v8543_v63 }
0x2014   :  { %v8546_v43 = vpop.xlane.xlu0 %8545 }
0x2015   :  { %v8565_v41 = vadd.f32 1e-05, %v8557_v51  ;;  %v8558_v60 = vmul.f32 0.03125, %v8546_v43  ;;  %v9488_v43 = vld [vmem:[%s13786_s13 + $0x1] ss:$0 sm:$0xff] }
0x2016   :  { %v8549_v47 = vpop.xlane.xlu1 %8548 }
0x2017   :  { %11182 = vrsqrt.f32 %v8565_v41  ;;  %v8566_v16 = vadd.f32 1e-05, %v8558_v60  ;;  %v8559_v62 = vmul.f32 0.03125, %v8549_v47 }
0x2018   :  { %v8552_v21 = vpop.xlane.xlu0 %8551 }
0x2019   :  { %11184 = vrsqrt.f32 %v8566_v16  ;;  %v8567_v39 = vadd.f32 1e-05, %v8559_v62  ;;  %v8560_v13 = vmul.f32 0.03125, %v8552_v21 }
0x201b   :  { %11186 = vrsqrt.f32 %v8567_v39  ;;  %v8568_v24 = vadd.f32 1e-05, %v8560_v13 }
0x201d   :  { %11188 = vrsqrt.f32 %v8568_v24 }
0x2021   :  { %v11183_v25 = vpop.eup %11182 }
0x2022   :  { %v8581_v48 = vmul.f32 %v11183_v25, %v13564_v53 }
0x2023   :  { %v11185_v32 = vpop.eup %11184 }
0x2024   :  { %v8582_v7 = vmul.f32 %v11185_v32, %v13566_v29  ;;  %v8595_v28 = vmul.f32 %v9465_v58, %v8581_v48 }
0x2025   :  { %v11187_v42 = vpop.eup %11186 }
0x2026   :  { %v8583_v10 = vmul.f32 %v11187_v42, %v13570_v5  ;;  %v8596_v49 = vmul.f32 %v9465_v58, %v8582_v7  ;;  %v13618_v44 = vadd.f32 %v9466_v14, %v8595_v28 }
0x2027   :  { %v11189_v61 = vpop.eup %11188 }
0x2028   :  { %v8597_v54 = vmul.f32 %v9465_v58, %v8583_v10  ;;  %v8584_v52 = vmul.f32 %v11189_v61, %v13575_v20  ;;  %v13620_v59 = vadd.f32 %v9466_v14, %v8596_v49  ;;  %v10882_v20 = vld [vmem:[%s13785_s12 + $0x30] sm:$0xff]  }
0x2029   :  { %10694 = vmatprep.subr.bf16.mxu0 %v10882_v20 }
0x202a   :  { %v8598_v6 = vmul.f32 %v9465_v58, %v8584_v52  ;;  %v8615_v53 = vpack.c.bf16 %v13620_v59, %v13618_v44  ;;  %v13624_v3 = vadd.f32 %v9466_v14, %v8597_v54  ;;  %10695 = vmatpush3.bf16.msra.mxu0 %v10882_v20 }
0x202b   :  { %10696 = vmatprep.subr.bf16.mxu0 %v10883_v9 }
0x202c   :  { %v13626_v29 = vadd.f32 %v9466_v14, %v8598_v6  ;;  %10686 = vmatprep.mubr.msk.bf16.mxu1 %vm226_vm1, %v8615_v53 }
0x202e   :  { %v8616_v5 = vpack.c.bf16 %v13626_v29, %v13624_v3  ;;  %10697 = vmatpush3.bf16.msra.mxu0 %v10883_v9 }
0x2030   :  { %10687 = vmatmul.mubr.msk.bf16.gmra.mrb[28].mxu1 %vm226_vm1, %v8616_v5 }
0x2031   :  { %10710 = vmatprep.mubr.msk.bf16.mxu1 %vm11231_vm2, %v13822_v34 }
0x20c7   :  { %v10684_v11 = vpop.f32.mrb[24].mxu1 }
0x20c8   :  { %v8697_v31 = vadd.f32 %v10684_v11, %v9472_v45  ;;  %v8688_v57 = vpop.f32.mrb[25].mxu1 }
0x20c9   :  { %v8689_v15 = vadd.f32 %v9472_v45, %v8688_v57  ;;  %v10685_v50 = vpop.f32.mrb[26].mxu1 }
0x20ca   :  { %v8700_v0 = vadd.f32 %v10685_v50, %v9472_v45  ;;  %v8691_v1 = vpop.f32.mrb[27].mxu1  ;;  %v8721_v12 = vmax.f32 %v8697_v31, 0.0 }
0x20cb   :  { %v8692_v30 = vadd.f32 %v9472_v45, %v8691_v1  ;;  %v8719_v46 = vmax.f32 %v8689_v15, 0.0 }
0x20cc   :  { %v8722_v36 = vmax.f32 %v8700_v0, 0.0 }
0x20cd   :  { %v8720_v58 = vmax.f32 %v8692_v30, 0.0 }
0x20ce   :  { %v8728_v35 = vpack.c.bf16 %v8722_v36, %v8721_v12 }
0x20cf   :  { %v8727_v22 = vpack.c.bf16 %v8720_v58, %v8719_v46 }
0x20d1   :  { %10698 = vmatprep.mubr.msk.bf16.mxu0 %vm4373_vm6, %v8727_v22 }
0x20d2   :  { %10699 = vmatmul.mubr.msk.bf16.vlgmr.msra.gmra.mrb[32].mxu0 %vm4373_vm6, %v8728_v35 }
0x2103   :  { %v10688_v37 = vpop.f32.mrb[28].mxu1 }
0x2104   :  { %v8713_v4 = vadd.f32 %v10688_v37, %v9472_v45  ;;  %v8704_v2 = vpop.f32.mrb[29].mxu1 }
0x2105   :  { %v8705_v14 = vadd.f32 %v9472_v45, %v8704_v2  ;;  %v10689_v17 = vpop.f32.mrb[30].mxu1 }
0x2106   :  { %v8716_v55 = vadd.f32 %v10689_v17, %v9472_v45  ;;  %v8707_v26 = vpop.f32.mrb[31].mxu1  ;;  %v8725_v8 = vmax.f32 %v8713_v4, 0.0 }
0x2107   :  { %v8708_v27 = vadd.f32 %v9472_v45, %v8707_v26  ;;  %v8723_v40 = vmax.f32 %v8705_v14, 0.0 }
0x2108   :  { %v8726_v56 = vmax.f32 %v8716_v55, 0.0 }
0x2109   :  { %v8724_v18 = vmax.f32 %v8708_v27, 0.0 }
0x210a   :  { %v8730_v63 = vpack.c.bf16 %v8726_v56, %v8725_v8 }
0x210b   :  { %v8729_v51 = vpack.c.bf16 %v8724_v18, %v8723_v40 }
0x210d   :  { %10702 = vmatprep.mubr.msk.bf16.mxu0 %vm4373_vm6, %v8729_v51 }
0x210e   :  { %10703 = vmatmul.mubr.msk.bf16.gmra.mrb[36].mxu0 %vm4373_vm6, %v8730_v63 }
0x21a5   :  { %v10700_v41 = vpop.f32.mrb[32].mxu0 }
0x21a6   :  { %v8827_v60 = vadd.f32 %v10700_v41, %v9488_v43  ;;  %v8818_v47 = vpop.f32.mrb[33].mxu0 }
0x21a7   :  { %v8819_v16 = vadd.f32 %v9488_v43, %v8818_v47  ;;  %v10701_v62 = vpop.f32.mrb[34].mxu0 }
0x21a8   :  { %v8851_v21 = vadd.f32 %v8827_v60, %v13607_v23  ;;  %v8830_v39 = vadd.f32 %v10701_v62, %v9488_v43  ;;  %v8821_v13 = vpop.f32.mrb[35].mxu0 }
0x21a9   :  { %v8822_v24 = vadd.f32 %v9488_v43, %v8821_v13  ;;  %v8849_v25 = vadd.f32 %v8819_v16, %v13599_v19 }
0x21aa   :  { %v8852_v48 = vadd.f32 %v8830_v39, %v13609_v38  ;;  %v8867_v32 = vsel %vm226_vm1, %v8851_v21, 0.0 }
0x21ab   :  { %8868 = vadd.xlane.f32.xlu1 %v8867_v32  ;;  %v8850_v7 = vadd.f32 %v8822_v24, %v13601_v33  ;;  %v8861_v42 = vsel %vm226_vm1, %v8849_v25, 0.0 }
0x21ac   :  { %v8870_v28 = vsel %vm226_vm1, %v8852_v48, 0.0 }
0x21ad   :  { %8871 = vadd.xlane.f32.xlu0 %v8870_v28  ;;  %v8864_v23 = vsel %vm226_vm1, %v8850_v7, 0.0 }
0x21af   :  { %8862 = vadd.xlane.f32.xlu1 %v8861_v42 }
0x21b1   :  { %8865 = vadd.xlane.f32.xlu0 %v8864_v23 }
0x21e1   :  { %v10704_v10 = vpop.f32.mrb[36].mxu0 }
0x21e2   :  { %v8843_v49 = vadd.f32 %v10704_v10, %v9488_v43  ;;  %v8834_v61 = vpop.f32.mrb[37].mxu0 }
0x21e3   :  { %v8835_v19 = vadd.f32 %v9488_v43, %v8834_v61  ;;  %v10705_v54 = vpop.f32.mrb[38].mxu0 }
0x21e4   :  { %v8846_v38 = vadd.f32 %v10705_v54, %v9488_v43  ;;  %v8837_v52 = vpop.f32.mrb[39].mxu0  ;;  %v8855_v33 = vadd.f32 %v8843_v49, %v13624_v3 }
0x21e5   :  { %v8853_v6 = vadd.f32 %v8835_v19, %v13618_v44  ;;  %v8838_v53 = vadd.f32 %v9488_v43, %v8837_v52 }
0x21e6   :  { %v8856_v9 = vadd.f32 %v8846_v38, %v13626_v29  ;;  %v8879_v11 = vsel %vm226_vm1, %v8855_v33, 0.0 }
0x21e7   :  { %v8854_v5 = vadd.f32 %v8838_v53, %v13620_v59  ;;  %v8873_v20 = vsel %vm226_vm1, %v8853_v6, 0.0 }
0x21e8   :  { %8874 = vadd.xlane.f32.xlu1 %v8873_v20  ;;  %v8882_v31 = vsel %vm226_vm1, %v8856_v9, 0.0 }
0x21e9   :  { %v8876_v45 = vsel %vm226_vm1, %v8854_v5, 0.0 }
0x21ea   :  { %8877 = vadd.xlane.f32.xlu0 %v8876_v45 }
0x21ec   :  { %8880 = vadd.xlane.f32.xlu1 %v8879_v11 }
0x21ee   :  { %8883 = vadd.xlane.f32.xlu0 %v8882_v31 }
0x2238   :  { %v8869_v44 = vpop.xlane.xlu1 %8868 }
0x2239   :  { %v8887_v57 = vmul.f32 0.03125, %v8869_v44 }
0x223a   :  { %v8872_v15 = vpop.xlane.xlu0 %8871 }
0x223b   :  { %v13666_v3 = vsub.f32 %v8851_v21, %v8887_v57  ;;  %v8888_v59 = vmul.f32 0.03125, %v8872_v15  ;;  %v13722_v57 = vld [vmem:[%s13788_s15 + $0x1] ss:$0 sm:$0xff] }
0x223c   :  { %v8863_v50 = vpop.xlane.xlu1 %8862 }
0x223d   :  { %v13668_v0 = vsub.f32 %v8852_v48, %v8888_v59  ;;  %v8885_v1 = vmul.f32 0.03125, %v8863_v50  ;;  %v8903_v29 = vmul.f32 %v13666_v3, %v13666_v3  ;;  %v10885_v48 = vld [vmem:[%s13789_s16 + $0x8] sm:$0xff]  }
0x223e   :  { %v8866_v30 = vpop.xlane.xlu0 %8865 }
0x223f   :  { %v13672_v12 = vsub.f32 %v8849_v25, %v8885_v1  ;;  %v8886_v36 = vmul.f32 0.03125, %v8866_v30  ;;  %v8915_v46 = vsel %vm226_vm1, %v8903_v29, 0.0  ;;  %v8904_v58 = vmul.f32 %v13668_v0, %v13668_v0  ;;  %v10884_v25 = vld [vmem:[%s13789_s16] sm:$0xff]  }
0x2240   :  { %8916 = vadd.xlane.f32.xlu1 %v8915_v46  ;;  %10707 = vmatpush3.bf16.msra.mxu1 %v10884_v25 }
0x2241   :  { %v8894_v35 = vsub.f32 %v8850_v7, %v8886_v36  ;;  %v8918_v22 = vsel %vm226_vm1, %v8904_v58, 0.0  ;;  %v8901_v37 = vmul.f32 %v13672_v12, %v13672_v12  ;;  %10708 = vmatprep.subr.bf16.mxu1 %v13822_v34 }
0x2242   :  { %8919 = vadd.xlane.f32.xlu0 %v8918_v22 }
0x2243   :  { %v8909_v4 = vsel %vm226_vm1, %v8901_v37, 0.0  ;;  %v8902_v2 = vmul.f32 %v8894_v35, %v8894_v35 }
0x2244   :  { %8910 = vadd.xlane.f32.xlu1 %v8909_v4  ;;  %10709 = vmatpush3.bf16.msra.mxu1 %v10885_v48 }
0x2245   :  { %v8912_v14 = vsel %vm226_vm1, %v8902_v2, 0.0  ;;  %10714 = vmatprep.subr.bf16.mxu1 %v13822_v34 }
0x2246   :  { %8913 = vadd.xlane.f32.xlu0 %v8912_v14 }
0x2275   :  { %v8875_v17 = vpop.xlane.xlu1 %8874 }
0x2276   :  { %v8889_v55 = vmul.f32 0.03125, %v8875_v17 }
0x2277   :  { %v8878_v26 = vpop.xlane.xlu0 %8877 }
0x2278   :  { %v13682_v27 = vsub.f32 %v8853_v6, %v8889_v55  ;;  %v8890_v8 = vmul.f32 0.03125, %v8878_v26 }
0x2279   :  { %v8881_v56 = vpop.xlane.xlu1 %8880 }
0x227a   :  { %v13684_v40 = vsub.f32 %v8854_v5, %v8890_v8  ;;  %v8891_v18 = vmul.f32 0.03125, %v8881_v56  ;;  %v8905_v63 = vmul.f32 %v13682_v27, %v13682_v27 }
0x227b   :  { %v8884_v51 = vpop.xlane.xlu0 %8883 }
0x227c   :  { %v13688_v43 = vsub.f32 %v8855_v33, %v8891_v18  ;;  %v8892_v41 = vmul.f32 0.03125, %v8884_v51  ;;  %v8921_v60 = vsel %vm226_vm1, %v8905_v63, 0.0  ;;  %v8906_v47 = vmul.f32 %v13684_v40, %v13684_v40 }
0x227d   :  { %8922 = vadd.xlane.f32.xlu1 %v8921_v60 }
0x227e   :  { %v13693_v16 = vsub.f32 %v8856_v9, %v8892_v41  ;;  %v8924_v62 = vsel %vm226_vm1, %v8906_v47, 0.0  ;;  %v8907_v21 = vmul.f32 %v13688_v43, %v13688_v43  ;;  %v13714_v9 = vld [vmem:[%s13787_s14 + $0x1] ss:$0 sm:$0xff] }
0x227f   :  { %8925 = vadd.xlane.f32.xlu0 %v8924_v62 }
0x2280   :  { %v8927_v39 = vsel %vm226_vm1, %v8907_v21, 0.0  ;;  %v8908_v13 = vmul.f32 %v13693_v16, %v13693_v16 }
0x2281   :  { %8928 = vadd.xlane.f32.xlu1 %v8927_v39 }
0x2282   :  { %v8930_v24 = vsel %vm226_vm1, %v8908_v13, 0.0 }
0x2283   :  { %8931 = vadd.xlane.f32.xlu0 %v8930_v24 }
0x22cd   :  { %v8917_v7 = vpop.xlane.xlu1 %8916 }
0x22ce   :  { %v8935_v49 = vmul.f32 0.03125, %v8917_v7 }
0x22cf   :  { %v8920_v32 = vpop.xlane.xlu0 %8919 }
0x22d0   :  { %v8943_v54 = vadd.f32 1e-05, %v8935_v49  ;;  %v8936_v38 = vmul.f32 0.03125, %v8920_v32 }
0x22d1   :  { %v8911_v42 = vpop.xlane.xlu1 %8910 }
0x22d2   :  { %v8933_v10 = vmul.f32 0.03125, %v8911_v42  ;;  %v8944_v52 = vadd.f32 1e-05, %v8936_v38 }
0x22d3   :  { %v8914_v28 = vpop.xlane.xlu0 %8913 }
0x22d4   :  { %v8934_v23 = vmul.f32 0.03125, %v8914_v28  ;;  %v8941_v19 = vadd.f32 1e-05, %v8933_v10 }
0x22d6   :  { %v8942_v61 = vadd.f32 1e-05, %v8934_v23 }
0x22d8   :  { %11190 = vrsqrt.f32 %v8942_v61 }
0x22d9   :  { %11192 = vrsqrt.f32 %v8941_v19 }
0x22da   :  { %11194 = vrsqrt.f32 %v8943_v54 }
0x22db   :  { %11196 = vrsqrt.f32 %v8944_v52 }
0x22e2   :  { %v11191_v6 = vpop.eup %11190 }
0x22e3   :  { %v11193_v53 = vpop.eup %11192  ;;  %v8958_v33 = vmul.f32 %v11191_v6, %v8894_v35 }
0x22e4   :  { %v11195_v5 = vpop.eup %11194  ;;  %v8957_v20 = vmul.f32 %v11193_v53, %v13672_v12 }
0x22e5   :  { %v8959_v45 = vmul.f32 %v11195_v5, %v13666_v3  ;;  %v8972_v11 = vmul.f32 %v13714_v9, %v8958_v33  ;;  %v11197_v31 = vpop.eup %11196 }
0x22e6   :  { %v8971_v44 = vmul.f32 %v13714_v9, %v8957_v20  ;;  %v8960_v59 = vmul.f32 %v11197_v31, %v13668_v0 }
0x22e7   :  { %v8973_v15 = vmul.f32 %v13714_v9, %v8959_v45  ;;  %v8986_v50 = vadd.f32 %v13722_v57, %v8972_v11 }
0x22e8   :  { %v8985_v1 = vadd.f32 %v13722_v57, %v8971_v44  ;;  %v8974_v29 = vmul.f32 %v13714_v9, %v8960_v59 }
0x22e9   :  { %v8987_v3 = vadd.f32 %v13722_v57, %v8973_v15  ;;  %v9000_v30 = vsel %vm226_vm1, %v8986_v50, 0.0 }
0x22ea   :  { %v8993_v12 = vsel %vm226_vm1, %v8985_v1, 0.0  ;;  %v9001_v36 = vrot.slane %v9000_v30, 4  ;;  %v8988_v58 = vadd.f32 %v13722_v57, %v8974_v29 }
0x22eb   :  { %v9007_v46 = vsel %vm226_vm1, %v8987_v3, 0.0  ;;  %v8994_v35 = vrot.slane %v8993_v12, 4 }
0x22ec   :  { %v9008_v22 = vrot.slane %v9007_v46, 4  ;;  %v9002_v0 = vadd.f32 %v9001_v36, %v9000_v30  ;;  %v9014_v4 = vsel %vm226_vm1, %v8988_v58, 0.0 }
0x22ed   :  { %v8995_v2 = vadd.f32 %v8994_v35, %v8993_v12  ;;  %v9015_v56 = vrot.slane %v9014_v4, 4 }
0x22ee   :  { %v9009_v8 = vadd.f32 %v9008_v22, %v9007_v46  ;;  %v9003_v18 = vrot.slane %v9002_v0, 2 }
0x22ef   :  { %v8996_v51 = vrot.slane %v8995_v2, 2  ;;  %v9016_v24 = vadd.f32 %v9015_v56, %v9014_v4 }
0x22f0   :  { %v9010_v39 = vrot.slane %v9009_v8, 2  ;;  %v9004_v13 = vadd.f32 %v9003_v18, %v9002_v0 }
0x22f1   :  { %v8997_v25 = vadd.f32 %v8996_v51, %v8995_v2  ;;  %v9017_v28 = vrot.slane %v9016_v24, 2 }
0x22f2   :  { %v9005_v32 = vrot.slane %v9004_v13, 1  ;;  %v9011_v7 = vadd.f32 %v9010_v39, %v9009_v8 }
0x22f3   :  { %v8998_v42 = vrot.slane %v8997_v25, 1  ;;  %v9018_v54 = vadd.f32 %v9017_v28, %v9016_v24 }
0x22f4   :  { %v9006_v10 = vadd.f32 %v9005_v32, %v9004_v13  ;;  %v9012_v19 = vrot.slane %v9011_v7, 1 }
0x22f5   :  { %v8999_v38 = vadd.f32 %v8998_v42, %v8997_v25  ;;  %v9019_v44 = vrot.slane %v9018_v54, 1 }
0x22f6   :  { %v9051_v33 = vmul.f32 0.125, %v9006_v10  ;;  %v9013_v31 = vadd.f32 %v9012_v19, %v9011_v7 }
0x22f7   :  { %v9020_v58 = vadd.f32 %v9019_v44, %v9018_v54 }
0x22f8   :  { %v9059_v3 = vpack.c.bf16 %v9051_v33, %v9051_v33  ;;  %v9052_v12 = vmul.f32 0.125, %v9013_v31 }
0x22f9   :  { %v9053_v56 = vmul.f32 0.125, %v9020_v58 }
0x22fa   :  { %v9086_v2 = vunpack.c.l.b16 %v9059_v3  ;;  %v9060_v8 = vpack.c.bf16 %v9052_v12, %v9052_v12  ;;  %v9198_v12 = vld [vmem:[#allocation2] sm:$0x1] }
0x22fb   :  { %v9061_v24 = vpack.c.bf16 %v9053_v56, %v9053_v56 }
0x22fc   :  { %v9087_v13 = vunpack.c.l.b16 %v9060_v8 }
0x230a   :  { %v8923_v37 = vpop.xlane.xlu1 %8922 }
0x230b   :  { %v8937_v14 = vmul.f32 0.03125, %v8923_v37 }
0x230c   :  { %v8926_v17 = vpop.xlane.xlu0 %8925 }
0x230d   :  { %v8945_v55 = vadd.f32 1e-05, %v8937_v14  ;;  %v8938_v26 = vmul.f32 0.03125, %v8926_v17 }
0x230e   :  { %v8929_v63 = vpop.xlane.xlu1 %8928 }
0x230f   :  { %11198 = vrsqrt.f32 %v8945_v55  ;;  %v8946_v41 = vadd.f32 1e-05, %v8938_v26  ;;  %v8939_v60 = vmul.f32 0.03125, %v8929_v63 }
0x2310   :  { %v8932_v47 = vpop.xlane.xlu0 %8931 }
0x2311   :  { %11200 = vrsqrt.f32 %v8946_v41  ;;  %v8947_v62 = vadd.f32 1e-05, %v8939_v60  ;;  %v8940_v21 = vmul.f32 0.03125, %v8932_v47 }
0x2313   :  { %11202 = vrsqrt.f32 %v8947_v62  ;;  %v8948_v48 = vadd.f32 1e-05, %v8940_v21 }
0x2315   :  { %11204 = vrsqrt.f32 %v8948_v48 }
0x2319   :  { %v11199_v23 = vpop.eup %11198 }
0x231a   :  { %v8961_v49 = vmul.f32 %v11199_v23, %v13682_v27  ;;  %v9050_v27 = vmul.f32 0.125, %v8999_v38 }
0x231b   :  { %v11201_v61 = vpop.eup %11200 }
0x231c   :  { %v8975_v52 = vmul.f32 %v13714_v9, %v8961_v49  ;;  %v8962_v6 = vmul.f32 %v11201_v61, %v13684_v40  ;;  %v9058_v35 = vpack.c.bf16 %v9050_v27, %v9050_v27  ;;  %v9088_v61 = vunpack.c.l.b16 %v9061_v24 }
0x231d   :  { %v11203_v53 = vpop.eup %11202 }
0x231e   :  { %v8989_v5 = vadd.f32 %v13722_v57, %v8975_v52  ;;  %v8976_v20 = vmul.f32 %v13714_v9, %v8962_v6  ;;  %v8963_v45 = vmul.f32 %v11203_v53, %v13688_v43  ;;  %v9085_v18 = vunpack.c.l.b16 %v9058_v35 }
0x231f   :  { %v11205_v11 = vpop.eup %11204 }
0x2320   :  { %v9021_v15 = vsel %vm226_vm1, %v8989_v5, 0.0  ;;  %v8990_v59 = vadd.f32 %v13722_v57, %v8976_v20  ;;  %v8977_v50 = vmul.f32 %v13714_v9, %v8963_v45  ;;  %v8964_v40 = vmul.f32 %v11205_v11, %v13693_v16 }
0x2321   :  { %v9022_v1 = vrot.slane %v9021_v15, 4 }
0x2322   :  { %v9028_v29 = vsel %vm226_vm1, %v8990_v59, 0.0  ;;  %v8991_v30 = vadd.f32 %v13722_v57, %v8977_v50  ;;  %v8978_v43 = vmul.f32 %v13714_v9, %v8964_v40  ;;  %v9501_v50 = vld [vmem:[%s13790_s17] ss:$0 sm:$0xff]  ;;  %s11247_s17 = smov [#allocation3]  }
0x2323   :  { %v9023_v36 = vadd.f32 %v9022_v1, %v9021_v15  ;;  %v9029_v46 = vrot.slane %v9028_v29, 4  ;;  %s9259_s10 = sshll.u32 %s11247_s17, 4  ;;  %s9260_s10 = int_to_ptr.vmem [resolvable:$true] %s9259_s10 }
0x2324   :  { %v9035_v22 = vsel %vm226_vm1, %v8991_v30, 0.0  ;;  %v8992_v0 = vadd.f32 %v13722_v57, %v8978_v43  ;;  %v9094_v57 = vsel %vm9093_vm7, %v9086_v2, %v9085_v18  ;;  %s11206_s27 = scalar_lea.vmem %s9260_s10, 16  ;;  %p11211_p1 = scmp.lt.s32.totalorder %s9260_s10, %s9260_s10 }
0x2325   :  { %v9024_v37 = vrot.slane %v9023_v36, 2  ;;  %v9030_v4 = vadd.f32 %v9029_v46, %v9028_v29  ;;  %v9036_v16 = vrot.slane %v9035_v22, 4  ;;  %v9096_v28 = vsel %vm9095_vm8, %v9087_v13, %v9094_v57  ;;  %p11207_p0 = scmp.ne.s32.totalorder %s9260_s10, %s11206_s27 }
0x2326   :  { %v9042_v14 = vsel %vm226_vm1, %v8992_v0, 0.0  ;;  %v9098_v6 = vsel %vm9097_vm9, %v9088_v61, %v9096_v28 }
0x2327   :  { %v9025_v17 = vadd.f32 %v9024_v37, %v9023_v36  ;;  %v9031_v55 = vrot.slane %v9030_v4, 2  ;;  %v9037_v26 = vadd.f32 %v9036_v16, %v9035_v22  ;;  %v9043_v9 = vrot.slane %v9042_v14, 4 }
0x2328   :  { %v11246_v36 = vmov 0   ;;  %v9204_v22 = vlaneseq }
0x2329   :  { %v9026_v63 = vrot.slane %v9025_v17, 1  ;;  %v9032_v51 = vadd.f32 %v9031_v55, %v9030_v4  ;;  %v9038_v41 = vrot.slane %v9037_v26, 2  ;;  %v9044_v60 = vadd.f32 %v9043_v9, %v9042_v14  ;;  %10858 = vset.pattern.permute.xlu0 %v11246_v36 }
0x232a   :  { %9201 = vperm.xlu0 %10858, %v9198_v12   ;;  %v9205_v0 = vshrl.u32 %v9204_v22, 7 }
0x232b   :  { %v9027_v47 = vadd.f32 %v9026_v63, %v9025_v17  ;;  %v9033_v62 = vrot.slane %v9032_v51, 1  ;;  %v9039_v21 = vadd.f32 %v9038_v41, %v9037_v26  ;;  %v9045_v39 = vrot.slane %v9044_v60, 2 }
0x232c   :  { %v9206_v37 = vsub.s32 0, %v9205_v0 }
0x232d   :  { %v9054_v25 = vmul.f32 0.125, %v9027_v47  ;;  %v9034_v48 = vadd.f32 %v9033_v62, %v9032_v51  ;;  %v9040_v32 = vrot.slane %v9039_v21, 1  ;;  %v9046_v7 = vadd.f32 %v9045_v39, %v9044_v60 }
0x232f   :  { %v9062_v42 = vpack.c.bf16 %v9054_v25, %v9054_v25  ;;  %v9055_v23 = vmul.f32 0.125, %v9034_v48  ;;  %v9041_v10 = vadd.f32 %v9040_v32, %v9039_v21  ;;  %v9047_v49 = vrot.slane %v9046_v7, 1 }
0x2331   :  { %v9089_v19 = vunpack.c.l.b16 %v9062_v42  ;;  %v9063_v54 = vpack.c.bf16 %v9055_v23, %v9055_v23  ;;  %v9056_v38 = vmul.f32 0.125, %v9041_v10  ;;  %v9048_v52 = vadd.f32 %v9047_v49, %v9046_v7 }
0x2333   :  { %v9100_v53 = vsel %vm9099_vm10, %v9089_v19, %v9098_v6  ;;  %v9090_v33 = vunpack.c.l.b16 %v9063_v54  ;;  %v9064_v5 = vpack.c.bf16 %v9056_v38, %v9056_v38  ;;  %v9057_v20 = vmul.f32 0.125, %v9048_v52 }
0x2335   :  { %v9102_v45 = vsel %vm9101_vm11, %v9090_v33, %v9100_v53  ;;  %v9091_v11 = vunpack.c.l.b16 %v9064_v5  ;;  %v9065_v31 = vpack.c.bf16 %v9057_v20, %v9057_v20 }
0x2337   :  { %v9104_v44 = vsel %vm9103_vm12, %v9091_v11, %v9102_v45  ;;  %v9092_v27 = vunpack.c.l.b16 %v9065_v31 }
0x2339   :  { %v9106_v15 = vsel %vm9105_vm13, %v9092_v27, %v9104_v44 }
0x233a   :  { %v9107_v59 = vpack.c.b16 %v9106_v15, %v9106_v15 }
0x233c   :  { %10711 = vmatmul.mubr.msk.bf16.vlgmr.msra.gmra.mrb[32].mxu1 %vm226_vm1, %v9107_v59 }
0x233d   :  { %10716 = vmatprep.mubr.msk.bf16.mxu1 %vm11231_vm2, %v13822_v34  ;;  %v9164_v34 = vld [vmem:[%s13791_s18] sm:$0x1]  ;;  %s11210_s18 = scalar_lea.vmem %s9260_s10, 32 }
0x233e   :  { %p11212_p2 = scmp.lt.s32.totalorder %s11210_s18, %s11206_s27 }
0x2340   :  { %p11213_p3 = por %p11212_p2, %p11211_p1 }
0x2342   :  { %p11214_p4 = pnand %p11213_p3, %p11207_p0 }
0x23a9   :  { %v9202_v4 = vpop.permute.xlu0 %9201 }
0x23aa   :  { %v9207_v16 = vrot.slane %v9202_v4, %v9206_v37 }
0x240f   :  { %v9157_v40 = vpop.f32.mrb[32].mxu1 }
0x2410   :  { %v9158_v1 = vadd.f32 %v9501_v50, %v9157_v40  ;;  %v10712_v3 = vpop.f32.mrb[33].mxu1 }
0x2411   :  { %v9160_v29 = vpop.f32.mrb[34].mxu1 }
0x2412   :  { %v9163_v30 = vmax.f32 %v9158_v1, 0.0  ;;  %v10713_v43 = vpop.f32.mrb[35].mxu1 }
0x2414   :  { %9165 = vxpose.xlu1.b32.start.end [1/1] (short) (narrow) %v9163_v30, 16 }
0x2494   :  { %v9181_v46 = vpop.trf.xlu1 }
0x2498   :  { %v9182_v58 = vpop.trf.xlu1 }
0x2499   :  { %v9197_v35 = vpack.c.bf16 %v9182_v58, %v9181_v46 }
0x249b   :  { %10715 = vmatpush3.bf16.msra.mxu1 %v9197_v35 }
0x249e   :  { %10717 = vmatmul.mubr.msk.bf16.vlgmr.msra.gmra.mrb[36].mxu1 %vm112_vm0, %v9164_v34 }
0x2571   :  { %v9245_v2 = vpop.f32.mrb[36].mxu1 }
0x2572   :  { %v10718_v14 = vpop.f32.mrb[37].mxu1  ;;  %v9246_v17 = vadd.f32 %v9245_v2, %v9207_v16 }
0x2573   :  { %v9248_v55 = vpop.f32.mrb[38].mxu1 }
0x2574   :  { %v10719_v26 = vpop.f32.mrb[39].mxu1  ;;  %9252 = vst.msk [vmem:[#allocation3] sm:$0x1] %vm9251_vm14, %v9246_v17 }
0x2575   :  { %11217 = shalt.err (!%p11214_p4)
}
0x2576   :  { %s11218_s25 = scalar_lea.hbm %s13793_s20, 16 }
0x2577   :  { %p11219_p5 = scmp.ne.s32.totalorder %s13793_s20, %s11218_s25  ;;  %p11222_p6 = scmp.lt.u32.totalorder %s11218_s25, %s13793_s20 }
0x2579   :  { %p11224_p7 = pnand %p11222_p6, %p11219_p5 }
0x257b   :  { %11227 = shalt.err (!%p11224_p7)
}
0x257c   :  { %9262 = dma.vmem_to_hbm [thread:$0]  %s9260_s10, 16, %s13793_s20, [#allocation4]  }
0x257d   :  { %11228 = dma.done.wait [#allocation4], 16  }
0x257e   :  { %11229 = vsyncadd [#allocation4], 4294967280 }
0x257f   :  { %9266 = vsyncpa [#allocation4], 1 }

</bundles_post_ra>
